<compile_context>
chip_gen: v6e
topology: v6e:2x2x1
jax: 0.10.0
libtpu: 0.0.40
codegen_flags: <defaults>
</compile_context>

<pallas_src>
import math

import jax
import jax.numpy as jnp
from jax.experimental import pallas as pl
from jax.experimental.pallas import tpu as pltpu

# ---- hyper-parameters: MULTModel(input_dim=32, output_dim=32) ----
D = 32                    # input_dim == d_a == d_v
OUT_DIM = 32              # output_dim; last_out1 (Linear(D, D)) after last_out2 requires == d_a
NUM_HEADS = 4
HEAD_DIM = D // NUM_HEADS
NUM_LAYERS = 6
EPS = 1e-5
SCALING = HEAD_DIM ** -0.5
EMBED_SCALE = math.sqrt(D)

# ---- demo problem size (small, consistent with the module) ----
B = 2                     # batch
S = 8                     # sequence length
BS = B * S                # batch-flattened rows


# ---------------------------------------------------------------------------
# in-kernel helpers
# ---------------------------------------------------------------------------
def _layernorm(x, g, b):
    mu = jnp.mean(x, axis=-1, keepdims=True)
    var = jnp.mean((x - mu) * (x - mu), axis=-1, keepdims=True)
    return (x - mu) * jax.lax.rsqrt(var + EPS) * g + b


# ---------------------------------------------------------------------------
# Fused Pallas kernel: full 6-layer cross-modal encoder + final LN + last-step extraction.
# Grid axis (size 2) = which encoder (0: trans_a_with_v, 1: trans_v_with_a).
# All activations stay in VMEM/vregs for the whole stack.
# ---------------------------------------------------------------------------
def encoder_kernel(q_ref, kv_ref, nbias_ref,
                   ln0g_ref, ln0b_ref,
                   wq_ref, bq_ref, wk_ref, bk_ref, wv_ref, bv_ref,
                   wo_ref, bo_ref,
                   ln1g_ref, ln1b_ref,
                   w1_ref, b1_ref, w2_ref, b2_ref,
                   lnfg_ref, lnfb_ref,
                   o_ref):
    x = q_ref[0]            # [B*S, D]  query stream (batch-flattened)
    kv = kv_ref[0]          # [B*S, D]  key/value stream (other modality)
    nbias = nbias_ref[...]  # [B*S, B*S] 0 within a batch element, -1e30 across batch elements

    for l in range(NUM_LAYERS):           # static unroll: 6 layers, weights already in VMEM
        g0 = ln0g_ref[0, l]
        b0 = ln0b_ref[0, l]
        xn = _layernorm(x, g0, b0)
        kvn = _layernorm(kv, g0, b0)      # shared LN0 on K/V, computed once per layer

        q = (jnp.dot(xn, wq_ref[0, l], preferred_element_type=jnp.float32)
             + bq_ref[0, l]) * SCALING
        k = jnp.dot(kvn, wk_ref[0, l], preferred_element_type=jnp.float32) + bk_ref[0, l]
        v = jnp.dot(kvn, wv_ref[0, l], preferred_element_type=jnp.float32) + bv_ref[0, l]

        # multi-head attention: both batch elements in one matmul per head; the additive
        # cross-batch bias makes the softmax per-batch-exact (masked entries -> exp() == 0).
        heads = []
        for h in range(NUM_HEADS):
            lo, hi = h * HEAD_DIM, (h + 1) * HEAD_DIM
            s = jnp.dot(q[:, lo:hi], k[:, lo:hi].T,
                        preferred_element_type=jnp.float32) + nbias       # [BS, BS]
            s = s - jnp.max(s, axis=-1, keepdims=True)
            p = jnp.exp(s)
            p = p * pl.reciprocal(jnp.sum(p, axis=-1, keepdims=True), approx=True)
            heads.append(jnp.dot(p, v[:, lo:hi], preferred_element_type=jnp.float32))
        attn = jnp.concatenate(heads, axis=-1)                            # [BS, D]
        attn = jnp.dot(attn, wo_ref[0, l], preferred_element_type=jnp.float32) + bo_ref[0, l]
        x = x + attn                                                      # residual (eval mode)

        # feed-forward block
        xn = _layernorm(x, ln1g_ref[0, l], ln1b_ref[0, l])
        h1 = jnp.maximum(
            jnp.dot(xn, w1_ref[0, l], preferred_element_type=jnp.float32) + b1_ref[0, l], 0.0)
        h2 = jnp.dot(h1, w2_ref[0, l], preferred_element_type=jnp.float32) + b2_ref[0, l]
        x = x + h2

    # last timestep of each batch element, then final LayerNorm (LN is per-token, so
    # extract-then-LN == LN-then-extract of the reference).
    last = jnp.concatenate(
        [x[b * S + S - 1: b * S + S, :] for b in range(B)], axis=0)       # [B, D]
    o_ref[0] = _layernorm(last, lnfg_ref[0], lnfb_ref[0])


LAYER_PARAM_NAMES = ("ln0_g", "ln0_b", "wq", "bq", "wk", "bk", "wv", "bv",
                     "wo", "bo", "ln1_g", "ln1_b", "w1", "b1", "w2", "b2")


def _stacked_spec(arr):
    """BlockSpec selecting encoder `e`'s slab of a [2, ...] stacked parameter."""
    nd = arr.ndim
    return pl.BlockSpec((1,) + arr.shape[1:],
                        lambda e, _nd=nd: (e,) + (0,) * (_nd - 1))


def run_encoders(emb_stack, nbias, ep):
    """emb_stack: [2, B*S, D] with index 0 = embedded audio, 1 = embedded vision.
       Returns [2, B, D]: index 0 = last_h_a (trans_a_with_v), 1 = last_h_v (trans_v_with_a)."""
    weights = [ep[n] for n in LAYER_PARAM_NAMES] + [ep["lnf_g"], ep["lnf_b"]]
    in_specs = ([pl.BlockSpec((1, BS, D), lambda e: (e, 0, 0)),      # query stream
                 pl.BlockSpec((1, BS, D), lambda e: (1 - e, 0, 0)),  # kv = other modality
                 pl.BlockSpec((BS, BS), lambda e: (0, 0))]           # cross-batch mask
                + [_stacked_spec(w) for w in weights])
    return pl.pallas_call(
        encoder_kernel,
        out_shape=jax.ShapeDtypeStruct((2, B, D), jnp.float32),
        grid=(2,),
        in_specs=in_specs,
        out_specs=pl.BlockSpec((1, B, D), lambda e: (e, 0, 0)),
        compiler_params=pltpu.CompilerParams(
            dimension_semantics=("parallel",)),     # v7x: one encoder per TensorCore
    )(emb_stack, emb_stack, nbias, *weights)


# ---------------------------------------------------------------------------
# Pallas kernel: output head  (concat -> last_out2 -> relu -> last_out1)
# ---------------------------------------------------------------------------
def head_kernel(last_ref, w2o_ref, b2o_ref, w1o_ref, b1o_ref, proj_ref, cat_ref):
    last_h_a = last_ref[0]                                # [B, D]
    last_h_v = last_ref[1]                                # [B, D]
    cat = jnp.concatenate([last_h_v, last_h_a], axis=1)   # [B, 2D] == last_hs
    cat_ref[...] = cat
    t = jnp.maximum(
        jnp.dot(cat, w2o_ref[...], preferred_element_type=jnp.float32) + b2o_ref[...], 0.0)
    proj_ref[...] = jnp.dot(t, w1o_ref[...], preferred_element_type=jnp.float32) + b1o_ref[...]


def head(enc_out, hp):
    return pl.pallas_call(
        head_kernel,
        out_shape=(jax.ShapeDtypeStruct((B, OUT_DIM), jnp.float32),
                   jax.ShapeDtypeStruct((B, 2 * D), jnp.float32)),
    )(enc_out, hp["w2o"], hp["b2o"], hp["w1o"], hp["b1o"])


# ---------------------------------------------------------------------------
# JAX glue: sinusoidal positional embedding + embed scaling (cheap table lookup)
# ---------------------------------------------------------------------------
def _sinusoidal_table(num_pos, dim, padding_idx=0):
    half = dim // 2
    log_step = math.log(10000.0) / (half - 1)
    freqs = jnp.exp(jnp.arange(half, dtype=jnp.float32) * -log_step)
    args = jnp.arange(num_pos, dtype=jnp.float32)[:, None] * freqs[None, :]
    table = jnp.concatenate([jnp.sin(args), jnp.cos(args)], axis=1)     # dim is even
    return table.at[padding_idx].set(0.0)


def embed(x):
    # x: [B, S, D]. fairseq make_positions: positions = cumsum(non-pad mask) * mask
    # (padding token = feature 0 == 0, padding_idx = 0).
    bsz, seq, _ = x.shape
    mask = (x[:, :, 0] != 0.0).astype(jnp.int32)
    pos = jnp.cumsum(mask, axis=1) * mask
    table = _sinusoidal_table(seq + 1, D)
    return EMBED_SCALE * x + table[pos]


# ---------------------------------------------------------------------------
# Full forward
# ---------------------------------------------------------------------------
def mult_forward(params, x_v, x_a):
    # orig_d_a == d_a and orig_d_v == d_v  =>  align_a / align_v are skipped.
    emb_a = embed(x_a).reshape(BS, D)
    emb_v = embed(x_v).reshape(BS, D)
    emb_stack = jnp.stack([emb_a, emb_v])                    # [2, B*S, D]
    rid = jnp.arange(BS) // S
    nbias = jnp.where(rid[:, None] == rid[None, :], 0.0, -1e30).astype(jnp.float32)

    enc_out = run_encoders(emb_stack, nbias, params["enc"])  # [2, B, D]: (last_h_a, last_h_v)
    last_ha_proj, last_hs = head(enc_out, params["head"])
    return last_ha_proj, last_hs


# ---------------------------------------------------------------------------
# Deterministic parameter initialization (synthetic; shapes per the module __init__,
# stacked with a leading [encoder=2, layer=6] axis for the fused kernel)
# ---------------------------------------------------------------------------
def _uniform(key, shape, bound):
    return jax.random.uniform(key, shape, jnp.float32, -bound, bound)


def init_params(key):
    ks = jax.random.split(key, 16)
    bd = 1.0 / math.sqrt(D)
    b4d = 1.0 / math.sqrt(4 * D)
    b2d = 1.0 / math.sqrt(2 * D)
    E, L = 2, NUM_LAYERS
    enc = dict(
        ln0_g=jnp.ones((E, L, 1, D), jnp.float32),
        ln0_b=jnp.zeros((E, L, 1, D), jnp.float32),
        wq=_uniform(ks[0], (E, L, D, D), bd), bq=_uniform(ks[1], (E, L, 1, D), bd),
        wk=_uniform(ks[2], (E, L, D, D), bd), bk=_uniform(ks[3], (E, L, 1, D), bd),
        wv=_uniform(ks[4], (E, L, D, D), bd), bv=_uniform(ks[5], (E, L, 1, D), bd),
        wo=_uniform(ks[6], (E, L, D, D), bd), bo=_uniform(ks[7], (E, L, 1, D), bd),
        ln1_g=jnp.ones((E, L, 1, D), jnp.float32),
        ln1_b=jnp.zeros((E, L, 1, D), jnp.float32),
        w1=_uniform(ks[8], (E, L, D, 4 * D), bd), b1=_uniform(ks[9], (E, L, 1, 4 * D), bd),
        w2=_uniform(ks[10], (E, L, 4 * D, D), b4d), b2=_uniform(ks[11], (E, L, 1, D), b4d),
        lnf_g=jnp.ones((E, 1, D), jnp.float32),
        lnf_b=jnp.zeros((E, 1, D), jnp.float32),
    )
    headp = dict(
        w2o=_uniform(ks[12], (2 * D, OUT_DIM), b2d),   # last_out2: Linear(2*d_a, output_dim)
        b2o=_uniform(ks[13], (1, OUT_DIM), b2d),
        w1o=_uniform(ks[14], (D, D), bd),              # last_out1: Linear(d_a, d_a)
        b1o=_uniform(ks[15], (1, D), bd),
    )
    return dict(enc=enc, head=headp)


# ---------------------------------------------------------------------------
if __name__ == "__main__":
    key = jax.random.PRNGKey(0)
    k_params, k_v, k_a = jax.random.split(key, 3)
    params = init_params(k_params)

    x_v = jax.random.normal(k_v, (B, S, D), jnp.float32)   # vision  [batch, seq, feat]
    x_a = jax.random.normal(k_a, (B, S, D), jnp.float32)   # audio   [batch, seq, feat]

    fwd = jax.jit(mult_forward)
    last_ha_proj, last_hs = fwd(params, x_v, x_a)
    jax.block_until_ready((last_ha_proj, last_hs))

    assert last_ha_proj.shape == (B, OUT_DIM)
    assert last_hs.shape == (B, 2 * D)
    assert jnp.all(jnp.isfinite(last_ha_proj)) and jnp.all(jnp.isfinite(last_hs))
    print("KERNEL_OK")
</pallas_src>

<mosaic_0001>
module attributes {stable_mosaic.version = 11 : i64} {
  func.func @head_kernel(%arg0: memref<2x2x32xf32, #tpu.memory_space<vmem>>, %arg1: memref<64x32xf32, #tpu.memory_space<vmem>>, %arg2: memref<1x32xf32, #tpu.memory_space<vmem>>, %arg3: memref<32x32xf32, #tpu.memory_space<vmem>>, %arg4: memref<1x32xf32, #tpu.memory_space<vmem>>, %arg5: memref<2x32xf32, #tpu.memory_space<vmem>>, %arg6: memref<2x64xf32, #tpu.memory_space<vmem>>) attributes {dimension_semantics = [], scalar_prefetch = 0 : i64, scratch_operands = 0 : i64, tpu.core_type = #tpu.core_type<tc>} {
    %c0 = arith.constant 0 : index
    %c0_0 = arith.constant 0 : index
    %c0_1 = arith.constant 0 : index
    %0 = vector.load %arg0[%c0, %c0_0, %c0_1] : memref<2x2x32xf32, #tpu.memory_space<vmem>>, vector<1x2x32xf32>
    %1 = vector.shape_cast %0 : vector<1x2x32xf32> to vector<2x32xf32>
    %c1 = arith.constant 1 : index
    %c0_2 = arith.constant 0 : index
    %c0_3 = arith.constant 0 : index
    %2 = vector.load %arg0[%c1, %c0_2, %c0_3] : memref<2x2x32xf32, #tpu.memory_space<vmem>>, vector<1x2x32xf32>
    %3 = vector.shape_cast %2 : vector<1x2x32xf32> to vector<2x32xf32>
    %4 = tpu.concatenate %3, %1 in 1 : vector<2x32xf32>, vector<2x32xf32> -> vector<2x64xf32>
    %c0_4 = arith.constant 0 : index
    %c0_5 = arith.constant 0 : index
    %5 = vector.load %arg6[%c0_4, %c0_5] : memref<2x64xf32, #tpu.memory_space<vmem>>, vector<2x64xf32>
    tpu.vector_store %arg6[%c0_4, %c0_5], %4 {strides = array<i32>} : memref<2x64xf32, #tpu.memory_space<vmem>>, vector<2x64xf32>,
    %c0_6 = arith.constant 0 : index
    %c0_7 = arith.constant 0 : index
    %6 = vector.load %arg1[%c0_6, %c0_7] : memref<64x32xf32, #tpu.memory_space<vmem>>, vector<64x32xf32>
    %cst = arith.constant dense<0.000000e+00> : vector<2x32xf32>
    %7 = tpu.matmul %4, %6, %cst {dimension_numbers = #tpu.dot_dimension_numbers<[1], [0], [0], [1], [0, 0, 1, 1], [], []>} : vector<2x64xf32>, vector<64x32xf32>, vector<2x32xf32> -> vector<2x32xf32>
    %c0_8 = arith.constant 0 : index
    %c0_9 = arith.constant 0 : index
    %8 = vector.load %arg2[%c0_8, %c0_9] : memref<1x32xf32, #tpu.memory_space<vmem>>, vector<1x32xf32>
    %9 = vector.broadcast %8 : vector<1x32xf32> to vector<2x32xf32>
    %10 = arith.addf %7, %9 : vector<2x32xf32>
    %cst_10 = arith.constant 0.000000e+00 : f32
    %11 = vector.broadcast %cst_10 : f32 to vector<2x32xf32>
    %12 = arith.maximumf %10, %11 : vector<2x32xf32>
    %c0_11 = arith.constant 0 : index
    %c0_12 = arith.constant 0 : index
    %13 = vector.load %arg3[%c0_11, %c0_12] : memref<32x32xf32, #tpu.memory_space<vmem>>, vector<32x32xf32>
    %cst_13 = arith.constant dense<0.000000e+00> : vector<2x32xf32>
    %14 = tpu.matmul %12, %13, %cst_13 {dimension_numbers = #tpu.dot_dimension_numbers<[1], [0], [0], [1], [0, 0, 1, 1], [], []>} : vector<2x32xf32>, vector<32x32xf32>, vector<2x32xf32> -> vector<2x32xf32>
    %c0_14 = arith.constant 0 : index
    %c0_15 = arith.constant 0 : index
    %15 = vector.load %arg4[%c0_14, %c0_15] : memref<1x32xf32, #tpu.memory_space<vmem>>, vector<1x32xf32>
    %16 = vector.broadcast %15 : vector<1x32xf32> to vector<2x32xf32>
    %17 = arith.addf %14, %16 : vector<2x32xf32>
    %c0_16 = arith.constant 0 : index
    %c0_17 = arith.constant 0 : index
    %18 = vector.load %arg5[%c0_16, %c0_17] : memref<2x32xf32, #tpu.memory_space<vmem>>, vector<2x32xf32>
    tpu.vector_store %arg5[%c0_16, %c0_17], %17 {strides = array<i32>} : memref<2x32xf32, #tpu.memory_space<vmem>>, vector<2x32xf32>,
    return
  }
}

module attributes {stable_mosaic.version = 11 : i64} {
  func.func @encoder_kernel(%arg0: i32, %arg1: memref<1x16x32xf32, #tpu.memory_space<vmem>>, %arg2: memref<1x16x32xf32, #tpu.memory_space<vmem>>, %arg3: memref<16x16xf32, #tpu.memory_space<vmem>>, %arg4: memref<1x6x1x32xf32, #tpu.memory_space<vmem>>, %arg5: memref<1x6x1x32xf32, #tpu.memory_space<vmem>>, %arg6: memref<1x6x32x32xf32, #tpu.memory_space<vmem>>, %arg7: memref<1x6x1x32xf32, #tpu.memory_space<vmem>>, %arg8: memref<1x6x32x32xf32, #tpu.memory_space<vmem>>, %arg9: memref<1x6x1x32xf32, #tpu.memory_space<vmem>>, %arg10: memref<1x6x32x32xf32, #tpu.memory_space<vmem>>, %arg11: memref<1x6x1x32xf32, #tpu.memory_space<vmem>>, %arg12: memref<1x6x32x32xf32, #tpu.memory_space<vmem>>, %arg13: memref<1x6x1x32xf32, #tpu.memory_space<vmem>>, %arg14: memref<1x6x1x32xf32, #tpu.memory_space<vmem>>, %arg15: memref<1x6x1x32xf32, #tpu.memory_space<vmem>>, %arg16: memref<1x6x32x128xf32, #tpu.memory_space<vmem>>, %arg17: memref<1x6x1x128xf32, #tpu.memory_space<vmem>>, %arg18: memref<1x6x128x32xf32, #tpu.memory_space<vmem>>, %arg19: memref<1x6x1x32xf32, #tpu.memory_space<vmem>>, %arg20: memref<1x1x32xf32, #tpu.memory_space<vmem>>, %arg21: memref<1x1x32xf32, #tpu.memory_space<vmem>>, %arg22: memref<1x2x32xf32, #tpu.memory_space<vmem>>) attributes {dimension_semantics = [#tpu.dimension_semantics<parallel>], iteration_bounds = array<i64: 2>, scalar_prefetch = 0 : i64, scratch_operands = 0 : i64, tpu.core_type = #tpu.core_type<tc>, window_params = [{transform_indices = @transform_0, window_bounds = array<i64: 1, 16, 32>}, {transform_indices = @transform_1, window_bounds = array<i64: 1, 16, 32>}, {pipeline_mode = #tpu.pipeline_mode<synchronous>, transform_indices = @transform_2, window_bounds = array<i64: 16, 16>}, {transform_indices = @transform_3, window_bounds = array<i64: 1, 6, 1, 32>}, {transform_indices = @transform_4, window_bounds = array<i64: 1, 6, 1, 32>}, {transform_indices = @transform_5, window_bounds = array<i64: 1, 6, 32, 32>}, {transform_indices = @transform_6, window_bounds = array<i64: 1, 6, 1, 32>}, {transform_indices = @transform_7, window_bounds = array<i64: 1, 6, 32, 32>}, {transform_indices = @transform_8, window_bounds = array<i64: 1, 6, 1, 32>}, {transform_indices = @transform_9, window_bounds = array<i64: 1, 6, 32, 32>}, {transform_indices = @transform_10, window_bounds = array<i64: 1, 6, 1, 32>}, {transform_indices = @transform_11, window_bounds = array<i64: 1, 6, 32, 32>}, {transform_indices = @transform_12, window_bounds = array<i64: 1, 6, 1, 32>}, {transform_indices = @transform_13, window_bounds = array<i64: 1, 6, 1, 32>}, {transform_indices = @transform_14, window_bounds = array<i64: 1, 6, 1, 32>}, {transform_indices = @transform_15, window_bounds = array<i64: 1, 6, 32, 128>}, {transform_indices = @transform_16, window_bounds = array<i64: 1, 6, 1, 128>}, {transform_indices = @transform_17, window_bounds = array<i64: 1, 6, 128, 32>}, {transform_indices = @transform_18, window_bounds = array<i64: 1, 6, 1, 32>}, {transform_indices = @transform_19, window_bounds = array<i64: 1, 1, 32>}, {transform_indices = @transform_20, window_bounds = array<i64: 1, 1, 32>}, {transform_indices = @transform_21, window_bounds = array<i64: 1, 2, 32>}]} {
    %c0 = arith.constant 0 : index
    %c0_0 = arith.constant 0 : index
    %c0_1 = arith.constant 0 : index
    %0 = vector.load %arg1[%c0, %c0_0, %c0_1] : memref<1x16x32xf32, #tpu.memory_space<vmem>>, vector<1x16x32xf32>
    %1 = vector.shape_cast %0 : vector<1x16x32xf32> to vector<16x32xf32>
    %c0_2 = arith.constant 0 : index
    %c0_3 = arith.constant 0 : index
    %c0_4 = arith.constant 0 : index
    %2 = vector.load %arg2[%c0_2, %c0_3, %c0_4] : memref<1x16x32xf32, #tpu.memory_space<vmem>>, vector<1x16x32xf32>
    %3 = vector.shape_cast %2 : vector<1x16x32xf32> to vector<16x32xf32>
    %c0_5 = arith.constant 0 : index
    %c0_6 = arith.constant 0 : index
    %4 = vector.load %arg3[%c0_5, %c0_6] : memref<16x16xf32, #tpu.memory_space<vmem>>, vector<16x16xf32>
    %c0_7 = arith.constant 0 : index
    %c0_8 = arith.constant 0 : index
    %c0_9 = arith.constant 0 : index
    %c0_10 = arith.constant 0 : index
    %5 = vector.load %arg4[%c0_7, %c0_8, %c0_9, %c0_10] : memref<1x6x1x32xf32, #tpu.memory_space<vmem>>, vector<1x1x1x32xf32>
    %6 = vector.shape_cast %5 : vector<1x1x1x32xf32> to vector<1x32xf32>
    %c0_11 = arith.constant 0 : index
    %c0_12 = arith.constant 0 : index
    %c0_13 = arith.constant 0 : index
    %c0_14 = arith.constant 0 : index
    %7 = vector.load %arg5[%c0_11, %c0_12, %c0_13, %c0_14] : memref<1x6x1x32xf32, #tpu.memory_space<vmem>>, vector<1x1x1x32xf32>
    %8 = vector.shape_cast %7 : vector<1x1x1x32xf32> to vector<1x32xf32>
    %cst = arith.constant dense<0.000000e+00> : vector<16xf32>
    %9 = vector.multi_reduction <add>, %1, %cst [1] : vector<16x32xf32> to vector<16xf32>
    %10 = vector.shape_cast %9 : vector<16xf32> to vector<16x1xf32>
    %cst_15 = arith.constant 3.200000e+01 : f32
    %11 = vector.broadcast %cst_15 : f32 to vector<16x1xf32>
    %12 = arith.divf %10, %11 : vector<16x1xf32>
    %13 = vector.broadcast %12 : vector<16x1xf32> to vector<16x32xf32>
    %14 = arith.subf %1, %13 : vector<16x32xf32>
    %15 = vector.broadcast %12 : vector<16x1xf32> to vector<16x32xf32>
    %16 = arith.subf %1, %15 : vector<16x32xf32>
    %17 = arith.mulf %14, %16 : vector<16x32xf32>
    %cst_16 = arith.constant dense<0.000000e+00> : vector<16xf32>
    %18 = vector.multi_reduction <add>, %17, %cst_16 [1] : vector<16x32xf32> to vector<16xf32>
    %19 = vector.shape_cast %18 : vector<16xf32> to vector<16x1xf32>
    %cst_17 = arith.constant 3.200000e+01 : f32
    %20 = vector.broadcast %cst_17 : f32 to vector<16x1xf32>
    %21 = arith.divf %19, %20 : vector<16x1xf32>
    %22 = vector.broadcast %12 : vector<16x1xf32> to vector<16x32xf32>
    %23 = arith.subf %1, %22 : vector<16x32xf32>
    %cst_18 = arith.constant 9.99999974E-6 : f32
    %24 = vector.broadcast %cst_18 : f32 to vector<16x1xf32>
    %25 = arith.addf %21, %24 : vector<16x1xf32>
    %26 = math.rsqrt %25 : vector<16x1xf32>
    %27 = vector.broadcast %26 : vector<16x1xf32> to vector<16x32xf32>
    %28 = arith.mulf %23, %27 : vector<16x32xf32>
    %29 = vector.broadcast %6 : vector<1x32xf32> to vector<16x32xf32>
    %30 = arith.mulf %28, %29 : vector<16x32xf32>
    %31 = vector.broadcast %8 : vector<1x32xf32> to vector<16x32xf32>
    %32 = arith.addf %30, %31 : vector<16x32xf32>
    %cst_19 = arith.constant dense<0.000000e+00> : vector<16xf32>
    %33 = vector.multi_reduction <add>, %3, %cst_19 [1] : vector<16x32xf32> to vector<16xf32>
    %34 = vector.shape_cast %33 : vector<16xf32> to vector<16x1xf32>
    %cst_20 = arith.constant 3.200000e+01 : f32
    %35 = vector.broadcast %cst_20 : f32 to vector<16x1xf32>
    %36 = arith.divf %34, %35 : vector<16x1xf32>
    %37 = vector.broadcast %36 : vector<16x1xf32> to vector<16x32xf32>
    %38 = arith.subf %3, %37 : vector<16x32xf32>
    %39 = vector.broadcast %36 : vector<16x1xf32> to vector<16x32xf32>
    %40 = arith.subf %3, %39 : vector<16x32xf32>
    %41 = arith.mulf %38, %40 : vector<16x32xf32>
    %cst_21 = arith.constant dense<0.000000e+00> : vector<16xf32>
    %42 = vector.multi_reduction <add>, %41, %cst_21 [1] : vector<16x32xf32> to vector<16xf32>
    %43 = vector.shape_cast %42 : vector<16xf32> to vector<16x1xf32>
    %cst_22 = arith.constant 3.200000e+01 : f32
    %44 = vector.broadcast %cst_22 : f32 to vector<16x1xf32>
    %45 = arith.divf %43, %44 : vector<16x1xf32>
    %46 = vector.broadcast %36 : vector<16x1xf32> to vector<16x32xf32>
    %47 = arith.subf %3, %46 : vector<16x32xf32>
    %cst_23 = arith.constant 9.99999974E-6 : f32
    %48 = vector.broadcast %cst_23 : f32 to vector<16x1xf32>
    %49 = arith.addf %45, %48 : vector<16x1xf32>
    %50 = math.rsqrt %49 : vector<16x1xf32>
    %51 = vector.broadcast %50 : vector<16x1xf32> to vector<16x32xf32>
    %52 = arith.mulf %47, %51 : vector<16x32xf32>
    %53 = vector.broadcast %6 : vector<1x32xf32> to vector<16x32xf32>
    %54 = arith.mulf %52, %53 : vector<16x32xf32>
    %55 = vector.broadcast %8 : vector<1x32xf32> to vector<16x32xf32>
    %56 = arith.addf %54, %55 : vector<16x32xf32>
    %c0_24 = arith.constant 0 : index
    %c0_25 = arith.constant 0 : index
    %c0_26 = arith.constant 0 : index
    %c0_27 = arith.constant 0 : index
    %57 = vector.load %arg6[%c0_24, %c0_25, %c0_26, %c0_27] : memref<1x6x32x32xf32, #tpu.memory_space<vmem>>, vector<1x1x32x32xf32>
    %58 = vector.shape_cast %57 : vector<1x1x32x32xf32> to vector<32x32xf32>
    %cst_28 = arith.constant dense<0.000000e+00> : vector<16x32xf32>
    %59 = tpu.matmul %32, %58, %cst_28 {dimension_numbers = #tpu.dot_dimension_numbers<[1], [0], [0], [1], [0, 0, 1, 1], [], []>} : vector<16x32xf32>, vector<32x32xf32>, vector<16x32xf32> -> vector<16x32xf32>
    %c0_29 = arith.constant 0 : index
    %c0_30 = arith.constant 0 : index
    %c0_31 = arith.constant 0 : index
    %c0_32 = arith.constant 0 : index
    %60 = vector.load %arg7[%c0_29, %c0_30, %c0_31, %c0_32] : memref<1x6x1x32xf32, #tpu.memory_space<vmem>>, vector<1x1x1x32xf32>
    %61 = vector.shape_cast %60 : vector<1x1x1x32xf32> to vector<1x32xf32>
    %62 = vector.broadcast %61 : vector<1x32xf32> to vector<16x32xf32>
    %63 = arith.addf %59, %62 : vector<16x32xf32>
    %cst_33 = arith.constant 0.353553385 : f32
    %64 = vector.broadcast %cst_33 : f32 to vector<16x32xf32>
    %65 = arith.mulf %63, %64 : vector<16x32xf32>
    %c0_34 = arith.constant 0 : index
    %c0_35 = arith.constant 0 : index
    %c0_36 = arith.constant 0 : index
    %c0_37 = arith.constant 0 : index
    %66 = vector.load %arg8[%c0_34, %c0_35, %c0_36, %c0_37] : memref<1x6x32x32xf32, #tpu.memory_space<vmem>>, vector<1x1x32x32xf32>
    %67 = vector.shape_cast %66 : vector<1x1x32x32xf32> to vector<32x32xf32>
    %cst_38 = arith.constant dense<0.000000e+00> : vector<16x32xf32>
    %68 = tpu.matmul %56, %67, %cst_38 {dimension_numbers = #tpu.dot_dimension_numbers<[1], [0], [0], [1], [0, 0, 1, 1], [], []>} : vector<16x32xf32>, vector<32x32xf32>, vector<16x32xf32> -> vector<16x32xf32>
    %c0_39 = arith.constant 0 : index
    %c0_40 = arith.constant 0 : index
    %c0_41 = arith.constant 0 : index
    %c0_42 = arith.constant 0 : index
    %69 = vector.load %arg9[%c0_39, %c0_40, %c0_41, %c0_42] : memref<1x6x1x32xf32, #tpu.memory_space<vmem>>, vector<1x1x1x32xf32>
    %70 = vector.shape_cast %69 : vector<1x1x1x32xf32> to vector<1x32xf32>
    %71 = vector.broadcast %70 : vector<1x32xf32> to vector<16x32xf32>
    %72 = arith.addf %68, %71 : vector<16x32xf32>
    %c0_43 = arith.constant 0 : index
    %c0_44 = arith.constant 0 : index
    %c0_45 = arith.constant 0 : index
    %c0_46 = arith.constant 0 : index
    %73 = vector.load %arg10[%c0_43, %c0_44, %c0_45, %c0_46] : memref<1x6x32x32xf32, #tpu.memory_space<vmem>>, vector<1x1x32x32xf32>
    %74 = vector.shape_cast %73 : vector<1x1x32x32xf32> to vector<32x32xf32>
    %cst_47 = arith.constant dense<0.000000e+00> : vector<16x32xf32>
    %75 = tpu.matmul %56, %74, %cst_47 {dimension_numbers = #tpu.dot_dimension_numbers<[1], [0], [0], [1], [0, 0, 1, 1], [], []>} : vector<16x32xf32>, vector<32x32xf32>, vector<16x32xf32> -> vector<16x32xf32>
    %c0_48 = arith.constant 0 : index
    %c0_49 = arith.constant 0 : index
    %c0_50 = arith.constant 0 : index
    %c0_51 = arith.constant 0 : index
    %76 = vector.load %arg11[%c0_48, %c0_49, %c0_50, %c0_51] : memref<1x6x1x32xf32, #tpu.memory_space<vmem>>, vector<1x1x1x32xf32>
    %77 = vector.shape_cast %76 : vector<1x1x1x32xf32> to vector<1x32xf32>
    %78 = vector.broadcast %77 : vector<1x32xf32> to vector<16x32xf32>
    %79 = arith.addf %75, %78 : vector<16x32xf32>
    %80 = vector.extract_strided_slice %65 {offsets = [0, 0], sizes = [16, 8], strides = [1, 1]} : vector<16x32xf32> to vector<16x8xf32>
    %81 = vector.extract_strided_slice %72 {offsets = [0, 0], sizes = [16, 8], strides = [1, 1]} : vector<16x32xf32> to vector<16x8xf32>
    %82 = tpu.transpose %81, [1, 0] : vector<16x8xf32> -> vector<8x16xf32>
    %cst_52 = arith.constant dense<0.000000e+00> : vector<16x16xf32>
    %83 = tpu.matmul %80, %82, %cst_52 {dimension_numbers = #tpu.dot_dimension_numbers<[1], [0], [0], [1], [0, 0, 1, 1], [], []>} : vector<16x8xf32>, vector<8x16xf32>, vector<16x16xf32> -> vector<16x16xf32>
    %84 = arith.addf %83, %4 : vector<16x16xf32>
    %cst_53 = arith.constant dense<0xFF800000> : vector<16xf32>
    %85 = vector.multi_reduction <maximumf>, %84, %cst_53 [1] : vector<16x16xf32> to vector<16xf32>
    %86 = vector.shape_cast %85 : vector<16xf32> to vector<16x1xf32>
    %87 = vector.broadcast %86 : vector<16x1xf32> to vector<16x16xf32>
    %88 = arith.subf %84, %87 : vector<16x16xf32>
    %89 = math.exp %88 : vector<16x16xf32>
    %cst_54 = arith.constant dense<0.000000e+00> : vector<16xf32>
    %90 = vector.multi_reduction <add>, %89, %cst_54 [1] : vector<16x16xf32> to vector<16xf32>
    %91 = vector.shape_cast %90 : vector<16xf32> to vector<16x1xf32>
    %92 = tpu.reciprocal %91 {approx = true} : vector<16x1xf32> -> vector<16x1xf32>
    %93 = vector.broadcast %92 : vector<16x1xf32> to vector<16x16xf32>
    %94 = arith.mulf %89, %93 : vector<16x16xf32>
    %95 = vector.extract_strided_slice %79 {offsets = [0, 0], sizes = [16, 8], strides = [1, 1]} : vector<16x32xf32> to vector<16x8xf32>
    %cst_55 = arith.constant dense<0.000000e+00> : vector<16x8xf32>
    %96 = tpu.matmul %94, %95, %cst_55 {dimension_numbers = #tpu.dot_dimension_numbers<[1], [0], [0], [1], [0, 0, 1, 1], [], []>} : vector<16x16xf32>, vector<16x8xf32>, vector<16x8xf32> -> vector<16x8xf32>
    %97 = vector.extract_strided_slice %65 {offsets = [0, 8], sizes = [16, 8], strides = [1, 1]} : vector<16x32xf32> to vector<16x8xf32>
    %98 = vector.extract_strided_slice %72 {offsets = [0, 8], sizes = [16, 8], strides = [1, 1]} : vector<16x32xf32> to vector<16x8xf32>
    %99 = tpu.transpose %98, [1, 0] : vector<16x8xf32> -> vector<8x16xf32>
    %cst_56 = arith.constant dense<0.000000e+00> : vector<16x16xf32>
    %100 = tpu.matmul %97, %99, %cst_56 {dimension_numbers = #tpu.dot_dimension_numbers<[1], [0], [0], [1], [0, 0, 1, 1], [], []>} : vector<16x8xf32>, vector<8x16xf32>, vector<16x16xf32> -> vector<16x16xf32>
    %101 = arith.addf %100, %4 : vector<16x16xf32>
    %cst_57 = arith.constant dense<0xFF800000> : vector<16xf32>
    %102 = vector.multi_reduction <maximumf>, %101, %cst_57 [1] : vector<16x16xf32> to vector<16xf32>
    %103 = vector.shape_cast %102 : vector<16xf32> to vector<16x1xf32>
    %104 = vector.broadcast %103 : vector<16x1xf32> to vector<16x16xf32>
    %105 = arith.subf %101, %104 : vector<16x16xf32>
    %106 = math.exp %105 : vector<16x16xf32>
    %cst_58 = arith.constant dense<0.000000e+00> : vector<16xf32>
    %107 = vector.multi_reduction <add>, %106, %cst_58 [1] : vector<16x16xf32> to vector<16xf32>
    %108 = vector.shape_cast %107 : vector<16xf32> to vector<16x1xf32>
    %109 = tpu.reciprocal %108 {approx = true} : vector<16x1xf32> -> vector<16x1xf32>
    %110 = vector.broadcast %109 : vector<16x1xf32> to vector<16x16xf32>
    %111 = arith.mulf %106, %110 : vector<16x16xf32>
    %112 = vector.extract_strided_slice %79 {offsets = [0, 8], sizes = [16, 8], strides = [1, 1]} : vector<16x32xf32> to vector<16x8xf32>
    %cst_59 = arith.constant dense<0.000000e+00> : vector<16x8xf32>
    %113 = tpu.matmul %111, %112, %cst_59 {dimension_numbers = #tpu.dot_dimension_numbers<[1], [0], [0], [1], [0, 0, 1, 1], [], []>} : vector<16x16xf32>, vector<16x8xf32>, vector<16x8xf32> -> vector<16x8xf32>
    %114 = vector.extract_strided_slice %65 {offsets = [0, 16], sizes = [16, 8], strides = [1, 1]} : vector<16x32xf32> to vector<16x8xf32>
    %115 = vector.extract_strided_slice %72 {offsets = [0, 16], sizes = [16, 8], strides = [1, 1]} : vector<16x32xf32> to vector<16x8xf32>
    %116 = tpu.transpose %115, [1, 0] : vector<16x8xf32> -> vector<8x16xf32>
    %cst_60 = arith.constant dense<0.000000e+00> : vector<16x16xf32>
    %117 = tpu.matmul %114, %116, %cst_60 {dimension_numbers = #tpu.dot_dimension_numbers<[1], [0], [0], [1], [0, 0, 1, 1], [], []>} : vector<16x8xf32>, vector<8x16xf32>, vector<16x16xf32> -> vector<16x16xf32>
    %118 = arith.addf %117, %4 : vector<16x16xf32>
    %cst_61 = arith.constant dense<0xFF800000> : vector<16xf32>
    %119 = vector.multi_reduction <maximumf>, %118, %cst_61 [1] : vector<16x16xf32> to vector<16xf32>
    %120 = vector.shape_cast %119 : vector<16xf32> to vector<16x1xf32>
    %121 = vector.broadcast %120 : vector<16x1xf32> to vector<16x16xf32>
    %122 = arith.subf %118, %121 : vector<16x16xf32>
    %123 = math.exp %122 : vector<16x16xf32>
    %cst_62 = arith.constant dense<0.000000e+00> : vector<16xf32>
    %124 = vector.multi_reduction <add>, %123, %cst_62 [1] : vector<16x16xf32> to vector<16xf32>
    %125 = vector.shape_cast %124 : vector<16xf32> to vector<16x1xf32>
    %126 = tpu.reciprocal %125 {approx = true} : vector<16x1xf32> -> vector<16x1xf32>
    %127 = vector.broadcast %126 : vector<16x1xf32> to vector<16x16xf32>
    %128 = arith.mulf %123, %127 : vector<16x16xf32>
    %129 = vector.extract_strided_slice %79 {offsets = [0, 16], sizes = [16, 8], strides = [1, 1]} : vector<16x32xf32> to vector<16x8xf32>
    %cst_63 = arith.constant dense<0.000000e+00> : vector<16x8xf32>
    %130 = tpu.matmul %128, %129, %cst_63 {dimension_numbers = #tpu.dot_dimension_numbers<[1], [0], [0], [1], [0, 0, 1, 1], [], []>} : vector<16x16xf32>, vector<16x8xf32>, vector<16x8xf32> -> vector<16x8xf32>
    %131 = vector.extract_strided_slice %65 {offsets = [0, 24], sizes = [16, 8], strides = [1, 1]} : vector<16x32xf32> to vector<16x8xf32>
    %132 = vector.extract_strided_slice %72 {offsets = [0, 24], sizes = [16, 8], strides = [1, 1]} : vector<16x32xf32> to vector<16x8xf32>
    %133 = tpu.transpose %132, [1, 0] : vector<16x8xf32> -> vector<8x16xf32>
    %cst_64 = arith.constant dense<0.000000e+00> : vector<16x16xf32>
    %134 = tpu.matmul %131, %133, %cst_64 {dimension_numbers = #tpu.dot_dimension_numbers<[1], [0], [0], [1], [0, 0, 1, 1], [], []>} : vector<16x8xf32>, vector<8x16xf32>, vector<16x16xf32> -> vector<16x16xf32>
    %135 = arith.addf %134, %4 : vector<16x16xf32>
    %cst_65 = arith.constant dense<0xFF800000> : vector<16xf32>
    %136 = vector.multi_reduction <maximumf>, %135, %cst_65 [1] : vector<16x16xf32> to vector<16xf32>
    %137 = vector.shape_cast %136 : vector<16xf32> to vector<16x1xf32>
    %138 = vector.broadcast %137 : vector<16x1xf32> to vector<16x16xf32>
    %139 = arith.subf %135, %138 : vector<16x16xf32>
    %140 = math.exp %139 : vector<16x16xf32>
    %cst_66 = arith.constant dense<0.000000e+00> : vector<16xf32>
    %141 = vector.multi_reduction <add>, %140, %cst_66 [1] : vector<16x16xf32> to vector<16xf32>
    %142 = vector.shape_cast %141 : vector<16xf32> to vector<16x1xf32>
    %143 = tpu.reciprocal %142 {approx = true} : vector<16x1xf32> -> vector<16x1xf32>
    %144 = vector.broadcast %143 : vector<16x1xf32> to vector<16x16xf32>
    %145 = arith.mulf %140, %144 : vector<16x16xf32>
    %146 = vector.extract_strided_slice %79 {offsets = [0, 24], sizes = [16, 8], strides = [1, 1]} : vector<16x32xf32> to vector<16x8xf32>
    %cst_67 = arith.constant dense<0.000000e+00> : vector<16x8xf32>
    %147 = tpu.matmul %145, %146, %cst_67 {dimension_numbers = #tpu.dot_dimension_numbers<[1], [0], [0], [1], [0, 0, 1, 1], [], []>} : vector<16x16xf32>, vector<16x8xf32>, vector<16x8xf32> -> vector<16x8xf32>
    %148 = tpu.concatenate %96, %113, %130, %147 in 1 : vector<16x8xf32>, vector<16x8xf32>, vector<16x8xf32>, vector<16x8xf32> -> vector<16x32xf32>
    %c0_68 = arith.constant 0 : index
    %c0_69 = arith.constant 0 : index
    %c0_70 = arith.constant 0 : index
    %c0_71 = arith.constant 0 : index
    %149 = vector.load %arg12[%c0_68, %c0_69, %c0_70, %c0_71] : memref<1x6x32x32xf32, #tpu.memory_space<vmem>>, vector<1x1x32x32xf32>
    %150 = vector.shape_cast %149 : vector<1x1x32x32xf32> to vector<32x32xf32>
    %cst_72 = arith.constant dense<0.000000e+00> : vector<16x32xf32>
    %151 = tpu.matmul %148, %150, %cst_72 {dimension_numbers = #tpu.dot_dimension_numbers<[1], [0], [0], [1], [0, 0, 1, 1], [], []>} : vector<16x32xf32>, vector<32x32xf32>, vector<16x32xf32> -> vector<16x32xf32>
    %c0_73 = arith.constant 0 : index
    %c0_74 = arith.constant 0 : index
    %c0_75 = arith.constant 0 : index
    %c0_76 = arith.constant 0 : index
    %152 = vector.load %arg13[%c0_73, %c0_74, %c0_75, %c0_76] : memref<1x6x1x32xf32, #tpu.memory_space<vmem>>, vector<1x1x1x32xf32>
    %153 = vector.shape_cast %152 : vector<1x1x1x32xf32> to vector<1x32xf32>
    %154 = vector.broadcast %153 : vector<1x32xf32> to vector<16x32xf32>
    %155 = arith.addf %151, %154 : vector<16x32xf32>
    %156 = arith.addf %1, %155 : vector<16x32xf32>
    %c0_77 = arith.constant 0 : index
    %c0_78 = arith.constant 0 : index
    %c0_79 = arith.constant 0 : index
    %c0_80 = arith.constant 0 : index
    %157 = vector.load %arg14[%c0_77, %c0_78, %c0_79, %c0_80] : memref<1x6x1x32xf32, #tpu.memory_space<vmem>>, vector<1x1x1x32xf32>
    %158 = vector.shape_cast %157 : vector<1x1x1x32xf32> to vector<1x32xf32>
    %c0_81 = arith.constant 0 : index
    %c0_82 = arith.constant 0 : index
    %c0_83 = arith.constant 0 : index
    %c0_84 = arith.constant 0 : index
    %159 = vector.load %arg15[%c0_81, %c0_82, %c0_83, %c0_84] : memref<1x6x1x32xf32, #tpu.memory_space<vmem>>, vector<1x1x1x32xf32>
    %160 = vector.shape_cast %159 : vector<1x1x1x32xf32> to vector<1x32xf32>
    %cst_85 = arith.constant dense<0.000000e+00> : vector<16xf32>
    %161 = vector.multi_reduction <add>, %156, %cst_85 [1] : vector<16x32xf32> to vector<16xf32>
    %162 = vector.shape_cast %161 : vector<16xf32> to vector<16x1xf32>
    %cst_86 = arith.constant 3.200000e+01 : f32
    %163 = vector.broadcast %cst_86 : f32 to vector<16x1xf32>
    %164 = arith.divf %162, %163 : vector<16x1xf32>
    %165 = vector.broadcast %164 : vector<16x1xf32> to vector<16x32xf32>
    %166 = arith.subf %156, %165 : vector<16x32xf32>
    %167 = vector.broadcast %164 : vector<16x1xf32> to vector<16x32xf32>
    %168 = arith.subf %156, %167 : vector<16x32xf32>
    %169 = arith.mulf %166, %168 : vector<16x32xf32>
    %cst_87 = arith.constant dense<0.000000e+00> : vector<16xf32>
    %170 = vector.multi_reduction <add>, %169, %cst_87 [1] : vector<16x32xf32> to vector<16xf32>
    %171 = vector.shape_cast %170 : vector<16xf32> to vector<16x1xf32>
    %cst_88 = arith.constant 3.200000e+01 : f32
    %172 = vector.broadcast %cst_88 : f32 to vector<16x1xf32>
    %173 = arith.divf %171, %172 : vector<16x1xf32>
    %174 = vector.broadcast %164 : vector<16x1xf32> to vector<16x32xf32>
    %175 = arith.subf %156, %174 : vector<16x32xf32>
    %cst_89 = arith.constant 9.99999974E-6 : f32
    %176 = vector.broadcast %cst_89 : f32 to vector<16x1xf32>
    %177 = arith.addf %173, %176 : vector<16x1xf32>
    %178 = math.rsqrt %177 : vector<16x1xf32>
    %179 = vector.broadcast %178 : vector<16x1xf32> to vector<16x32xf32>
    %180 = arith.mulf %175, %179 : vector<16x32xf32>
    %181 = vector.broadcast %158 : vector<1x32xf32> to vector<16x32xf32>
    %182 = arith.mulf %180, %181 : vector<16x32xf32>
    %183 = vector.broadcast %160 : vector<1x32xf32> to vector<16x32xf32>
    %184 = arith.addf %182, %183 : vector<16x32xf32>
    %c0_90 = arith.constant 0 : index
    %c0_91 = arith.constant 0 : index
    %c0_92 = arith.constant 0 : index
    %c0_93 = arith.constant 0 : index
    %185 = vector.load %arg16[%c0_90, %c0_91, %c0_92, %c0_93] : memref<1x6x32x128xf32, #tpu.memory_space<vmem>>, vector<1x1x32x128xf32>
    %186 = vector.shape_cast %185 : vector<1x1x32x128xf32> to vector<32x128xf32>
    %cst_94 = arith.constant dense<0.000000e+00> : vector<16x128xf32>
    %187 = tpu.matmul %184, %186, %cst_94 {dimension_numbers = #tpu.dot_dimension_numbers<[1], [0], [0], [1], [0, 0, 1, 1], [], []>} : vector<16x32xf32>, vector<32x128xf32>, vector<16x128xf32> -> vector<16x128xf32>
    %c0_95 = arith.constant 0 : index
    %c0_96 = arith.constant 0 : index
    %c0_97 = arith.constant 0 : index
    %c0_98 = arith.constant 0 : index
    %188 = vector.load %arg17[%c0_95, %c0_96, %c0_97, %c0_98] : memref<1x6x1x128xf32, #tpu.memory_space<vmem>>, vector<1x1x1x128xf32>
    %189 = vector.shape_cast %188 : vector<1x1x1x128xf32> to vector<1x128xf32>
    %190 = vector.broadcast %189 : vector<1x128xf32> to vector<16x128xf32>
    %191 = arith.addf %187, %190 : vector<16x128xf32>
    %cst_99 = arith.constant 0.000000e+00 : f32
    %192 = vector.broadcast %cst_99 : f32 to vector<16x128xf32>
    %193 = arith.maximumf %191, %192 : vector<16x128xf32>
    %c0_100 = arith.constant 0 : index
    %c0_101 = arith.constant 0 : index
    %c0_102 = arith.constant 0 : index
    %c0_103 = arith.constant 0 : index
    %194 = vector.load %arg18[%c0_100, %c0_101, %c0_102, %c0_103] : memref<1x6x128x32xf32, #tpu.memory_space<vmem>>, vector<1x1x128x32xf32>
    %195 = vector.shape_cast %194 : vector<1x1x128x32xf32> to vector<128x32xf32>
    %cst_104 = arith.constant dense<0.000000e+00> : vector<16x32xf32>
    %196 = tpu.matmul %193, %195, %cst_104 {dimension_numbers = #tpu.dot_dimension_numbers<[1], [0], [0], [1], [0, 0, 1, 1], [], []>} : vector<16x128xf32>, vector<128x32xf32>, vector<16x32xf32> -> vector<16x32xf32>
    %c0_105 = arith.constant 0 : index
    %c0_106 = arith.constant 0 : index
    %c0_107 = arith.constant 0 : index
    %c0_108 = arith.constant 0 : index
    %197 = vector.load %arg19[%c0_105, %c0_106, %c0_107, %c0_108] : memref<1x6x1x32xf32, #tpu.memory_space<vmem>>, vector<1x1x1x32xf32>
    %198 = vector.shape_cast %197 : vector<1x1x1x32xf32> to vector<1x32xf32>
    %199 = vector.broadcast %198 : vector<1x32xf32> to vector<16x32xf32>
    %200 = arith.addf %196, %199 : vector<16x32xf32>
    %201 = arith.addf %156, %200 : vector<16x32xf32>
    %c0_109 = arith.constant 0 : index
    %c1 = arith.constant 1 : index
    %c0_110 = arith.constant 0 : index
    %c0_111 = arith.constant 0 : index
    %202 = vector.load %arg4[%c0_109, %c1, %c0_110, %c0_111] : memref<1x6x1x32xf32, #tpu.memory_space<vmem>>, vector<1x1x1x32xf32>
    %203 = vector.shape_cast %202 : vector<1x1x1x32xf32> to vector<1x32xf32>
    %c0_112 = arith.constant 0 : index
    %c1_113 = arith.constant 1 : index
    %c0_114 = arith.constant 0 : index
    %c0_115 = arith.constant 0 : index
    %204 = vector.load %arg5[%c0_112, %c1_113, %c0_114, %c0_115] : memref<1x6x1x32xf32, #tpu.memory_space<vmem>>, vector<1x1x1x32xf32>
    %205 = vector.shape_cast %204 : vector<1x1x1x32xf32> to vector<1x32xf32>
    %cst_116 = arith.constant dense<0.000000e+00> : vector<16xf32>
    %206 = vector.multi_reduction <add>, %201, %cst_116 [1] : vector<16x32xf32> to vector<16xf32>
    %207 = vector.shape_cast %206 : vector<16xf32> to vector<16x1xf32>
    %cst_117 = arith.constant 3.200000e+01 : f32
    %208 = vector.broadcast %cst_117 : f32 to vector<16x1xf32>
    %209 = arith.divf %207, %208 : vector<16x1xf32>
    %210 = vector.broadcast %209 : vector<16x1xf32> to vector<16x32xf32>
    %211 = arith.subf %201, %210 : vector<16x32xf32>
    %212 = vector.broadcast %209 : vector<16x1xf32> to vector<16x32xf32>
    %213 = arith.subf %201, %212 : vector<16x32xf32>
    %214 = arith.mulf %211, %213 : vector<16x32xf32>
    %cst_118 = arith.constant dense<0.000000e+00> : vector<16xf32>
    %215 = vector.multi_reduction <add>, %214, %cst_118 [1] : vector<16x32xf32> to vector<16xf32>
    %216 = vector.shape_cast %215 : vector<16xf32> to vector<16x1xf32>
    %cst_119 = arith.constant 3.200000e+01 : f32
    %217 = vector.broadcast %cst_119 : f32 to vector<16x1xf32>
    %218 = arith.divf %216, %217 : vector<16x1xf32>
    %219 = vector.broadcast %209 : vector<16x1xf32> to vector<16x32xf32>
    %220 = arith.subf %201, %219 : vector<16x32xf32>
    %cst_120 = arith.constant 9.99999974E-6 : f32
    %221 = vector.broadcast %cst_120 : f32 to vector<16x1xf32>
    %222 = arith.addf %218, %221 : vector<16x1xf32>
    %223 = math.rsqrt %222 : vector<16x1xf32>
    %224 = vector.broadcast %223 : vector<16x1xf32> to vector<16x32xf32>
    %225 = arith.mulf %220, %224 : vector<16x32xf32>
    %226 = vector.broadcast %203 : vector<1x32xf32> to vector<16x32xf32>
    %227 = arith.mulf %225, %226 : vector<16x32xf32>
    %228 = vector.broadcast %205 : vector<1x32xf32> to vector<16x32xf32>
    %229 = arith.addf %227, %228 : vector<16x32xf32>
    %cst_121 = arith.constant dense<0.000000e+00> : vector<16xf32>
    %230 = vector.multi_reduction <add>, %3, %cst_121 [1] : vector<16x32xf32> to vector<16xf32>
    %231 = vector.shape_cast %230 : vector<16xf32> to vector<16x1xf32>
    %cst_122 = arith.constant 3.200000e+01 : f32
    %232 = vector.broadcast %cst_122 : f32 to vector<16x1xf32>
    %233 = arith.divf %231, %232 : vector<16x1xf32>
    %234 = vector.broadcast %233 : vector<16x1xf32> to vector<16x32xf32>
    %235 = arith.subf %3, %234 : vector<16x32xf32>
    %236 = vector.broadcast %233 : vector<16x1xf32> to vector<16x32xf32>
    %237 = arith.subf %3, %236 : vector<16x32xf32>
    %238 = arith.mulf %235, %237 : vector<16x32xf32>
    %cst_123 = arith.constant dense<0.000000e+00> : vector<16xf32>
    %239 = vector.multi_reduction <add>, %238, %cst_123 [1] : vector<16x32xf32> to vector<16xf32>
    %240 = vector.shape_cast %239 : vector<16xf32> to vector<16x1xf32>
    %cst_124 = arith.constant 3.200000e+01 : f32
    %241 = vector.broadcast %cst_124 : f32 to vector<16x1xf32>
    %242 = arith.divf %240, %241 : vector<16x1xf32>
    %243 = vector.broadcast %233 : vector<16x1xf32> to vector<16x32xf32>
    %244 = arith.subf %3, %243 : vector<16x32xf32>
    %cst_125 = arith.constant 9.99999974E-6 : f32
    %245 = vector.broadcast %cst_125 : f32 to vector<16x1xf32>
    %246 = arith.addf %242, %245 : vector<16x1xf32>
    %247 = math.rsqrt %246 : vector<16x1xf32>
    %248 = vector.broadcast %247 : vector<16x1xf32> to vector<16x32xf32>
    %249 = arith.mulf %244, %248 : vector<16x32xf32>
    %250 = vector.broadcast %203 : vector<1x32xf32> to vector<16x32xf32>
    %251 = arith.mulf %249, %250 : vector<16x32xf32>
    %252 = vector.broadcast %205 : vector<1x32xf32> to vector<16x32xf32>
    %253 = arith.addf %251, %252 : vector<16x32xf32>
    %c0_126 = arith.constant 0 : index
    %c1_127 = arith.constant 1 : index
    %c0_128 = arith.constant 0 : index
    %c0_129 = arith.constant 0 : index
    %254 = vector.load %arg6[%c0_126, %c1_127, %c0_128, %c0_129] : memref<1x6x32x32xf32, #tpu.memory_space<vmem>>, vector<1x1x32x32xf32>
    %255 = vector.shape_cast %254 : vector<1x1x32x32xf32> to vector<32x32xf32>
    %cst_130 = arith.constant dense<0.000000e+00> : vector<16x32xf32>
    %256 = tpu.matmul %229, %255, %cst_130 {dimension_numbers = #tpu.dot_dimension_numbers<[1], [0], [0], [1], [0, 0, 1, 1], [], []>} : vector<16x32xf32>, vector<32x32xf32>, vector<16x32xf32> -> vector<16x32xf32>
    %c0_131 = arith.constant 0 : index
    %c1_132 = arith.constant 1 : index
    %c0_133 = arith.constant 0 : index
    %c0_134 = arith.constant 0 : index
    %257 = vector.load %arg7[%c0_131, %c1_132, %c0_133, %c0_134] : memref<1x6x1x32xf32, #tpu.memory_space<vmem>>, vector<1x1x1x32xf32>
    %258 = vector.shape_cast %257 : vector<1x1x1x32xf32> to vector<1x32xf32>
    %259 = vector.broadcast %258 : vector<1x32xf32> to vector<16x32xf32>
    %260 = arith.addf %256, %259 : vector<16x32xf32>
    %cst_135 = arith.constant 0.353553385 : f32
    %261 = vector.broadcast %cst_135 : f32 to vector<16x32xf32>
    %262 = arith.mulf %260, %261 : vector<16x32xf32>
    %c0_136 = arith.constant 0 : index
    %c1_137 = arith.constant 1 : index
    %c0_138 = arith.constant 0 : index
    %c0_139 = arith.constant 0 : index
    %263 = vector.load %arg8[%c0_136, %c1_137, %c0_138, %c0_139] : memref<1x6x32x32xf32, #tpu.memory_space<vmem>>, vector<1x1x32x32xf32>
    %264 = vector.shape_cast %263 : vector<1x1x32x32xf32> to vector<32x32xf32>
    %cst_140 = arith.constant dense<0.000000e+00> : vector<16x32xf32>
    %265 = tpu.matmul %253, %264, %cst_140 {dimension_numbers = #tpu.dot_dimension_numbers<[1], [0], [0], [1], [0, 0, 1, 1], [], []>} : vector<16x32xf32>, vector<32x32xf32>, vector<16x32xf32> -> vector<16x32xf32>
    %c0_141 = arith.constant 0 : index
    %c1_142 = arith.constant 1 : index
    %c0_143 = arith.constant 0 : index
    %c0_144 = arith.constant 0 : index
    %266 = vector.load %arg9[%c0_141, %c1_142, %c0_143, %c0_144] : memref<1x6x1x32xf32, #tpu.memory_space<vmem>>, vector<1x1x1x32xf32>
    %267 = vector.shape_cast %266 : vector<1x1x1x32xf32> to vector<1x32xf32>
    %268 = vector.broadcast %267 : vector<1x32xf32> to vector<16x32xf32>
    %269 = arith.addf %265, %268 : vector<16x32xf32>
    %c0_145 = arith.constant 0 : index
    %c1_146 = arith.constant 1 : index
    %c0_147 = arith.constant 0 : index
    %c0_148 = arith.constant 0 : index
    %270 = vector.load %arg10[%c0_145, %c1_146, %c0_147, %c0_148] : memref<1x6x32x32xf32, #tpu.memory_space<vmem>>, vector<1x1x32x32xf32>
    %271 = vector.shape_cast %270 : vector<1x1x32x32xf32> to vector<32x32xf32>
    %cst_149 = arith.constant dense<0.000000e+00> : vector<16x32xf32>
    %272 = tpu.matmul %253, %271, %cst_149 {dimension_numbers = #tpu.dot_dimension_numbers<[1], [0], [0], [1], [0, 0, 1, 1], [], []>} : vector<16x32xf32>, vector<32x32xf32>, vector<16x32xf32> -> vector<16x32xf32>
    %c0_150 = arith.constant 0 : index
    %c1_151 = arith.constant 1 : index
    %c0_152 = arith.constant 0 : index
    %c0_153 = arith.constant 0 : index
    %273 = vector.load %arg11[%c0_150, %c1_151, %c0_152, %c0_153] : memref<1x6x1x32xf32, #tpu.memory_space<vmem>>, vector<1x1x1x32xf32>
    %274 = vector.shape_cast %273 : vector<1x1x1x32xf32> to vector<1x32xf32>
    %275 = vector.broadcast %274 : vector<1x32xf32> to vector<16x32xf32>
    %276 = arith.addf %272, %275 : vector<16x32xf32>
    %277 = vector.extract_strided_slice %262 {offsets = [0, 0], sizes = [16, 8], strides = [1, 1]} : vector<16x32xf32> to vector<16x8xf32>
    %278 = vector.extract_strided_slice %269 {offsets = [0, 0], sizes = [16, 8], strides = [1, 1]} : vector<16x32xf32> to vector<16x8xf32>
    %279 = tpu.transpose %278, [1, 0] : vector<16x8xf32> -> vector<8x16xf32>
    %cst_154 = arith.constant dense<0.000000e+00> : vector<16x16xf32>
    %280 = tpu.matmul %277, %279, %cst_154 {dimension_numbers = #tpu.dot_dimension_numbers<[1], [0], [0], [1], [0, 0, 1, 1], [], []>} : vector<16x8xf32>, vector<8x16xf32>, vector<16x16xf32> -> vector<16x16xf32>
    %281 = arith.addf %280, %4 : vector<16x16xf32>
    %cst_155 = arith.constant dense<0xFF800000> : vector<16xf32>
    %282 = vector.multi_reduction <maximumf>, %281, %cst_155 [1] : vector<16x16xf32> to vector<16xf32>
    %283 = vector.shape_cast %282 : vector<16xf32> to vector<16x1xf32>
    %284 = vector.broadcast %283 : vector<16x1xf32> to vector<16x16xf32>
    %285 = arith.subf %281, %284 : vector<16x16xf32>
    %286 = math.exp %285 : vector<16x16xf32>
    %cst_156 = arith.constant dense<0.000000e+00> : vector<16xf32>
    %287 = vector.multi_reduction <add>, %286, %cst_156 [1] : vector<16x16xf32> to vector<16xf32>
    %288 = vector.shape_cast %287 : vector<16xf32> to vector<16x1xf32>
    %289 = tpu.reciprocal %288 {approx = true} : vector<16x1xf32> -> vector<16x1xf32>
    %290 = vector.broadcast %289 : vector<16x1xf32> to vector<16x16xf32>
    %291 = arith.mulf %286, %290 : vector<16x16xf32>
    %292 = vector.extract_strided_slice %276 {offsets = [0, 0], sizes = [16, 8], strides = [1, 1]} : vector<16x32xf32> to vector<16x8xf32>
    %cst_157 = arith.constant dense<0.000000e+00> : vector<16x8xf32>
    %293 = tpu.matmul %291, %292, %cst_157 {dimension_numbers = #tpu.dot_dimension_numbers<[1], [0], [0], [1], [0, 0, 1, 1], [], []>} : vector<16x16xf32>, vector<16x8xf32>, vector<16x8xf32> -> vector<16x8xf32>
    %294 = vector.extract_strided_slice %262 {offsets = [0, 8], sizes = [16, 8], strides = [1, 1]} : vector<16x32xf32> to vector<16x8xf32>
    %295 = vector.extract_strided_slice %269 {offsets = [0, 8], sizes = [16, 8], strides = [1, 1]} : vector<16x32xf32> to vector<16x8xf32>
    %296 = tpu.transpose %295, [1, 0] : vector<16x8xf32> -> vector<8x16xf32>
    %cst_158 = arith.constant dense<0.000000e+00> : vector<16x16xf32>
    %297 = tpu.matmul %294, %296, %cst_158 {dimension_numbers = #tpu.dot_dimension_numbers<[1], [0], [0], [1], [0, 0, 1, 1], [], []>} : vector<16x8xf32>, vector<8x16xf32>, vector<16x16xf32> -> vector<16x16xf32>
    %298 = arith.addf %297, %4 : vector<16x16xf32>
    %cst_159 = arith.constant dense<0xFF800000> : vector<16xf32>
    %299 = vector.multi_reduction <maximumf>, %298, %cst_159 [1] : vector<16x16xf32> to vector<16xf32>
    %300 = vector.shape_cast %299 : vector<16xf32> to vector<16x1xf32>
    %301 = vector.broadcast %300 : vector<16x1xf32> to vector<16x16xf32>
    %302 = arith.subf %298, %301 : vector<16x16xf32>
    %303 = math.exp %302 : vector<16x16xf32>
    %cst_160 = arith.constant dense<0.000000e+00> : vector<16xf32>
    %304 = vector.multi_reduction <add>, %303, %cst_160 [1] : vector<16x16xf32> to vector<16xf32>
    %305 = vector.shape_cast %304 : vector<16xf32> to vector<16x1xf32>
    %306 = tpu.reciprocal %305 {approx = true} : vector<16x1xf32> -> vector<16x1xf32>
    %307 = vector.broadcast %306 : vector<16x1xf32> to vector<16x16xf32>
    %308 = arith.mulf %303, %307 : vector<16x16xf32>
    %309 = vector.extract_strided_slice %276 {offsets = [0, 8], sizes = [16, 8], strides = [1, 1]} : vector<16x32xf32> to vector<16x8xf32>
    %cst_161 = arith.constant dense<0.000000e+00> : vector<16x8xf32>
    %310 = tpu.matmul %308, %309, %cst_161 {dimension_numbers = #tpu.dot_dimension_numbers<[1], [0], [0], [1], [0, 0, 1, 1], [], []>} : vector<16x16xf32>, vector<16x8xf32>, vector<16x8xf32> -> vector<16x8xf32>
    %311 = vector.extract_strided_slice %262 {offsets = [0, 16], sizes = [16, 8], strides = [1, 1]} : vector<16x32xf32> to vector<16x8xf32>
    %312 = vector.extract_strided_slice %269 {offsets = [0, 16], sizes = [16, 8], strides = [1, 1]} : vector<16x32xf32> to vector<16x8xf32>
    %313 = tpu.transpose %312, [1, 0] : vector<16x8xf32> -> vector<8x16xf32>
    %cst_162 = arith.constant dense<0.000000e+00> : vector<16x16xf32>
    %314 = tpu.matmul %311, %313, %cst_162 {dimension_numbers = #tpu.dot_dimension_numbers<[1], [0], [0], [1], [0, 0, 1, 1], [], []>} : vector<16x8xf32>, vector<8x16xf32>, vector<16x16xf32> -> vector<16x16xf32>
    %315 = arith.addf %314, %4 : vector<16x16xf32>
    %cst_163 = arith.constant dense<0xFF800000> : vector<16xf32>
    %316 = vector.multi_reduction <maximumf>, %315, %cst_163 [1] : vector<16x16xf32> to vector<16xf32>
    %317 = vector.shape_cast %316 : vector<16xf32> to vector<16x1xf32>
    %318 = vector.broadcast %317 : vector<16x1xf32> to vector<16x16xf32>
    %319 = arith.subf %315, %318 : vector<16x16xf32>
    %320 = math.exp %319 : vector<16x16xf32>
    %cst_164 = arith.constant dense<0.000000e+00> : vector<16xf32>
    %321 = vector.multi_reduction <add>, %320, %cst_164 [1] : vector<16x16xf32> to vector<16xf32>
    %322 = vector.shape_cast %321 : vector<16xf32> to vector<16x1xf32>
    %323 = tpu.reciprocal %322 {approx = true} : vector<16x1xf32> -> vector<16x1xf32>
    %324 = vector.broadcast %323 : vector<16x1xf32> to vector<16x16xf32>
    %325 = arith.mulf %320, %324 : vector<16x16xf32>
    %326 = vector.extract_strided_slice %276 {offsets = [0, 16], sizes = [16, 8], strides = [1, 1]} : vector<16x32xf32> to vector<16x8xf32>
    %cst_165 = arith.constant dense<0.000000e+00> : vector<16x8xf32>
    %327 = tpu.matmul %325, %326, %cst_165 {dimension_numbers = #tpu.dot_dimension_numbers<[1], [0], [0], [1], [0, 0, 1, 1], [], []>} : vector<16x16xf32>, vector<16x8xf32>, vector<16x8xf32> -> vector<16x8xf32>
    %328 = vector.extract_strided_slice %262 {offsets = [0, 24], sizes = [16, 8], strides = [1, 1]} : vector<16x32xf32> to vector<16x8xf32>
    %329 = vector.extract_strided_slice %269 {offsets = [0, 24], sizes = [16, 8], strides = [1, 1]} : vector<16x32xf32> to vector<16x8xf32>
    %330 = tpu.transpose %329, [1, 0] : vector<16x8xf32> -> vector<8x16xf32>
    %cst_166 = arith.constant dense<0.000000e+00> : vector<16x16xf32>
    %331 = tpu.matmul %328, %330, %cst_166 {dimension_numbers = #tpu.dot_dimension_numbers<[1], [0], [0], [1], [0, 0, 1, 1], [], []>} : vector<16x8xf32>, vector<8x16xf32>, vector<16x16xf32> -> vector<16x16xf32>
    %332 = arith.addf %331, %4 : vector<16x16xf32>
    %cst_167 = arith.constant dense<0xFF800000> : vector<16xf32>
    %333 = vector.multi_reduction <maximumf>, %332, %cst_167 [1] : vector<16x16xf32> to vector<16xf32>
    %334 = vector.shape_cast %333 : vector<16xf32> to vector<16x1xf32>
    %335 = vector.broadcast %334 : vector<16x1xf32> to vector<16x16xf32>
    %336 = arith.subf %332, %335 : vector<16x16xf32>
    %337 = math.exp %336 : vector<16x16xf32>
    %cst_168 = arith.constant dense<0.000000e+00> : vector<16xf32>
    %338 = vector.multi_reduction <add>, %337, %cst_168 [1] : vector<16x16xf32> to vector<16xf32>
    %339 = vector.shape_cast %338 : vector<16xf32> to vector<16x1xf32>
    %340 = tpu.reciprocal %339 {approx = true} : vector<16x1xf32> -> vector<16x1xf32>
    %341 = vector.broadcast %340 : vector<16x1xf32> to vector<16x16xf32>
    %342 = arith.mulf %337, %341 : vector<16x16xf32>
    %343 = vector.extract_strided_slice %276 {offsets = [0, 24], sizes = [16, 8], strides = [1, 1]} : vector<16x32xf32> to vector<16x8xf32>
    %cst_169 = arith.constant dense<0.000000e+00> : vector<16x8xf32>
    %344 = tpu.matmul %342, %343, %cst_169 {dimension_numbers = #tpu.dot_dimension_numbers<[1], [0], [0], [1], [0, 0, 1, 1], [], []>} : vector<16x16xf32>, vector<16x8xf32>, vector<16x8xf32> -> vector<16x8xf32>
    %345 = tpu.concatenate %293, %310, %327, %344 in 1 : vector<16x8xf32>, vector<16x8xf32>, vector<16x8xf32>, vector<16x8xf32> -> vector<16x32xf32>
    %c0_170 = arith.constant 0 : index
    %c1_171 = arith.constant 1 : index
    %c0_172 = arith.constant 0 : index
    %c0_173 = arith.constant 0 : index
    %346 = vector.load %arg12[%c0_170, %c1_171, %c0_172, %c0_173] : memref<1x6x32x32xf32, #tpu.memory_space<vmem>>, vector<1x1x32x32xf32>
    %347 = vector.shape_cast %346 : vector<1x1x32x32xf32> to vector<32x32xf32>
    %cst_174 = arith.constant dense<0.000000e+00> : vector<16x32xf32>
    %348 = tpu.matmul %345, %347, %cst_174 {dimension_numbers = #tpu.dot_dimension_numbers<[1], [0], [0], [1], [0, 0, 1, 1], [], []>} : vector<16x32xf32>, vector<32x32xf32>, vector<16x32xf32> -> vector<16x32xf32>
    %c0_175 = arith.constant 0 : index
    %c1_176 = arith.constant 1 : index
    %c0_177 = arith.constant 0 : index
    %c0_178 = arith.constant 0 : index
    %349 = vector.load %arg13[%c0_175, %c1_176, %c0_177, %c0_178] : memref<1x6x1x32xf32, #tpu.memory_space<vmem>>, vector<1x1x1x32xf32>
    %350 = vector.shape_cast %349 : vector<1x1x1x32xf32> to vector<1x32xf32>
    %351 = vector.broadcast %350 : vector<1x32xf32> to vector<16x32xf32>
    %352 = arith.addf %348, %351 : vector<16x32xf32>
    %353 = arith.addf %201, %352 : vector<16x32xf32>
    %c0_179 = arith.constant 0 : index
    %c1_180 = arith.constant 1 : index
    %c0_181 = arith.constant 0 : index
    %c0_182 = arith.constant 0 : index
    %354 = vector.load %arg14[%c0_179, %c1_180, %c0_181, %c0_182] : memref<1x6x1x32xf32, #tpu.memory_space<vmem>>, vector<1x1x1x32xf32>
    %355 = vector.shape_cast %354 : vector<1x1x1x32xf32> to vector<1x32xf32>
    %c0_183 = arith.constant 0 : index
    %c1_184 = arith.constant 1 : index
    %c0_185 = arith.constant 0 : index
    %c0_186 = arith.constant 0 : index
    %356 = vector.load %arg15[%c0_183, %c1_184, %c0_185, %c0_186] : memref<1x6x1x32xf32, #tpu.memory_space<vmem>>, vector<1x1x1x32xf32>
    %357 = vector.shape_cast %356 : vector<1x1x1x32xf32> to vector<1x32xf32>
    %cst_187 = arith.constant dense<0.000000e+00> : vector<16xf32>
    %358 = vector.multi_reduction <add>, %353, %cst_187 [1] : vector<16x32xf32> to vector<16xf32>
    %359 = vector.shape_cast %358 : vector<16xf32> to vector<16x1xf32>
    %cst_188 = arith.constant 3.200000e+01 : f32
    %360 = vector.broadcast %cst_188 : f32 to vector<16x1xf32>
    %361 = arith.divf %359, %360 : vector<16x1xf32>
    %362 = vector.broadcast %361 : vector<16x1xf32> to vector<16x32xf32>
    %363 = arith.subf %353, %362 : vector<16x32xf32>
    %364 = vector.broadcast %361 : vector<16x1xf32> to vector<16x32xf32>
    %365 = arith.subf %353, %364 : vector<16x32xf32>
    %366 = arith.mulf %363, %365 : vector<16x32xf32>
    %cst_189 = arith.constant dense<0.000000e+00> : vector<16xf32>
    %367 = vector.multi_reduction <add>, %366, %cst_189 [1] : vector<16x32xf32> to vector<16xf32>
    %368 = vector.shape_cast %367 : vector<16xf32> to vector<16x1xf32>
    %cst_190 = arith.constant 3.200000e+01 : f32
    %369 = vector.broadcast %cst_190 : f32 to vector<16x1xf32>
    %370 = arith.divf %368, %369 : vector<16x1xf32>
    %371 = vector.broadcast %361 : vector<16x1xf32> to vector<16x32xf32>
    %372 = arith.subf %353, %371 : vector<16x32xf32>
    %cst_191 = arith.constant 9.99999974E-6 : f32
    %373 = vector.broadcast %cst_191 : f32 to vector<16x1xf32>
    %374 = arith.addf %370, %373 : vector<16x1xf32>
    %375 = math.rsqrt %374 : vector<16x1xf32>
    %376 = vector.broadcast %375 : vector<16x1xf32> to vector<16x32xf32>
    %377 = arith.mulf %372, %376 : vector<16x32xf32>
    %378 = vector.broadcast %355 : vector<1x32xf32> to vector<16x32xf32>
    %379 = arith.mulf %377, %378 : vector<16x32xf32>
    %380 = vector.broadcast %357 : vector<1x32xf32> to vector<16x32xf32>
    %381 = arith.addf %379, %380 : vector<16x32xf32>
    %c0_192 = arith.constant 0 : index
    %c1_193 = arith.constant 1 : index
    %c0_194 = arith.constant 0 : index
    %c0_195 = arith.constant 0 : index
    %382 = vector.load %arg16[%c0_192, %c1_193, %c0_194, %c0_195] : memref<1x6x32x128xf32, #tpu.memory_space<vmem>>, vector<1x1x32x128xf32>
    %383 = vector.shape_cast %382 : vector<1x1x32x128xf32> to vector<32x128xf32>
    %cst_196 = arith.constant dense<0.000000e+00> : vector<16x128xf32>
    %384 = tpu.matmul %381, %383, %cst_196 {dimension_numbers = #tpu.dot_dimension_numbers<[1], [0], [0], [1], [0, 0, 1, 1], [], []>} : vector<16x32xf32>, vector<32x128xf32>, vector<16x128xf32> -> vector<16x128xf32>
    %c0_197 = arith.constant 0 : index
    %c1_198 = arith.constant 1 : index
    %c0_199 = arith.constant 0 : index
    %c0_200 = arith.constant 0 : index
    %385 = vector.load %arg17[%c0_197, %c1_198, %c0_199, %c0_200] : memref<1x6x1x128xf32, #tpu.memory_space<vmem>>, vector<1x1x1x128xf32>
    %386 = vector.shape_cast %385 : vector<1x1x1x128xf32> to vector<1x128xf32>
    %387 = vector.broadcast %386 : vector<1x128xf32> to vector<16x128xf32>
    %388 = arith.addf %384, %387 : vector<16x128xf32>
    %cst_201 = arith.constant 0.000000e+00 : f32
    %389 = vector.broadcast %cst_201 : f32 to vector<16x128xf32>
    %390 = arith.maximumf %388, %389 : vector<16x128xf32>
    %c0_202 = arith.constant 0 : index
    %c1_203 = arith.constant 1 : index
    %c0_204 = arith.constant 0 : index
    %c0_205 = arith.constant 0 : index
    %391 = vector.load %arg18[%c0_202, %c1_203, %c0_204, %c0_205] : memref<1x6x128x32xf32, #tpu.memory_space<vmem>>, vector<1x1x128x32xf32>
    %392 = vector.shape_cast %391 : vector<1x1x128x32xf32> to vector<128x32xf32>
    %cst_206 = arith.constant dense<0.000000e+00> : vector<16x32xf32>
    %393 = tpu.matmul %390, %392, %cst_206 {dimension_numbers = #tpu.dot_dimension_numbers<[1], [0], [0], [1], [0, 0, 1, 1], [], []>} : vector<16x128xf32>, vector<128x32xf32>, vector<16x32xf32> -> vector<16x32xf32>
    %c0_207 = arith.constant 0 : index
    %c1_208 = arith.constant 1 : index
    %c0_209 = arith.constant 0 : index
    %c0_210 = arith.constant 0 : index
    %394 = vector.load %arg19[%c0_207, %c1_208, %c0_209, %c0_210] : memref<1x6x1x32xf32, #tpu.memory_space<vmem>>, vector<1x1x1x32xf32>
    %395 = vector.shape_cast %394 : vector<1x1x1x32xf32> to vector<1x32xf32>
    %396 = vector.broadcast %395 : vector<1x32xf32> to vector<16x32xf32>
    %397 = arith.addf %393, %396 : vector<16x32xf32>
    %398 = arith.addf %353, %397 : vector<16x32xf32>
    %c0_211 = arith.constant 0 : index
    %c2 = arith.constant 2 : index
    %c0_212 = arith.constant 0 : index
    %c0_213 = arith.constant 0 : index
    %399 = vector.load %arg4[%c0_211, %c2, %c0_212, %c0_213] : memref<1x6x1x32xf32, #tpu.memory_space<vmem>>, vector<1x1x1x32xf32>
    %400 = vector.shape_cast %399 : vector<1x1x1x32xf32> to vector<1x32xf32>
    %c0_214 = arith.constant 0 : index
    %c2_215 = arith.constant 2 : index
    %c0_216 = arith.constant 0 : index
    %c0_217 = arith.constant 0 : index
    %401 = vector.load %arg5[%c0_214, %c2_215, %c0_216, %c0_217] : memref<1x6x1x32xf32, #tpu.memory_space<vmem>>, vector<1x1x1x32xf32>
    %402 = vector.shape_cast %401 : vector<1x1x1x32xf32> to vector<1x32xf32>
    %cst_218 = arith.constant dense<0.000000e+00> : vector<16xf32>
    %403 = vector.multi_reduction <add>, %398, %cst_218 [1] : vector<16x32xf32> to vector<16xf32>
    %404 = vector.shape_cast %403 : vector<16xf32> to vector<16x1xf32>
    %cst_219 = arith.constant 3.200000e+01 : f32
    %405 = vector.broadcast %cst_219 : f32 to vector<16x1xf32>
    %406 = arith.divf %404, %405 : vector<16x1xf32>
    %407 = vector.broadcast %406 : vector<16x1xf32> to vector<16x32xf32>
    %408 = arith.subf %398, %407 : vector<16x32xf32>
    %409 = vector.broadcast %406 : vector<16x1xf32> to vector<16x32xf32>
    %410 = arith.subf %398, %409 : vector<16x32xf32>
    %411 = arith.mulf %408, %410 : vector<16x32xf32>
    %cst_220 = arith.constant dense<0.000000e+00> : vector<16xf32>
    %412 = vector.multi_reduction <add>, %411, %cst_220 [1] : vector<16x32xf32> to vector<16xf32>
    %413 = vector.shape_cast %412 : vector<16xf32> to vector<16x1xf32>
    %cst_221 = arith.constant 3.200000e+01 : f32
    %414 = vector.broadcast %cst_221 : f32 to vector<16x1xf32>
    %415 = arith.divf %413, %414 : vector<16x1xf32>
    %416 = vector.broadcast %406 : vector<16x1xf32> to vector<16x32xf32>
    %417 = arith.subf %398, %416 : vector<16x32xf32>
    %cst_222 = arith.constant 9.99999974E-6 : f32
    %418 = vector.broadcast %cst_222 : f32 to vector<16x1xf32>
    %419 = arith.addf %415, %418 : vector<16x1xf32>
    %420 = math.rsqrt %419 : vector<16x1xf32>
    %421 = vector.broadcast %420 : vector<16x1xf32> to vector<16x32xf32>
    %422 = arith.mulf %417, %421 : vector<16x32xf32>
    %423 = vector.broadcast %400 : vector<1x32xf32> to vector<16x32xf32>
    %424 = arith.mulf %422, %423 : vector<16x32xf32>
    %425 = vector.broadcast %402 : vector<1x32xf32> to vector<16x32xf32>
    %426 = arith.addf %424, %425 : vector<16x32xf32>
    %cst_223 = arith.constant dense<0.000000e+00> : vector<16xf32>
    %427 = vector.multi_reduction <add>, %3, %cst_223 [1] : vector<16x32xf32> to vector<16xf32>
    %428 = vector.shape_cast %427 : vector<16xf32> to vector<16x1xf32>
    %cst_224 = arith.constant 3.200000e+01 : f32
    %429 = vector.broadcast %cst_224 : f32 to vector<16x1xf32>
    %430 = arith.divf %428, %429 : vector<16x1xf32>
    %431 = vector.broadcast %430 : vector<16x1xf32> to vector<16x32xf32>
    %432 = arith.subf %3, %431 : vector<16x32xf32>
    %433 = vector.broadcast %430 : vector<16x1xf32> to vector<16x32xf32>
    %434 = arith.subf %3, %433 : vector<16x32xf32>
    %435 = arith.mulf %432, %434 : vector<16x32xf32>
    %cst_225 = arith.constant dense<0.000000e+00> : vector<16xf32>
    %436 = vector.multi_reduction <add>, %435, %cst_225 [1] : vector<16x32xf32> to vector<16xf32>
    %437 = vector.shape_cast %436 : vector<16xf32> to vector<16x1xf32>
    %cst_226 = arith.constant 3.200000e+01 : f32
    %438 = vector.broadcast %cst_226 : f32 to vector<16x1xf32>
    %439 = arith.divf %437, %438 : vector<16x1xf32>
    %440 = vector.broadcast %430 : vector<16x1xf32> to vector<16x32xf32>
    %441 = arith.subf %3, %440 : vector<16x32xf32>
    %cst_227 = arith.constant 9.99999974E-6 : f32
    %442 = vector.broadcast %cst_227 : f32 to vector<16x1xf32>
    %443 = arith.addf %439, %442 : vector<16x1xf32>
    %444 = math.rsqrt %443 : vector<16x1xf32>
    %445 = vector.broadcast %444 : vector<16x1xf32> to vector<16x32xf32>
    %446 = arith.mulf %441, %445 : vector<16x32xf32>
    %447 = vector.broadcast %400 : vector<1x32xf32> to vector<16x32xf32>
    %448 = arith.mulf %446, %447 : vector<16x32xf32>
    %449 = vector.broadcast %402 : vector<1x32xf32> to vector<16x32xf32>
    %450 = arith.addf %448, %449 : vector<16x32xf32>
    %c0_228 = arith.constant 0 : index
    %c2_229 = arith.constant 2 : index
    %c0_230 = arith.constant 0 : index
    %c0_231 = arith.constant 0 : index
    %451 = vector.load %arg6[%c0_228, %c2_229, %c0_230, %c0_231] : memref<1x6x32x32xf32, #tpu.memory_space<vmem>>, vector<1x1x32x32xf32>
    %452 = vector.shape_cast %451 : vector<1x1x32x32xf32> to vector<32x32xf32>
    %cst_232 = arith.constant dense<0.000000e+00> : vector<16x32xf32>
    %453 = tpu.matmul %426, %452, %cst_232 {dimension_numbers = #tpu.dot_dimension_numbers<[1], [0], [0], [1], [0, 0, 1, 1], [], []>} : vector<16x32xf32>, vector<32x32xf32>, vector<16x32xf32> -> vector<16x32xf32>
    %c0_233 = arith.constant 0 : index
    %c2_234 = arith.constant 2 : index
    %c0_235 = arith.constant 0 : index
    %c0_236 = arith.constant 0 : index
    %454 = vector.load %arg7[%c0_233, %c2_234, %c0_235, %c0_236] : memref<1x6x1x32xf32, #tpu.memory_space<vmem>>, vector<1x1x1x32xf32>
    %455 = vector.shape_cast %454 : vector<1x1x1x32xf32> to vector<1x32xf32>
    %456 = vector.broadcast %455 : vector<1x32xf32> to vector<16x32xf32>
    %457 = arith.addf %453, %456 : vector<16x32xf32>
    %cst_237 = arith.constant 0.353553385 : f32
    %458 = vector.broadcast %cst_237 : f32 to vector<16x32xf32>
    %459 = arith.mulf %457, %458 : vector<16x32xf32>
    %c0_238 = arith.constant 0 : index
    %c2_239 = arith.constant 2 : index
    %c0_240 = arith.constant 0 : index
    %c0_241 = arith.constant 0 : index
    %460 = vector.load %arg8[%c0_238, %c2_239, %c0_240, %c0_241] : memref<1x6x32x32xf32, #tpu.memory_space<vmem>>, vector<1x1x32x32xf32>
    %461 = vector.shape_cast %460 : vector<1x1x32x32xf32> to vector<32x32xf32>
    %cst_242 = arith.constant dense<0.000000e+00> : vector<16x32xf32>
    %462 = tpu.matmul %450, %461, %cst_242 {dimension_numbers = #tpu.dot_dimension_numbers<[1], [0], [0], [1], [0, 0, 1, 1], [], []>} : vector<16x32xf32>, vector<32x32xf32>, vector<16x32xf32> -> vector<16x32xf32>
    %c0_243 = arith.constant 0 : index
    %c2_244 = arith.constant 2 : index
    %c0_245 = arith.constant 0 : index
    %c0_246 = arith.constant 0 : index
    %463 = vector.load %arg9[%c0_243, %c2_244, %c0_245, %c0_246] : memref<1x6x1x32xf32, #tpu.memory_space<vmem>>, vector<1x1x1x32xf32>
    %464 = vector.shape_cast %463 : vector<1x1x1x32xf32> to vector<1x32xf32>
    %465 = vector.broadcast %464 : vector<1x32xf32> to vector<16x32xf32>
    %466 = arith.addf %462, %465 : vector<16x32xf32>
    %c0_247 = arith.constant 0 : index
    %c2_248 = arith.constant 2 : index
    %c0_249 = arith.constant 0 : index
    %c0_250 = arith.constant 0 : index
    %467 = vector.load %arg10[%c0_247, %c2_248, %c0_249, %c0_250] : memref<1x6x32x32xf32, #tpu.memory_space<vmem>>, vector<1x1x32x32xf32>
    %468 = vector.shape_cast %467 : vector<1x1x32x32xf32> to vector<32x32xf32>
    %cst_251 = arith.constant dense<0.000000e+00> : vector<16x32xf32>
    %469 = tpu.matmul %450, %468, %cst_251 {dimension_numbers = #tpu.dot_dimension_numbers<[1], [0], [0], [1], [0, 0, 1, 1], [], []>} : vector<16x32xf32>, vector<32x32xf32>, vector<16x32xf32> -> vector<16x32xf32>
    %c0_252 = arith.constant 0 : index
    %c2_253 = arith.constant 2 : index
    %c0_254 = arith.constant 0 : index
    %c0_255 = arith.constant 0 : index
    %470 = vector.load %arg11[%c0_252, %c2_253, %c0_254, %c0_255] : memref<1x6x1x32xf32, #tpu.memory_space<vmem>>, vector<1x1x1x32xf32>
    %471 = vector.shape_cast %470 : vector<1x1x1x32xf32> to vector<1x32xf32>
    %472 = vector.broadcast %471 : vector<1x32xf32> to vector<16x32xf32>
    %473 = arith.addf %469, %472 : vector<16x32xf32>
    %474 = vector.extract_strided_slice %459 {offsets = [0, 0], sizes = [16, 8], strides = [1, 1]} : vector<16x32xf32> to vector<16x8xf32>
    %475 = vector.extract_strided_slice %466 {offsets = [0, 0], sizes = [16, 8], strides = [1, 1]} : vector<16x32xf32> to vector<16x8xf32>
    %476 = tpu.transpose %475, [1, 0] : vector<16x8xf32> -> vector<8x16xf32>
    %cst_256 = arith.constant dense<0.000000e+00> : vector<16x16xf32>
    %477 = tpu.matmul %474, %476, %cst_256 {dimension_numbers = #tpu.dot_dimension_numbers<[1], [0], [0], [1], [0, 0, 1, 1], [], []>} : vector<16x8xf32>, vector<8x16xf32>, vector<16x16xf32> -> vector<16x16xf32>
    %478 = arith.addf %477, %4 : vector<16x16xf32>
    %cst_257 = arith.constant dense<0xFF800000> : vector<16xf32>
    %479 = vector.multi_reduction <maximumf>, %478, %cst_257 [1] : vector<16x16xf32> to vector<16xf32>
    %480 = vector.shape_cast %479 : vector<16xf32> to vector<16x1xf32>
    %481 = vector.broadcast %480 : vector<16x1xf32> to vector<16x16xf32>
    %482 = arith.subf %478, %481 : vector<16x16xf32>
    %483 = math.exp %482 : vector<16x16xf32>
    %cst_258 = arith.constant dense<0.000000e+00> : vector<16xf32>
    %484 = vector.multi_reduction <add>, %483, %cst_258 [1] : vector<16x16xf32> to vector<16xf32>
    %485 = vector.shape_cast %484 : vector<16xf32> to vector<16x1xf32>
    %486 = tpu.reciprocal %485 {approx = true} : vector<16x1xf32> -> vector<16x1xf32>
    %487 = vector.broadcast %486 : vector<16x1xf32> to vector<16x16xf32>
    %488 = arith.mulf %483, %487 : vector<16x16xf32>
    %489 = vector.extract_strided_slice %473 {offsets = [0, 0], sizes = [16, 8], strides = [1, 1]} : vector<16x32xf32> to vector<16x8xf32>
    %cst_259 = arith.constant dense<0.000000e+00> : vector<16x8xf32>
    %490 = tpu.matmul %488, %489, %cst_259 {dimension_numbers = #tpu.dot_dimension_numbers<[1], [0], [0], [1], [0, 0, 1, 1], [], []>} : vector<16x16xf32>, vector<16x8xf32>, vector<16x8xf32> -> vector<16x8xf32>
    %491 = vector.extract_strided_slice %459 {offsets = [0, 8], sizes = [16, 8], strides = [1, 1]} : vector<16x32xf32> to vector<16x8xf32>
    %492 = vector.extract_strided_slice %466 {offsets = [0, 8], sizes = [16, 8], strides = [1, 1]} : vector<16x32xf32> to vector<16x8xf32>
    %493 = tpu.transpose %492, [1, 0] : vector<16x8xf32> -> vector<8x16xf32>
    %cst_260 = arith.constant dense<0.000000e+00> : vector<16x16xf32>
    %494 = tpu.matmul %491, %493, %cst_260 {dimension_numbers = #tpu.dot_dimension_numbers<[1], [0], [0], [1], [0, 0, 1, 1], [], []>} : vector<16x8xf32>, vector<8x16xf32>, vector<16x16xf32> -> vector<16x16xf32>
    %495 = arith.addf %494, %4 : vector<16x16xf32>
    %cst_261 = arith.constant dense<0xFF800000> : vector<16xf32>
    %496 = vector.multi_reduction <maximumf>, %495, %cst_261 [1] : vector<16x16xf32> to vector<16xf32>
    %497 = vector.shape_cast %496 : vector<16xf32> to vector<16x1xf32>
    %498 = vector.broadcast %497 : vector<16x1xf32> to vector<16x16xf32>
    %499 = arith.subf %495, %498 : vector<16x16xf32>
    %500 = math.exp %499 : vector<16x16xf32>
    %cst_262 = arith.constant dense<0.000000e+00> : vector<16xf32>
    %501 = vector.multi_reduction <add>, %500, %cst_262 [1] : vector<16x16xf32> to vector<16xf32>
    %502 = vector.shape_cast %501 : vector<16xf32> to vector<16x1xf32>
    %503 = tpu.reciprocal %502 {approx = true} : vector<16x1xf32> -> vector<16x1xf32>
    %504 = vector.broadcast %503 : vector<16x1xf32> to vector<16x16xf32>
    %505 = arith.mulf %500, %504 : vector<16x16xf32>
    %506 = vector.extract_strided_slice %473 {offsets = [0, 8], sizes = [16, 8], strides = [1, 1]} : vector<16x32xf32> to vector<16x8xf32>
    %cst_263 = arith.constant dense<0.000000e+00> : vector<16x8xf32>
    %507 = tpu.matmul %505, %506, %cst_263 {dimension_numbers = #tpu.dot_dimension_numbers<[1], [0], [0], [1], [0, 0, 1, 1], [], []>} : vector<16x16xf32>, vector<16x8xf32>, vector<16x8xf32> -> vector<16x8xf32>
    %508 = vector.extract_strided_slice %459 {offsets = [0, 16], sizes = [16, 8], strides = [1, 1]} : vector<16x32xf32> to vector<16x8xf32>
    %509 = vector.extract_strided_slice %466 {offsets = [0, 16], sizes = [16, 8], strides = [1, 1]} : vector<16x32xf32> to vector<16x8xf32>
    %510 = tpu.transpose %509, [1, 0] : vector<16x8xf32> -> vector<8x16xf32>
    %cst_264 = arith.constant dense<0.000000e+00> : vector<16x16xf32>
    %511 = tpu.matmul %508, %510, %cst_264 {dimension_numbers = #tpu.dot_dimension_numbers<[1], [0], [0], [1], [0, 0, 1, 1], [], []>} : vector<16x8xf32>, vector<8x16xf32>, vector<16x16xf32> -> vector<16x16xf32>
    %512 = arith.addf %511, %4 : vector<16x16xf32>
    %cst_265 = arith.constant dense<0xFF800000> : vector<16xf32>
    %513 = vector.multi_reduction <maximumf>, %512, %cst_265 [1] : vector<16x16xf32> to vector<16xf32>
    %514 = vector.shape_cast %513 : vector<16xf32> to vector<16x1xf32>
    %515 = vector.broadcast %514 : vector<16x1xf32> to vector<16x16xf32>
    %516 = arith.subf %512, %515 : vector<16x16xf32>
    %517 = math.exp %516 : vector<16x16xf32>
    %cst_266 = arith.constant dense<0.000000e+00> : vector<16xf32>
    %518 = vector.multi_reduction <add>, %517, %cst_266 [1] : vector<16x16xf32> to vector<16xf32>
    %519 = vector.shape_cast %518 : vector<16xf32> to vector<16x1xf32>
    %520 = tpu.reciprocal %519 {approx = true} : vector<16x1xf32> -> vector<16x1xf32>
    %521 = vector.broadcast %520 : vector<16x1xf32> to vector<16x16xf32>
    %522 = arith.mulf %517, %521 : vector<16x16xf32>
    %523 = vector.extract_strided_slice %473 {offsets = [0, 16], sizes = [16, 8], strides = [1, 1]} : vector<16x32xf32> to vector<16x8xf32>
    %cst_267 = arith.constant dense<0.000000e+00> : vector<16x8xf32>
    %524 = tpu.matmul %522, %523, %cst_267 {dimension_numbers = #tpu.dot_dimension_numbers<[1], [0], [0], [1], [0, 0, 1, 1], [], []>} : vector<16x16xf32>, vector<16x8xf32>, vector<16x8xf32> -> vector<16x8xf32>
    %525 = vector.extract_strided_slice %459 {offsets = [0, 24], sizes = [16, 8], strides = [1, 1]} : vector<16x32xf32> to vector<16x8xf32>
    %526 = vector.extract_strided_slice %466 {offsets = [0, 24], sizes = [16, 8], strides = [1, 1]} : vector<16x32xf32> to vector<16x8xf32>
    %527 = tpu.transpose %526, [1, 0] : vector<16x8xf32> -> vector<8x16xf32>
    %cst_268 = arith.constant dense<0.000000e+00> : vector<16x16xf32>
    %528 = tpu.matmul %525, %527, %cst_268 {dimension_numbers = #tpu.dot_dimension_numbers<[1], [0], [0], [1], [0, 0, 1, 1], [], []>} : vector<16x8xf32>, vector<8x16xf32>, vector<16x16xf32> -> vector<16x16xf32>
    %529 = arith.addf %528, %4 : vector<16x16xf32>
    %cst_269 = arith.constant dense<0xFF800000> : vector<16xf32>
    %530 = vector.multi_reduction <maximumf>, %529, %cst_269 [1] : vector<16x16xf32> to vector<16xf32>
    %531 = vector.shape_cast %530 : vector<16xf32> to vector<16x1xf32>
    %532 = vector.broadcast %531 : vector<16x1xf32> to vector<16x16xf32>
    %533 = arith.subf %529, %532 : vector<16x16xf32>
    %534 = math.exp %533 : vector<16x16xf32>
    %cst_270 = arith.constant dense<0.000000e+00> : vector<16xf32>
    %535 = vector.multi_reduction <add>, %534, %cst_270 [1] : vector<16x16xf32> to vector<16xf32>
    %536 = vector.shape_cast %535 : vector<16xf32> to vector<16x1xf32>
    %537 = tpu.reciprocal %536 {approx = true} : vector<16x1xf32> -> vector<16x1xf32>
    %538 = vector.broadcast %537 : vector<16x1xf32> to vector<16x16xf32>
    %539 = arith.mulf %534, %538 : vector<16x16xf32>
    %540 = vector.extract_strided_slice %473 {offsets = [0, 24], sizes = [16, 8], strides = [1, 1]} : vector<16x32xf32> to vector<16x8xf32>
    %cst_271 = arith.constant dense<0.000000e+00> : vector<16x8xf32>
    %541 = tpu.matmul %539, %540, %cst_271 {dimension_numbers = #tpu.dot_dimension_numbers<[1], [0], [0], [1], [0, 0, 1, 1], [], []>} : vector<16x16xf32>, vector<16x8xf32>, vector<16x8xf32> -> vector<16x8xf32>
    %542 = tpu.concatenate %490, %507, %524, %541 in 1 : vector<16x8xf32>, vector<16x8xf32>, vector<16x8xf32>, vector<16x8xf32> -> vector<16x32xf32>
    %c0_272 = arith.constant 0 : index
    %c2_273 = arith.constant 2 : index
    %c0_274 = arith.constant 0 : index
    %c0_275 = arith.constant 0 : index
    %543 = vector.load %arg12[%c0_272, %c2_273, %c0_274, %c0_275] : memref<1x6x32x32xf32, #tpu.memory_space<vmem>>, vector<1x1x32x32xf32>
    %544 = vector.shape_cast %543 : vector<1x1x32x32xf32> to vector<32x32xf32>
    %cst_276 = arith.constant dense<0.000000e+00> : vector<16x32xf32>
    %545 = tpu.matmul %542, %544, %cst_276 {dimension_numbers = #tpu.dot_dimension_numbers<[1], [0], [0], [1], [0, 0, 1, 1], [], []>} : vector<16x32xf32>, vector<32x32xf32>, vector<16x32xf32> -> vector<16x32xf32>
    %c0_277 = arith.constant 0 : index
    %c2_278 = arith.constant 2 : index
    %c0_279 = arith.constant 0 : index
    %c0_280 = arith.constant 0 : index
    %546 = vector.load %arg13[%c0_277, %c2_278, %c0_279, %c0_280] : memref<1x6x1x32xf32, #tpu.memory_space<vmem>>, vector<1x1x1x32xf32>
    %547 = vector.shape_cast %546 : vector<1x1x1x32xf32> to vector<1x32xf32>
    %548 = vector.broadcast %547 : vector<1x32xf32> to vector<16x32xf32>
    %549 = arith.addf %545, %548 : vector<16x32xf32>
    %550 = arith.addf %398, %549 : vector<16x32xf32>
    %c0_281 = arith.constant 0 : index
    %c2_282 = arith.constant 2 : index
    %c0_283 = arith.constant 0 : index
    %c0_284 = arith.constant 0 : index
    %551 = vector.load %arg14[%c0_281, %c2_282, %c0_283, %c0_284] : memref<1x6x1x32xf32, #tpu.memory_space<vmem>>, vector<1x1x1x32xf32>
    %552 = vector.shape_cast %551 : vector<1x1x1x32xf32> to vector<1x32xf32>
    %c0_285 = arith.constant 0 : index
    %c2_286 = arith.constant 2 : index
    %c0_287 = arith.constant 0 : index
    %c0_288 = arith.constant 0 : index
    %553 = vector.load %arg15[%c0_285, %c2_286, %c0_287, %c0_288] : memref<1x6x1x32xf32, #tpu.memory_space<vmem>>, vector<1x1x1x32xf32>
    %554 = vector.shape_cast %553 : vector<1x1x1x32xf32> to vector<1x32xf32>
    %cst_289 = arith.constant dense<0.000000e+00> : vector<16xf32>
    %555 = vector.multi_reduction <add>, %550, %cst_289 [1] : vector<16x32xf32> to vector<16xf32>
    %556 = vector.shape_cast %555 : vector<16xf32> to vector<16x1xf32>
    %cst_290 = arith.constant 3.200000e+01 : f32
    %557 = vector.broadcast %cst_290 : f32 to vector<16x1xf32>
    %558 = arith.divf %556, %557 : vector<16x1xf32>
    %559 = vector.broadcast %558 : vector<16x1xf32> to vector<16x32xf32>
    %560 = arith.subf %550, %559 : vector<16x32xf32>
    %561 = vector.broadcast %558 : vector<16x1xf32> to vector<16x32xf32>
    %562 = arith.subf %550, %561 : vector<16x32xf32>
    %563 = arith.mulf %560, %562 : vector<16x32xf32>
    %cst_291 = arith.constant dense<0.000000e+00> : vector<16xf32>
    %564 = vector.multi_reduction <add>, %563, %cst_291 [1] : vector<16x32xf32> to vector<16xf32>
    %565 = vector.shape_cast %564 : vector<16xf32> to vector<16x1xf32>
    %cst_292 = arith.constant 3.200000e+01 : f32
    %566 = vector.broadcast %cst_292 : f32 to vector<16x1xf32>
    %567 = arith.divf %565, %566 : vector<16x1xf32>
    %568 = vector.broadcast %558 : vector<16x1xf32> to vector<16x32xf32>
    %569 = arith.subf %550, %568 : vector<16x32xf32>
    %cst_293 = arith.constant 9.99999974E-6 : f32
    %570 = vector.broadcast %cst_293 : f32 to vector<16x1xf32>
    %571 = arith.addf %567, %570 : vector<16x1xf32>
    %572 = math.rsqrt %571 : vector<16x1xf32>
    %573 = vector.broadcast %572 : vector<16x1xf32> to vector<16x32xf32>
    %574 = arith.mulf %569, %573 : vector<16x32xf32>
    %575 = vector.broadcast %552 : vector<1x32xf32> to vector<16x32xf32>
    %576 = arith.mulf %574, %575 : vector<16x32xf32>
    %577 = vector.broadcast %554 : vector<1x32xf32> to vector<16x32xf32>
    %578 = arith.addf %576, %577 : vector<16x32xf32>
    %c0_294 = arith.constant 0 : index
    %c2_295 = arith.constant 2 : index
    %c0_296 = arith.constant 0 : index
    %c0_297 = arith.constant 0 : index
    %579 = vector.load %arg16[%c0_294, %c2_295, %c0_296, %c0_297] : memref<1x6x32x128xf32, #tpu.memory_space<vmem>>, vector<1x1x32x128xf32>
    %580 = vector.shape_cast %579 : vector<1x1x32x128xf32> to vector<32x128xf32>
    %cst_298 = arith.constant dense<0.000000e+00> : vector<16x128xf32>
    %581 = tpu.matmul %578, %580, %cst_298 {dimension_numbers = #tpu.dot_dimension_numbers<[1], [0], [0], [1], [0, 0, 1, 1], [], []>} : vector<16x32xf32>, vector<32x128xf32>, vector<16x128xf32> -> vector<16x128xf32>
    %c0_299 = arith.constant 0 : index
    %c2_300 = arith.constant 2 : index
    %c0_301 = arith.constant 0 : index
    %c0_302 = arith.constant 0 : index
    %582 = vector.load %arg17[%c0_299, %c2_300, %c0_301, %c0_302] : memref<1x6x1x128xf32, #tpu.memory_space<vmem>>, vector<1x1x1x128xf32>
    %583 = vector.shape_cast %582 : vector<1x1x1x128xf32> to vector<1x128xf32>
    %584 = vector.broadcast %583 : vector<1x128xf32> to vector<16x128xf32>
    %585 = arith.addf %581, %584 : vector<16x128xf32>
    %cst_303 = arith.constant 0.000000e+00 : f32
    %586 = vector.broadcast %cst_303 : f32 to vector<16x128xf32>
    %587 = arith.maximumf %585, %586 : vector<16x128xf32>
    %c0_304 = arith.constant 0 : index
    %c2_305 = arith.constant 2 : index
    %c0_306 = arith.constant 0 : index
    %c0_307 = arith.constant 0 : index
    %588 = vector.load %arg18[%c0_304, %c2_305, %c0_306, %c0_307] : memref<1x6x128x32xf32, #tpu.memory_space<vmem>>, vector<1x1x128x32xf32>
    %589 = vector.shape_cast %588 : vector<1x1x128x32xf32> to vector<128x32xf32>
    %cst_308 = arith.constant dense<0.000000e+00> : vector<16x32xf32>
    %590 = tpu.matmul %587, %589, %cst_308 {dimension_numbers = #tpu.dot_dimension_numbers<[1], [0], [0], [1], [0, 0, 1, 1], [], []>} : vector<16x128xf32>, vector<128x32xf32>, vector<16x32xf32> -> vector<16x32xf32>
    %c0_309 = arith.constant 0 : index
    %c2_310 = arith.constant 2 : index
    %c0_311 = arith.constant 0 : index
    %c0_312 = arith.constant 0 : index
    %591 = vector.load %arg19[%c0_309, %c2_310, %c0_311, %c0_312] : memref<1x6x1x32xf32, #tpu.memory_space<vmem>>, vector<1x1x1x32xf32>
    %592 = vector.shape_cast %591 : vector<1x1x1x32xf32> to vector<1x32xf32>
    %593 = vector.broadcast %592 : vector<1x32xf32> to vector<16x32xf32>
    %594 = arith.addf %590, %593 : vector<16x32xf32>
    %595 = arith.addf %550, %594 : vector<16x32xf32>
    %c0_313 = arith.constant 0 : index
    %c3 = arith.constant 3 : index
    %c0_314 = arith.constant 0 : index
    %c0_315 = arith.constant 0 : index
    %596 = vector.load %arg4[%c0_313, %c3, %c0_314, %c0_315] : memref<1x6x1x32xf32, #tpu.memory_space<vmem>>, vector<1x1x1x32xf32>
    %597 = vector.shape_cast %596 : vector<1x1x1x32xf32> to vector<1x32xf32>
    %c0_316 = arith.constant 0 : index
    %c3_317 = arith.constant 3 : index
    %c0_318 = arith.constant 0 : index
    %c0_319 = arith.constant 0 : index
    %598 = vector.load %arg5[%c0_316, %c3_317, %c0_318, %c0_319] : memref<1x6x1x32xf32, #tpu.memory_space<vmem>>, vector<1x1x1x32xf32>
    %599 = vector.shape_cast %598 : vector<1x1x1x32xf32> to vector<1x32xf32>
    %cst_320 = arith.constant dense<0.000000e+00> : vector<16xf32>
    %600 = vector.multi_reduction <add>, %595, %cst_320 [1] : vector<16x32xf32> to vector<16xf32>
    %601 = vector.shape_cast %600 : vector<16xf32> to vector<16x1xf32>
    %cst_321 = arith.constant 3.200000e+01 : f32
    %602 = vector.broadcast %cst_321 : f32 to vector<16x1xf32>
    %603 = arith.divf %601, %602 : vector<16x1xf32>
    %604 = vector.broadcast %603 : vector<16x1xf32> to vector<16x32xf32>
    %605 = arith.subf %595, %604 : vector<16x32xf32>
    %606 = vector.broadcast %603 : vector<16x1xf32> to vector<16x32xf32>
    %607 = arith.subf %595, %606 : vector<16x32xf32>
    %608 = arith.mulf %605, %607 : vector<16x32xf32>
    %cst_322 = arith.constant dense<0.000000e+00> : vector<16xf32>
    %609 = vector.multi_reduction <add>, %608, %cst_322 [1] : vector<16x32xf32> to vector<16xf32>
    %610 = vector.shape_cast %609 : vector<16xf32> to vector<16x1xf32>
    %cst_323 = arith.constant 3.200000e+01 : f32
    %611 = vector.broadcast %cst_323 : f32 to vector<16x1xf32>
    %612 = arith.divf %610, %611 : vector<16x1xf32>
    %613 = vector.broadcast %603 : vector<16x1xf32> to vector<16x32xf32>
    %614 = arith.subf %595, %613 : vector<16x32xf32>
    %cst_324 = arith.constant 9.99999974E-6 : f32
    %615 = vector.broadcast %cst_324 : f32 to vector<16x1xf32>
    %616 = arith.addf %612, %615 : vector<16x1xf32>
    %617 = math.rsqrt %616 : vector<16x1xf32>
    %618 = vector.broadcast %617 : vector<16x1xf32> to vector<16x32xf32>
    %619 = arith.mulf %614, %618 : vector<16x32xf32>
    %620 = vector.broadcast %597 : vector<1x32xf32> to vector<16x32xf32>
    %621 = arith.mulf %619, %620 : vector<16x32xf32>
    %622 = vector.broadcast %599 : vector<1x32xf32> to vector<16x32xf32>
    %623 = arith.addf %621, %622 : vector<16x32xf32>
    %cst_325 = arith.constant dense<0.000000e+00> : vector<16xf32>
    %624 = vector.multi_reduction <add>, %3, %cst_325 [1] : vector<16x32xf32> to vector<16xf32>
    %625 = vector.shape_cast %624 : vector<16xf32> to vector<16x1xf32>
    %cst_326 = arith.constant 3.200000e+01 : f32
    %626 = vector.broadcast %cst_326 : f32 to vector<16x1xf32>
    %627 = arith.divf %625, %626 : vector<16x1xf32>
    %628 = vector.broadcast %627 : vector<16x1xf32> to vector<16x32xf32>
    %629 = arith.subf %3, %628 : vector<16x32xf32>
    %630 = vector.broadcast %627 : vector<16x1xf32> to vector<16x32xf32>
    %631 = arith.subf %3, %630 : vector<16x32xf32>
    %632 = arith.mulf %629, %631 : vector<16x32xf32>
    %cst_327 = arith.constant dense<0.000000e+00> : vector<16xf32>
    %633 = vector.multi_reduction <add>, %632, %cst_327 [1] : vector<16x32xf32> to vector<16xf32>
    %634 = vector.shape_cast %633 : vector<16xf32> to vector<16x1xf32>
    %cst_328 = arith.constant 3.200000e+01 : f32
    %635 = vector.broadcast %cst_328 : f32 to vector<16x1xf32>
    %636 = arith.divf %634, %635 : vector<16x1xf32>
    %637 = vector.broadcast %627 : vector<16x1xf32> to vector<16x32xf32>
    %638 = arith.subf %3, %637 : vector<16x32xf32>
    %cst_329 = arith.constant 9.99999974E-6 : f32
    %639 = vector.broadcast %cst_329 : f32 to vector<16x1xf32>
    %640 = arith.addf %636, %639 : vector<16x1xf32>
    %641 = math.rsqrt %640 : vector<16x1xf32>
    %642 = vector.broadcast %641 : vector<16x1xf32> to vector<16x32xf32>
    %643 = arith.mulf %638, %642 : vector<16x32xf32>
    %644 = vector.broadcast %597 : vector<1x32xf32> to vector<16x32xf32>
    %645 = arith.mulf %643, %644 : vector<16x32xf32>
    %646 = vector.broadcast %599 : vector<1x32xf32> to vector<16x32xf32>
    %647 = arith.addf %645, %646 : vector<16x32xf32>
    %c0_330 = arith.constant 0 : index
    %c3_331 = arith.constant 3 : index
    %c0_332 = arith.constant 0 : index
    %c0_333 = arith.constant 0 : index
    %648 = vector.load %arg6[%c0_330, %c3_331, %c0_332, %c0_333] : memref<1x6x32x32xf32, #tpu.memory_space<vmem>>, vector<1x1x32x32xf32>
    %649 = vector.shape_cast %648 : vector<1x1x32x32xf32> to vector<32x32xf32>
    %cst_334 = arith.constant dense<0.000000e+00> : vector<16x32xf32>
    %650 = tpu.matmul %623, %649, %cst_334 {dimension_numbers = #tpu.dot_dimension_numbers<[1], [0], [0], [1], [0, 0, 1, 1], [], []>} : vector<16x32xf32>, vector<32x32xf32>, vector<16x32xf32> -> vector<16x32xf32>
    %c0_335 = arith.constant 0 : index
    %c3_336 = arith.constant 3 : index
    %c0_337 = arith.constant 0 : index
    %c0_338 = arith.constant 0 : index
    %651 = vector.load %arg7[%c0_335, %c3_336, %c0_337, %c0_338] : memref<1x6x1x32xf32, #tpu.memory_space<vmem>>, vector<1x1x1x32xf32>
    %652 = vector.shape_cast %651 : vector<1x1x1x32xf32> to vector<1x32xf32>
    %653 = vector.broadcast %652 : vector<1x32xf32> to vector<16x32xf32>
    %654 = arith.addf %650, %653 : vector<16x32xf32>
    %cst_339 = arith.constant 0.353553385 : f32
    %655 = vector.broadcast %cst_339 : f32 to vector<16x32xf32>
    %656 = arith.mulf %654, %655 : vector<16x32xf32>
    %c0_340 = arith.constant 0 : index
    %c3_341 = arith.constant 3 : index
    %c0_342 = arith.constant 0 : index
    %c0_343 = arith.constant 0 : index
    %657 = vector.load %arg8[%c0_340, %c3_341, %c0_342, %c0_343] : memref<1x6x32x32xf32, #tpu.memory_space<vmem>>, vector<1x1x32x32xf32>
    %658 = vector.shape_cast %657 : vector<1x1x32x32xf32> to vector<32x32xf32>
    %cst_344 = arith.constant dense<0.000000e+00> : vector<16x32xf32>
    %659 = tpu.matmul %647, %658, %cst_344 {dimension_numbers = #tpu.dot_dimension_numbers<[1], [0], [0], [1], [0, 0, 1, 1], [], []>} : vector<16x32xf32>, vector<32x32xf32>, vector<16x32xf32> -> vector<16x32xf32>
    %c0_345 = arith.constant 0 : index
    %c3_346 = arith.constant 3 : index
    %c0_347 = arith.constant 0 : index
    %c0_348 = arith.constant 0 : index
    %660 = vector.load %arg9[%c0_345, %c3_346, %c0_347, %c0_348] : memref<1x6x1x32xf32, #tpu.memory_space<vmem>>, vector<1x1x1x32xf32>
    %661 = vector.shape_cast %660 : vector<1x1x1x32xf32> to vector<1x32xf32>
    %662 = vector.broadcast %661 : vector<1x32xf32> to vector<16x32xf32>
    %663 = arith.addf %659, %662 : vector<16x32xf32>
    %c0_349 = arith.constant 0 : index
    %c3_350 = arith.constant 3 : index
    %c0_351 = arith.constant 0 : index
    %c0_352 = arith.constant 0 : index
    %664 = vector.load %arg10[%c0_349, %c3_350, %c0_351, %c0_352] : memref<1x6x32x32xf32, #tpu.memory_space<vmem>>, vector<1x1x32x32xf32>
    %665 = vector.shape_cast %664 : vector<1x1x32x32xf32> to vector<32x32xf32>
    %cst_353 = arith.constant dense<0.000000e+00> : vector<16x32xf32>
    %666 = tpu.matmul %647, %665, %cst_353 {dimension_numbers = #tpu.dot_dimension_numbers<[1], [0], [0], [1], [0, 0, 1, 1], [], []>} : vector<16x32xf32>, vector<32x32xf32>, vector<16x32xf32> -> vector<16x32xf32>
    %c0_354 = arith.constant 0 : index
    %c3_355 = arith.constant 3 : index
    %c0_356 = arith.constant 0 : index
    %c0_357 = arith.constant 0 : index
    %667 = vector.load %arg11[%c0_354, %c3_355, %c0_356, %c0_357] : memref<1x6x1x32xf32, #tpu.memory_space<vmem>>, vector<1x1x1x32xf32>
    %668 = vector.shape_cast %667 : vector<1x1x1x32xf32> to vector<1x32xf32>
    %669 = vector.broadcast %668 : vector<1x32xf32> to vector<16x32xf32>
    %670 = arith.addf %666, %669 : vector<16x32xf32>
    %671 = vector.extract_strided_slice %656 {offsets = [0, 0], sizes = [16, 8], strides = [1, 1]} : vector<16x32xf32> to vector<16x8xf32>
    %672 = vector.extract_strided_slice %663 {offsets = [0, 0], sizes = [16, 8], strides = [1, 1]} : vector<16x32xf32> to vector<16x8xf32>
    %673 = tpu.transpose %672, [1, 0] : vector<16x8xf32> -> vector<8x16xf32>
    %cst_358 = arith.constant dense<0.000000e+00> : vector<16x16xf32>
    %674 = tpu.matmul %671, %673, %cst_358 {dimension_numbers = #tpu.dot_dimension_numbers<[1], [0], [0], [1], [0, 0, 1, 1], [], []>} : vector<16x8xf32>, vector<8x16xf32>, vector<16x16xf32> -> vector<16x16xf32>
    %675 = arith.addf %674, %4 : vector<16x16xf32>
    %cst_359 = arith.constant dense<0xFF800000> : vector<16xf32>
    %676 = vector.multi_reduction <maximumf>, %675, %cst_359 [1] : vector<16x16xf32> to vector<16xf32>
    %677 = vector.shape_cast %676 : vector<16xf32> to vector<16x1xf32>
    %678 = vector.broadcast %677 : vector<16x1xf32> to vector<16x16xf32>
    %679 = arith.subf %675, %678 : vector<16x16xf32>
    %680 = math.exp %679 : vector<16x16xf32>
    %cst_360 = arith.constant dense<0.000000e+00> : vector<16xf32>
    %681 = vector.multi_reduction <add>, %680, %cst_360 [1] : vector<16x16xf32> to vector<16xf32>
    %682 = vector.shape_cast %681 : vector<16xf32> to vector<16x1xf32>
    %683 = tpu.reciprocal %682 {approx = true} : vector<16x1xf32> -> vector<16x1xf32>
    %684 = vector.broadcast %683 : vector<16x1xf32> to vector<16x16xf32>
    %685 = arith.mulf %680, %684 : vector<16x16xf32>
    %686 = vector.extract_strided_slice %670 {offsets = [0, 0], sizes = [16, 8], strides = [1, 1]} : vector<16x32xf32> to vector<16x8xf32>
    %cst_361 = arith.constant dense<0.000000e+00> : vector<16x8xf32>
    %687 = tpu.matmul %685, %686, %cst_361 {dimension_numbers = #tpu.dot_dimension_numbers<[1], [0], [0], [1], [0, 0, 1, 1], [], []>} : vector<16x16xf32>, vector<16x8xf32>, vector<16x8xf32> -> vector<16x8xf32>
    %688 = vector.extract_strided_slice %656 {offsets = [0, 8], sizes = [16, 8], strides = [1, 1]} : vector<16x32xf32> to vector<16x8xf32>
    %689 = vector.extract_strided_slice %663 {offsets = [0, 8], sizes = [16, 8], strides = [1, 1]} : vector<16x32xf32> to vector<16x8xf32>
    %690 = tpu.transpose %689, [1, 0] : vector<16x8xf32> -> vector<8x16xf32>
    %cst_362 = arith.constant dense<0.000000e+00> : vector<16x16xf32>
    %691 = tpu.matmul %688, %690, %cst_362 {dimension_numbers = #tpu.dot_dimension_numbers<[1], [0], [0], [1], [0, 0, 1, 1], [], []>} : vector<16x8xf32>, vector<8x16xf32>, vector<16x16xf32> -> vector<16x16xf32>
    %692 = arith.addf %691, %4 : vector<16x16xf32>
    %cst_363 = arith.constant dense<0xFF800000> : vector<16xf32>
    %693 = vector.multi_reduction <maximumf>, %692, %cst_363 [1] : vector<16x16xf32> to vector<16xf32>
    %694 = vector.shape_cast %693 : vector<16xf32> to vector<16x1xf32>
    %695 = vector.broadcast %694 : vector<16x1xf32> to vector<16x16xf32>
    %696 = arith.subf %692, %695 : vector<16x16xf32>
    %697 = math.exp %696 : vector<16x16xf32>
    %cst_364 = arith.constant dense<0.000000e+00> : vector<16xf32>
    %698 = vector.multi_reduction <add>, %697, %cst_364 [1] : vector<16x16xf32> to vector<16xf32>
    %699 = vector.shape_cast %698 : vector<16xf32> to vector<16x1xf32>
    %700 = tpu.reciprocal %699 {approx = true} : vector<16x1xf32> -> vector<16x1xf32>
    %701 = vector.broadcast %700 : vector<16x1xf32> to vector<16x16xf32>
    %702 = arith.mulf %697, %701 : vector<16x16xf32>
    %703 = vector.extract_strided_slice %670 {offsets = [0, 8], sizes = [16, 8], strides = [1, 1]} : vector<16x32xf32> to vector<16x8xf32>
    %cst_365 = arith.constant dense<0.000000e+00> : vector<16x8xf32>
    %704 = tpu.matmul %702, %703, %cst_365 {dimension_numbers = #tpu.dot_dimension_numbers<[1], [0], [0], [1], [0, 0, 1, 1], [], []>} : vector<16x16xf32>, vector<16x8xf32>, vector<16x8xf32> -> vector<16x8xf32>
    %705 = vector.extract_strided_slice %656 {offsets = [0, 16], sizes = [16, 8], strides = [1, 1]} : vector<16x32xf32> to vector<16x8xf32>
    %706 = vector.extract_strided_slice %663 {offsets = [0, 16], sizes = [16, 8], strides = [1, 1]} : vector<16x32xf32> to vector<16x8xf32>
    %707 = tpu.transpose %706, [1, 0] : vector<16x8xf32> -> vector<8x16xf32>
    %cst_366 = arith.constant dense<0.000000e+00> : vector<16x16xf32>
    %708 = tpu.matmul %705, %707, %cst_366 {dimension_numbers = #tpu.dot_dimension_numbers<[1], [0], [0], [1], [0, 0, 1, 1], [], []>} : vector<16x8xf32>, vector<8x16xf32>, vector<16x16xf32> -> vector<16x16xf32>
    %709 = arith.addf %708, %4 : vector<16x16xf32>
    %cst_367 = arith.constant dense<0xFF800000> : vector<16xf32>
    %710 = vector.multi_reduction <maximumf>, %709, %cst_367 [1] : vector<16x16xf32> to vector<16xf32>
    %711 = vector.shape_cast %710 : vector<16xf32> to vector<16x1xf32>
    %712 = vector.broadcast %711 : vector<16x1xf32> to vector<16x16xf32>
    %713 = arith.subf %709, %712 : vector<16x16xf32>
    %714 = math.exp %713 : vector<16x16xf32>
    %cst_368 = arith.constant dense<0.000000e+00> : vector<16xf32>
    %715 = vector.multi_reduction <add>, %714, %cst_368 [1] : vector<16x16xf32> to vector<16xf32>
    %716 = vector.shape_cast %715 : vector<16xf32> to vector<16x1xf32>
    %717 = tpu.reciprocal %716 {approx = true} : vector<16x1xf32> -> vector<16x1xf32>
    %718 = vector.broadcast %717 : vector<16x1xf32> to vector<16x16xf32>
    %719 = arith.mulf %714, %718 : vector<16x16xf32>
    %720 = vector.extract_strided_slice %670 {offsets = [0, 16], sizes = [16, 8], strides = [1, 1]} : vector<16x32xf32> to vector<16x8xf32>
    %cst_369 = arith.constant dense<0.000000e+00> : vector<16x8xf32>
    %721 = tpu.matmul %719, %720, %cst_369 {dimension_numbers = #tpu.dot_dimension_numbers<[1], [0], [0], [1], [0, 0, 1, 1], [], []>} : vector<16x16xf32>, vector<16x8xf32>, vector<16x8xf32> -> vector<16x8xf32>
    %722 = vector.extract_strided_slice %656 {offsets = [0, 24], sizes = [16, 8], strides = [1, 1]} : vector<16x32xf32> to vector<16x8xf32>
    %723 = vector.extract_strided_slice %663 {offsets = [0, 24], sizes = [16, 8], strides = [1, 1]} : vector<16x32xf32> to vector<16x8xf32>
    %724 = tpu.transpose %723, [1, 0] : vector<16x8xf32> -> vector<8x16xf32>
    %cst_370 = arith.constant dense<0.000000e+00> : vector<16x16xf32>
    %725 = tpu.matmul %722, %724, %cst_370 {dimension_numbers = #tpu.dot_dimension_numbers<[1], [0], [0], [1], [0, 0, 1, 1], [], []>} : vector<16x8xf32>, vector<8x16xf32>, vector<16x16xf32> -> vector<16x16xf32>
    %726 = arith.addf %725, %4 : vector<16x16xf32>
    %cst_371 = arith.constant dense<0xFF800000> : vector<16xf32>
    %727 = vector.multi_reduction <maximumf>, %726, %cst_371 [1] : vector<16x16xf32> to vector<16xf32>
    %728 = vector.shape_cast %727 : vector<16xf32> to vector<16x1xf32>
    %729 = vector.broadcast %728 : vector<16x1xf32> to vector<16x16xf32>
    %730 = arith.subf %726, %729 : vector<16x16xf32>
    %731 = math.exp %730 : vector<16x16xf32>
    %cst_372 = arith.constant dense<0.000000e+00> : vector<16xf32>
    %732 = vector.multi_reduction <add>, %731, %cst_372 [1] : vector<16x16xf32> to vector<16xf32>
    %733 = vector.shape_cast %732 : vector<16xf32> to vector<16x1xf32>
    %734 = tpu.reciprocal %733 {approx = true} : vector<16x1xf32> -> vector<16x1xf32>
    %735 = vector.broadcast %734 : vector<16x1xf32> to vector<16x16xf32>
    %736 = arith.mulf %731, %735 : vector<16x16xf32>
    %737 = vector.extract_strided_slice %670 {offsets = [0, 24], sizes = [16, 8], strides = [1, 1]} : vector<16x32xf32> to vector<16x8xf32>
    %cst_373 = arith.constant dense<0.000000e+00> : vector<16x8xf32>
    %738 = tpu.matmul %736, %737, %cst_373 {dimension_numbers = #tpu.dot_dimension_numbers<[1], [0], [0], [1], [0, 0, 1, 1], [], []>} : vector<16x16xf32>, vector<16x8xf32>, vector<16x8xf32> -> vector<16x8xf32>
    %739 = tpu.concatenate %687, %704, %721, %738 in 1 : vector<16x8xf32>, vector<16x8xf32>, vector<16x8xf32>, vector<16x8xf32> -> vector<16x32xf32>
    %c0_374 = arith.constant 0 : index
    %c3_375 = arith.constant 3 : index
    %c0_376 = arith.constant 0 : index
    %c0_377 = arith.constant 0 : index
    %740 = vector.load %arg12[%c0_374, %c3_375, %c0_376, %c0_377] : memref<1x6x32x32xf32, #tpu.memory_space<vmem>>, vector<1x1x32x32xf32>
    %741 = vector.shape_cast %740 : vector<1x1x32x32xf32> to vector<32x32xf32>
    %cst_378 = arith.constant dense<0.000000e+00> : vector<16x32xf32>
    %742 = tpu.matmul %739, %741, %cst_378 {dimension_numbers = #tpu.dot_dimension_numbers<[1], [0], [0], [1], [0, 0, 1, 1], [], []>} : vector<16x32xf32>, vector<32x32xf32>, vector<16x32xf32> -> vector<16x32xf32>
    %c0_379 = arith.constant 0 : index
    %c3_380 = arith.constant 3 : index
    %c0_381 = arith.constant 0 : index
    %c0_382 = arith.constant 0 : index
    %743 = vector.load %arg13[%c0_379, %c3_380, %c0_381, %c0_382] : memref<1x6x1x32xf32, #tpu.memory_space<vmem>>, vector<1x1x1x32xf32>
    %744 = vector.shape_cast %743 : vector<1x1x1x32xf32> to vector<1x32xf32>
    %745 = vector.broadcast %744 : vector<1x32xf32> to vector<16x32xf32>
    %746 = arith.addf %742, %745 : vector<16x32xf32>
    %747 = arith.addf %595, %746 : vector<16x32xf32>
    %c0_383 = arith.constant 0 : index
    %c3_384 = arith.constant 3 : index
    %c0_385 = arith.constant 0 : index
    %c0_386 = arith.constant 0 : index
    %748 = vector.load %arg14[%c0_383, %c3_384, %c0_385, %c0_386] : memref<1x6x1x32xf32, #tpu.memory_space<vmem>>, vector<1x1x1x32xf32>
    %749 = vector.shape_cast %748 : vector<1x1x1x32xf32> to vector<1x32xf32>
    %c0_387 = arith.constant 0 : index
    %c3_388 = arith.constant 3 : index
    %c0_389 = arith.constant 0 : index
    %c0_390 = arith.constant 0 : index
    %750 = vector.load %arg15[%c0_387, %c3_388, %c0_389, %c0_390] : memref<1x6x1x32xf32, #tpu.memory_space<vmem>>, vector<1x1x1x32xf32>
    %751 = vector.shape_cast %750 : vector<1x1x1x32xf32> to vector<1x32xf32>
    %cst_391 = arith.constant dense<0.000000e+00> : vector<16xf32>
    %752 = vector.multi_reduction <add>, %747, %cst_391 [1] : vector<16x32xf32> to vector<16xf32>
    %753 = vector.shape_cast %752 : vector<16xf32> to vector<16x1xf32>
    %cst_392 = arith.constant 3.200000e+01 : f32
    %754 = vector.broadcast %cst_392 : f32 to vector<16x1xf32>
    %755 = arith.divf %753, %754 : vector<16x1xf32>
    %756 = vector.broadcast %755 : vector<16x1xf32> to vector<16x32xf32>
    %757 = arith.subf %747, %756 : vector<16x32xf32>
    %758 = vector.broadcast %755 : vector<16x1xf32> to vector<16x32xf32>
    %759 = arith.subf %747, %758 : vector<16x32xf32>
    %760 = arith.mulf %757, %759 : vector<16x32xf32>
    %cst_393 = arith.constant dense<0.000000e+00> : vector<16xf32>
    %761 = vector.multi_reduction <add>, %760, %cst_393 [1] : vector<16x32xf32> to vector<16xf32>
    %762 = vector.shape_cast %761 : vector<16xf32> to vector<16x1xf32>
    %cst_394 = arith.constant 3.200000e+01 : f32
    %763 = vector.broadcast %cst_394 : f32 to vector<16x1xf32>
    %764 = arith.divf %762, %763 : vector<16x1xf32>
    %765 = vector.broadcast %755 : vector<16x1xf32> to vector<16x32xf32>
    %766 = arith.subf %747, %765 : vector<16x32xf32>
    %cst_395 = arith.constant 9.99999974E-6 : f32
    %767 = vector.broadcast %cst_395 : f32 to vector<16x1xf32>
    %768 = arith.addf %764, %767 : vector<16x1xf32>
    %769 = math.rsqrt %768 : vector<16x1xf32>
    %770 = vector.broadcast %769 : vector<16x1xf32> to vector<16x32xf32>
    %771 = arith.mulf %766, %770 : vector<16x32xf32>
    %772 = vector.broadcast %749 : vector<1x32xf32> to vector<16x32xf32>
    %773 = arith.mulf %771, %772 : vector<16x32xf32>
    %774 = vector.broadcast %751 : vector<1x32xf32> to vector<16x32xf32>
    %775 = arith.addf %773, %774 : vector<16x32xf32>
    %c0_396 = arith.constant 0 : index
    %c3_397 = arith.constant 3 : index
    %c0_398 = arith.constant 0 : index
    %c0_399 = arith.constant 0 : index
    %776 = vector.load %arg16[%c0_396, %c3_397, %c0_398, %c0_399] : memref<1x6x32x128xf32, #tpu.memory_space<vmem>>, vector<1x1x32x128xf32>
    %777 = vector.shape_cast %776 : vector<1x1x32x128xf32> to vector<32x128xf32>
    %cst_400 = arith.constant dense<0.000000e+00> : vector<16x128xf32>
    %778 = tpu.matmul %775, %777, %cst_400 {dimension_numbers = #tpu.dot_dimension_numbers<[1], [0], [0], [1], [0, 0, 1, 1], [], []>} : vector<16x32xf32>, vector<32x128xf32>, vector<16x128xf32> -> vector<16x128xf32>
    %c0_401 = arith.constant 0 : index
    %c3_402 = arith.constant 3 : index
    %c0_403 = arith.constant 0 : index
    %c0_404 = arith.constant 0 : index
    %779 = vector.load %arg17[%c0_401, %c3_402, %c0_403, %c0_404] : memref<1x6x1x128xf32, #tpu.memory_space<vmem>>, vector<1x1x1x128xf32>
    %780 = vector.shape_cast %779 : vector<1x1x1x128xf32> to vector<1x128xf32>
    %781 = vector.broadcast %780 : vector<1x128xf32> to vector<16x128xf32>
    %782 = arith.addf %778, %781 : vector<16x128xf32>
    %cst_405 = arith.constant 0.000000e+00 : f32
    %783 = vector.broadcast %cst_405 : f32 to vector<16x128xf32>
    %784 = arith.maximumf %782, %783 : vector<16x128xf32>
    %c0_406 = arith.constant 0 : index
    %c3_407 = arith.constant 3 : index
    %c0_408 = arith.constant 0 : index
    %c0_409 = arith.constant 0 : index
    %785 = vector.load %arg18[%c0_406, %c3_407, %c0_408, %c0_409] : memref<1x6x128x32xf32, #tpu.memory_space<vmem>>, vector<1x1x128x32xf32>
    %786 = vector.shape_cast %785 : vector<1x1x128x32xf32> to vector<128x32xf32>
    %cst_410 = arith.constant dense<0.000000e+00> : vector<16x32xf32>
    %787 = tpu.matmul %784, %786, %cst_410 {dimension_numbers = #tpu.dot_dimension_numbers<[1], [0], [0], [1], [0, 0, 1, 1], [], []>} : vector<16x128xf32>, vector<128x32xf32>, vector<16x32xf32> -> vector<16x32xf32>
    %c0_411 = arith.constant 0 : index
    %c3_412 = arith.constant 3 : index
    %c0_413 = arith.constant 0 : index
    %c0_414 = arith.constant 0 : index
    %788 = vector.load %arg19[%c0_411, %c3_412, %c0_413, %c0_414] : memref<1x6x1x32xf32, #tpu.memory_space<vmem>>, vector<1x1x1x32xf32>
    %789 = vector.shape_cast %788 : vector<1x1x1x32xf32> to vector<1x32xf32>
    %790 = vector.broadcast %789 : vector<1x32xf32> to vector<16x32xf32>
    %791 = arith.addf %787, %790 : vector<16x32xf32>
    %792 = arith.addf %747, %791 : vector<16x32xf32>
    %c0_415 = arith.constant 0 : index
    %c4 = arith.constant 4 : index
    %c0_416 = arith.constant 0 : index
    %c0_417 = arith.constant 0 : index
    %793 = vector.load %arg4[%c0_415, %c4, %c0_416, %c0_417] : memref<1x6x1x32xf32, #tpu.memory_space<vmem>>, vector<1x1x1x32xf32>
    %794 = vector.shape_cast %793 : vector<1x1x1x32xf32> to vector<1x32xf32>
    %c0_418 = arith.constant 0 : index
    %c4_419 = arith.constant 4 : index
    %c0_420 = arith.constant 0 : index
    %c0_421 = arith.constant 0 : index
    %795 = vector.load %arg5[%c0_418, %c4_419, %c0_420, %c0_421] : memref<1x6x1x32xf32, #tpu.memory_space<vmem>>, vector<1x1x1x32xf32>
    %796 = vector.shape_cast %795 : vector<1x1x1x32xf32> to vector<1x32xf32>
    %cst_422 = arith.constant dense<0.000000e+00> : vector<16xf32>
    %797 = vector.multi_reduction <add>, %792, %cst_422 [1] : vector<16x32xf32> to vector<16xf32>
    %798 = vector.shape_cast %797 : vector<16xf32> to vector<16x1xf32>
    %cst_423 = arith.constant 3.200000e+01 : f32
    %799 = vector.broadcast %cst_423 : f32 to vector<16x1xf32>
    %800 = arith.divf %798, %799 : vector<16x1xf32>
    %801 = vector.broadcast %800 : vector<16x1xf32> to vector<16x32xf32>
    %802 = arith.subf %792, %801 : vector<16x32xf32>
    %803 = vector.broadcast %800 : vector<16x1xf32> to vector<16x32xf32>
    %804 = arith.subf %792, %803 : vector<16x32xf32>
    %805 = arith.mulf %802, %804 : vector<16x32xf32>
    %cst_424 = arith.constant dense<0.000000e+00> : vector<16xf32>
    %806 = vector.multi_reduction <add>, %805, %cst_424 [1] : vector<16x32xf32> to vector<16xf32>
    %807 = vector.shape_cast %806 : vector<16xf32> to vector<16x1xf32>
    %cst_425 = arith.constant 3.200000e+01 : f32
    %808 = vector.broadcast %cst_425 : f32 to vector<16x1xf32>
    %809 = arith.divf %807, %808 : vector<16x1xf32>
    %810 = vector.broadcast %800 : vector<16x1xf32> to vector<16x32xf32>
    %811 = arith.subf %792, %810 : vector<16x32xf32>
    %cst_426 = arith.constant 9.99999974E-6 : f32
    %812 = vector.broadcast %cst_426 : f32 to vector<16x1xf32>
    %813 = arith.addf %809, %812 : vector<16x1xf32>
    %814 = math.rsqrt %813 : vector<16x1xf32>
    %815 = vector.broadcast %814 : vector<16x1xf32> to vector<16x32xf32>
    %816 = arith.mulf %811, %815 : vector<16x32xf32>
    %817 = vector.broadcast %794 : vector<1x32xf32> to vector<16x32xf32>
    %818 = arith.mulf %816, %817 : vector<16x32xf32>
    %819 = vector.broadcast %796 : vector<1x32xf32> to vector<16x32xf32>
    %820 = arith.addf %818, %819 : vector<16x32xf32>
    %cst_427 = arith.constant dense<0.000000e+00> : vector<16xf32>
    %821 = vector.multi_reduction <add>, %3, %cst_427 [1] : vector<16x32xf32> to vector<16xf32>
    %822 = vector.shape_cast %821 : vector<16xf32> to vector<16x1xf32>
    %cst_428 = arith.constant 3.200000e+01 : f32
    %823 = vector.broadcast %cst_428 : f32 to vector<16x1xf32>
    %824 = arith.divf %822, %823 : vector<16x1xf32>
    %825 = vector.broadcast %824 : vector<16x1xf32> to vector<16x32xf32>
    %826 = arith.subf %3, %825 : vector<16x32xf32>
    %827 = vector.broadcast %824 : vector<16x1xf32> to vector<16x32xf32>
    %828 = arith.subf %3, %827 : vector<16x32xf32>
    %829 = arith.mulf %826, %828 : vector<16x32xf32>
    %cst_429 = arith.constant dense<0.000000e+00> : vector<16xf32>
    %830 = vector.multi_reduction <add>, %829, %cst_429 [1] : vector<16x32xf32> to vector<16xf32>
    %831 = vector.shape_cast %830 : vector<16xf32> to vector<16x1xf32>
    %cst_430 = arith.constant 3.200000e+01 : f32
    %832 = vector.broadcast %cst_430 : f32 to vector<16x1xf32>
    %833 = arith.divf %831, %832 : vector<16x1xf32>
    %834 = vector.broadcast %824 : vector<16x1xf32> to vector<16x32xf32>
    %835 = arith.subf %3, %834 : vector<16x32xf32>
    %cst_431 = arith.constant 9.99999974E-6 : f32
    %836 = vector.broadcast %cst_431 : f32 to vector<16x1xf32>
    %837 = arith.addf %833, %836 : vector<16x1xf32>
    %838 = math.rsqrt %837 : vector<16x1xf32>
    %839 = vector.broadcast %838 : vector<16x1xf32> to vector<16x32xf32>
    %840 = arith.mulf %835, %839 : vector<16x32xf32>
    %841 = vector.broadcast %794 : vector<1x32xf32> to vector<16x32xf32>
    %842 = arith.mulf %840, %841 : vector<16x32xf32>
    %843 = vector.broadcast %796 : vector<1x32xf32> to vector<16x32xf32>
    %844 = arith.addf %842, %843 : vector<16x32xf32>
    %c0_432 = arith.constant 0 : index
    %c4_433 = arith.constant 4 : index
    %c0_434 = arith.constant 0 : index
    %c0_435 = arith.constant 0 : index
    %845 = vector.load %arg6[%c0_432, %c4_433, %c0_434, %c0_435] : memref<1x6x32x32xf32, #tpu.memory_space<vmem>>, vector<1x1x32x32xf32>
    %846 = vector.shape_cast %845 : vector<1x1x32x32xf32> to vector<32x32xf32>
    %cst_436 = arith.constant dense<0.000000e+00> : vector<16x32xf32>
    %847 = tpu.matmul %820, %846, %cst_436 {dimension_numbers = #tpu.dot_dimension_numbers<[1], [0], [0], [1], [0, 0, 1, 1], [], []>} : vector<16x32xf32>, vector<32x32xf32>, vector<16x32xf32> -> vector<16x32xf32>
    %c0_437 = arith.constant 0 : index
    %c4_438 = arith.constant 4 : index
    %c0_439 = arith.constant 0 : index
    %c0_440 = arith.constant 0 : index
    %848 = vector.load %arg7[%c0_437, %c4_438, %c0_439, %c0_440] : memref<1x6x1x32xf32, #tpu.memory_space<vmem>>, vector<1x1x1x32xf32>
    %849 = vector.shape_cast %848 : vector<1x1x1x32xf32> to vector<1x32xf32>
    %850 = vector.broadcast %849 : vector<1x32xf32> to vector<16x32xf32>
    %851 = arith.addf %847, %850 : vector<16x32xf32>
    %cst_441 = arith.constant 0.353553385 : f32
    %852 = vector.broadcast %cst_441 : f32 to vector<16x32xf32>
    %853 = arith.mulf %851, %852 : vector<16x32xf32>
    %c0_442 = arith.constant 0 : index
    %c4_443 = arith.constant 4 : index
    %c0_444 = arith.constant 0 : index
    %c0_445 = arith.constant 0 : index
    %854 = vector.load %arg8[%c0_442, %c4_443, %c0_444, %c0_445] : memref<1x6x32x32xf32, #tpu.memory_space<vmem>>, vector<1x1x32x32xf32>
    %855 = vector.shape_cast %854 : vector<1x1x32x32xf32> to vector<32x32xf32>
    %cst_446 = arith.constant dense<0.000000e+00> : vector<16x32xf32>
    %856 = tpu.matmul %844, %855, %cst_446 {dimension_numbers = #tpu.dot_dimension_numbers<[1], [0], [0], [1], [0, 0, 1, 1], [], []>} : vector<16x32xf32>, vector<32x32xf32>, vector<16x32xf32> -> vector<16x32xf32>
    %c0_447 = arith.constant 0 : index
    %c4_448 = arith.constant 4 : index
    %c0_449 = arith.constant 0 : index
    %c0_450 = arith.constant 0 : index
    %857 = vector.load %arg9[%c0_447, %c4_448, %c0_449, %c0_450] : memref<1x6x1x32xf32, #tpu.memory_space<vmem>>, vector<1x1x1x32xf32>
    %858 = vector.shape_cast %857 : vector<1x1x1x32xf32> to vector<1x32xf32>
    %859 = vector.broadcast %858 : vector<1x32xf32> to vector<16x32xf32>
    %860 = arith.addf %856, %859 : vector<16x32xf32>
    %c0_451 = arith.constant 0 : index
    %c4_452 = arith.constant 4 : index
    %c0_453 = arith.constant 0 : index
    %c0_454 = arith.constant 0 : index
    %861 = vector.load %arg10[%c0_451, %c4_452, %c0_453, %c0_454] : memref<1x6x32x32xf32, #tpu.memory_space<vmem>>, vector<1x1x32x32xf32>
    %862 = vector.shape_cast %861 : vector<1x1x32x32xf32> to vector<32x32xf32>
    %cst_455 = arith.constant dense<0.000000e+00> : vector<16x32xf32>
    %863 = tpu.matmul %844, %862, %cst_455 {dimension_numbers = #tpu.dot_dimension_numbers<[1], [0], [0], [1], [0, 0, 1, 1], [], []>} : vector<16x32xf32>, vector<32x32xf32>, vector<16x32xf32> -> vector<16x32xf32>
    %c0_456 = arith.constant 0 : index
    %c4_457 = arith.constant 4 : index
    %c0_458 = arith.constant 0 : index
    %c0_459 = arith.constant 0 : index
    %864 = vector.load %arg11[%c0_456, %c4_457, %c0_458, %c0_459] : memref<1x6x1x32xf32, #tpu.memory_space<vmem>>, vector<1x1x1x32xf32>
    %865 = vector.shape_cast %864 : vector<1x1x1x32xf32> to vector<1x32xf32>
    %866 = vector.broadcast %865 : vector<1x32xf32> to vector<16x32xf32>
    %867 = arith.addf %863, %866 : vector<16x32xf32>
    %868 = vector.extract_strided_slice %853 {offsets = [0, 0], sizes = [16, 8], strides = [1, 1]} : vector<16x32xf32> to vector<16x8xf32>
    %869 = vector.extract_strided_slice %860 {offsets = [0, 0], sizes = [16, 8], strides = [1, 1]} : vector<16x32xf32> to vector<16x8xf32>
    %870 = tpu.transpose %869, [1, 0] : vector<16x8xf32> -> vector<8x16xf32>
    %cst_460 = arith.constant dense<0.000000e+00> : vector<16x16xf32>
    %871 = tpu.matmul %868, %870, %cst_460 {dimension_numbers = #tpu.dot_dimension_numbers<[1], [0], [0], [1], [0, 0, 1, 1], [], []>} : vector<16x8xf32>, vector<8x16xf32>, vector<16x16xf32> -> vector<16x16xf32>
    %872 = arith.addf %871, %4 : vector<16x16xf32>
    %cst_461 = arith.constant dense<0xFF800000> : vector<16xf32>
    %873 = vector.multi_reduction <maximumf>, %872, %cst_461 [1] : vector<16x16xf32> to vector<16xf32>
    %874 = vector.shape_cast %873 : vector<16xf32> to vector<16x1xf32>
    %875 = vector.broadcast %874 : vector<16x1xf32> to vector<16x16xf32>
    %876 = arith.subf %872, %875 : vector<16x16xf32>
    %877 = math.exp %876 : vector<16x16xf32>
    %cst_462 = arith.constant dense<0.000000e+00> : vector<16xf32>
    %878 = vector.multi_reduction <add>, %877, %cst_462 [1] : vector<16x16xf32> to vector<16xf32>
    %879 = vector.shape_cast %878 : vector<16xf32> to vector<16x1xf32>
    %880 = tpu.reciprocal %879 {approx = true} : vector<16x1xf32> -> vector<16x1xf32>
    %881 = vector.broadcast %880 : vector<16x1xf32> to vector<16x16xf32>
    %882 = arith.mulf %877, %881 : vector<16x16xf32>
    %883 = vector.extract_strided_slice %867 {offsets = [0, 0], sizes = [16, 8], strides = [1, 1]} : vector<16x32xf32> to vector<16x8xf32>
    %cst_463 = arith.constant dense<0.000000e+00> : vector<16x8xf32>
    %884 = tpu.matmul %882, %883, %cst_463 {dimension_numbers = #tpu.dot_dimension_numbers<[1], [0], [0], [1], [0, 0, 1, 1], [], []>} : vector<16x16xf32>, vector<16x8xf32>, vector<16x8xf32> -> vector<16x8xf32>
    %885 = vector.extract_strided_slice %853 {offsets = [0, 8], sizes = [16, 8], strides = [1, 1]} : vector<16x32xf32> to vector<16x8xf32>
    %886 = vector.extract_strided_slice %860 {offsets = [0, 8], sizes = [16, 8], strides = [1, 1]} : vector<16x32xf32> to vector<16x8xf32>
    %887 = tpu.transpose %886, [1, 0] : vector<16x8xf32> -> vector<8x16xf32>
    %cst_464 = arith.constant dense<0.000000e+00> : vector<16x16xf32>
    %888 = tpu.matmul %885, %887, %cst_464 {dimension_numbers = #tpu.dot_dimension_numbers<[1], [0], [0], [1], [0, 0, 1, 1], [], []>} : vector<16x8xf32>, vector<8x16xf32>, vector<16x16xf32> -> vector<16x16xf32>
    %889 = arith.addf %888, %4 : vector<16x16xf32>
    %cst_465 = arith.constant dense<0xFF800000> : vector<16xf32>
    %890 = vector.multi_reduction <maximumf>, %889, %cst_465 [1] : vector<16x16xf32> to vector<16xf32>
    %891 = vector.shape_cast %890 : vector<16xf32> to vector<16x1xf32>
    %892 = vector.broadcast %891 : vector<16x1xf32> to vector<16x16xf32>
    %893 = arith.subf %889, %892 : vector<16x16xf32>
    %894 = math.exp %893 : vector<16x16xf32>
    %cst_466 = arith.constant dense<0.000000e+00> : vector<16xf32>
    %895 = vector.multi_reduction <add>, %894, %cst_466 [1] : vector<16x16xf32> to vector<16xf32>
    %896 = vector.shape_cast %895 : vector<16xf32> to vector<16x1xf32>
    %897 = tpu.reciprocal %896 {approx = true} : vector<16x1xf32> -> vector<16x1xf32>
    %898 = vector.broadcast %897 : vector<16x1xf32> to vector<16x16xf32>
    %899 = arith.mulf %894, %898 : vector<16x16xf32>
    %900 = vector.extract_strided_slice %867 {offsets = [0, 8], sizes = [16, 8], strides = [1, 1]} : vector<16x32xf32> to vector<16x8xf32>
    %cst_467 = arith.constant dense<0.000000e+00> : vector<16x8xf32>
    %901 = tpu.matmul %899, %900, %cst_467 {dimension_numbers = #tpu.dot_dimension_numbers<[1], [0], [0], [1], [0, 0, 1, 1], [], []>} : vector<16x16xf32>, vector<16x8xf32>, vector<16x8xf32> -> vector<16x8xf32>
    %902 = vector.extract_strided_slice %853 {offsets = [0, 16], sizes = [16, 8], strides = [1, 1]} : vector<16x32xf32> to vector<16x8xf32>
    %903 = vector.extract_strided_slice %860 {offsets = [0, 16], sizes = [16, 8], strides = [1, 1]} : vector<16x32xf32> to vector<16x8xf32>
    %904 = tpu.transpose %903, [1, 0] : vector<16x8xf32> -> vector<8x16xf32>
    %cst_468 = arith.constant dense<0.000000e+00> : vector<16x16xf32>
    %905 = tpu.matmul %902, %904, %cst_468 {dimension_numbers = #tpu.dot_dimension_numbers<[1], [0], [0], [1], [0, 0, 1, 1], [], []>} : vector<16x8xf32>, vector<8x16xf32>, vector<16x16xf32> -> vector<16x16xf32>
    %906 = arith.addf %905, %4 : vector<16x16xf32>
    %cst_469 = arith.constant dense<0xFF800000> : vector<16xf32>
    %907 = vector.multi_reduction <maximumf>, %906, %cst_469 [1] : vector<16x16xf32> to vector<16xf32>
    %908 = vector.shape_cast %907 : vector<16xf32> to vector<16x1xf32>
    %909 = vector.broadcast %908 : vector<16x1xf32> to vector<16x16xf32>
    %910 = arith.subf %906, %909 : vector<16x16xf32>
    %911 = math.exp %910 : vector<16x16xf32>
    %cst_470 = arith.constant dense<0.000000e+00> : vector<16xf32>
    %912 = vector.multi_reduction <add>, %911, %cst_470 [1] : vector<16x16xf32> to vector<16xf32>
    %913 = vector.shape_cast %912 : vector<16xf32> to vector<16x1xf32>
    %914 = tpu.reciprocal %913 {approx = true} : vector<16x1xf32> -> vector<16x1xf32>
    %915 = vector.broadcast %914 : vector<16x1xf32> to vector<16x16xf32>
    %916 = arith.mulf %911, %915 : vector<16x16xf32>
    %917 = vector.extract_strided_slice %867 {offsets = [0, 16], sizes = [16, 8], strides = [1, 1]} : vector<16x32xf32> to vector<16x8xf32>
    %cst_471 = arith.constant dense<0.000000e+00> : vector<16x8xf32>
    %918 = tpu.matmul %916, %917, %cst_471 {dimension_numbers = #tpu.dot_dimension_numbers<[1], [0], [0], [1], [0, 0, 1, 1], [], []>} : vector<16x16xf32>, vector<16x8xf32>, vector<16x8xf32> -> vector<16x8xf32>
    %919 = vector.extract_strided_slice %853 {offsets = [0, 24], sizes = [16, 8], strides = [1, 1]} : vector<16x32xf32> to vector<16x8xf32>
    %920 = vector.extract_strided_slice %860 {offsets = [0, 24], sizes = [16, 8], strides = [1, 1]} : vector<16x32xf32> to vector<16x8xf32>
    %921 = tpu.transpose %920, [1, 0] : vector<16x8xf32> -> vector<8x16xf32>
    %cst_472 = arith.constant dense<0.000000e+00> : vector<16x16xf32>
    %922 = tpu.matmul %919, %921, %cst_472 {dimension_numbers = #tpu.dot_dimension_numbers<[1], [0], [0], [1], [0, 0, 1, 1], [], []>} : vector<16x8xf32>, vector<8x16xf32>, vector<16x16xf32> -> vector<16x16xf32>
    %923 = arith.addf %922, %4 : vector<16x16xf32>
    %cst_473 = arith.constant dense<0xFF800000> : vector<16xf32>
    %924 = vector.multi_reduction <maximumf>, %923, %cst_473 [1] : vector<16x16xf32> to vector<16xf32>
    %925 = vector.shape_cast %924 : vector<16xf32> to vector<16x1xf32>
    %926 = vector.broadcast %925 : vector<16x1xf32> to vector<16x16xf32>
    %927 = arith.subf %923, %926 : vector<16x16xf32>
    %928 = math.exp %927 : vector<16x16xf32>
    %cst_474 = arith.constant dense<0.000000e+00> : vector<16xf32>
    %929 = vector.multi_reduction <add>, %928, %cst_474 [1] : vector<16x16xf32> to vector<16xf32>
    %930 = vector.shape_cast %929 : vector<16xf32> to vector<16x1xf32>
    %931 = tpu.reciprocal %930 {approx = true} : vector<16x1xf32> -> vector<16x1xf32>
    %932 = vector.broadcast %931 : vector<16x1xf32> to vector<16x16xf32>
    %933 = arith.mulf %928, %932 : vector<16x16xf32>
    %934 = vector.extract_strided_slice %867 {offsets = [0, 24], sizes = [16, 8], strides = [1, 1]} : vector<16x32xf32> to vector<16x8xf32>
    %cst_475 = arith.constant dense<0.000000e+00> : vector<16x8xf32>
    %935 = tpu.matmul %933, %934, %cst_475 {dimension_numbers = #tpu.dot_dimension_numbers<[1], [0], [0], [1], [0, 0, 1, 1], [], []>} : vector<16x16xf32>, vector<16x8xf32>, vector<16x8xf32> -> vector<16x8xf32>
    %936 = tpu.concatenate %884, %901, %918, %935 in 1 : vector<16x8xf32>, vector<16x8xf32>, vector<16x8xf32>, vector<16x8xf32> -> vector<16x32xf32>
    %c0_476 = arith.constant 0 : index
    %c4_477 = arith.constant 4 : index
    %c0_478 = arith.constant 0 : index
    %c0_479 = arith.constant 0 : index
    %937 = vector.load %arg12[%c0_476, %c4_477, %c0_478, %c0_479] : memref<1x6x32x32xf32, #tpu.memory_space<vmem>>, vector<1x1x32x32xf32>
    %938 = vector.shape_cast %937 : vector<1x1x32x32xf32> to vector<32x32xf32>
    %cst_480 = arith.constant dense<0.000000e+00> : vector<16x32xf32>
    %939 = tpu.matmul %936, %938, %cst_480 {dimension_numbers = #tpu.dot_dimension_numbers<[1], [0], [0], [1], [0, 0, 1, 1], [], []>} : vector<16x32xf32>, vector<32x32xf32>, vector<16x32xf32> -> vector<16x32xf32>
    %c0_481 = arith.constant 0 : index
    %c4_482 = arith.constant 4 : index
    %c0_483 = arith.constant 0 : index
    %c0_484 = arith.constant 0 : index
    %940 = vector.load %arg13[%c0_481, %c4_482, %c0_483, %c0_484] : memref<1x6x1x32xf32, #tpu.memory_space<vmem>>, vector<1x1x1x32xf32>
    %941 = vector.shape_cast %940 : vector<1x1x1x32xf32> to vector<1x32xf32>
    %942 = vector.broadcast %941 : vector<1x32xf32> to vector<16x32xf32>
    %943 = arith.addf %939, %942 : vector<16x32xf32>
    %944 = arith.addf %792, %943 : vector<16x32xf32>
    %c0_485 = arith.constant 0 : index
    %c4_486 = arith.constant 4 : index
    %c0_487 = arith.constant 0 : index
    %c0_488 = arith.constant 0 : index
    %945 = vector.load %arg14[%c0_485, %c4_486, %c0_487, %c0_488] : memref<1x6x1x32xf32, #tpu.memory_space<vmem>>, vector<1x1x1x32xf32>
    %946 = vector.shape_cast %945 : vector<1x1x1x32xf32> to vector<1x32xf32>
    %c0_489 = arith.constant 0 : index
    %c4_490 = arith.constant 4 : index
    %c0_491 = arith.constant 0 : index
    %c0_492 = arith.constant 0 : index
    %947 = vector.load %arg15[%c0_489, %c4_490, %c0_491, %c0_492] : memref<1x6x1x32xf32, #tpu.memory_space<vmem>>, vector<1x1x1x32xf32>
    %948 = vector.shape_cast %947 : vector<1x1x1x32xf32> to vector<1x32xf32>
    %cst_493 = arith.constant dense<0.000000e+00> : vector<16xf32>
    %949 = vector.multi_reduction <add>, %944, %cst_493 [1] : vector<16x32xf32> to vector<16xf32>
    %950 = vector.shape_cast %949 : vector<16xf32> to vector<16x1xf32>
    %cst_494 = arith.constant 3.200000e+01 : f32
    %951 = vector.broadcast %cst_494 : f32 to vector<16x1xf32>
    %952 = arith.divf %950, %951 : vector<16x1xf32>
    %953 = vector.broadcast %952 : vector<16x1xf32> to vector<16x32xf32>
    %954 = arith.subf %944, %953 : vector<16x32xf32>
    %955 = vector.broadcast %952 : vector<16x1xf32> to vector<16x32xf32>
    %956 = arith.subf %944, %955 : vector<16x32xf32>
    %957 = arith.mulf %954, %956 : vector<16x32xf32>
    %cst_495 = arith.constant dense<0.000000e+00> : vector<16xf32>
    %958 = vector.multi_reduction <add>, %957, %cst_495 [1] : vector<16x32xf32> to vector<16xf32>
    %959 = vector.shape_cast %958 : vector<16xf32> to vector<16x1xf32>
    %cst_496 = arith.constant 3.200000e+01 : f32
    %960 = vector.broadcast %cst_496 : f32 to vector<16x1xf32>
    %961 = arith.divf %959, %960 : vector<16x1xf32>
    %962 = vector.broadcast %952 : vector<16x1xf32> to vector<16x32xf32>
    %963 = arith.subf %944, %962 : vector<16x32xf32>
    %cst_497 = arith.constant 9.99999974E-6 : f32
    %964 = vector.broadcast %cst_497 : f32 to vector<16x1xf32>
    %965 = arith.addf %961, %964 : vector<16x1xf32>
    %966 = math.rsqrt %965 : vector<16x1xf32>
    %967 = vector.broadcast %966 : vector<16x1xf32> to vector<16x32xf32>
    %968 = arith.mulf %963, %967 : vector<16x32xf32>
    %969 = vector.broadcast %946 : vector<1x32xf32> to vector<16x32xf32>
    %970 = arith.mulf %968, %969 : vector<16x32xf32>
    %971 = vector.broadcast %948 : vector<1x32xf32> to vector<16x32xf32>
    %972 = arith.addf %970, %971 : vector<16x32xf32>
    %c0_498 = arith.constant 0 : index
    %c4_499 = arith.constant 4 : index
    %c0_500 = arith.constant 0 : index
    %c0_501 = arith.constant 0 : index
    %973 = vector.load %arg16[%c0_498, %c4_499, %c0_500, %c0_501] : memref<1x6x32x128xf32, #tpu.memory_space<vmem>>, vector<1x1x32x128xf32>
    %974 = vector.shape_cast %973 : vector<1x1x32x128xf32> to vector<32x128xf32>
    %cst_502 = arith.constant dense<0.000000e+00> : vector<16x128xf32>
    %975 = tpu.matmul %972, %974, %cst_502 {dimension_numbers = #tpu.dot_dimension_numbers<[1], [0], [0], [1], [0, 0, 1, 1], [], []>} : vector<16x32xf32>, vector<32x128xf32>, vector<16x128xf32> -> vector<16x128xf32>
    %c0_503 = arith.constant 0 : index
    %c4_504 = arith.constant 4 : index
    %c0_505 = arith.constant 0 : index
    %c0_506 = arith.constant 0 : index
    %976 = vector.load %arg17[%c0_503, %c4_504, %c0_505, %c0_506] : memref<1x6x1x128xf32, #tpu.memory_space<vmem>>, vector<1x1x1x128xf32>
    %977 = vector.shape_cast %976 : vector<1x1x1x128xf32> to vector<1x128xf32>
    %978 = vector.broadcast %977 : vector<1x128xf32> to vector<16x128xf32>
    %979 = arith.addf %975, %978 : vector<16x128xf32>
    %cst_507 = arith.constant 0.000000e+00 : f32
    %980 = vector.broadcast %cst_507 : f32 to vector<16x128xf32>
    %981 = arith.maximumf %979, %980 : vector<16x128xf32>
    %c0_508 = arith.constant 0 : index
    %c4_509 = arith.constant 4 : index
    %c0_510 = arith.constant 0 : index
    %c0_511 = arith.constant 0 : index
    %982 = vector.load %arg18[%c0_508, %c4_509, %c0_510, %c0_511] : memref<1x6x128x32xf32, #tpu.memory_space<vmem>>, vector<1x1x128x32xf32>
    %983 = vector.shape_cast %982 : vector<1x1x128x32xf32> to vector<128x32xf32>
    %cst_512 = arith.constant dense<0.000000e+00> : vector<16x32xf32>
    %984 = tpu.matmul %981, %983, %cst_512 {dimension_numbers = #tpu.dot_dimension_numbers<[1], [0], [0], [1], [0, 0, 1, 1], [], []>} : vector<16x128xf32>, vector<128x32xf32>, vector<16x32xf32> -> vector<16x32xf32>
    %c0_513 = arith.constant 0 : index
    %c4_514 = arith.constant 4 : index
    %c0_515 = arith.constant 0 : index
    %c0_516 = arith.constant 0 : index
    %985 = vector.load %arg19[%c0_513, %c4_514, %c0_515, %c0_516] : memref<1x6x1x32xf32, #tpu.memory_space<vmem>>, vector<1x1x1x32xf32>
    %986 = vector.shape_cast %985 : vector<1x1x1x32xf32> to vector<1x32xf32>
    %987 = vector.broadcast %986 : vector<1x32xf32> to vector<16x32xf32>
    %988 = arith.addf %984, %987 : vector<16x32xf32>
    %989 = arith.addf %944, %988 : vector<16x32xf32>
    %c0_517 = arith.constant 0 : index
    %c5 = arith.constant 5 : index
    %c0_518 = arith.constant 0 : index
    %c0_519 = arith.constant 0 : index
    %990 = vector.load %arg4[%c0_517, %c5, %c0_518, %c0_519] : memref<1x6x1x32xf32, #tpu.memory_space<vmem>>, vector<1x1x1x32xf32>
    %991 = vector.shape_cast %990 : vector<1x1x1x32xf32> to vector<1x32xf32>
    %c0_520 = arith.constant 0 : index
    %c5_521 = arith.constant 5 : index
    %c0_522 = arith.constant 0 : index
    %c0_523 = arith.constant 0 : index
    %992 = vector.load %arg5[%c0_520, %c5_521, %c0_522, %c0_523] : memref<1x6x1x32xf32, #tpu.memory_space<vmem>>, vector<1x1x1x32xf32>
    %993 = vector.shape_cast %992 : vector<1x1x1x32xf32> to vector<1x32xf32>
    %cst_524 = arith.constant dense<0.000000e+00> : vector<16xf32>
    %994 = vector.multi_reduction <add>, %989, %cst_524 [1] : vector<16x32xf32> to vector<16xf32>
    %995 = vector.shape_cast %994 : vector<16xf32> to vector<16x1xf32>
    %cst_525 = arith.constant 3.200000e+01 : f32
    %996 = vector.broadcast %cst_525 : f32 to vector<16x1xf32>
    %997 = arith.divf %995, %996 : vector<16x1xf32>
    %998 = vector.broadcast %997 : vector<16x1xf32> to vector<16x32xf32>
    %999 = arith.subf %989, %998 : vector<16x32xf32>
    %1000 = vector.broadcast %997 : vector<16x1xf32> to vector<16x32xf32>
    %1001 = arith.subf %989, %1000 : vector<16x32xf32>
    %1002 = arith.mulf %999, %1001 : vector<16x32xf32>
    %cst_526 = arith.constant dense<0.000000e+00> : vector<16xf32>
    %1003 = vector.multi_reduction <add>, %1002, %cst_526 [1] : vector<16x32xf32> to vector<16xf32>
    %1004 = vector.shape_cast %1003 : vector<16xf32> to vector<16x1xf32>
    %cst_527 = arith.constant 3.200000e+01 : f32
    %1005 = vector.broadcast %cst_527 : f32 to vector<16x1xf32>
    %1006 = arith.divf %1004, %1005 : vector<16x1xf32>
    %1007 = vector.broadcast %997 : vector<16x1xf32> to vector<16x32xf32>
    %1008 = arith.subf %989, %1007 : vector<16x32xf32>
    %cst_528 = arith.constant 9.99999974E-6 : f32
    %1009 = vector.broadcast %cst_528 : f32 to vector<16x1xf32>
    %1010 = arith.addf %1006, %1009 : vector<16x1xf32>
    %1011 = math.rsqrt %1010 : vector<16x1xf32>
    %1012 = vector.broadcast %1011 : vector<16x1xf32> to vector<16x32xf32>
    %1013 = arith.mulf %1008, %1012 : vector<16x32xf32>
    %1014 = vector.broadcast %991 : vector<1x32xf32> to vector<16x32xf32>
    %1015 = arith.mulf %1013, %1014 : vector<16x32xf32>
    %1016 = vector.broadcast %993 : vector<1x32xf32> to vector<16x32xf32>
    %1017 = arith.addf %1015, %1016 : vector<16x32xf32>
    %cst_529 = arith.constant dense<0.000000e+00> : vector<16xf32>
    %1018 = vector.multi_reduction <add>, %3, %cst_529 [1] : vector<16x32xf32> to vector<16xf32>
    %1019 = vector.shape_cast %1018 : vector<16xf32> to vector<16x1xf32>
    %cst_530 = arith.constant 3.200000e+01 : f32
    %1020 = vector.broadcast %cst_530 : f32 to vector<16x1xf32>
    %1021 = arith.divf %1019, %1020 : vector<16x1xf32>
    %1022 = vector.broadcast %1021 : vector<16x1xf32> to vector<16x32xf32>
    %1023 = arith.subf %3, %1022 : vector<16x32xf32>
    %1024 = vector.broadcast %1021 : vector<16x1xf32> to vector<16x32xf32>
    %1025 = arith.subf %3, %1024 : vector<16x32xf32>
    %1026 = arith.mulf %1023, %1025 : vector<16x32xf32>
    %cst_531 = arith.constant dense<0.000000e+00> : vector<16xf32>
    %1027 = vector.multi_reduction <add>, %1026, %cst_531 [1] : vector<16x32xf32> to vector<16xf32>
    %1028 = vector.shape_cast %1027 : vector<16xf32> to vector<16x1xf32>
    %cst_532 = arith.constant 3.200000e+01 : f32
    %1029 = vector.broadcast %cst_532 : f32 to vector<16x1xf32>
    %1030 = arith.divf %1028, %1029 : vector<16x1xf32>
    %1031 = vector.broadcast %1021 : vector<16x1xf32> to vector<16x32xf32>
    %1032 = arith.subf %3, %1031 : vector<16x32xf32>
    %cst_533 = arith.constant 9.99999974E-6 : f32
    %1033 = vector.broadcast %cst_533 : f32 to vector<16x1xf32>
    %1034 = arith.addf %1030, %1033 : vector<16x1xf32>
    %1035 = math.rsqrt %1034 : vector<16x1xf32>
    %1036 = vector.broadcast %1035 : vector<16x1xf32> to vector<16x32xf32>
    %1037 = arith.mulf %1032, %1036 : vector<16x32xf32>
    %1038 = vector.broadcast %991 : vector<1x32xf32> to vector<16x32xf32>
    %1039 = arith.mulf %1037, %1038 : vector<16x32xf32>
    %1040 = vector.broadcast %993 : vector<1x32xf32> to vector<16x32xf32>
    %1041 = arith.addf %1039, %1040 : vector<16x32xf32>
    %c0_534 = arith.constant 0 : index
    %c5_535 = arith.constant 5 : index
    %c0_536 = arith.constant 0 : index
    %c0_537 = arith.constant 0 : index
    %1042 = vector.load %arg6[%c0_534, %c5_535, %c0_536, %c0_537] : memref<1x6x32x32xf32, #tpu.memory_space<vmem>>, vector<1x1x32x32xf32>
    %1043 = vector.shape_cast %1042 : vector<1x1x32x32xf32> to vector<32x32xf32>
    %cst_538 = arith.constant dense<0.000000e+00> : vector<16x32xf32>
    %1044 = tpu.matmul %1017, %1043, %cst_538 {dimension_numbers = #tpu.dot_dimension_numbers<[1], [0], [0], [1], [0, 0, 1, 1], [], []>} : vector<16x32xf32>, vector<32x32xf32>, vector<16x32xf32> -> vector<16x32xf32>
    %c0_539 = arith.constant 0 : index
    %c5_540 = arith.constant 5 : index
    %c0_541 = arith.constant 0 : index
    %c0_542 = arith.constant 0 : index
    %1045 = vector.load %arg7[%c0_539, %c5_540, %c0_541, %c0_542] : memref<1x6x1x32xf32, #tpu.memory_space<vmem>>, vector<1x1x1x32xf32>
    %1046 = vector.shape_cast %1045 : vector<1x1x1x32xf32> to vector<1x32xf32>
    %1047 = vector.broadcast %1046 : vector<1x32xf32> to vector<16x32xf32>
    %1048 = arith.addf %1044, %1047 : vector<16x32xf32>
    %cst_543 = arith.constant 0.353553385 : f32
    %1049 = vector.broadcast %cst_543 : f32 to vector<16x32xf32>
    %1050 = arith.mulf %1048, %1049 : vector<16x32xf32>
    %c0_544 = arith.constant 0 : index
    %c5_545 = arith.constant 5 : index
    %c0_546 = arith.constant 0 : index
    %c0_547 = arith.constant 0 : index
    %1051 = vector.load %arg8[%c0_544, %c5_545, %c0_546, %c0_547] : memref<1x6x32x32xf32, #tpu.memory_space<vmem>>, vector<1x1x32x32xf32>
    %1052 = vector.shape_cast %1051 : vector<1x1x32x32xf32> to vector<32x32xf32>
    %cst_548 = arith.constant dense<0.000000e+00> : vector<16x32xf32>
    %1053 = tpu.matmul %1041, %1052, %cst_548 {dimension_numbers = #tpu.dot_dimension_numbers<[1], [0], [0], [1], [0, 0, 1, 1], [], []>} : vector<16x32xf32>, vector<32x32xf32>, vector<16x32xf32> -> vector<16x32xf32>
    %c0_549 = arith.constant 0 : index
    %c5_550 = arith.constant 5 : index
    %c0_551 = arith.constant 0 : index
    %c0_552 = arith.constant 0 : index
    %1054 = vector.load %arg9[%c0_549, %c5_550, %c0_551, %c0_552] : memref<1x6x1x32xf32, #tpu.memory_space<vmem>>, vector<1x1x1x32xf32>
    %1055 = vector.shape_cast %1054 : vector<1x1x1x32xf32> to vector<1x32xf32>
    %1056 = vector.broadcast %1055 : vector<1x32xf32> to vector<16x32xf32>
    %1057 = arith.addf %1053, %1056 : vector<16x32xf32>
    %c0_553 = arith.constant 0 : index
    %c5_554 = arith.constant 5 : index
    %c0_555 = arith.constant 0 : index
    %c0_556 = arith.constant 0 : index
    %1058 = vector.load %arg10[%c0_553, %c5_554, %c0_555, %c0_556] : memref<1x6x32x32xf32, #tpu.memory_space<vmem>>, vector<1x1x32x32xf32>
    %1059 = vector.shape_cast %1058 : vector<1x1x32x32xf32> to vector<32x32xf32>
    %cst_557 = arith.constant dense<0.000000e+00> : vector<16x32xf32>
    %1060 = tpu.matmul %1041, %1059, %cst_557 {dimension_numbers = #tpu.dot_dimension_numbers<[1], [0], [0], [1], [0, 0, 1, 1], [], []>} : vector<16x32xf32>, vector<32x32xf32>, vector<16x32xf32> -> vector<16x32xf32>
    %c0_558 = arith.constant 0 : index
    %c5_559 = arith.constant 5 : index
    %c0_560 = arith.constant 0 : index
    %c0_561 = arith.constant 0 : index
    %1061 = vector.load %arg11[%c0_558, %c5_559, %c0_560, %c0_561] : memref<1x6x1x32xf32, #tpu.memory_space<vmem>>, vector<1x1x1x32xf32>
    %1062 = vector.shape_cast %1061 : vector<1x1x1x32xf32> to vector<1x32xf32>
    %1063 = vector.broadcast %1062 : vector<1x32xf32> to vector<16x32xf32>
    %1064 = arith.addf %1060, %1063 : vector<16x32xf32>
    %1065 = vector.extract_strided_slice %1050 {offsets = [0, 0], sizes = [16, 8], strides = [1, 1]} : vector<16x32xf32> to vector<16x8xf32>
    %1066 = vector.extract_strided_slice %1057 {offsets = [0, 0], sizes = [16, 8], strides = [1, 1]} : vector<16x32xf32> to vector<16x8xf32>
    %1067 = tpu.transpose %1066, [1, 0] : vector<16x8xf32> -> vector<8x16xf32>
    %cst_562 = arith.constant dense<0.000000e+00> : vector<16x16xf32>
    %1068 = tpu.matmul %1065, %1067, %cst_562 {dimension_numbers = #tpu.dot_dimension_numbers<[1], [0], [0], [1], [0, 0, 1, 1], [], []>} : vector<16x8xf32>, vector<8x16xf32>, vector<16x16xf32> -> vector<16x16xf32>
    %1069 = arith.addf %1068, %4 : vector<16x16xf32>
    %cst_563 = arith.constant dense<0xFF800000> : vector<16xf32>
    %1070 = vector.multi_reduction <maximumf>, %1069, %cst_563 [1] : vector<16x16xf32> to vector<16xf32>
    %1071 = vector.shape_cast %1070 : vector<16xf32> to vector<16x1xf32>
    %1072 = vector.broadcast %1071 : vector<16x1xf32> to vector<16x16xf32>
    %1073 = arith.subf %1069, %1072 : vector<16x16xf32>
    %1074 = math.exp %1073 : vector<16x16xf32>
    %cst_564 = arith.constant dense<0.000000e+00> : vector<16xf32>
    %1075 = vector.multi_reduction <add>, %1074, %cst_564 [1] : vector<16x16xf32> to vector<16xf32>
    %1076 = vector.shape_cast %1075 : vector<16xf32> to vector<16x1xf32>
    %1077 = tpu.reciprocal %1076 {approx = true} : vector<16x1xf32> -> vector<16x1xf32>
    %1078 = vector.broadcast %1077 : vector<16x1xf32> to vector<16x16xf32>
    %1079 = arith.mulf %1074, %1078 : vector<16x16xf32>
    %1080 = vector.extract_strided_slice %1064 {offsets = [0, 0], sizes = [16, 8], strides = [1, 1]} : vector<16x32xf32> to vector<16x8xf32>
    %cst_565 = arith.constant dense<0.000000e+00> : vector<16x8xf32>
    %1081 = tpu.matmul %1079, %1080, %cst_565 {dimension_numbers = #tpu.dot_dimension_numbers<[1], [0], [0], [1], [0, 0, 1, 1], [], []>} : vector<16x16xf32>, vector<16x8xf32>, vector<16x8xf32> -> vector<16x8xf32>
    %1082 = vector.extract_strided_slice %1050 {offsets = [0, 8], sizes = [16, 8], strides = [1, 1]} : vector<16x32xf32> to vector<16x8xf32>
    %1083 = vector.extract_strided_slice %1057 {offsets = [0, 8], sizes = [16, 8], strides = [1, 1]} : vector<16x32xf32> to vector<16x8xf32>
    %1084 = tpu.transpose %1083, [1, 0] : vector<16x8xf32> -> vector<8x16xf32>
    %cst_566 = arith.constant dense<0.000000e+00> : vector<16x16xf32>
    %1085 = tpu.matmul %1082, %1084, %cst_566 {dimension_numbers = #tpu.dot_dimension_numbers<[1], [0], [0], [1], [0, 0, 1, 1], [], []>} : vector<16x8xf32>, vector<8x16xf32>, vector<16x16xf32> -> vector<16x16xf32>
    %1086 = arith.addf %1085, %4 : vector<16x16xf32>
    %cst_567 = arith.constant dense<0xFF800000> : vector<16xf32>
    %1087 = vector.multi_reduction <maximumf>, %1086, %cst_567 [1] : vector<16x16xf32> to vector<16xf32>
    %1088 = vector.shape_cast %1087 : vector<16xf32> to vector<16x1xf32>
    %1089 = vector.broadcast %1088 : vector<16x1xf32> to vector<16x16xf32>
    %1090 = arith.subf %1086, %1089 : vector<16x16xf32>
    %1091 = math.exp %1090 : vector<16x16xf32>
    %cst_568 = arith.constant dense<0.000000e+00> : vector<16xf32>
    %1092 = vector.multi_reduction <add>, %1091, %cst_568 [1] : vector<16x16xf32> to vector<16xf32>
    %1093 = vector.shape_cast %1092 : vector<16xf32> to vector<16x1xf32>
    %1094 = tpu.reciprocal %1093 {approx = true} : vector<16x1xf32> -> vector<16x1xf32>
    %1095 = vector.broadcast %1094 : vector<16x1xf32> to vector<16x16xf32>
    %1096 = arith.mulf %1091, %1095 : vector<16x16xf32>
    %1097 = vector.extract_strided_slice %1064 {offsets = [0, 8], sizes = [16, 8], strides = [1, 1]} : vector<16x32xf32> to vector<16x8xf32>
    %cst_569 = arith.constant dense<0.000000e+00> : vector<16x8xf32>
    %1098 = tpu.matmul %1096, %1097, %cst_569 {dimension_numbers = #tpu.dot_dimension_numbers<[1], [0], [0], [1], [0, 0, 1, 1], [], []>} : vector<16x16xf32>, vector<16x8xf32>, vector<16x8xf32> -> vector<16x8xf32>
    %1099 = vector.extract_strided_slice %1050 {offsets = [0, 16], sizes = [16, 8], strides = [1, 1]} : vector<16x32xf32> to vector<16x8xf32>
    %1100 = vector.extract_strided_slice %1057 {offsets = [0, 16], sizes = [16, 8], strides = [1, 1]} : vector<16x32xf32> to vector<16x8xf32>
    %1101 = tpu.transpose %1100, [1, 0] : vector<16x8xf32> -> vector<8x16xf32>
    %cst_570 = arith.constant dense<0.000000e+00> : vector<16x16xf32>
    %1102 = tpu.matmul %1099, %1101, %cst_570 {dimension_numbers = #tpu.dot_dimension_numbers<[1], [0], [0], [1], [0, 0, 1, 1], [], []>} : vector<16x8xf32>, vector<8x16xf32>, vector<16x16xf32> -> vector<16x16xf32>
    %1103 = arith.addf %1102, %4 : vector<16x16xf32>
    %cst_571 = arith.constant dense<0xFF800000> : vector<16xf32>
    %1104 = vector.multi_reduction <maximumf>, %1103, %cst_571 [1] : vector<16x16xf32> to vector<16xf32>
    %1105 = vector.shape_cast %1104 : vector<16xf32> to vector<16x1xf32>
    %1106 = vector.broadcast %1105 : vector<16x1xf32> to vector<16x16xf32>
    %1107 = arith.subf %1103, %1106 : vector<16x16xf32>
    %1108 = math.exp %1107 : vector<16x16xf32>
    %cst_572 = arith.constant dense<0.000000e+00> : vector<16xf32>
    %1109 = vector.multi_reduction <add>, %1108, %cst_572 [1] : vector<16x16xf32> to vector<16xf32>
    %1110 = vector.shape_cast %1109 : vector<16xf32> to vector<16x1xf32>
    %1111 = tpu.reciprocal %1110 {approx = true} : vector<16x1xf32> -> vector<16x1xf32>
    %1112 = vector.broadcast %1111 : vector<16x1xf32> to vector<16x16xf32>
    %1113 = arith.mulf %1108, %1112 : vector<16x16xf32>
    %1114 = vector.extract_strided_slice %1064 {offsets = [0, 16], sizes = [16, 8], strides = [1, 1]} : vector<16x32xf32> to vector<16x8xf32>
    %cst_573 = arith.constant dense<0.000000e+00> : vector<16x8xf32>
    %1115 = tpu.matmul %1113, %1114, %cst_573 {dimension_numbers = #tpu.dot_dimension_numbers<[1], [0], [0], [1], [0, 0, 1, 1], [], []>} : vector<16x16xf32>, vector<16x8xf32>, vector<16x8xf32> -> vector<16x8xf32>
    %1116 = vector.extract_strided_slice %1050 {offsets = [0, 24], sizes = [16, 8], strides = [1, 1]} : vector<16x32xf32> to vector<16x8xf32>
    %1117 = vector.extract_strided_slice %1057 {offsets = [0, 24], sizes = [16, 8], strides = [1, 1]} : vector<16x32xf32> to vector<16x8xf32>
    %1118 = tpu.transpose %1117, [1, 0] : vector<16x8xf32> -> vector<8x16xf32>
    %cst_574 = arith.constant dense<0.000000e+00> : vector<16x16xf32>
    %1119 = tpu.matmul %1116, %1118, %cst_574 {dimension_numbers = #tpu.dot_dimension_numbers<[1], [0], [0], [1], [0, 0, 1, 1], [], []>} : vector<16x8xf32>, vector<8x16xf32>, vector<16x16xf32> -> vector<16x16xf32>
    %1120 = arith.addf %1119, %4 : vector<16x16xf32>
    %cst_575 = arith.constant dense<0xFF800000> : vector<16xf32>
    %1121 = vector.multi_reduction <maximumf>, %1120, %cst_575 [1] : vector<16x16xf32> to vector<16xf32>
    %1122 = vector.shape_cast %1121 : vector<16xf32> to vector<16x1xf32>
    %1123 = vector.broadcast %1122 : vector<16x1xf32> to vector<16x16xf32>
    %1124 = arith.subf %1120, %1123 : vector<16x16xf32>
    %1125 = math.exp %1124 : vector<16x16xf32>
    %cst_576 = arith.constant dense<0.000000e+00> : vector<16xf32>
    %1126 = vector.multi_reduction <add>, %1125, %cst_576 [1] : vector<16x16xf32> to vector<16xf32>
    %1127 = vector.shape_cast %1126 : vector<16xf32> to vector<16x1xf32>
    %1128 = tpu.reciprocal %1127 {approx = true} : vector<16x1xf32> -> vector<16x1xf32>
    %1129 = vector.broadcast %1128 : vector<16x1xf32> to vector<16x16xf32>
    %1130 = arith.mulf %1125, %1129 : vector<16x16xf32>
    %1131 = vector.extract_strided_slice %1064 {offsets = [0, 24], sizes = [16, 8], strides = [1, 1]} : vector<16x32xf32> to vector<16x8xf32>
    %cst_577 = arith.constant dense<0.000000e+00> : vector<16x8xf32>
    %1132 = tpu.matmul %1130, %1131, %cst_577 {dimension_numbers = #tpu.dot_dimension_numbers<[1], [0], [0], [1], [0, 0, 1, 1], [], []>} : vector<16x16xf32>, vector<16x8xf32>, vector<16x8xf32> -> vector<16x8xf32>
    %1133 = tpu.concatenate %1081, %1098, %1115, %1132 in 1 : vector<16x8xf32>, vector<16x8xf32>, vector<16x8xf32>, vector<16x8xf32> -> vector<16x32xf32>
    %c0_578 = arith.constant 0 : index
    %c5_579 = arith.constant 5 : index
    %c0_580 = arith.constant 0 : index
    %c0_581 = arith.constant 0 : index
    %1134 = vector.load %arg12[%c0_578, %c5_579, %c0_580, %c0_581] : memref<1x6x32x32xf32, #tpu.memory_space<vmem>>, vector<1x1x32x32xf32>
    %1135 = vector.shape_cast %1134 : vector<1x1x32x32xf32> to vector<32x32xf32>
    %cst_582 = arith.constant dense<0.000000e+00> : vector<16x32xf32>
    %1136 = tpu.matmul %1133, %1135, %cst_582 {dimension_numbers = #tpu.dot_dimension_numbers<[1], [0], [0], [1], [0, 0, 1, 1], [], []>} : vector<16x32xf32>, vector<32x32xf32>, vector<16x32xf32> -> vector<16x32xf32>
    %c0_583 = arith.constant 0 : index
    %c5_584 = arith.constant 5 : index
    %c0_585 = arith.constant 0 : index
    %c0_586 = arith.constant 0 : index
    %1137 = vector.load %arg13[%c0_583, %c5_584, %c0_585, %c0_586] : memref<1x6x1x32xf32, #tpu.memory_space<vmem>>, vector<1x1x1x32xf32>
    %1138 = vector.shape_cast %1137 : vector<1x1x1x32xf32> to vector<1x32xf32>
    %1139 = vector.broadcast %1138 : vector<1x32xf32> to vector<16x32xf32>
    %1140 = arith.addf %1136, %1139 : vector<16x32xf32>
    %1141 = arith.addf %989, %1140 : vector<16x32xf32>
    %c0_587 = arith.constant 0 : index
    %c5_588 = arith.constant 5 : index
    %c0_589 = arith.constant 0 : index
    %c0_590 = arith.constant 0 : index
    %1142 = vector.load %arg14[%c0_587, %c5_588, %c0_589, %c0_590] : memref<1x6x1x32xf32, #tpu.memory_space<vmem>>, vector<1x1x1x32xf32>
    %1143 = vector.shape_cast %1142 : vector<1x1x1x32xf32> to vector<1x32xf32>
    %c0_591 = arith.constant 0 : index
    %c5_592 = arith.constant 5 : index
    %c0_593 = arith.constant 0 : index
    %c0_594 = arith.constant 0 : index
    %1144 = vector.load %arg15[%c0_591, %c5_592, %c0_593, %c0_594] : memref<1x6x1x32xf32, #tpu.memory_space<vmem>>, vector<1x1x1x32xf32>
    %1145 = vector.shape_cast %1144 : vector<1x1x1x32xf32> to vector<1x32xf32>
    %cst_595 = arith.constant dense<0.000000e+00> : vector<16xf32>
    %1146 = vector.multi_reduction <add>, %1141, %cst_595 [1] : vector<16x32xf32> to vector<16xf32>
    %1147 = vector.shape_cast %1146 : vector<16xf32> to vector<16x1xf32>
    %cst_596 = arith.constant 3.200000e+01 : f32
    %1148 = vector.broadcast %cst_596 : f32 to vector<16x1xf32>
    %1149 = arith.divf %1147, %1148 : vector<16x1xf32>
    %1150 = vector.broadcast %1149 : vector<16x1xf32> to vector<16x32xf32>
    %1151 = arith.subf %1141, %1150 : vector<16x32xf32>
    %1152 = vector.broadcast %1149 : vector<16x1xf32> to vector<16x32xf32>
    %1153 = arith.subf %1141, %1152 : vector<16x32xf32>
    %1154 = arith.mulf %1151, %1153 : vector<16x32xf32>
    %cst_597 = arith.constant dense<0.000000e+00> : vector<16xf32>
    %1155 = vector.multi_reduction <add>, %1154, %cst_597 [1] : vector<16x32xf32> to vector<16xf32>
    %1156 = vector.shape_cast %1155 : vector<16xf32> to vector<16x1xf32>
    %cst_598 = arith.constant 3.200000e+01 : f32
    %1157 = vector.broadcast %cst_598 : f32 to vector<16x1xf32>
    %1158 = arith.divf %1156, %1157 : vector<16x1xf32>
    %1159 = vector.broadcast %1149 : vector<16x1xf32> to vector<16x32xf32>
    %1160 = arith.subf %1141, %1159 : vector<16x32xf32>
    %cst_599 = arith.constant 9.99999974E-6 : f32
    %1161 = vector.broadcast %cst_599 : f32 to vector<16x1xf32>
    %1162 = arith.addf %1158, %1161 : vector<16x1xf32>
    %1163 = math.rsqrt %1162 : vector<16x1xf32>
    %1164 = vector.broadcast %1163 : vector<16x1xf32> to vector<16x32xf32>
    %1165 = arith.mulf %1160, %1164 : vector<16x32xf32>
    %1166 = vector.broadcast %1143 : vector<1x32xf32> to vector<16x32xf32>
    %1167 = arith.mulf %1165, %1166 : vector<16x32xf32>
    %1168 = vector.broadcast %1145 : vector<1x32xf32> to vector<16x32xf32>
    %1169 = arith.addf %1167, %1168 : vector<16x32xf32>
    %c0_600 = arith.constant 0 : index
    %c5_601 = arith.constant 5 : index
    %c0_602 = arith.constant 0 : index
    %c0_603 = arith.constant 0 : index
    %1170 = vector.load %arg16[%c0_600, %c5_601, %c0_602, %c0_603] : memref<1x6x32x128xf32, #tpu.memory_space<vmem>>, vector<1x1x32x128xf32>
    %1171 = vector.shape_cast %1170 : vector<1x1x32x128xf32> to vector<32x128xf32>
    %cst_604 = arith.constant dense<0.000000e+00> : vector<16x128xf32>
    %1172 = tpu.matmul %1169, %1171, %cst_604 {dimension_numbers = #tpu.dot_dimension_numbers<[1], [0], [0], [1], [0, 0, 1, 1], [], []>} : vector<16x32xf32>, vector<32x128xf32>, vector<16x128xf32> -> vector<16x128xf32>
    %c0_605 = arith.constant 0 : index
    %c5_606 = arith.constant 5 : index
    %c0_607 = arith.constant 0 : index
    %c0_608 = arith.constant 0 : index
    %1173 = vector.load %arg17[%c0_605, %c5_606, %c0_607, %c0_608] : memref<1x6x1x128xf32, #tpu.memory_space<vmem>>, vector<1x1x1x128xf32>
    %1174 = vector.shape_cast %1173 : vector<1x1x1x128xf32> to vector<1x128xf32>
    %1175 = vector.broadcast %1174 : vector<1x128xf32> to vector<16x128xf32>
    %1176 = arith.addf %1172, %1175 : vector<16x128xf32>
    %cst_609 = arith.constant 0.000000e+00 : f32
    %1177 = vector.broadcast %cst_609 : f32 to vector<16x128xf32>
    %1178 = arith.maximumf %1176, %1177 : vector<16x128xf32>
    %c0_610 = arith.constant 0 : index
    %c5_611 = arith.constant 5 : index
    %c0_612 = arith.constant 0 : index
    %c0_613 = arith.constant 0 : index
    %1179 = vector.load %arg18[%c0_610, %c5_611, %c0_612, %c0_613] : memref<1x6x128x32xf32, #tpu.memory_space<vmem>>, vector<1x1x128x32xf32>
    %1180 = vector.shape_cast %1179 : vector<1x1x128x32xf32> to vector<128x32xf32>
    %cst_614 = arith.constant dense<0.000000e+00> : vector<16x32xf32>
    %1181 = tpu.matmul %1178, %1180, %cst_614 {dimension_numbers = #tpu.dot_dimension_numbers<[1], [0], [0], [1], [0, 0, 1, 1], [], []>} : vector<16x128xf32>, vector<128x32xf32>, vector<16x32xf32> -> vector<16x32xf32>
    %c0_615 = arith.constant 0 : index
    %c5_616 = arith.constant 5 : index
    %c0_617 = arith.constant 0 : index
    %c0_618 = arith.constant 0 : index
    %1182 = vector.load %arg19[%c0_615, %c5_616, %c0_617, %c0_618] : memref<1x6x1x32xf32, #tpu.memory_space<vmem>>, vector<1x1x1x32xf32>
    %1183 = vector.shape_cast %1182 : vector<1x1x1x32xf32> to vector<1x32xf32>
    %1184 = vector.broadcast %1183 : vector<1x32xf32> to vector<16x32xf32>
    %1185 = arith.addf %1181, %1184 : vector<16x32xf32>
    %1186 = arith.addf %1141, %1185 : vector<16x32xf32>
    %1187 = vector.extract_strided_slice %1186 {offsets = [7, 0], sizes = [1, 32], strides = [1, 1]} : vector<16x32xf32> to vector<1x32xf32>
    %1188 = vector.extract_strided_slice %1186 {offsets = [15, 0], sizes = [1, 32], strides = [1, 1]} : vector<16x32xf32> to vector<1x32xf32>
    %1189 = tpu.concatenate %1187, %1188 in 0 : vector<1x32xf32>, vector<1x32xf32> -> vector<2x32xf32>
    %c0_619 = arith.constant 0 : index
    %c0_620 = arith.constant 0 : index
    %c0_621 = arith.constant 0 : index
    %1190 = vector.load %arg20[%c0_619, %c0_620, %c0_621] : memref<1x1x32xf32, #tpu.memory_space<vmem>>, vector<1x1x32xf32>
    %1191 = vector.shape_cast %1190 : vector<1x1x32xf32> to vector<1x32xf32>
    %c0_622 = arith.constant 0 : index
    %c0_623 = arith.constant 0 : index
    %c0_624 = arith.constant 0 : index
    %1192 = vector.load %arg21[%c0_622, %c0_623, %c0_624] : memref<1x1x32xf32, #tpu.memory_space<vmem>>, vector<1x1x32xf32>
    %1193 = vector.shape_cast %1192 : vector<1x1x32xf32> to vector<1x32xf32>
    %cst_625 = arith.constant dense<0.000000e+00> : vector<2xf32>
    %1194 = vector.multi_reduction <add>, %1189, %cst_625 [1] : vector<2x32xf32> to vector<2xf32>
    %1195 = vector.shape_cast %1194 : vector<2xf32> to vector<2x1xf32>
    %cst_626 = arith.constant 3.200000e+01 : f32
    %1196 = vector.broadcast %cst_626 : f32 to vector<2x1xf32>
    %1197 = arith.divf %1195, %1196 : vector<2x1xf32>
    %1198 = vector.broadcast %1197 : vector<2x1xf32> to vector<2x32xf32>
    %1199 = arith.subf %1189, %1198 : vector<2x32xf32>
    %1200 = vector.broadcast %1197 : vector<2x1xf32> to vector<2x32xf32>
    %1201 = arith.subf %1189, %1200 : vector<2x32xf32>
    %1202 = arith.mulf %1199, %1201 : vector<2x32xf32>
    %cst_627 = arith.constant dense<0.000000e+00> : vector<2xf32>
    %1203 = vector.multi_reduction <add>, %1202, %cst_627 [1] : vector<2x32xf32> to vector<2xf32>
    %1204 = vector.shape_cast %1203 : vector<2xf32> to vector<2x1xf32>
    %cst_628 = arith.constant 3.200000e+01 : f32
    %1205 = vector.broadcast %cst_628 : f32 to vector<2x1xf32>
    %1206 = arith.divf %1204, %1205 : vector<2x1xf32>
    %1207 = vector.broadcast %1197 : vector<2x1xf32> to vector<2x32xf32>
    %1208 = arith.subf %1189, %1207 : vector<2x32xf32>
    %cst_629 = arith.constant 9.99999974E-6 : f32
    %1209 = vector.broadcast %cst_629 : f32 to vector<2x1xf32>
    %1210 = arith.addf %1206, %1209 : vector<2x1xf32>
    %1211 = math.rsqrt %1210 : vector<2x1xf32>
    %1212 = vector.broadcast %1211 : vector<2x1xf32> to vector<2x32xf32>
    %1213 = arith.mulf %1208, %1212 : vector<2x32xf32>
    %1214 = vector.broadcast %1191 : vector<1x32xf32> to vector<2x32xf32>
    %1215 = arith.mulf %1213, %1214 : vector<2x32xf32>
    %1216 = vector.broadcast %1193 : vector<1x32xf32> to vector<2x32xf32>
    %1217 = arith.addf %1215, %1216 : vector<2x32xf32>
    %c0_630 = arith.constant 0 : index
    %c0_631 = arith.constant 0 : index
    %c0_632 = arith.constant 0 : index
    %1218 = vector.load %arg22[%c0_630, %c0_631, %c0_632] : memref<1x2x32xf32, #tpu.memory_space<vmem>>, vector<1x2x32xf32>
    %1219 = vector.shape_cast %1218 : vector<1x2x32xf32> to vector<2x32xf32>
    %1220 = vector.shape_cast %1217 : vector<2x32xf32> to vector<1x2x32xf32>
    tpu.vector_store %arg22[%c0_630, %c0_631, %c0_632], %1220 {strides = array<i32>} : memref<1x2x32xf32, #tpu.memory_space<vmem>>, vector<1x2x32xf32>,
    return
  }
  func.func @transform_0(%arg0: i32) -> (i32, i32, i32) {
    %c0_i32 = arith.constant 0 : i32
    %c0_i32_0 = arith.constant 0 : i32
    %c0_i32_1 = arith.constant 0 : i32
    return %arg0, %c0_i32, %c0_i32_0 : i32, i32, i32
  }
  func.func @transform_1(%arg0: i32) -> (i32, i32, i32) {
    %c1_i32 = arith.constant 1 : i32
    %0 = arith.subi %c1_i32, %arg0 : i32
    %c0_i32 = arith.constant 0 : i32
    %c0_i32_0 = arith.constant 0 : i32
    %c0_i32_1 = arith.constant 0 : i32
    return %0, %c0_i32, %c0_i32_0 : i32, i32, i32
  }
  func.func @transform_2(%arg0: i32) -> (i32, i32) {
    %c0_i32 = arith.constant 0 : i32
    %c0_i32_0 = arith.constant 0 : i32
    %c0_i32_1 = arith.constant 0 : i32
    return %c0_i32, %c0_i32_0 : i32, i32
  }
  func.func @transform_3(%arg0: i32) -> (i32, i32, i32, i32) {
    %c0_i32 = arith.constant 0 : i32
    %c0_i32_0 = arith.constant 0 : i32
    %c0_i32_1 = arith.constant 0 : i32
    %c0_i32_2 = arith.constant 0 : i32
    return %arg0, %c0_i32, %c0_i32_0, %c0_i32_1 : i32, i32, i32, i32
  }
  func.func @transform_4(%arg0: i32) -> (i32, i32, i32, i32) {
    %c0_i32 = arith.constant 0 : i32
    %c0_i32_0 = arith.constant 0 : i32
    %c0_i32_1 = arith.constant 0 : i32
    %c0_i32_2 = arith.constant 0 : i32
    return %arg0, %c0_i32, %c0_i32_0, %c0_i32_1 : i32, i32, i32, i32
  }
  func.func @transform_5(%arg0: i32) -> (i32, i32, i32, i32) {
    %c0_i32 = arith.constant 0 : i32
    %c0_i32_0 = arith.constant 0 : i32
    %c0_i32_1 = arith.constant 0 : i32
    %c0_i32_2 = arith.constant 0 : i32
    return %arg0, %c0_i32, %c0_i32_0, %c0_i32_1 : i32, i32, i32, i32
  }
  func.func @transform_6(%arg0: i32) -> (i32, i32, i32, i32) {
    %c0_i32 = arith.constant 0 : i32
    %c0_i32_0 = arith.constant 0 : i32
    %c0_i32_1 = arith.constant 0 : i32
    %c0_i32_2 = arith.constant 0 : i32
    return %arg0, %c0_i32, %c0_i32_0, %c0_i32_1 : i32, i32, i32, i32
  }
  func.func @transform_7(%arg0: i32) -> (i32, i32, i32, i32) {
    %c0_i32 = arith.constant 0 : i32
    %c0_i32_0 = arith.constant 0 : i32
    %c0_i32_1 = arith.constant 0 : i32
    %c0_i32_2 = arith.constant 0 : i32
    return %arg0, %c0_i32, %c0_i32_0, %c0_i32_1 : i32, i32, i32, i32
  }
  func.func @transform_8(%arg0: i32) -> (i32, i32, i32, i32) {
    %c0_i32 = arith.constant 0 : i32
    %c0_i32_0 = arith.constant 0 : i32
    %c0_i32_1 = arith.constant 0 : i32
    %c0_i32_2 = arith.constant 0 : i32
    return %arg0, %c0_i32, %c0_i32_0, %c0_i32_1 : i32, i32, i32, i32
  }
  func.func @transform_9(%arg0: i32) -> (i32, i32, i32, i32) {
    %c0_i32 = arith.constant 0 : i32
    %c0_i32_0 = arith.constant 0 : i32
    %c0_i32_1 = arith.constant 0 : i32
    %c0_i32_2 = arith.constant 0 : i32
    return %arg0, %c0_i32, %c0_i32_0, %c0_i32_1 : i32, i32, i32, i32
  }
  func.func @transform_10(%arg0: i32) -> (i32, i32, i32, i32) {
    %c0_i32 = arith.constant 0 : i32
    %c0_i32_0 = arith.constant 0 : i32
    %c0_i32_1 = arith.constant 0 : i32
    %c0_i32_2 = arith.constant 0 : i32
    return %arg0, %c0_i32, %c0_i32_0, %c0_i32_1 : i32, i32, i32, i32
  }
  func.func @transform_11(%arg0: i32) -> (i32, i32, i32, i32) {
    %c0_i32 = arith.constant 0 : i32
    %c0_i32_0 = arith.constant 0 : i32
    %c0_i32_1 = arith.constant 0 : i32
    %c0_i32_2 = arith.constant 0 : i32
    return %arg0, %c0_i32, %c0_i32_0, %c0_i32_1 : i32, i32, i32, i32
  }
  func.func @transform_12(%arg0: i32) -> (i32, i32, i32, i32) {
    %c0_i32 = arith.constant 0 : i32
    %c0_i32_0 = arith.constant 0 : i32
    %c0_i32_1 = arith.constant 0 : i32
    %c0_i32_2 = arith.constant 0 : i32
    return %arg0, %c0_i32, %c0_i32_0, %c0_i32_1 : i32, i32, i32, i32
  }
  func.func @transform_13(%arg0: i32) -> (i32, i32, i32, i32) {
    %c0_i32 = arith.constant 0 : i32
    %c0_i32_0 = arith.constant 0 : i32
    %c0_i32_1 = arith.constant 0 : i32
    %c0_i32_2 = arith.constant 0 : i32
    return %arg0, %c0_i32, %c0_i32_0, %c0_i32_1 : i32, i32, i32, i32
  }
  func.func @transform_14(%arg0: i32) -> (i32, i32, i32, i32) {
    %c0_i32 = arith.constant 0 : i32
    %c0_i32_0 = arith.constant 0 : i32
    %c0_i32_1 = arith.constant 0 : i32
    %c0_i32_2 = arith.constant 0 : i32
    return %arg0, %c0_i32, %c0_i32_0, %c0_i32_1 : i32, i32, i32, i32
  }
  func.func @transform_15(%arg0: i32) -> (i32, i32, i32, i32) {
    %c0_i32 = arith.constant 0 : i32
    %c0_i32_0 = arith.constant 0 : i32
    %c0_i32_1 = arith.constant 0 : i32
    %c0_i32_2 = arith.constant 0 : i32
    return %arg0, %c0_i32, %c0_i32_0, %c0_i32_1 : i32, i32, i32, i32
  }
  func.func @transform_16(%arg0: i32) -> (i32, i32, i32, i32) {
    %c0_i32 = arith.constant 0 : i32
    %c0_i32_0 = arith.constant 0 : i32
    %c0_i32_1 = arith.constant 0 : i32
    %c0_i32_2 = arith.constant 0 : i32
    return %arg0, %c0_i32, %c0_i32_0, %c0_i32_1 : i32, i32, i32, i32
  }
  func.func @transform_17(%arg0: i32) -> (i32, i32, i32, i32) {
    %c0_i32 = arith.constant 0 : i32
    %c0_i32_0 = arith.constant 0 : i32
    %c0_i32_1 = arith.constant 0 : i32
    %c0_i32_2 = arith.constant 0 : i32
    return %arg0, %c0_i32, %c0_i32_0, %c0_i32_1 : i32, i32, i32, i32
  }
  func.func @transform_18(%arg0: i32) -> (i32, i32, i32, i32) {
    %c0_i32 = arith.constant 0 : i32
    %c0_i32_0 = arith.constant 0 : i32
    %c0_i32_1 = arith.constant 0 : i32
    %c0_i32_2 = arith.constant 0 : i32
    return %arg0, %c0_i32, %c0_i32_0, %c0_i32_1 : i32, i32, i32, i32
  }
  func.func @transform_19(%arg0: i32) -> (i32, i32, i32) {
    %c0_i32 = arith.constant 0 : i32
    %c0_i32_0 = arith.constant 0 : i32
    %c0_i32_1 = arith.constant 0 : i32
    return %arg0, %c0_i32, %c0_i32_0 : i32, i32, i32
  }
  func.func @transform_20(%arg0: i32) -> (i32, i32, i32) {
    %c0_i32 = arith.constant 0 : i32
    %c0_i32_0 = arith.constant 0 : i32
    %c0_i32_1 = arith.constant 0 : i32
    return %arg0, %c0_i32, %c0_i32_0 : i32, i32, i32
  }
  func.func @transform_21(%arg0: i32) -> (i32, i32, i32) {
    %c0_i32 = arith.constant 0 : i32
    %c0_i32_0 = arith.constant 0 : i32
    %c0_i32_1 = arith.constant 0 : i32
    return %arg0, %c0_i32, %c0_i32_0 : i32, i32, i32
  }
}

</mosaic_0001>

<bundles_post_ra>
// kernel: mult_forward.3
= control target key start
LH: loop header
LB: loop body
LE: loop exit
PB: predicated region body
PF: predicated region fallthrough
CT: control target
= control target key end

     0   :  { %12 = vsyncpa [#allocation3], 0  ;;  %s337_s25 = smov 32   ;;  %v338_v2 = vmov 0.0   ;;  %vm339_vm0 = vmmov 0   ;;  %s433_s0 = inlined_call_operand.vmem [shape: f32[2,2,32], index: 0, kind: input, shape index: {}]   ;;  %s434_s1 = inlined_call_operand.vmem [shape: f32[64,32], index: 1, kind: input, shape index: {}]   ;;  %s435_s2 = inlined_call_operand.vmem [shape: f32[1,32], index: 2, kind: input, shape index: {}]   ;;  %s436_s3 = inlined_call_operand.vmem [shape: f32[32,32], index: 3, kind: input, shape index: {}]   ;;  %s437_s4 = inlined_call_operand.vmem [shape: f32[1,32], index: 4, kind: input, shape index: {}]   ;;  %s438_s5 = inlined_call_operand.hbm [shape: f32[2,32], index: 5, kind: output, shape index: {0}]   ;;  %s439_s6 = inlined_call_operand.hbm [shape: f32[2,64], index: 6, kind: output, shape index: {1}]  }
   0x1   :  { %v24_v0 = vld [vmem:[%s433_s0] sm:$0x3]  ;;  %v42_v1 = vld [vmem:[%s434_s1 + $0x38] sm:$0xff]  ;;  %258 = vmatprep.subr.mxu0 %v338_v2  ;;  %v41_v3 = vld [vmem:[%s434_s1 + $0x30] sm:$0xff]  ;;  %274 = vmatprep.mubr.msk.f32.mxu0 %vm339_vm0, %v338_v2 }
   0x2   :  { %28 = vrot.lane.b32.xlu0 %v24_v0, %s337_s25  ;;  %259 = vmatpush3.msra.mxu0 %v42_v1  ;;  %v40_v4 = vld [vmem:[%s434_s1 + $0x28] sm:$0xff]  ;;  %v128_v5 = vld [vmem:[%s436_s3 + $0x18] sm:$0xff] }
   0x3   :  { %260 = vmatprep.subr.mxu0 %v338_v2  ;;  %277 = vmatprep.subr.mxu1 %v338_v2 }
   0x4   :  { %261 = vmatpush3.msra.mxu0 %v41_v3  ;;  %278 = vmatpush3.msra.mxu1 %v128_v5 }
   0x5   :  { %13 = vsyncpa [#allocation5], 0  ;;  %262 = vmatprep.subr.mxu0 %v338_v2  ;;  %v39_v6 = vld [vmem:[%s434_s1 + $0x20] sm:$0xff]  ;;  %279 = vmatprep.subr.mxu1 %v338_v2  ;;  %v38_v7 = vld [vmem:[%s434_s1 + $0x18] sm:$0xff]  ;;  %vm31_vm1 = vcmask 261120   ;;  %vm50_vm2 = vcmask 523264  }
   0x6   :  { %263 = vmatpush3.msra.mxu0 %v40_v4  ;;  %285 = vmatprep.mubr.msk.f32.mxu1 %vm339_vm0, %v338_v2  ;;  %v37_v8 = vld [vmem:[%s434_s1 + $0x10] sm:$0xff]  ;;  %v36_v9 = vld [vmem:[%s434_s1 + $0x8] sm:$0xff]  ;;  %v35_v10 = vld [vmem:[%s434_s1] sm:$0xff]  ;;  %vm33_vm3 = vcmask 517120   ;;  %s340_s26 = smov [#allocation4]  }
   0x7   :  { %264 = vmatprep.subr.mxu0 %v338_v2  ;;  %v239_v11 = vld [vmem:[%s433_s0 + $0x2] sm:$0x3]  ;;  %v127_v14 = vld [vmem:[%s436_s3 + $0x10] sm:$0xff]  ;;  %v126_v15 = vld [vmem:[%s436_s3 + $0x8] sm:$0xff]  ;;  %s227_s27 = sshll.u32 %s340_s26, 4  ;;  %s228_s27 = int_to_ptr.vmem [resolvable:$true] %s227_s27 }
   0x8   :  { %265 = vmatpush3.msra.mxu0 %v39_v6  ;;  %280 = vmatpush3.msra.mxu1 %v127_v14  ;;  %v125_v16 = vld [vmem:[%s436_s3] sm:$0xff]  ;;  %s293_s28 = scalar_lea.vmem %s228_s27, 32  ;;  %p298_p1 = scmp.lt.s32.totalorder %s228_s27, %s228_s27 }
   0x9   :  { %266 = vmatprep.subr.mxu0 %v338_v2  ;;  %281 = vmatprep.subr.mxu1 %v338_v2  ;;  %v240_v17 = vld [vmem:[%s435_s2] ss:$0 sm:$0xff]  ;;  %p294_p0 = scmp.ne.s32.totalorder %s228_s27, %s293_s28  ;;  %p299_p2 = scmp.lt.s32.totalorder %s293_s28, %s293_s28 }
   0xa   :  { %267 = vmatpush3.msra.mxu0 %v38_v7  ;;  %282 = vmatpush3.msra.mxu1 %v126_v15 }
   0xb   :  { %268 = vmatprep.subr.mxu0 %v338_v2  ;;  %283 = vmatprep.subr.mxu1 %v338_v2  ;;  %p300_p3 = por %p299_p2, %p298_p1 }
   0xc   :  { %269 = vmatpush3.msra.mxu0 %v37_v8  ;;  %284 = vmatpush3.msra.mxu1 %v125_v16 }
   0xd   :  { %270 = vmatprep.subr.mxu0 %v338_v2  ;;  %p301_p4 = pnand %p300_p3, %p294_p0 }
   0xe   :  { %271 = vmatpush3.msra.mxu0 %v36_v9 }
   0xf   :  { %272 = vmatprep.subr.mxu0 %v338_v2 }
  0x10   :  { %273 = vmatpush3.msra.mxu0 %v35_v10 }
  0x74   :  { %v29_v12 = vpop.permute.xlu0 %28 }
  0x75   :  { %v32_v13 = vsel %vm31_vm1, %v239_v11, %v29_v12 }
  0x76   :  { %275 = vmatmul.mubr.msk.f32.vlgmr.msra.gmra.mxu0 %vm50_vm2, %v32_v13  ;;  %34 = vst.msk [vmem:[#allocation4] sm:$0x3] %vm33_vm3, %v32_v13 }
 0x136   :  { %v120_v18 = vpop.f32.mrf.mxu0 }
 0x137   :  { %v121_v19 = vadd.f32 %v240_v17, %v120_v18 }
 0x138   :  { %v276_v20 = vpop.f32.mrf.mxu0 }
 0x139   :  { %v124_v21 = vmax.f32 %v121_v19, 0.0 }
 0x13b   :  { %286 = vmatmul.mubr.msk.f32.vlgmr.msra.gmra.mxu1 %vm31_vm1, %v124_v21 }
 0x13c   :  { %304 = shalt.err (!%p301_p4)
}
 0x13d   :  { %230 = dma.vmem_to_hbm [thread:$0]  %s228_s27, 32, %s439_s6, [#allocation5]   ;;  %v242_v22 = vld [vmem:[%s437_s4] ss:$0 sm:$0xff]  ;;  %vm209_vm4 = vcmask 254976  }
 0x13e   :  { %s341_s7 = smov [#allocation2]  }
 0x13f   :  { %s217_s8 = sshll.u32 %s341_s7, 4  ;;  %s218_s8 = int_to_ptr.vmem [resolvable:$true] %s217_s8 }
 0x140   :  { %s313_s9 = scalar_lea.vmem %s218_s8, 32  ;;  %p318_p6 = scmp.lt.s32.totalorder %s218_s8, %s218_s8 }
 0x141   :  { %p314_p5 = scmp.ne.s32.totalorder %s218_s8, %s313_s9  ;;  %p319_p7 = scmp.lt.s32.totalorder %s313_s9, %s313_s9 }
 0x143   :  { %p320_p8 = por %p319_p7, %p318_p6 }
 0x145   :  { %p321_p9 = pnand %p320_p8, %p314_p5 }
 0x1fb   :  { %v205_v23 = vpop.f32.mrf.mxu1 }
 0x1fc   :  { %v206_v24 = vadd.f32 %v242_v22, %v205_v23 }
 0x1fd   :  { %v287_v25 = vpop.f32.mrf.mxu1 }
 0x1fe   :  { %210 = vst.msk [vmem:[#allocation2] sm:$0x3] %vm209_vm4, %v206_v24 }
 0x1ff   :  { %324 = shalt.err (!%p321_p9)
}
 0x200   :  { %220 = dma.vmem_to_hbm [thread:$0]  %s218_s8, 32, %s438_s5, [#allocation3]  }
 0x201   :  { %333 = dma.done.wait [#allocation3], 32  }
 0x202   :  { %334 = vsyncadd [#allocation3], 4294967264 }
 0x203   :  { %335 = dma.done.wait [#allocation5], 32  }
 0x204   :  { %336 = vsyncadd [#allocation5], 4294967264 }
 0x205   :  { %237 = vsyncpa [#allocation3], 1 }
 0x206   :  { %238 = vsyncpa [#allocation5], 1 }

// kernel: mult_forward.2
= control target key start
LH: loop header
LB: loop body
LE: loop exit
PB: predicated region body
PF: predicated region fallthrough
CT: control target
= control target key end

     0   :  { %s14182_s0 = inlined_call_operand.vmem [shape: f32[2,16,32], index: 0, kind: input, shape index: {}, may-alias: {0,1}]   ;;  %s14183_s1 = inlined_call_operand.vmem [shape: f32[2,16,32], index: 1, kind: input, shape index: {}, may-alias: {0,1}]   ;;  %s14184_s2 = inlined_call_operand.vmem [shape: f32[16,16], index: 2, kind: input, shape index: {}]   ;;  %s14185_s3 = inlined_call_operand.vmem [shape: f32[2,6,1,32], index: 3, kind: input, shape index: {}]   ;;  %s14186_s4 = inlined_call_operand.vmem [shape: f32[2,6,1,32], index: 4, kind: input, shape index: {}]   ;;  %s14187_s5 = inlined_call_operand.vmem [shape: f32[2,6,32,32], index: 5, kind: input, shape index: {}]   ;;  %s14188_s6 = inlined_call_operand.vmem [shape: f32[2,6,1,32], index: 6, kind: input, shape index: {}]   ;;  %s14189_s7 = inlined_call_operand.vmem [shape: f32[2,6,32,32], index: 7, kind: input, shape index: {}]   ;;  %s14190_s8 = inlined_call_operand.vmem [shape: f32[2,6,1,32], index: 8, kind: input, shape index: {}]   ;;  %s14191_s9 = inlined_call_operand.vmem [shape: f32[2,6,32,32], index: 9, kind: input, shape index: {}]   ;;  %s14192_s10 = inlined_call_operand.vmem [shape: f32[2,6,1,32], index: 10, kind: input, shape index: {}]   ;;  %s14193_s11 = inlined_call_operand.vmem [shape: f32[2,6,32,32], index: 11, kind: input, shape index: {}]   ;;  %s14194_s12 = inlined_call_operand.vmem [shape: f32[2,6,1,32], index: 12, kind: input, shape index: {}]   ;;  %s14195_s13 = inlined_call_operand.vmem [shape: f32[2,6,1,32], index: 13, kind: input, shape index: {}]   ;;  %s14196_s14 = inlined_call_operand.vmem [shape: f32[2,6,1,32], index: 14, kind: input, shape index: {}]   ;;  %s14197_s15 = inlined_call_operand.vmem [shape: f32[2,6,32,128], index: 15, kind: input, shape index: {}]   ;;  %s14198_s16 = inlined_call_operand.vmem [shape: f32[2,6,1,128], index: 16, kind: input, shape index: {}]   ;;  %s14199_s17 = inlined_call_operand.vmem [shape: f32[2,6,128,32], index: 17, kind: input, shape index: {}]   ;;  %s14200_s18 = inlined_call_operand.vmem [shape: f32[2,6,1,32], index: 18, kind: input, shape index: {}]   ;;  %s14201_s19 = inlined_call_operand.vmem [shape: f32[2,1,32], index: 19, kind: input, shape index: {}]   ;;  %s14202_s20 = inlined_call_operand.vmem [shape: f32[2,1,32], index: 20, kind: input, shape index: {}]   ;;  %s14203_s21 = inlined_call_operand.vmem [shape: f32[2,2,32], index: 21, kind: output, shape index: {}]  }
   0x1   :  { %14218 = sst [smem:[#allocation3_spill]] %s14182_s0 }
   0x2   :  { %14219 = sst [smem:[#allocation4_spill]] %s14183_s1 }
   0x3   :  { %14220 = sst [smem:[#allocation5_spill]] %s14184_s2  ;;  %s12549_s2 = smov 0  }
   0x4   :  { %14221 = sst [smem:[#allocation6_spill]] %s14185_s3 }
   0x5   :  { %14222 = sst [smem:[#allocation7_spill]] %s14186_s4 }
   0x6   :  { %14223 = sst [smem:[#allocation8_spill]] %s14187_s5 }
   0x7   :  { %14224 = sst [smem:[#allocation9_spill]] %s14188_s6 }
   0x8   :  { %14225 = sst [smem:[#allocation10_spill]] %s14189_s7 }
   0x9   :  { %14226 = sst [smem:[#allocation11_spill]] %s14190_s8 }
   0xa   :  { %14227 = sst [smem:[#allocation12_spill]] %s14191_s9 }
   0xb   :  { %14228 = sst [smem:[#allocation13_spill]] %s14192_s10 }
   0xc   :  { %14229 = sst [smem:[#allocation14_spill]] %s14193_s11 }
   0xd   :  { %14230 = sst [smem:[#allocation15_spill]] %s14194_s12 }
   0xe   :  { %14231 = sst [smem:[#allocation16_spill]] %s14195_s13 }
   0xf   :  { %14232 = sst [smem:[#allocation17_spill]] %s14196_s14 }
  0x10   :  { %14233 = sst [smem:[#allocation18_spill]] %s14197_s15 }
  0x11   :  { %14234 = sst [smem:[#allocation19_spill]] %s14198_s16 }
  0x12   :  { %14235 = sst [smem:[#allocation20_spill]] %s14199_s17 }
  0x13   :  { %14236 = sst [smem:[#allocation21_spill]] %s14200_s18 }
  0x14 LB: > { %14237 = sst [smem:[#allocation2_spill]] %s12431_s2  ;;  %s10275_s25 = sadd.s32 4294967295, %s12431_s2   ;;  %s12431_s2 = sphi %s12549_s2, %s31_s2  }
  0x15   : > { %p10279_p0 = scmp.ge.s32.totalorder %s12431_s2, 1  ;;  %p767_p1 = scmp.lt.s32.totalorder %s12431_s2, 3 }
  0x17   : > { %p768_p2 = pnand %p10279_p0, %p767_p1 }
  0x18   : > { %p908_p3 = scmp.lt.s32.totalorder (!%p768_p2), %s10275_s25, 1  ;;  %s913_s26 = ssub.s32 (!%p768_p2), 1, %s10275_s25 }
  0x19   : > { %771 = sbr.rel (%p768_p2) target bundleno = 20809 (0x5149), region = 104  ;;  %p914_p4 = scmp.lt.s32.totalorder (!%p768_p2), %s913_s26, 1 }
  0x1a   : > { %s14238_s29 = sld [smem:[#allocation3_spill]] (!%p768_p2) }
  0x1b   : > { %s14239_s22 = sld [smem:[#allocation4_spill]] (!%p768_p2) }
  0x1c   : > { %s14241_s7 = sld [smem:[#allocation10_spill]] (!%p768_p2) }
  0x1d   : > { %s14244_s9 = sld [smem:[#allocation12_spill]] (!%p768_p2) }
  0x1e   : > { %s14265_s25 = smov (!%p908_p3, %s10275_s25), 1  ;;  %s14267_s26 = smov (!%p914_p4, %s913_s26), 1  ;;  %vm1008_vm0 = vcmask 261120   ;;  %vm1354_vm1 = vcmask 64512   ;;  %vm1442_vm2 = vcmask 130048   ;;  %vm2176_vm3 = vcmask 195584  }
  0x1f   : > { %s10789_s27 = sshll.u32 %s14265_s25, 4  ;;  %s10790_s4 = sshll.u32 %s14267_s26, 4  ;;  %vm9967_vm4 = vcmask 1040384   ;;  %vm9971_vm5 = vcmask 254976  }
  0x20   : > { %s912_s0 = scalar_lea.vmem %s14238_s29, %s10789_s27  ;;  %s12587_s1 = smul.u32 192, %s14265_s25 }
  0x21   : > { %v12563_v0 = vld [vmem:[%s912_s0] sm:$0xff]  ;;  %v12565_v1 = vld [vmem:[%s912_s0 + $0x8] sm:$0xff]  ;;  %s918_s23 = scalar_lea.vmem %s14239_s22, %s10790_s4  ;;  %s14240_s27 = sld [smem:[#allocation8_spill]] }
  0x22   : > { %v1009_v2 = vsel %vm1008_vm0, %v12563_v0, 0.0  ;;  %v1012_v3 = vsel %vm1008_vm0, %v12565_v1, 0.0  ;;  %v1002_v4 = vld [vmem:[%s918_s23] sm:$0xff]  ;;  %v1003_v5 = vld [vmem:[%s918_s23 + $0x8] sm:$0xff]  ;;  %s12602_s0 = scalar_lea.vmem %s14241_s7, %s12587_s1  ;;  %s12607_s4 = smul.u32 6, %s14265_s25 }
  0x23   : > { %1010 = vadd.xlane.f32.xlu0 %v1009_v2  ;;  %v1052_v6 = vsel %vm1008_vm0, %v1002_v4, 0.0  ;;  %v1055_v7 = vsel %vm1008_vm0, %v1003_v5, 0.0  ;;  %v1179_v32 = vld [vmem:[%s12602_s0 + $0x18] sm:$0xff]  ;;  %s14242_s22 = sld [smem:[#allocation6_spill]]  ;;  %s12656_s5 = scalar_lea.vmem %s14244_s9, %s12587_s1 }
  0x24   : > { %1053 = vadd.xlane.f32.xlu1 %v1052_v6  ;;  %s14245_s6 = sld [smem:[#allocation9_spill]]  ;;  %s14205_s7 = smov 120  }
  0x25   : > { %s14246_s8 = sld [smem:[#allocation11_spill]]  ;;  %s14213_s29 = smov 104  }
  0x26   : > { %s14247_s10 = sld [smem:[#allocation13_spill]] }
  0x27   : > { %1013 = vadd.xlane.f32.xlu0 %v1012_v3  ;;  %s12593_s3 = scalar_lea.vmem %s14240_s27, %s12587_s1  ;;  %s14243_s27 = sld [smem:[#allocation7_spill]] }
  0x28   : > { %1056 = vadd.xlane.f32.xlu1 %v1055_v7  ;;  %v1085_v28 = vld [vmem:[%s12593_s3 + $0x18] sm:$0xff]  ;;  %v1084_v29 = vld [vmem:[%s12593_s3 + $0x10] sm:$0xff]  ;;  %v1083_v30 = vld [vmem:[%s12593_s3 + $0x8] sm:$0xff]  ;;  %s14248_s24 = sld [smem:[#allocation5_spill]] }
  0x29   : > { %11271 = vmatprep.subr.mxu1 %v1085_v28  ;;  %v1082_v31 = vld [vmem:[%s12593_s3] sm:$0xff]  ;;  %s12613_s23 = scalar_lea.vmem %s14242_s22, %s12607_s4  ;;  %s14211_s22 = smov 8  }
  0x2a   : > { %11272 = vmatpush3.msra.mxu1 %v1085_v28  ;;  %v10291_v46 = vld [vmem:[%s12613_s23] ss:$0 sm:$0xff]  ;;  %v10337_v54 = vld [vmem:[%s12613_s23 + $0x1] ss:$0 sm:$0xff]  ;;  %v10427_v55 = vld [vmem:[%s12613_s23 + $0x2] ss:$0 sm:$0xff]  ;;  %s12681_s26 = scalar_lea.vmem %s14245_s6, %s12607_s4 }
  0x2b   : > { %11273 = vmatprep.subr.mxu1 %v1084_v29  ;;  %v10517_v56 = vld [vmem:[%s12613_s23 + $0x3] ss:$0 sm:$0xff]  ;;  %v10607_v58 = vld [vmem:[%s12613_s23 + $0x4] ss:$0 sm:$0xff]  ;;  %v10697_v59 = vld [vmem:[%s12613_s23 + $0x5] ss:$0 sm:$0xff]  ;;  %s12688_s30 = scalar_lea.vmem %s14246_s8, %s12607_s4 }
  0x2c   : > { %11274 = vmatpush3.msra.mxu1 %v1084_v29  ;;  %s14249_s6 = smov 120   ;;  %s14250_s11 = sld [smem:[#allocation14_spill]] }
  0x2d   : > { %11275 = vmatprep.subr.mxu1 %v1083_v30  ;;  %s12619_s28 = scalar_lea.vmem %s14243_s27, %s12607_s4  ;;  %s12709_s27 = scalar_lea.vmem %s14247_s10, %s12607_s4 }
  0x2e   : > { %11276 = vmatpush3.msra.mxu1 %v1083_v30  ;;  %v10292_v48 = vld [vmem:[%s12619_s28] ss:$0 sm:$0xff]  ;;  %v12630_v61 = vld [vmem:[%s12619_s28 + $0x1] ss:$0 sm:$0xff]  ;;  %v10428_v62 = vld [vmem:[%s12619_s28 + $0x2] ss:$0 sm:$0xff] }
  0x2f   : > { %11277 = vmatprep.subr.mxu1 %v1082_v31  ;;  %v10608_v6 = vld [vmem:[%s12619_s28 + $0x4] ss:$0 sm:$0xff]  ;;  %v10698_v7 = vld [vmem:[%s12619_s28 + $0x5] ss:$0 sm:$0xff]  ;;  %s14251_s12 = sld [smem:[#allocation15_spill]]  ;;  %s12149_s10 = smul.u32 768, %s14265_s25 }
  0x30   : > { %11278 = vmatpush3.msra.mxu1 %v1082_v31  ;;  %s14252_s15 = sld [smem:[#allocation18_spill]] }
  0x31   : > { %11282 = vmatprep.subr.mxu1 %v1179_v32  ;;  %s14253_s17 = sld [smem:[#allocation20_spill]] }
  0x32   : > { %s14254_s13 = sld [smem:[#allocation16_spill]] }
  0x33   : > { %s14255_s14 = sld [smem:[#allocation17_spill]] }
  0x34   : > { %s14256_s16 = sld [smem:[#allocation19_spill]] }
  0x35   : > { %s12862_s8 = scalar_lea.vmem %s14251_s12, %s12607_s4  ;;  %s14257_s18 = sld [smem:[#allocation21_spill]] }
  0x36   : > { %s12891_s9 = scalar_lea.vmem %s14252_s15, %s12587_s1 }
  0x38   : > { %s12919_s12 = scalar_lea.vmem %s14254_s13, %s12607_s4  ;;  %s14258_s13 = smov 112  }
  0x39   : > { %s12925_s15 = scalar_lea.vmem %s14255_s14, %s12607_s4 }
  0x3b   : > { %s12948_s14 = scalar_lea.vmem %s14257_s18, %s12607_s4 }
  0xac   : > { %v1011_v8 = vpop.xlane.xlu0 %1010 }
  0xad   : > { %v1016_v9 = vmul.f32 0.03125, %v1011_v8  ;;  %v1054_v12 = vpop.xlane.xlu1 %1053 }
  0xae   : > { %v1058_v15 = vmul.f32 0.03125, %v1054_v12 }
  0xaf   : > { %v1018_v10 = vsub.f32 %v12563_v0, %v1016_v9 }
  0xb0   : > { %v1014_v11 = vpop.xlane.xlu0 %1013  ;;  %v1060_v18 = vsub.f32 %v1002_v4, %v1058_v15  ;;  %v10518_v4 = vld [vmem:[%s12619_s28 + $0x3] ss:$0 sm:$0xff] }
  0xb1   : > { %v1017_v13 = vmul.f32 0.03125, %v1014_v11  ;;  %v1020_v14 = vmul.f32 %v1018_v10, %v1018_v10  ;;  %v1057_v19 = vpop.xlane.xlu1 %1056 }
  0xb2   : > { %v1059_v21 = vmul.f32 0.03125, %v1057_v19  ;;  %v1062_v22 = vmul.f32 %v1060_v18, %v1060_v18 }
  0xb3   : > { %v1019_v16 = vsub.f32 %v12565_v1, %v1017_v13  ;;  %v1022_v17 = vsel %vm1008_vm0, %v1020_v14, 0.0  ;;  %v1178_v13 = vld [vmem:[%s12602_s0 + $0x10] sm:$0xff] }
  0xb4   : > { %1023 = vadd.xlane.f32.xlu0 %v1022_v17  ;;  %v12580_v24 = vsub.f32 %v1003_v5, %v1059_v21  ;;  %v1064_v25 = vsel %vm1008_vm0, %v1062_v22, 0.0 }
  0xb5   : > { %v1021_v20 = vmul.f32 %v1019_v16, %v1019_v16 }
  0xb6   : > { %v1063_v26 = vmul.f32 %v12580_v24, %v12580_v24 }
  0xb7   : > { %v1025_v23 = vsel %vm1008_vm0, %v1021_v20, 0.0  ;;  %v1177_v20 = vld [vmem:[%s12602_s0 + $0x8] sm:$0xff] }
  0xb8   : > { %1026 = vadd.xlane.f32.xlu1 %v1025_v23  ;;  %1065 = vadd.xlane.f32.xlu0 %v1064_v25  ;;  %v1067_v27 = vsel %vm1008_vm0, %v1063_v26, 0.0 }
  0xbc   : > { %1068 = vadd.xlane.f32.xlu1 %v1067_v27  ;;  %v1176_v27 = vld [vmem:[%s12602_s0] sm:$0xff] }
 0x13d   : > { %v1024_v33 = vpop.xlane.xlu0 %1023 }
 0x13e   : > { %v1028_v34 = vmul.f32 0.03125, %v1024_v33  ;;  %v1271_v33 = vld [vmem:[%s12656_s5 + $0x18] sm:$0xff] }
 0x140   : > { %v1030_v35 = vadd.f32 1e-05, %v1028_v34 }
 0x141   : > { %v1027_v36 = vpop.xlane.xlu1 %1026  ;;  %v1066_v38 = vpop.xlane.xlu0 %1065 }
 0x142   : > { %12164 = vrsqrt.f32 %v1030_v35  ;;  %v1029_v37 = vmul.f32 0.03125, %v1027_v36  ;;  %v1070_v39 = vmul.f32 0.03125, %v1066_v38  ;;  %v1270_v35 = vld [vmem:[%s12656_s5 + $0x10] sm:$0xff]  ;;  %v1269_v36 = vld [vmem:[%s12656_s5 + $0x8] sm:$0xff] }
 0x144   : > { %v1031_v40 = vadd.f32 1e-05, %v1029_v37  ;;  %v1072_v41 = vadd.f32 1e-05, %v1070_v39  ;;  %v1268_v37 = vld [vmem:[%s12656_s5] sm:$0xff] }
 0x145   : > { %v1069_v42 = vpop.xlane.xlu1 %1068  ;;  %v10293_v39 = vld [vmem:[%s12681_s26] ss:$0 sm:$0xff] }
 0x146   : > { %12166 = vrsqrt.f32 %v1031_v40  ;;  %v1071_v43 = vmul.f32 0.03125, %v1069_v42 }
 0x147   : > { %12168 = vrsqrt.f32 %v1072_v41 }
 0x148   : > { %v1073_v44 = vadd.f32 1e-05, %v1071_v43  ;;  %v10296_v43 = vld [vmem:[%s12688_s30] ss:$0 sm:$0xff] }
 0x14a   : > { %12170 = vrsqrt.f32 %v1073_v44 }
 0x14f   : > { %v12165_v45 = vpop.eup %12164 }
 0x150   : > { %v1034_v47 = vmul.f32 %v12165_v45, %v1018_v10 }
 0x152   : > { %v1042_v49 = vmul.f32 %v10291_v46, %v1034_v47 }
 0x153   : > { %v12167_v50 = vpop.eup %12166 }
 0x154   : > { %v12169_v51 = vpop.eup %12168  ;;  %v1050_v52 = vadd.f32 %v10292_v48, %v1042_v49  ;;  %v1035_v53 = vmul.f32 %v12167_v50, %v1019_v16  ;;  %v10299_v49 = vld [vmem:[%s12709_s27] ss:$0 sm:$0xff] }
 0x155   : > { %v1076_v57 = vmul.f32 %v12169_v51, %v1060_v18 }
 0x156   : > { %11279 = vmatprep.mubr.msk.f32.mxu1 %vm1008_vm0, %v1050_v52  ;;  %v1043_v60 = vmul.f32 %v10291_v46, %v1035_v53 }
 0x157   : > { %v1078_v63 = vmul.f32 %v10291_v46, %v1076_v57  ;;  %v2557_v2 = vmul.f32 %v10337_v54, %v1076_v57  ;;  %v4047_v3 = vmul.f32 %v10427_v55, %v1076_v57  ;;  %v5537_v5 = vmul.f32 %v10517_v56, %v1076_v57  ;;  %v12171_v8 = vpop.eup %12170 }
 0x158   : > { %v1051_v9 = vadd.f32 %v10292_v48, %v1043_v60  ;;  %v7027_v10 = vmul.f32 %v10607_v58, %v1076_v57  ;;  %v8517_v11 = vmul.f32 %v10697_v59, %v1076_v57  ;;  %v1077_v12 = vmul.f32 %v12171_v8, %v12580_v24 }
 0x159   : > { %v1080_v14 = vadd.f32 %v10292_v48, %v1078_v63  ;;  %v12639_v15 = vadd.f32 %v12630_v61, %v2557_v2  ;;  %v12641_v16 = vadd.f32 %v10428_v62, %v4047_v3  ;;  %v12644_v17 = vadd.f32 %v10518_v4, %v5537_v5 }
 0x15a   : > { %11280 = vmatmul.mubr.msk.f32.vlgmr.msra.gmra.mxu1 %vm1008_vm0, %v1051_v9  ;;  %v12646_v18 = vadd.f32 %v10608_v6, %v7027_v10  ;;  %v12648_v19 = vadd.f32 %v10698_v7, %v8517_v11  ;;  %v2558_v21 = vmul.f32 %v10337_v54, %v1077_v12  ;;  %v4048_v22 = vmul.f32 %v10427_v55, %v1077_v12 }
 0x15b   : > { %11283 = vmatpush3.msra.mxu1 %v1179_v32  ;;  %11290 = vmatprep.mubr.msk.f32.mxu1 %vm1008_vm0, %v1080_v14  ;;  %v1079_v23 = vmul.f32 %v10291_v46, %v1077_v12  ;;  %v5538_v24 = vmul.f32 %v10517_v56, %v1077_v12  ;;  %v7028_v25 = vmul.f32 %v10607_v58, %v1077_v12 }
 0x15c   : > { %11284 = vmatprep.subr.mxu1 %v1178_v13  ;;  %v8518_v26 = vmul.f32 %v10697_v59, %v1077_v12  ;;  %v12660_v28 = vadd.f32 %v12630_v61, %v2558_v21  ;;  %v12662_v29 = vadd.f32 %v10428_v62, %v4048_v22  ;;  %v12743_v59 = vld [vmem:[%s14248_s24 + $0x8] sm:$0xff]  ;;  %v12748_v62 = vld [vmem:[%s14248_s24] sm:$0xff] }
 0x15d   : > { %11285 = vmatpush3.msra.mxu1 %v1178_v13  ;;  %v12664_v30 = vadd.f32 %v10518_v4, %v5538_v24  ;;  %v12666_v31 = vadd.f32 %v10608_v6, %v7028_v25  ;;  %v1081_v34 = vadd.f32 %v10292_v48, %v1079_v23 }
 0x15e   : > { %11286 = vmatprep.subr.mxu1 %v1177_v20  ;;  %v12668_v32 = vadd.f32 %v10698_v7, %v8518_v26 }
 0x15f   : > { %11287 = vmatpush3.msra.mxu1 %v1177_v20 }
 0x160   : > { %11288 = vmatprep.subr.mxu1 %v1176_v27 }
 0x161   : > { %11289 = vmatpush3.msra.mxu1 %v1176_v27 }
 0x162   : > { %11291 = vmatmul.mubr.msk.f32.vlgmr.msra.gmra.mxu1 %vm1008_vm0, %v1081_v34  ;;  %11293 = vmatprep.subr.mxu1 %v1271_v33 }
 0x163   : > { %11294 = vmatpush3.msra.mxu1 %v1271_v33  ;;  %11301 = vmatprep.mubr.msk.f32.mxu1 %vm1008_vm0, %v1080_v14 }
 0x164   : > { %11295 = vmatprep.subr.mxu1 %v1270_v35 }
 0x165   : > { %11296 = vmatpush3.msra.mxu1 %v1270_v35 }
 0x166   : > { %11297 = vmatprep.subr.mxu1 %v1269_v36 }
 0x167   : > { %11298 = vmatpush3.msra.mxu1 %v1269_v36 }
 0x168   : > { %11299 = vmatprep.subr.mxu1 %v1268_v37 }
 0x169   : > { %11300 = vmatpush3.msra.mxu1 %v1268_v37 }
 0x16a   : > { %11302 = vmatmul.mubr.msk.f32.vlgmr.msra.gmra.mxu1 %vm1008_vm0, %v1081_v34 }
 0x21a   : > { %v11281_v38 = vpop.f32.mrf.mxu1 }
 0x21b   : > { %v1171_v47 = vadd.f32 %v11281_v38, %v10293_v39 }
 0x21c   : > { %v1165_v40 = vpop.f32.mrf.mxu1 }
 0x21d   : > { %v1166_v41 = vadd.f32 %v10293_v39, %v1165_v40  ;;  %v12718_v50 = vmul.f32 0.35355338, %v1171_v47 }
 0x21f   : > { %v12690_v42 = vmul.f32 0.35355338, %v1166_v41 }
 0x221   : > { %1546 = vrot.lane.b32.xlu1 %v12690_v42, %s14205_s7  ;;  %11308 = vmatprep.mubr.msk.f32.mxu1 %vm1354_vm1, %v12690_v42 }
 0x222   : > { %v11292_v44 = vpop.f32.mrf.mxu1 }
 0x223   : > { %v12697_v45 = vadd.f32 %v11292_v44, %v10296_v43 }
 0x224   : > { %v1259_v46 = vpop.f32.mrf.mxu1 }
 0x225   : > { %v12699_v48 = vadd.f32 %v10296_v43, %v1259_v46  ;;  %1552 = vrot.lane.b32.xlu0 %v12697_v45, %s14205_s7  ;;  %11304 = vmatprep.subr.msk.mxu1 %vm1354_vm1, %v12697_v45 }
 0x226   : > { %11305 = vmatpush3.xpose.msk.msra.mxu1 %vm1354_vm1, %v12697_v45 }
 0x227   : > { %1550 = vrot.lane.b32.xlu1 %v12699_v48, %s14205_s7  ;;  %11306 = vmatprep.subr.msk.mxu1 %vm1354_vm1, %v12699_v48 }
 0x22a   : > { %v11303_v51 = vpop.f32.mrf.mxu1  ;;  %11307 = vmatpush3.xpose.msk.msra.mxu1 %vm1354_vm1, %v12699_v48 }
 0x22b   : > { %v12722_v52 = vadd.f32 %v11303_v51, %v10299_v49  ;;  %1548 = vrot.lane.b32.xlu1 %v12718_v50, %s14205_s7  ;;  %s14207_s7 = smov 112  }
 0x22c   : > { %v1345_v53 = vpop.f32.mrf.mxu1 }
 0x22d   : > { %v12726_v54 = vadd.f32 %v10299_v49, %v1345_v53  ;;  %11309 = vmatmul.mubr.msk.f32.vlgmr.msra.gmra.mxu1 %vm1354_vm1, %v12718_v50  ;;  %11311 = vmatprep.subr.mxu0 %v12722_v52 }
 0x22e   : > { %11312 = vmatpush3.msra.mxu0 %v12722_v52 }
 0x22f   : > { %11313 = vmatprep.subr.mxu0 %v12726_v54 }
 0x230   : > { %11314 = vmatpush3.msra.mxu0 %v12726_v54 }
 0x293   : > { %v1547_v55 = vpop.permute.xlu1 %1546 }
 0x294   : > { %11322 = vmatprep.mubr.msk.f32.mxu1 %vm1354_vm1, %v1547_v55 }
 0x297   : > { %v1553_v56 = vpop.permute.xlu0 %1552 }
 0x298   : > { %11318 = vmatprep.subr.msk.mxu1 %vm1354_vm1, %v1553_v56 }
 0x299   : > { %v1551_v57 = vpop.permute.xlu1 %1550  ;;  %11319 = vmatpush3.xpose.msk.msra.mxu1 %vm1354_vm1, %v1553_v56 }
 0x29a   : > { %11320 = vmatprep.subr.msk.mxu1 %vm1354_vm1, %v1551_v57 }
 0x29d   : > { %11321 = vmatpush3.xpose.msk.msra.mxu1 %vm1354_vm1, %v1551_v57  ;;  %v1549_v58 = vpop.permute.xlu1 %1548 }
 0x2a0   : > { %11323 = vmatmul.mubr.msk.f32.vlgmr.msra.gmra.mxu1 %vm1354_vm1, %v1549_v58 }
 0x2ed   : > { %v11310_v60 = vpop.f32.mrf.mxu1 }
 0x2ee   : > { %v1439_v63 = vadd.f32 %v11310_v60, %v12743_v59 }
 0x2ef   : > { %v1433_v2 = vpop.f32.mrf.mxu1 }
 0x2f0   : > { %v1434_v3 = vadd.f32 %v1433_v2, %v12748_v62  ;;  %v1446_v4 = vsel %vm1442_vm2, %v1439_v63, -inf }
 0x2f1   : > { %1447 = vmax.xlane.f32.xlu1 %v1446_v4 }
 0x2f2   : > { %v1443_v5 = vsel %vm1442_vm2, %v1434_v3, -inf }
 0x2f3   : > { %1444 = vmax.xlane.f32.xlu0 %v1443_v5 }
 0x360   : > { %v11324_v6 = vpop.f32.mrf.mxu1 }
 0x361   : > { %v1634_v9 = vadd.f32 %v11324_v6, %v12743_v59 }
 0x362   : > { %v1628_v7 = vpop.f32.mrf.mxu1 }
 0x363   : > { %v1629_v8 = vadd.f32 %v1628_v7, %v12748_v62  ;;  %v1640_v11 = vsel %vm1442_vm2, %v1634_v9, -inf }
 0x365   : > { %v1637_v10 = vsel %vm1442_vm2, %v1629_v8, -inf }
 0x366   : > { %1638 = vmax.xlane.f32.xlu0 %v1637_v10 }
 0x36a   : > { %1641 = vmax.xlane.f32.xlu0 %v1640_v11 }
 0x37a   : > { %v1448_v12 = vpop.xlane.xlu1 %1447 }
 0x37b   : > { %v1450_v13 = vsub.f32 %v1439_v63, %v1448_v12 }
 0x37c   : > { %v1445_v14 = vpop.xlane.xlu0 %1444 }
 0x37d   : > { %v1453_v20 = vmul.f32 1.442695, %v1450_v13  ;;  %v1449_v21 = vsub.f32 %v1434_v3, %v1445_v14 }
 0x37f   : > { %12172 = vpow2.f32 %v1453_v20  ;;  %v1451_v22 = vmul.f32 1.442695, %v1449_v21 }
 0x381   : > { %12174 = vpow2.f32 %v1451_v22 }
 0x38c   : > { %v12173_v23 = vpop.eup %12172 }
 0x38d   : > { %v1458_v24 = vsel %vm1442_vm2, %v12173_v23, 0.0 }
 0x38e   : > { %v12175_v25 = vpop.eup %12174  ;;  %1459 = vadd.xlane.f32.xlu1 %v1458_v24 }
 0x38f   : > { %v1455_v26 = vsel %vm1442_vm2, %v12175_v25, 0.0 }
 0x390   : > { %1456 = vadd.xlane.f32.xlu0 %v1455_v26 }
 0x3ef   : > { %v1639_v27 = vpop.xlane.xlu0 %1638 }
 0x3f0   : > { %v1643_v33 = vsub.f32 %v1629_v8, %v1639_v27 }
 0x3f2   : > { %v1645_v34 = vmul.f32 1.442695, %v1643_v33 }
 0x3f3   : > { %v1642_v35 = vpop.xlane.xlu0 %1641 }
 0x3f4   : > { %12176 = vpow2.f32 %v1645_v34  ;;  %v1644_v36 = vsub.f32 %v1634_v9, %v1642_v35 }
 0x3f6   : > { %v1647_v37 = vmul.f32 1.442695, %v1644_v36 }
 0x3f8   : > { %12178 = vpow2.f32 %v1647_v37 }
 0x401   : > { %v12177_v38 = vpop.eup %12176 }
 0x402   : > { %v1649_v39 = vsel %vm1442_vm2, %v12177_v38, 0.0 }
 0x403   : > { %1650 = vadd.xlane.f32.xlu0 %v1649_v39 }
 0x405   : > { %v12179_v40 = vpop.eup %12178 }
 0x406   : > { %v1652_v41 = vsel %vm1442_vm2, %v12179_v40, 0.0 }
 0x407   : > { %1653 = vadd.xlane.f32.xlu1 %v1652_v41 }
 0x417   : > { %v1460_v43 = vpop.xlane.xlu1 %1459 }
 0x418   : > { %1661 = vrot.lane.b32.xlu1 %v12726_v54, %s14249_s6  ;;  %12180 = vrcp.f32 %v1460_v43 }
 0x419   : > { %1663 = vrot.lane.b32.xlu0 %v12722_v52, %s14249_s6  ;;  %v1457_v44 = vpop.xlane.xlu0 %1456 }
 0x41a   : > { %12182 = vrcp.f32 %v1457_v44 }
 0x41c   : > { %1754 = vrot.lane.b32.xlu1 %v12697_v45, %s14207_s7 }
 0x41d   : > { %1748 = vrot.lane.b32.xlu0 %v12690_v42, %s14207_s7 }
 0x420   : > { %1752 = vrot.lane.b32.xlu1 %v12699_v48, %s14207_s7 }
 0x424   : > { %1750 = vrot.lane.b32.xlu1 %v12718_v50, %s14207_s7 }
 0x425   : > { %v12181_v46 = vpop.eup %12180 }
 0x426   : > { %v1464_v51 = vmul.f32 %v12181_v46, %v12173_v23 }
 0x427   : > { %v12183_v47 = vpop.eup %12182 }
 0x428   : > { %v1463_v49 = vmul.f32 %v12183_v47, %v12175_v25 }
 0x42a   : > { %11315 = vmatprep.mubr.msk.f32.mxu0 %vm1442_vm2, %v1463_v49 }
 0x42b   : > { %11316 = vmatmul.mubr.msk.f32.vlgmr.msra.gmra.mxu0 %vm1442_vm2, %v1464_v51 }
 0x48c   : > { %v1651_v53 = vpop.xlane.xlu0 %1650 }
 0x48d   : > { %12184 = vrcp.f32 %v1651_v53 }
 0x490   : > { %v1654_v55 = vpop.xlane.xlu1 %1653  ;;  %v1664_v56 = vpop.permute.xlu0 %1663 }
 0x491   : > { %12186 = vrcp.f32 %v1654_v55  ;;  %11325 = vmatprep.subr.mxu0 %v1664_v56 }
 0x492   : > { %11326 = vmatpush3.msra.mxu0 %v1664_v56 }
 0x494   : > { %v1662_v57 = vpop.permute.xlu1 %1661  ;;  %v1749_v4 = vpop.permute.xlu0 %1748 }
 0x495   : > { %11327 = vmatprep.subr.mxu0 %v1662_v57 }
 0x496   : > { %11328 = vmatpush3.msra.mxu0 %v1662_v57 }
 0x498   : > { %v1755_v58 = vpop.permute.xlu1 %1754 }
 0x499   : > { %11332 = vmatprep.subr.msk.mxu0 %vm1354_vm1, %v1755_v58 }
 0x49a   : > { %v12185_v60 = vpop.eup %12184 }
 0x49b   : > { %v1657_v63 = vmul.f32 %v12185_v60, %v12177_v38 }
 0x49c   : > { %v1753_v5 = vpop.permute.xlu1 %1752 }
 0x49d   : > { %11329 = vmatprep.mubr.msk.f32.mxu0 %vm1442_vm2, %v1657_v63 }
 0x49e   : > { %v12187_v2 = vpop.eup %12186 }
 0x49f   : > { %v1658_v3 = vmul.f32 %v12187_v2, %v12179_v40 }
 0x4a0   : > { %v1751_v6 = vpop.permute.xlu1 %1750 }
 0x4a1   : > { %11330 = vmatmul.mubr.msk.f32.vlgmr.msra.gmra.mxu0 %vm1442_vm2, %v1658_v3 }
 0x4a2   : > { %11333 = vmatpush3.xpose.msk.msra.mxu0 %vm1354_vm1, %v1755_v58  ;;  %11336 = vmatprep.mubr.msk.f32.mxu0 %vm1354_vm1, %v1749_v4 }
 0x4a3   : > { %11334 = vmatprep.subr.msk.mxu0 %vm1354_vm1, %v1753_v5 }
 0x4a6   : > { %11335 = vmatpush3.xpose.msk.msra.mxu0 %vm1354_vm1, %v1753_v5 }
 0x4a9   : > { %11337 = vmatmul.mubr.msk.f32.vlgmr.msra.gmra.mxu0 %vm1354_vm1, %v1751_v6 }
 0x4eb   : > { %v12784_v7 = vpop.f32.mrf.mxu0 }
 0x4ed   : > { %v12786_v8 = vpop.f32.mrf.mxu0 }
 0x561   : > { %v12788_v9 = vpop.f32.mrf.mxu0 }
 0x563   : > { %v12790_v10 = vpop.f32.mrf.mxu0 }
 0x569   : > { %v11338_v11 = vpop.f32.mrf.mxu0 }
 0x56a   : > { %v1836_v12 = vadd.f32 %v11338_v11, %v12743_v59 }
 0x56b   : > { %v1830_v13 = vpop.f32.mrf.mxu0 }
 0x56c   : > { %v1831_v14 = vadd.f32 %v1830_v13, %v12748_v62  ;;  %v1842_v20 = vsel %vm1442_vm2, %v1836_v12, -inf }
 0x56d   : > { %1843 = vmax.xlane.f32.xlu1 %v1842_v20 }
 0x56e   : > { %v1839_v21 = vsel %vm1442_vm2, %v1831_v14, -inf }
 0x56f   : > { %1840 = vmax.xlane.f32.xlu0 %v1839_v21 }
 0x57e   : > { %1861 = vrot.lane.b32.xlu1 %v12726_v54, %s14207_s7 }
 0x582   : > { %1954 = vrot.lane.b32.xlu1 %v12697_v45, %s14213_s29 }
 0x586   : > { %1952 = vrot.lane.b32.xlu1 %v12699_v48, %s14213_s29 }
 0x58a   : > { %1950 = vrot.lane.b32.xlu1 %v12718_v50, %s14213_s29 }
 0x5f6   : > { %v1844_v22 = vpop.xlane.xlu1 %1843 }
 0x5f7   : > { %v1846_v23 = vsub.f32 %v1836_v12, %v1844_v22 }
 0x5f8   : > { %v1841_v24 = vpop.xlane.xlu0 %1840 }
 0x5f9   : > { %v1849_v25 = vmul.f32 1.442695, %v1846_v23  ;;  %v1845_v26 = vsub.f32 %v1831_v14, %v1841_v24 }
 0x5fa   : > { %v1862_v36 = vpop.permute.xlu1 %1861 }
 0x5fb   : > { %12188 = vpow2.f32 %v1849_v25  ;;  %v1847_v27 = vmul.f32 1.442695, %v1845_v26 }
 0x5fd   : > { %12190 = vpow2.f32 %v1847_v27 }
 0x5fe   : > { %v1955_v38 = vpop.permute.xlu1 %1954 }
 0x602   : > { %v1953_v44 = vpop.permute.xlu1 %1952 }
 0x606   : > { %v1951_v46 = vpop.permute.xlu1 %1950 }
 0x608   : > { %v12189_v33 = vpop.eup %12188 }
 0x609   : > { %v1854_v34 = vsel %vm1442_vm2, %v12189_v33, 0.0 }
 0x60a   : > { %v12191_v35 = vpop.eup %12190  ;;  %1855 = vadd.xlane.f32.xlu0 %v1854_v34 }
 0x60b   : > { %v1851_v45 = vsel %vm1442_vm2, %v12191_v35, 0.0 }
 0x60e   : > { %1852 = vadd.xlane.f32.xlu0 %v1851_v45 }
 0x624   : > { %1863 = vrot.lane.b32.xlu0 %v12722_v52, %s14207_s7  ;;  %s14209_s7 = smov 16  }
 0x628   : > { %1948 = vrot.lane.b32.xlu0 %v12690_v42, %s14213_s29 }
 0x693   : > { %v1856_v48 = vpop.xlane.xlu0 %1855 }
 0x694   : > { %12192 = vrcp.f32 %v1856_v48 }
 0x697   : > { %v1853_v50 = vpop.xlane.xlu0 %1852 }
 0x698   : > { %12194 = vrcp.f32 %v1853_v50 }
 0x69b   : > { %v1864_v37 = vpop.permute.xlu0 %1863 }
 0x69c   : > { %11339 = vmatprep.subr.mxu1 %v1864_v37 }
 0x69d   : > { %11340 = vmatpush3.msra.mxu1 %v1864_v37 }
 0x69e   : > { %11341 = vmatprep.subr.mxu1 %v1862_v36 }
 0x69f   : > { %11342 = vmatpush3.msra.mxu1 %v1862_v36  ;;  %v1949_v42 = vpop.permute.xlu0 %1948 }
 0x6a0   : > { %11346 = vmatprep.subr.msk.mxu1 %vm1354_vm1, %v1955_v38 }
 0x6a1   : > { %v12193_v39 = vpop.eup %12192 }
 0x6a2   : > { %v1860_v43 = vmul.f32 %v12193_v39, %v12189_v33 }
 0x6a5   : > { %v12195_v40 = vpop.eup %12194 }
 0x6a6   : > { %v1859_v41 = vmul.f32 %v12195_v40, %v12191_v35 }
 0x6a8   : > { %11343 = vmatprep.mubr.msk.f32.mxu1 %vm1442_vm2, %v1859_v41 }
 0x6a9   : > { %11344 = vmatmul.mubr.msk.f32.vlgmr.msra.gmra.mxu1 %vm1442_vm2, %v1860_v43 }
 0x6aa   : > { %11347 = vmatpush3.xpose.msk.msra.mxu1 %vm1354_vm1, %v1955_v38  ;;  %11350 = vmatprep.mubr.msk.f32.mxu1 %vm1354_vm1, %v1949_v42 }
 0x6ab   : > { %11348 = vmatprep.subr.msk.mxu1 %vm1354_vm1, %v1953_v44 }
 0x6ae   : > { %11349 = vmatpush3.xpose.msk.msra.mxu1 %vm1354_vm1, %v1953_v44 }
 0x6b1   : > { %11351 = vmatmul.mubr.msk.f32.vlgmr.msra.gmra.mxu1 %vm1354_vm1, %v1951_v46 }
 0x769   : > { %v11345_v47 = vpop.f32.mrf.mxu1 }
 0x76b   : > { %v1939_v49 = vpop.f32.mrf.mxu1 }
 0x771   : > { %v11352_v51 = vpop.f32.mrf.mxu1 }
 0x772   : > { %v2036_v53 = vadd.f32 %v11352_v51, %v12743_v59 }
 0x773   : > { %v2030_v55 = vpop.f32.mrf.mxu1 }
 0x774   : > { %v2031_v56 = vadd.f32 %v2030_v55, %v12748_v62  ;;  %v2042_v57 = vsel %vm1442_vm2, %v2036_v53, -inf }
 0x775   : > { %2043 = vmax.xlane.f32.xlu1 %v2042_v57 }
 0x776   : > { %v2039_v58 = vsel %vm1442_vm2, %v2031_v56, -inf }
 0x777   : > { %2040 = vmax.xlane.f32.xlu0 %v2039_v58 }
 0x786   : > { %2061 = vrot.lane.b32.xlu1 %v12726_v54, %s14213_s29 }
 0x78a   : > { %2150 = vrot.lane.b32.xlu1 %v12790_v10, %s14211_s22 }
 0x78e   : > { %2152 = vrot.lane.b32.xlu1 %v12788_v9, %s14211_s22  ;;  %s14262_s22 = smov 24  }
 0x792   : > { %2160 = vrot.lane.b32.xlu1 %v11345_v47, %s14209_s7 }
 0x7fe   : > { %v2044_v60 = vpop.xlane.xlu1 %2043 }
 0x7ff   : > { %v2046_v63 = vsub.f32 %v2036_v53, %v2044_v60 }
 0x800   : > { %v2041_v2 = vpop.xlane.xlu0 %2040 }
 0x801   : > { %v2049_v3 = vmul.f32 1.442695, %v2046_v63  ;;  %v2045_v4 = vsub.f32 %v2031_v56, %v2041_v2 }
 0x802   : > { %v2062_v14 = vpop.permute.xlu1 %2061 }
 0x803   : > { %12196 = vpow2.f32 %v2049_v3  ;;  %v2047_v5 = vmul.f32 1.442695, %v2045_v4  ;;  %v2320_v4 = vld [vmem:[%s12891_s9 + $0x18] sm:$0xff] }
 0x804   : > { %11371 = vmatprep.subr.mxu1 %v2320_v4 }
 0x805   : > { %12198 = vpow2.f32 %v2047_v5  ;;  %v2319_v5 = vld [vmem:[%s12891_s9 + $0x10] sm:$0xff]  ;;  %11372 = vmatpush3.msra.mxu1 %v2320_v4 }
 0x806   : > { %v2151_v34 = vpop.permute.xlu1 %2150  ;;  %11373 = vmatprep.subr.mxu1 %v2319_v5 }
 0x807   : > { %v2172_v50 = vsel %vm1354_vm1, %v12786_v8, %v2151_v34  ;;  %11374 = vmatpush3.msra.mxu1 %v2319_v5 }
 0x80a   : > { %v2153_v35 = vpop.permute.xlu1 %2152 }
 0x80b   : > { %v2173_v37 = vsel %vm1354_vm1, %v12784_v7, %v2153_v35  ;;  %v10326_v7 = vld [vmem:[%s12862_s8] ss:$0 sm:$0xff] }
 0x80e   : > { %v2161_v45 = vpop.permute.xlu1 %2160 }
 0x80f   : > { %v2175_v40 = vsel %vm1442_vm2, %v2173_v37, %v2161_v45 }
 0x810   : > { %v12197_v6 = vpop.eup %12196 }
 0x811   : > { %v2054_v54 = vsel %vm1442_vm2, %v12197_v6, 0.0 }
 0x812   : > { %v12199_v11 = vpop.eup %12198  ;;  %2055 = vadd.xlane.f32.xlu0 %v2054_v54  ;;  %v2317_v54 = vld [vmem:[%s12891_s9] sm:$0xff] }
 0x813   : > { %v2051_v10 = vsel %vm1442_vm2, %v12199_v11, 0.0 }
 0x816   : > { %2052 = vadd.xlane.f32.xlu0 %v2051_v10 }
 0x82c   : > { %2063 = vrot.lane.b32.xlu0 %v12722_v52, %s14213_s29  ;;  %s12840_s29 = scalar_lea.vmem %s14250_s11, %s12587_s1  ;;  %s12941_s1 = scalar_lea.vmem %s14256_s16, %s12607_s4 }
 0x82d   : > { %v2182_v52 = vld [vmem:[%s12840_s29 + $0x18] sm:$0xff]  ;;  %v2181_v24 = vld [vmem:[%s12840_s29 + $0x10] sm:$0xff]  ;;  %v2180_v25 = vld [vmem:[%s12840_s29 + $0x8] sm:$0xff]  ;;  %s14259_s4 = smov 104   ;;  %s14261_s11 = smov 16  }
 0x82e   : > { %v2179_v26 = vld [vmem:[%s12840_s29] sm:$0xff] }
 0x830   : > { %2158 = vrot.lane.b32.xlu0 %v1939_v49, %s14209_s7  ;;  %s14215_s7 = smov 24  }
 0x89b   : > { %v2056_v9 = vpop.xlane.xlu0 %2055 }
 0x89c   : > { %12200 = vrcp.f32 %v2056_v9 }
 0x89f   : > { %v2053_v12 = vpop.xlane.xlu0 %2052 }
 0x8a0   : > { %12202 = vrcp.f32 %v2053_v12 }
 0x8a3   : > { %v2064_v13 = vpop.permute.xlu0 %2063 }
 0x8a4   : > { %11353 = vmatprep.subr.mxu0 %v2064_v13 }
 0x8a5   : > { %11354 = vmatpush3.msra.mxu0 %v2064_v13 }
 0x8a6   : > { %11355 = vmatprep.subr.mxu0 %v2062_v14 }
 0x8a7   : > { %11356 = vmatpush3.msra.mxu0 %v2062_v14  ;;  %v2159_v48 = vpop.permute.xlu0 %2158 }
 0x8a8   : > { %11360 = vmatprep.subr.mxu0 %v2182_v52  ;;  %v2174_v38 = vsel %vm1442_vm2, %v2172_v50, %v2159_v48  ;;  %v10329_v48 = vld [vmem:[%s12919_s12] ss:$0 sm:$0xff] }
 0x8a9   : > { %v12201_v20 = vpop.eup %12200 }
 0x8aa   : > { %v2060_v23 = vmul.f32 %v12201_v20, %v12197_v6  ;;  %v2318_v6 = vld [vmem:[%s12891_s9 + $0x8] sm:$0xff] }
 0x8ab   : > { %11375 = vmatprep.subr.mxu1 %v2318_v6 }
 0x8ac   : > { %11376 = vmatpush3.msra.mxu1 %v2318_v6 }
 0x8ad   : > { %v12203_v21 = vpop.eup %12202  ;;  %11377 = vmatprep.subr.mxu1 %v2317_v54 }
 0x8ae   : > { %v2059_v22 = vmul.f32 %v12203_v21, %v12199_v11  ;;  %11378 = vmatpush3.msra.mxu1 %v2317_v54 }
 0x8b0   : > { %11357 = vmatprep.mubr.msk.f32.mxu0 %vm1442_vm2, %v2059_v22 }
 0x8b1   : > { %11358 = vmatmul.mubr.msk.f32.vlgmr.msra.gmra.mxu0 %vm1442_vm2, %v2060_v23 }
 0x8b2   : > { %11361 = vmatpush3.msra.mxu0 %v2182_v52 }
 0x8b3   : > { %11362 = vmatprep.subr.mxu0 %v2181_v24 }
 0x8b4   : > { %11363 = vmatpush3.msra.mxu0 %v2181_v24 }
 0x8b5   : > { %11364 = vmatprep.subr.mxu0 %v2180_v25 }
 0x8b6   : > { %11365 = vmatpush3.msra.mxu0 %v2180_v25 }
 0x8b7   : > { %11366 = vmatprep.subr.mxu0 %v2179_v26 }
 0x8b8   : > { %11367 = vmatpush3.msra.mxu0 %v2179_v26 }
 0x971   : > { %v11359_v27 = vpop.f32.mrf.mxu0 }
 0x972   : > { %2168 = vrot.lane.b32.xlu1 %v11359_v27, %s14215_s7 }
 0x973   : > { %v2139_v33 = vpop.f32.mrf.mxu0 }
 0x974   : > { %2166 = vrot.lane.b32.xlu0 %v2139_v33, %s14215_s7  ;;  %s12900_s7 = scalar_lea.vmem %s14253_s17, %s12149_s10  ;;  %s14260_s10 = smov 8  }
 0x975   : > { %v2426_v11 = vld [vmem:[%s12900_s7 + $0x78] sm:$0xff]  ;;  %v2425_v10 = vld [vmem:[%s12900_s7 + $0x70] sm:$0xff]  ;;  %v2424_v9 = vld [vmem:[%s12900_s7 + $0x68] sm:$0xff] }
 0x976   : > { %11382 = vmatprep.subr.mxu0 %v2426_v11  ;;  %v2423_v12 = vld [vmem:[%s12900_s7 + $0x60] sm:$0xff]  ;;  %v2422_v13 = vld [vmem:[%s12900_s7 + $0x58] sm:$0xff]  ;;  %v2421_v14 = vld [vmem:[%s12900_s7 + $0x50] sm:$0xff] }
 0x977   : > { %v2420_v20 = vld [vmem:[%s12900_s7 + $0x48] sm:$0xff]  ;;  %v2419_v21 = vld [vmem:[%s12900_s7 + $0x40] sm:$0xff]  ;;  %v2418_v22 = vld [vmem:[%s12900_s7 + $0x38] sm:$0xff] }
 0x978   : > { %v2417_v23 = vld [vmem:[%s12900_s7 + $0x30] sm:$0xff]  ;;  %v2416_v52 = vld [vmem:[%s12900_s7 + $0x28] sm:$0xff]  ;;  %v2415_v24 = vld [vmem:[%s12900_s7 + $0x20] sm:$0xff] }
 0x9e4   : > { %v2169_v36 = vpop.permute.xlu1 %2168 }
 0x9e5   : > { %v2178_v43 = vsel %vm2176_vm3, %v2175_v40, %v2169_v36  ;;  %v10330_v36 = vld [vmem:[%s12925_s15] ss:$0 sm:$0xff] }
 0x9e6   : > { %v2167_v39 = vpop.permute.xlu0 %2166 }
 0x9e7   : > { %v2177_v41 = vsel %vm2176_vm3, %v2174_v38, %v2167_v39 }
 0x9e8   : > { %11368 = vmatprep.mubr.msk.f32.mxu0 %vm1008_vm0, %v2177_v41 }
 0x9e9   : > { %11369 = vmatmul.mubr.msk.f32.vlgmr.msra.gmra.mxu0 %vm1008_vm0, %v2178_v43 }
 0x9ea   : > { %11383 = vmatpush3.msra.mxu0 %v2426_v11 }
 0x9eb   : > { %11384 = vmatprep.subr.mxu0 %v2425_v10 }
 0x9ec   : > { %11385 = vmatpush3.msra.mxu0 %v2425_v10 }
 0x9ed   : > { %11386 = vmatprep.subr.mxu0 %v2424_v9 }
 0x9ee   : > { %11387 = vmatpush3.msra.mxu0 %v2424_v9 }
 0x9ef   : > { %11388 = vmatprep.subr.mxu0 %v2423_v12 }
 0x9f0   : > { %11389 = vmatpush3.msra.mxu0 %v2423_v12 }
 0x9f1   : > { %11390 = vmatprep.subr.mxu0 %v2422_v13 }
 0x9f2   : > { %11391 = vmatpush3.msra.mxu0 %v2422_v13 }
 0x9f3   : > { %11392 = vmatprep.subr.mxu0 %v2421_v14 }
 0x9f4   : > { %11393 = vmatpush3.msra.mxu0 %v2421_v14 }
 0x9f5   : > { %11394 = vmatprep.subr.mxu0 %v2420_v20 }
 0x9f6   : > { %11395 = vmatpush3.msra.mxu0 %v2420_v20 }
 0x9f7   : > { %11396 = vmatprep.subr.mxu0 %v2419_v21 }
 0x9f8   : > { %11397 = vmatpush3.msra.mxu0 %v2419_v21  ;;  %v10342_v21 = vld [vmem:[%s12593_s3 + $0x38] sm:$0xff] }
 0x9f9   : > { %11398 = vmatprep.subr.mxu0 %v2418_v22  ;;  %11417 = vmatprep.subr.mxu1 %v10342_v21 }
 0x9fa   : > { %11399 = vmatpush3.msra.mxu0 %v2418_v22  ;;  %v10341_v22 = vld [vmem:[%s12593_s3 + $0x30] sm:$0xff] }
 0x9fb   : > { %11400 = vmatprep.subr.mxu0 %v2417_v23 }
 0x9fc   : > { %11401 = vmatpush3.msra.mxu0 %v2417_v23  ;;  %v10340_v23 = vld [vmem:[%s12593_s3 + $0x28] sm:$0xff] }
 0x9fd   : > { %11402 = vmatprep.subr.mxu0 %v2416_v52 }
 0x9fe   : > { %11403 = vmatpush3.msra.mxu0 %v2416_v52  ;;  %v10339_v52 = vld [vmem:[%s12593_s3 + $0x20] sm:$0xff] }
 0x9ff   : > { %11404 = vmatprep.subr.mxu0 %v2415_v24 }
 0xa00   : > { %11405 = vmatpush3.msra.mxu0 %v2415_v24  ;;  %v10350_v24 = vld [vmem:[%s12602_s0 + $0x38] sm:$0xff] }
 0xaa9   : > { %v11370_v8 = vpop.f32.mrf.mxu0 }
 0xaaa   : > { %v2268_v42 = vadd.f32 %v11370_v8, %v10326_v7  ;;  %v2413_v8 = vld [vmem:[%s12900_s7 + $0x10] sm:$0xff] }
 0xaab   : > { %v2262_v44 = vpop.f32.mrf.mxu0 }
 0xaac   : > { %v12866_v46 = vadd.f32 %v2268_v42, %v12565_v1  ;;  %v2263_v47 = vadd.f32 %v10326_v7, %v2262_v44  ;;  %v2414_v7 = vld [vmem:[%s12900_s7 + $0x18] sm:$0xff]  ;;  %v2412_v42 = vld [vmem:[%s12900_s7 + $0x8] sm:$0xff]  ;;  %v2411_v44 = vld [vmem:[%s12900_s7] sm:$0xff] }
 0xaad   : > { %11406 = vmatprep.subr.mxu0 %v2414_v7 }
 0xaae   : > { %v12869_v49 = vadd.f32 %v2263_v47, %v12563_v0  ;;  %v2278_v51 = vsel %vm1008_vm0, %v12866_v46, 0.0  ;;  %11407 = vmatpush3.msra.mxu0 %v2414_v7  ;;  %v10331_v47 = vld [vmem:[%s12941_s1] ss:$0 sm:$0xff]  ;;  %v10348_v7 = vld [vmem:[%s12602_s0 + $0x28] sm:$0xff] }
 0xaaf   : > { %2279 = vadd.xlane.f32.xlu1 %v2278_v51  ;;  %11408 = vmatprep.subr.mxu0 %v2413_v8 }
 0xab0   : > { %v2275_v53 = vsel %vm1008_vm0, %v12869_v49, 0.0  ;;  %11409 = vmatpush3.msra.mxu0 %v2413_v8  ;;  %v10347_v8 = vld [vmem:[%s12602_s0 + $0x20] sm:$0xff] }
 0xab1   : > { %2276 = vadd.xlane.f32.xlu0 %v2275_v53  ;;  %11410 = vmatprep.subr.mxu0 %v2412_v42 }
 0xab2   : > { %11411 = vmatpush3.msra.mxu0 %v2412_v42  ;;  %v10358_v42 = vld [vmem:[%s12656_s5 + $0x38] sm:$0xff] }
 0xab3   : > { %11412 = vmatprep.subr.mxu0 %v2411_v44 }
 0xab4   : > { %11413 = vmatpush3.msra.mxu0 %v2411_v44  ;;  %v10356_v44 = vld [vmem:[%s12656_s5 + $0x28] sm:$0xff] }
 0xb38   : > { %v2280_v55 = vpop.xlane.xlu1 %2279 }
 0xb39   : > { %v2282_v56 = vmul.f32 0.03125, %v2280_v55 }
 0xb3a   : > { %v2277_v57 = vpop.xlane.xlu0 %2276 }
 0xb3b   : > { %v2281_v58 = vmul.f32 0.03125, %v2277_v57  ;;  %v12876_v1 = vsub.f32 %v12866_v46, %v2282_v56 }
 0xb3d   : > { %v12879_v60 = vsub.f32 %v12869_v49, %v2281_v58  ;;  %v2286_v2 = vmul.f32 %v12876_v1, %v12876_v1 }
 0xb3f   : > { %v2285_v0 = vmul.f32 %v12879_v60, %v12879_v60  ;;  %v2290_v3 = vsel %vm1008_vm0, %v2286_v2, 0.0 }
 0xb41   : > { %v2287_v63 = vsel %vm1008_vm0, %v2285_v0, 0.0 }
 0xb42   : > { %2288 = vadd.xlane.f32.xlu0 %v2287_v63 }
 0xb46   : > { %2291 = vadd.xlane.f32.xlu0 %v2290_v3 }
 0xbcb   : > { %v2289_v25 = vpop.xlane.xlu0 %2288 }
 0xbcc   : > { %v2293_v26 = vmul.f32 0.03125, %v2289_v25 }
 0xbce   : > { %v2295_v27 = vadd.f32 1e-05, %v2293_v26 }
 0xbcf   : > { %v2292_v33 = vpop.xlane.xlu0 %2291 }
 0xbd0   : > { %12204 = vrsqrt.f32 %v2295_v27  ;;  %v2294_v34 = vmul.f32 0.03125, %v2292_v33 }
 0xbd2   : > { %v2296_v35 = vadd.f32 1e-05, %v2294_v34 }
 0xbd4   : > { %12206 = vrsqrt.f32 %v2296_v35 }
 0xbdd   : > { %v12205_v45 = vpop.eup %12204 }
 0xbde   : > { %v2299_v50 = vmul.f32 %v12205_v45, %v12879_v60 }
 0xbe0   : > { %v2307_v37 = vmul.f32 %v10329_v48, %v2299_v50 }
 0xbe1   : > { %v12207_v38 = vpop.eup %12206 }
 0xbe2   : > { %v2300_v39 = vmul.f32 %v12207_v38, %v12876_v1  ;;  %v2315_v40 = vadd.f32 %v10330_v36, %v2307_v37  ;;  %v10334_v1 = vld [vmem:[%s12948_s14] ss:$0 sm:$0xff]  ;;  %v12410_v37 = vld [vmem:[%s12613_s23 + $0x1] ss:$0 sm:$0xff] }
 0xbe4   : > { %v2308_v41 = vmul.f32 %v10329_v48, %v2300_v39  ;;  %11379 = vmatprep.mubr.msk.f32.mxu1 %vm1008_vm0, %v2315_v40 }
 0xbe6   : > { %v2316_v43 = vadd.f32 %v10330_v36, %v2308_v41 }
 0xbe8   : > { %11380 = vmatmul.mubr.msk.f32.vlgmr.msra.gmra.mxu1 %vm1008_vm0, %v2316_v43  ;;  %v10349_v43 = vld [vmem:[%s12602_s0 + $0x30] sm:$0xff] }
 0xbe9   : > { %11418 = vmatpush3.msra.mxu1 %v10342_v21 }
 0xbea   : > { %11419 = vmatprep.subr.mxu1 %v10341_v22 }
 0xbeb   : > { %11420 = vmatpush3.msra.mxu1 %v10341_v22 }
 0xbec   : > { %11421 = vmatprep.subr.mxu1 %v10340_v23 }
 0xbed   : > { %11422 = vmatpush3.msra.mxu1 %v10340_v23 }
 0xbee   : > { %11423 = vmatprep.subr.mxu1 %v10339_v52 }
 0xbef   : > { %11424 = vmatpush3.msra.mxu1 %v10339_v52 }
 0xbf0   : > { %11428 = vmatprep.subr.mxu1 %v10350_v24 }
 0xca8   : > { %v11381_v51 = vpop.f32.mrf.mxu1 }
 0xca9   : > { %v2406_v53 = vadd.f32 %v11381_v51, %v10331_v47 }
 0xcaa   : > { %v2400_v55 = vpop.f32.mrf.mxu1 }
 0xcab   : > { %v2401_v56 = vadd.f32 %v10331_v47, %v2400_v55  ;;  %v2410_v58 = vmax.f32 %v2406_v53, 0.0  ;;  %v10355_v47 = vld [vmem:[%s12656_s5 + $0x20] sm:$0xff] }
 0xcac   : > { %v10344_v53 = vld [vmem:[%s12681_s26 + $0x1] ss:$0 sm:$0xff] }
 0xcad   : > { %v2409_v57 = vmax.f32 %v2401_v56, 0.0 }
 0xcaf   : > { %11414 = vmatprep.mubr.f32.mxu0 %v2409_v57 }
 0xcb0   : > { %11415 = vmatmul.mubr.f32.vlgmr.msra.gmra.mxu0 %v2410_v58  ;;  %v10352_v58 = vld [vmem:[%s12688_s30 + $0x1] ss:$0 sm:$0xff] }
 0xd70   : > { %v11416_v60 = vpop.f32.mrf.mxu0 }
 0xd71   : > { %v2506_v0 = vadd.f32 %v11416_v60, %v10334_v1 }
 0xd72   : > { %v2500_v63 = vpop.f32.mrf.mxu0 }
 0xd73   : > { %v12952_v2 = vadd.f32 %v2506_v0, %v12866_v46  ;;  %v2501_v3 = vadd.f32 %v10334_v1, %v2500_v63  ;;  %v10360_v63 = vld [vmem:[%s12709_s27 + $0x1] ss:$0 sm:$0xff] }
 0xd75   : > { %v12955_v4 = vadd.f32 %v2501_v3, %v12869_v49  ;;  %v2518_v5 = vsel %vm1008_vm0, %v12952_v2, 0.0 }
 0xd76   : > { %2519 = vadd.xlane.f32.xlu1 %v2518_v5 }
 0xd77   : > { %v2515_v6 = vsel %vm1008_vm0, %v12955_v4, 0.0 }
 0xd78   : > { %2516 = vadd.xlane.f32.xlu0 %v2515_v6 }
 0xdff   : > { %v2520_v54 = vpop.xlane.xlu1 %2519 }
 0xe00   : > { %v2522_v11 = vmul.f32 0.03125, %v2520_v54 }
 0xe01   : > { %v2517_v10 = vpop.xlane.xlu0 %2516 }
 0xe02   : > { %v2524_v46 = vsub.f32 %v12952_v2, %v2522_v11  ;;  %v2521_v9 = vmul.f32 0.03125, %v2517_v10 }
 0xe04   : > { %v2523_v49 = vsub.f32 %v12955_v4, %v2521_v9  ;;  %v2526_v12 = vmul.f32 %v2524_v46, %v2524_v46 }
 0xe06   : > { %v2530_v13 = vsel %vm1008_vm0, %v2526_v12, 0.0  ;;  %v2525_v14 = vmul.f32 %v2523_v49, %v2523_v49 }
 0xe07   : > { %2531 = vadd.xlane.f32.xlu1 %v2530_v13 }
 0xe08   : > { %v2527_v20 = vsel %vm1008_vm0, %v2525_v14, 0.0 }
 0xe09   : > { %2528 = vadd.xlane.f32.xlu0 %v2527_v20 }
 0xe90   : > { %v2532_v25 = vpop.xlane.xlu1 %2531 }
 0xe91   : > { %v2534_v26 = vmul.f32 0.03125, %v2532_v25 }
 0xe92   : > { %v2529_v27 = vpop.xlane.xlu0 %2528 }
 0xe93   : > { %v2536_v33 = vadd.f32 1e-05, %v2534_v26  ;;  %v2533_v34 = vmul.f32 0.03125, %v2529_v27 }
 0xe95   : > { %12208 = vrsqrt.f32 %v2536_v33  ;;  %v2535_v35 = vadd.f32 1e-05, %v2533_v34 }
 0xe97   : > { %12210 = vrsqrt.f32 %v2535_v35 }
 0xea2   : > { %v12209_v45 = vpop.eup %12208 }
 0xea3   : > { %v2540_v48 = vmul.f32 %v12209_v45, %v2524_v46 }
 0xea4   : > { %v12211_v50 = vpop.eup %12210 }
 0xea5   : > { %v2539_v36 = vmul.f32 %v12211_v50, %v2523_v49  ;;  %v2548_v38 = vmul.f32 %v12410_v37, %v2540_v48 }
 0xea7   : > { %v2547_v39 = vmul.f32 %v12410_v37, %v2539_v36  ;;  %v2556_v40 = vadd.f32 %v12630_v61, %v2548_v38 }
 0xea9   : > { %v2555_v41 = vadd.f32 %v12630_v61, %v2547_v39  ;;  %v10357_v61 = vld [vmem:[%s12656_s5 + $0x30] sm:$0xff] }
 0xeab   : > { %11425 = vmatprep.mubr.msk.f32.mxu1 %vm1008_vm0, %v2555_v41 }
 0xeac   : > { %11426 = vmatmul.mubr.msk.f32.vlgmr.msra.gmra.mxu1 %vm1008_vm0, %v2556_v40 }
 0xead   : > { %11429 = vmatpush3.msra.mxu1 %v10350_v24  ;;  %11436 = vmatprep.mubr.msk.f32.mxu1 %vm1008_vm0, %v12639_v15 }
 0xeae   : > { %11430 = vmatprep.subr.mxu1 %v10349_v43 }
 0xeaf   : > { %11431 = vmatpush3.msra.mxu1 %v10349_v43 }
 0xeb0   : > { %11432 = vmatprep.subr.mxu1 %v10348_v7 }
 0xeb1   : > { %11433 = vmatpush3.msra.mxu1 %v10348_v7 }
 0xeb2   : > { %11434 = vmatprep.subr.mxu1 %v10347_v8 }
 0xeb3   : > { %11435 = vmatpush3.msra.mxu1 %v10347_v8 }
 0xeb4   : > { %11437 = vmatmul.mubr.msk.f32.vlgmr.msra.gmra.mxu1 %vm1008_vm0, %v12660_v28  ;;  %11439 = vmatprep.subr.mxu1 %v10358_v42 }
 0xeb5   : > { %11440 = vmatpush3.msra.mxu1 %v10358_v42  ;;  %11447 = vmatprep.mubr.msk.f32.mxu1 %vm1008_vm0, %v12639_v15 }
 0xeb6   : > { %11441 = vmatprep.subr.mxu1 %v10357_v61 }
 0xeb7   : > { %11442 = vmatpush3.msra.mxu1 %v10357_v61 }
 0xeb8   : > { %11443 = vmatprep.subr.mxu1 %v10356_v44 }
 0xeb9   : > { %11444 = vmatpush3.msra.mxu1 %v10356_v44 }
 0xeba   : > { %11445 = vmatprep.subr.mxu1 %v10355_v47 }
 0xebb   : > { %11446 = vmatpush3.msra.mxu1 %v10355_v47 }
 0xebc   : > { %11448 = vmatmul.mubr.msk.f32.vlgmr.msra.gmra.mxu1 %vm1008_vm0, %v12660_v28 }
 0xf6c   : > { %v11427_v51 = vpop.f32.mrf.mxu1 }
 0xf6d   : > { %v2652_v0 = vadd.f32 %v11427_v51, %v10344_v53 }
 0xf6e   : > { %v2646_v55 = vpop.f32.mrf.mxu1 }
 0xf6f   : > { %v2647_v56 = vadd.f32 %v10344_v53, %v2646_v55  ;;  %v13013_v3 = vmul.f32 0.35355338, %v2652_v0 }
 0xf71   : > { %v12991_v57 = vmul.f32 0.35355338, %v2647_v56 }
 0xf73   : > { %3029 = vrot.lane.b32.xlu1 %v12991_v57, %s14249_s6  ;;  %11454 = vmatprep.mubr.msk.f32.mxu1 %vm1354_vm1, %v12991_v57 }
 0xf74   : > { %v11438_v15 = vpop.f32.mrf.mxu1 }
 0xf75   : > { %v12998_v1 = vadd.f32 %v11438_v15, %v10352_v58 }
 0xf76   : > { %v2742_v60 = vpop.f32.mrf.mxu1 }
 0xf77   : > { %v13000_v28 = vadd.f32 %v10352_v58, %v2742_v60  ;;  %3035 = vrot.lane.b32.xlu0 %v12998_v1, %s14249_s6  ;;  %11450 = vmatprep.subr.msk.mxu1 %vm1354_vm1, %v12998_v1 }
 0xf78   : > { %11451 = vmatpush3.xpose.msk.msra.mxu1 %vm1354_vm1, %v12998_v1 }
 0xf79   : > { %11452 = vmatprep.subr.msk.mxu1 %vm1354_vm1, %v13000_v28  ;;  %3033 = vrot.lane.b32.xlu1 %v13000_v28, %s14249_s6 }
 0xf7c   : > { %v11449_v5 = vpop.f32.mrf.mxu1  ;;  %11453 = vmatpush3.xpose.msk.msra.mxu1 %vm1354_vm1, %v13000_v28 }
 0xf7d   : > { %v13017_v6 = vadd.f32 %v11449_v5, %v10360_v63  ;;  %3031 = vrot.lane.b32.xlu1 %v13013_v3, %s14249_s6 }
 0xf7e   : > { %v2830_v54 = vpop.f32.mrf.mxu1 }
 0xf7f   : > { %v13021_v11 = vadd.f32 %v10360_v63, %v2830_v54  ;;  %11455 = vmatmul.mubr.msk.f32.vlgmr.msra.gmra.mxu1 %vm1354_vm1, %v13013_v3  ;;  %11457 = vmatprep.subr.mxu0 %v13017_v6 }
 0xf80   : > { %11458 = vmatpush3.msra.mxu0 %v13017_v6 }
 0xf81   : > { %11459 = vmatprep.subr.mxu0 %v13021_v11 }
 0xf82   : > { %11460 = vmatpush3.msra.mxu0 %v13021_v11 }
 0xfe5   : > { %v3030_v10 = vpop.permute.xlu1 %3029 }
 0xfe6   : > { %11468 = vmatprep.mubr.msk.f32.mxu1 %vm1354_vm1, %v3030_v10 }
 0xfe9   : > { %v3036_v46 = vpop.permute.xlu0 %3035 }
 0xfea   : > { %11464 = vmatprep.subr.msk.mxu1 %vm1354_vm1, %v3036_v46 }
 0xfeb   : > { %v3034_v9 = vpop.permute.xlu1 %3033  ;;  %11465 = vmatpush3.xpose.msk.msra.mxu1 %vm1354_vm1, %v3036_v46 }
 0xfec   : > { %11466 = vmatprep.subr.msk.mxu1 %vm1354_vm1, %v3034_v9 }
 0xfef   : > { %11467 = vmatpush3.xpose.msk.msra.mxu1 %vm1354_vm1, %v3034_v9  ;;  %v3032_v49 = vpop.permute.xlu1 %3031 }
 0xff2   : > { %11469 = vmatmul.mubr.msk.f32.vlgmr.msra.gmra.mxu1 %vm1354_vm1, %v3032_v49 }
0x103f   : > { %v11456_v12 = vpop.f32.mrf.mxu1 }
0x1040   : > { %v2923_v13 = vadd.f32 %v11456_v12, %v12743_v59 }
0x1041   : > { %v2917_v14 = vpop.f32.mrf.mxu1 }
0x1042   : > { %v2918_v20 = vadd.f32 %v2917_v14, %v12748_v62  ;;  %v2929_v21 = vsel %vm1442_vm2, %v2923_v13, -inf }
0x1043   : > { %2930 = vmax.xlane.f32.xlu1 %v2929_v21 }
0x1044   : > { %v2926_v22 = vsel %vm1442_vm2, %v2918_v20, -inf }
0x1045   : > { %2927 = vmax.xlane.f32.xlu0 %v2926_v22 }
0x10b2   : > { %v11470_v23 = vpop.f32.mrf.mxu1 }
0x10b3   : > { %v3117_v25 = vadd.f32 %v11470_v23, %v12743_v59 }
0x10b4   : > { %v3111_v52 = vpop.f32.mrf.mxu1 }
0x10b5   : > { %v3112_v24 = vadd.f32 %v3111_v52, %v12748_v62  ;;  %v3123_v27 = vsel %vm1442_vm2, %v3117_v25, -inf  ;;  %v13080_v52 = vld [vmem:[%s14248_s24 + $0x8] sm:$0xff] }
0x10b7   : > { %v3120_v26 = vsel %vm1442_vm2, %v3112_v24, -inf }
0x10b8   : > { %3121 = vmax.xlane.f32.xlu0 %v3120_v26  ;;  %v13086_v26 = vld [vmem:[%s14248_s24] sm:$0xff] }
0x10bc   : > { %3124 = vmax.xlane.f32.xlu0 %v3123_v27 }
0x10cc   : > { %v2931_v33 = vpop.xlane.xlu1 %2930 }
0x10cd   : > { %v2933_v34 = vsub.f32 %v2923_v13, %v2931_v33 }
0x10ce   : > { %v2928_v35 = vpop.xlane.xlu0 %2927 }
0x10cf   : > { %v2936_v45 = vmul.f32 1.442695, %v2933_v34  ;;  %v2932_v48 = vsub.f32 %v2918_v20, %v2928_v35 }
0x10d1   : > { %12212 = vpow2.f32 %v2936_v45  ;;  %v2934_v50 = vmul.f32 1.442695, %v2932_v48 }
0x10d3   : > { %12214 = vpow2.f32 %v2934_v50 }
0x10de   : > { %v12213_v36 = vpop.eup %12212 }
0x10df   : > { %v2941_v37 = vsel %vm1442_vm2, %v12213_v36, 0.0 }
0x10e0   : > { %v12215_v62 = vpop.eup %12214  ;;  %2942 = vadd.xlane.f32.xlu1 %v2941_v37 }
0x10e1   : > { %v2938_v59 = vsel %vm1442_vm2, %v12215_v62, 0.0 }
0x10e2   : > { %2939 = vadd.xlane.f32.xlu0 %v2938_v59 }
0x1141   : > { %v3122_v38 = vpop.xlane.xlu0 %3121 }
0x1142   : > { %v3126_v39 = vsub.f32 %v3112_v24, %v3122_v38 }
0x1144   : > { %v3128_v40 = vmul.f32 1.442695, %v3126_v39 }
0x1145   : > { %v3125_v41 = vpop.xlane.xlu0 %3124 }
0x1146   : > { %12216 = vpow2.f32 %v3128_v40  ;;  %v3127_v43 = vsub.f32 %v3117_v25, %v3125_v41 }
0x1148   : > { %v3130_v7 = vmul.f32 1.442695, %v3127_v43 }
0x114a   : > { %12218 = vpow2.f32 %v3130_v7 }
0x1153   : > { %v12217_v8 = vpop.eup %12216 }
0x1154   : > { %v3132_v42 = vsel %vm1442_vm2, %v12217_v8, 0.0 }
0x1155   : > { %3133 = vadd.xlane.f32.xlu0 %v3132_v42 }
0x1157   : > { %v12219_v61 = vpop.eup %12218 }
0x1158   : > { %v3135_v44 = vsel %vm1442_vm2, %v12219_v61, 0.0 }
0x1159   : > { %3136 = vadd.xlane.f32.xlu1 %v3135_v44 }
0x1169   : > { %v2943_v47 = vpop.xlane.xlu1 %2942 }
0x116a   : > { %3144 = vrot.lane.b32.xlu1 %v13021_v11, %s14249_s6  ;;  %12220 = vrcp.f32 %v2943_v47 }
0x116b   : > { %3146 = vrot.lane.b32.xlu0 %v13017_v6, %s14249_s6  ;;  %v2940_v51 = vpop.xlane.xlu0 %2939 }
0x116c   : > { %12222 = vrcp.f32 %v2940_v51 }
0x116e   : > { %3237 = vrot.lane.b32.xlu1 %v12998_v1, %s14258_s13 }
0x116f   : > { %3231 = vrot.lane.b32.xlu0 %v12991_v57, %s14258_s13 }
0x1172   : > { %3235 = vrot.lane.b32.xlu1 %v13000_v28, %s14258_s13 }
0x1176   : > { %3233 = vrot.lane.b32.xlu1 %v13013_v3, %s14258_s13 }
0x1177   : > { %v12221_v53 = vpop.eup %12220 }
0x1178   : > { %v2947_v58 = vmul.f32 %v12221_v53, %v12213_v36 }
0x1179   : > { %v12223_v55 = vpop.eup %12222 }
0x117a   : > { %v2946_v56 = vmul.f32 %v12223_v55, %v12215_v62 }
0x117c   : > { %11461 = vmatprep.mubr.msk.f32.mxu0 %vm1442_vm2, %v2946_v56 }
0x117d   : > { %11462 = vmatmul.mubr.msk.f32.vlgmr.msra.gmra.mxu0 %vm1442_vm2, %v2947_v58 }
0x11de   : > { %v3134_v15 = vpop.xlane.xlu0 %3133 }
0x11df   : > { %12224 = vrcp.f32 %v3134_v15 }
0x11e2   : > { %v3137_v60 = vpop.xlane.xlu1 %3136  ;;  %v3147_v0 = vpop.permute.xlu0 %3146 }
0x11e3   : > { %12226 = vrcp.f32 %v3137_v60  ;;  %11471 = vmatprep.subr.mxu0 %v3147_v0 }
0x11e4   : > { %11472 = vmatpush3.msra.mxu0 %v3147_v0 }
0x11e6   : > { %v3145_v63 = vpop.permute.xlu1 %3144  ;;  %v3232_v49 = vpop.permute.xlu0 %3231 }
0x11e7   : > { %11473 = vmatprep.subr.mxu0 %v3145_v63 }
0x11e8   : > { %11474 = vmatpush3.msra.mxu0 %v3145_v63 }
0x11ea   : > { %v3238_v5 = vpop.permute.xlu1 %3237 }
0x11eb   : > { %11478 = vmatprep.subr.msk.mxu0 %vm1354_vm1, %v3238_v5 }
0x11ec   : > { %v12225_v54 = vpop.eup %12224 }
0x11ed   : > { %v3140_v10 = vmul.f32 %v12225_v54, %v12217_v8 }
0x11ee   : > { %v3236_v12 = vpop.permute.xlu1 %3235 }
0x11ef   : > { %11475 = vmatprep.mubr.msk.f32.mxu0 %vm1442_vm2, %v3140_v10 }
0x11f0   : > { %v12227_v46 = vpop.eup %12226 }
0x11f1   : > { %v3141_v9 = vmul.f32 %v12227_v46, %v12219_v61 }
0x11f2   : > { %v3234_v13 = vpop.permute.xlu1 %3233 }
0x11f3   : > { %11476 = vmatmul.mubr.msk.f32.vlgmr.msra.gmra.mxu0 %vm1442_vm2, %v3141_v9 }
0x11f4   : > { %11479 = vmatpush3.xpose.msk.msra.mxu0 %vm1354_vm1, %v3238_v5  ;;  %11482 = vmatprep.mubr.msk.f32.mxu0 %vm1354_vm1, %v3232_v49 }
0x11f5   : > { %11480 = vmatprep.subr.msk.mxu0 %vm1354_vm1, %v3236_v12 }
0x11f8   : > { %11481 = vmatpush3.xpose.msk.msra.mxu0 %vm1354_vm1, %v3236_v12 }
0x11fb   : > { %11483 = vmatmul.mubr.msk.f32.vlgmr.msra.gmra.mxu0 %vm1354_vm1, %v3234_v13 }
0x123d   : > { %v13069_v14 = vpop.f32.mrf.mxu0 }
0x123f   : > { %v13071_v20 = vpop.f32.mrf.mxu0 }
0x12b3   : > { %v13073_v21 = vpop.f32.mrf.mxu0 }
0x12b5   : > { %v13075_v22 = vpop.f32.mrf.mxu0 }
0x12bb   : > { %v11484_v23 = vpop.f32.mrf.mxu0 }
0x12bc   : > { %v3319_v24 = vadd.f32 %v13080_v52, %v11484_v23 }
0x12bd   : > { %v3313_v25 = vpop.f32.mrf.mxu0 }
0x12be   : > { %v3314_v27 = vadd.f32 %v13086_v26, %v3313_v25  ;;  %v3325_v33 = vsel %vm1442_vm2, %v3319_v24, -inf }
0x12bf   : > { %3326 = vmax.xlane.f32.xlu1 %v3325_v33  ;;  %v10390_v33 = vld [vmem:[%s12840_s29 + $0x38] sm:$0xff] }
0x12c0   : > { %v3322_v34 = vsel %vm1442_vm2, %v3314_v27, -inf }
0x12c1   : > { %3323 = vmax.xlane.f32.xlu0 %v3322_v34  ;;  %v10389_v34 = vld [vmem:[%s12840_s29 + $0x30] sm:$0xff] }
0x12d0   : > { %3344 = vrot.lane.b32.xlu1 %v13021_v11, %s14258_s13 }
0x12d4   : > { %3437 = vrot.lane.b32.xlu1 %v12998_v1, %s14259_s4 }
0x12d8   : > { %3435 = vrot.lane.b32.xlu1 %v13000_v28, %s14259_s4 }
0x12dc   : > { %3433 = vrot.lane.b32.xlu1 %v13013_v3, %s14259_s4 }
0x1348   : > { %v3327_v35 = vpop.xlane.xlu1 %3326 }
0x1349   : > { %v3329_v45 = vsub.f32 %v3319_v24, %v3327_v35  ;;  %v10388_v35 = vld [vmem:[%s12840_s29 + $0x28] sm:$0xff] }
0x134a   : > { %v3324_v48 = vpop.xlane.xlu0 %3323 }
0x134b   : > { %v3332_v50 = vmul.f32 1.442695, %v3329_v45  ;;  %v3328_v36 = vsub.f32 %v3314_v27, %v3324_v48  ;;  %v10387_v45 = vld [vmem:[%s12840_s29 + $0x20] sm:$0xff] }
0x134c   : > { %v3345_v39 = vpop.permute.xlu1 %3344 }
0x134d   : > { %12228 = vpow2.f32 %v3332_v50  ;;  %v3330_v37 = vmul.f32 1.442695, %v3328_v36 }
0x134f   : > { %12230 = vpow2.f32 %v3330_v37 }
0x1350   : > { %v3438_v41 = vpop.permute.xlu1 %3437 }
0x1354   : > { %v3436_v61 = vpop.permute.xlu1 %3435 }
0x1358   : > { %v3434_v44 = vpop.permute.xlu1 %3433 }
0x135a   : > { %v12229_v62 = vpop.eup %12228 }
0x135b   : > { %v3337_v59 = vsel %vm1442_vm2, %v12229_v62, 0.0 }
0x135c   : > { %v12231_v38 = vpop.eup %12230  ;;  %3338 = vadd.xlane.f32.xlu0 %v3337_v59 }
0x135d   : > { %v3334_v1 = vsel %vm1442_vm2, %v12231_v38, 0.0 }
0x1360   : > { %3335 = vadd.xlane.f32.xlu0 %v3334_v1 }
0x1376   : > { %3346 = vrot.lane.b32.xlu0 %v13017_v6, %s14258_s13 }
0x137a   : > { %3431 = vrot.lane.b32.xlu0 %v12991_v57, %s14259_s4 }
0x13e5   : > { %v3339_v28 = vpop.xlane.xlu0 %3338 }
0x13e6   : > { %12232 = vrcp.f32 %v3339_v28 }
0x13e9   : > { %v3336_v3 = vpop.xlane.xlu0 %3335 }
0x13ea   : > { %12234 = vrcp.f32 %v3336_v3 }
0x13ed   : > { %v3347_v40 = vpop.permute.xlu0 %3346 }
0x13ee   : > { %11485 = vmatprep.subr.mxu1 %v3347_v40 }
0x13ef   : > { %11486 = vmatpush3.msra.mxu1 %v3347_v40 }
0x13f0   : > { %11487 = vmatprep.subr.mxu1 %v3345_v39 }
0x13f1   : > { %11488 = vmatpush3.msra.mxu1 %v3345_v39  ;;  %v3432_v57 = vpop.permute.xlu0 %3431 }
0x13f2   : > { %11492 = vmatprep.subr.msk.mxu1 %vm1354_vm1, %v3438_v41 }
0x13f3   : > { %v12233_v43 = vpop.eup %12232 }
0x13f4   : > { %v3343_v42 = vmul.f32 %v12233_v43, %v12229_v62 }
0x13f7   : > { %v12235_v7 = vpop.eup %12234 }
0x13f8   : > { %v3342_v8 = vmul.f32 %v12235_v7, %v12231_v38  ;;  %v10392_v7 = vld [vmem:[%s12862_s8 + $0x1] ss:$0 sm:$0xff] }
0x13fa   : > { %11489 = vmatprep.mubr.msk.f32.mxu1 %vm1442_vm2, %v3342_v8 }
0x13fb   : > { %11490 = vmatmul.mubr.msk.f32.vlgmr.msra.gmra.mxu1 %vm1442_vm2, %v3343_v42 }
0x13fc   : > { %11493 = vmatpush3.xpose.msk.msra.mxu1 %vm1354_vm1, %v3438_v41  ;;  %11496 = vmatprep.mubr.msk.f32.mxu1 %vm1354_vm1, %v3432_v57 }
0x13fd   : > { %11494 = vmatprep.subr.msk.mxu1 %vm1354_vm1, %v3436_v61 }
0x1400   : > { %11495 = vmatpush3.xpose.msk.msra.mxu1 %vm1354_vm1, %v3436_v61 }
0x1403   : > { %11497 = vmatmul.mubr.msk.f32.vlgmr.msra.gmra.mxu1 %vm1354_vm1, %v3434_v44 }
0x14bb   : > { %v11491_v47 = vpop.f32.mrf.mxu1 }
0x14bd   : > { %v3422_v51 = vpop.f32.mrf.mxu1 }
0x14c3   : > { %v11498_v53 = vpop.f32.mrf.mxu1 }
0x14c4   : > { %v3519_v55 = vadd.f32 %v13080_v52, %v11498_v53 }
0x14c5   : > { %v3513_v56 = vpop.f32.mrf.mxu1 }
0x14c6   : > { %v3514_v58 = vadd.f32 %v13086_v26, %v3513_v56  ;;  %v3525_v15 = vsel %vm1442_vm2, %v3519_v55, -inf }
0x14c7   : > { %3526 = vmax.xlane.f32.xlu1 %v3525_v15 }
0x14c8   : > { %v3522_v60 = vsel %vm1442_vm2, %v3514_v58, -inf }
0x14c9   : > { %3523 = vmax.xlane.f32.xlu0 %v3522_v60 }
0x14d8   : > { %3544 = vrot.lane.b32.xlu1 %v13021_v11, %s14259_s4 }
0x14dc   : > { %3633 = vrot.lane.b32.xlu1 %v13075_v22, %s14260_s10 }
0x14e0   : > { %3635 = vrot.lane.b32.xlu1 %v13073_v21, %s14260_s10 }
0x14e4   : > { %3643 = vrot.lane.b32.xlu1 %v11491_v47, %s14261_s11 }
0x1550   : > { %v3527_v0 = vpop.xlane.xlu1 %3526 }
0x1551   : > { %v3529_v63 = vsub.f32 %v3519_v55, %v3527_v0 }
0x1552   : > { %v3524_v5 = vpop.xlane.xlu0 %3523 }
0x1553   : > { %v3532_v54 = vmul.f32 1.442695, %v3529_v63  ;;  %v3528_v10 = vsub.f32 %v3514_v58, %v3524_v5  ;;  %v10402_v63 = vld [vmem:[%s12891_s9 + $0x38] sm:$0xff]  ;;  %v10401_v5 = vld [vmem:[%s12891_s9 + $0x30] sm:$0xff] }
0x1554   : > { %v3545_v23 = vpop.permute.xlu1 %3544  ;;  %11517 = vmatprep.subr.mxu1 %v10402_v63 }
0x1555   : > { %12236 = vpow2.f32 %v3532_v54  ;;  %v3530_v46 = vmul.f32 1.442695, %v3528_v10  ;;  %11518 = vmatpush3.msra.mxu1 %v10402_v63  ;;  %v10400_v54 = vld [vmem:[%s12891_s9 + $0x28] sm:$0xff]  ;;  %v10399_v10 = vld [vmem:[%s12891_s9 + $0x20] sm:$0xff] }
0x1556   : > { %11519 = vmatprep.subr.mxu1 %v10401_v5 }
0x1557   : > { %12238 = vpow2.f32 %v3530_v46  ;;  %11520 = vmatpush3.msra.mxu1 %v10401_v5  ;;  %v10422_v46 = vld [vmem:[%s12900_s7 + $0xf8] sm:$0xff] }
0x1558   : > { %v3634_v36 = vpop.permute.xlu1 %3633  ;;  %11521 = vmatprep.subr.mxu1 %v10400_v54 }
0x1559   : > { %v3655_v38 = vsel %vm1354_vm1, %v13071_v20, %v3634_v36  ;;  %11522 = vmatpush3.msra.mxu1 %v10400_v54  ;;  %v10397_v36 = vld [vmem:[%s12919_s12 + $0x1] ss:$0 sm:$0xff] }
0x155a   : > { %11523 = vmatprep.subr.mxu1 %v10399_v10 }
0x155b   : > { %11524 = vmatpush3.msra.mxu1 %v10399_v10 }
0x155c   : > { %v3636_v37 = vpop.permute.xlu1 %3635 }
0x155d   : > { %v3656_v28 = vsel %vm1354_vm1, %v13069_v14, %v3636_v37 }
0x1560   : > { %v3644_v62 = vpop.permute.xlu1 %3643 }
0x1561   : > { %v3658_v40 = vsel %vm1442_vm2, %v3656_v28, %v3644_v62  ;;  %v10398_v62 = vld [vmem:[%s12925_s15 + $0x1] ss:$0 sm:$0xff] }
0x1562   : > { %v12237_v9 = vpop.eup %12236 }
0x1563   : > { %v3537_v49 = vsel %vm1442_vm2, %v12237_v9, 0.0 }
0x1564   : > { %v12239_v11 = vpop.eup %12238  ;;  %3538 = vadd.xlane.f32.xlu0 %v3537_v49  ;;  %v10420_v49 = vld [vmem:[%s12900_s7 + $0xe8] sm:$0xff] }
0x1565   : > { %v3534_v12 = vsel %vm1442_vm2, %v12239_v11, 0.0 }
0x1568   : > { %3535 = vadd.xlane.f32.xlu0 %v3534_v12  ;;  %v10418_v12 = vld [vmem:[%s12900_s7 + $0xd8] sm:$0xff] }
0x157e   : > { %3546 = vrot.lane.b32.xlu0 %v13017_v6, %s14259_s4 }
0x1582   : > { %3641 = vrot.lane.b32.xlu0 %v3422_v51, %s14261_s11 }
0x15ed   : > { %v3539_v13 = vpop.xlane.xlu0 %3538 }
0x15ee   : > { %12240 = vrcp.f32 %v3539_v13  ;;  %v10417_v13 = vld [vmem:[%s12900_s7 + $0xd0] sm:$0xff] }
0x15f1   : > { %v3536_v21 = vpop.xlane.xlu0 %3535 }
0x15f2   : > { %12242 = vrcp.f32 %v3536_v21  ;;  %v10416_v21 = vld [vmem:[%s12900_s7 + $0xc8] sm:$0xff] }
0x15f5   : > { %v3547_v22 = vpop.permute.xlu0 %3546 }
0x15f6   : > { %11499 = vmatprep.subr.mxu0 %v3547_v22 }
0x15f7   : > { %11500 = vmatpush3.msra.mxu0 %v3547_v22  ;;  %v10415_v22 = vld [vmem:[%s12900_s7 + $0xc0] sm:$0xff] }
0x15f8   : > { %11501 = vmatprep.subr.mxu0 %v3545_v23 }
0x15f9   : > { %11502 = vmatpush3.msra.mxu0 %v3545_v23  ;;  %v3642_v59 = vpop.permute.xlu0 %3641  ;;  %v10414_v23 = vld [vmem:[%s12900_s7 + $0xb8] sm:$0xff] }
0x15fa   : > { %11506 = vmatprep.subr.mxu0 %v10390_v33  ;;  %v3657_v3 = vsel %vm1442_vm2, %v3655_v38, %v3642_v59 }
0x15fb   : > { %v12241_v24 = vpop.eup %12240 }
0x15fc   : > { %v3543_v6 = vmul.f32 %v12241_v24, %v12237_v9  ;;  %v10421_v9 = vld [vmem:[%s12900_s7 + $0xf0] sm:$0xff] }
0x15fd   : > { %v10413_v24 = vld [vmem:[%s12900_s7 + $0xb0] sm:$0xff] }
0x15ff   : > { %v12243_v25 = vpop.eup %12242 }
0x1600   : > { %v3542_v27 = vmul.f32 %v12243_v25, %v12239_v11  ;;  %v10419_v11 = vld [vmem:[%s12900_s7 + $0xe0] sm:$0xff]  ;;  %v10412_v25 = vld [vmem:[%s12900_s7 + $0xa8] sm:$0xff] }
0x1602   : > { %11503 = vmatprep.mubr.msk.f32.mxu0 %vm1442_vm2, %v3542_v27  ;;  %v10411_v27 = vld [vmem:[%s12900_s7 + $0xa0] sm:$0xff] }
0x1603   : > { %11504 = vmatmul.mubr.msk.f32.vlgmr.msra.gmra.mxu0 %vm1442_vm2, %v3543_v6 }
0x1604   : > { %11507 = vmatpush3.msra.mxu0 %v10390_v33 }
0x1605   : > { %11508 = vmatprep.subr.mxu0 %v10389_v34 }
0x1606   : > { %11509 = vmatpush3.msra.mxu0 %v10389_v34 }
0x1607   : > { %11510 = vmatprep.subr.mxu0 %v10388_v35 }
0x1608   : > { %11511 = vmatpush3.msra.mxu0 %v10388_v35 }
0x1609   : > { %11512 = vmatprep.subr.mxu0 %v10387_v45 }
0x160a   : > { %11513 = vmatpush3.msra.mxu0 %v10387_v45 }
0x160b   : > { %11528 = vmatprep.subr.mxu0 %v10422_v46 }
0x16c3   : > { %v11505_v48 = vpop.f32.mrf.mxu0 }
0x16c4   : > { %3651 = vrot.lane.b32.xlu1 %v11505_v48, %s14262_s22 }
0x16c5   : > { %v3622_v50 = vpop.f32.mrf.mxu0 }
0x16c6   : > { %3649 = vrot.lane.b32.xlu0 %v3622_v50, %s14262_s22 }
0x1736   : > { %v3652_v1 = vpop.permute.xlu1 %3651 }
0x1737   : > { %v3660_v43 = vsel %vm2176_vm3, %v3658_v40, %v3652_v1  ;;  %v10410_v40 = vld [vmem:[%s12900_s7 + $0x98] sm:$0xff] }
0x1738   : > { %v3650_v39 = vpop.permute.xlu0 %3649 }
0x1739   : > { %v3659_v41 = vsel %vm2176_vm3, %v3657_v3, %v3650_v39 }
0x173a   : > { %11514 = vmatprep.mubr.msk.f32.mxu0 %vm1008_vm0, %v3659_v41  ;;  %v10409_v41 = vld [vmem:[%s12900_s7 + $0x90] sm:$0xff] }
0x173b   : > { %11515 = vmatmul.mubr.msk.f32.vlgmr.msra.gmra.mxu0 %vm1008_vm0, %v3660_v43  ;;  %v10408_v43 = vld [vmem:[%s12900_s7 + $0x88] sm:$0xff] }
0x173c   : > { %11529 = vmatpush3.msra.mxu0 %v10422_v46 }
0x173d   : > { %11530 = vmatprep.subr.mxu0 %v10421_v9 }
0x173e   : > { %11531 = vmatpush3.msra.mxu0 %v10421_v9 }
0x173f   : > { %11532 = vmatprep.subr.mxu0 %v10420_v49 }
0x1740   : > { %11533 = vmatpush3.msra.mxu0 %v10420_v49 }
0x1741   : > { %11534 = vmatprep.subr.mxu0 %v10419_v11 }
0x1742   : > { %11535 = vmatpush3.msra.mxu0 %v10419_v11 }
0x1743   : > { %11536 = vmatprep.subr.mxu0 %v10418_v12 }
0x1744   : > { %11537 = vmatpush3.msra.mxu0 %v10418_v12  ;;  %v10432_v12 = vld [vmem:[%s12593_s3 + $0x58] sm:$0xff] }
0x1745   : > { %11538 = vmatprep.subr.mxu0 %v10417_v13  ;;  %11563 = vmatprep.subr.mxu1 %v10432_v12 }
0x1746   : > { %11539 = vmatpush3.msra.mxu0 %v10417_v13  ;;  %v10431_v13 = vld [vmem:[%s12593_s3 + $0x50] sm:$0xff] }
0x1747   : > { %11540 = vmatprep.subr.mxu0 %v10416_v21 }
0x1748   : > { %11541 = vmatpush3.msra.mxu0 %v10416_v21  ;;  %v10430_v21 = vld [vmem:[%s12593_s3 + $0x48] sm:$0xff] }
0x1749   : > { %11542 = vmatprep.subr.mxu0 %v10415_v22 }
0x174a   : > { %11543 = vmatpush3.msra.mxu0 %v10415_v22  ;;  %v10429_v22 = vld [vmem:[%s12593_s3 + $0x40] sm:$0xff] }
0x174b   : > { %11544 = vmatprep.subr.mxu0 %v10414_v23 }
0x174c   : > { %11545 = vmatpush3.msra.mxu0 %v10414_v23  ;;  %v10440_v23 = vld [vmem:[%s12602_s0 + $0x58] sm:$0xff] }
0x174d   : > { %11546 = vmatprep.subr.mxu0 %v10413_v24 }
0x174e   : > { %11547 = vmatpush3.msra.mxu0 %v10413_v24 }
0x174f   : > { %11548 = vmatprep.subr.mxu0 %v10412_v25 }
0x1750   : > { %11549 = vmatpush3.msra.mxu0 %v10412_v25 }
0x1751   : > { %11550 = vmatprep.subr.mxu0 %v10411_v27 }
0x1752   : > { %11551 = vmatpush3.msra.mxu0 %v10411_v27 }
0x1753   : > { %11552 = vmatprep.subr.mxu0 %v10410_v40 }
0x1754   : > { %11553 = vmatpush3.msra.mxu0 %v10410_v40  ;;  %v10448_v40 = vld [vmem:[%s12656_s5 + $0x58] sm:$0xff] }
0x1755   : > { %11554 = vmatprep.subr.mxu0 %v10409_v41 }
0x1756   : > { %11555 = vmatpush3.msra.mxu0 %v10409_v41  ;;  %v10447_v41 = vld [vmem:[%s12656_s5 + $0x50] sm:$0xff] }
0x1757   : > { %11556 = vmatprep.subr.mxu0 %v10408_v43 }
0x1758   : > { %11557 = vmatpush3.msra.mxu0 %v10408_v43  ;;  %v10446_v43 = vld [vmem:[%s12656_s5 + $0x48] sm:$0xff] }
0x17fb   : > { %v11516_v8 = vpop.f32.mrf.mxu0 }
0x17fc   : > { %v3752_v20 = vadd.f32 %v11516_v8, %v10392_v7  ;;  %v10404_v8 = vld [vmem:[%s12941_s1 + $0x1] ss:$0 sm:$0xff] }
0x17fd   : > { %v3746_v42 = vpop.f32.mrf.mxu0 }
0x17fe   : > { %v13149_v57 = vadd.f32 %v3752_v20, %v12952_v2  ;;  %v3747_v14 = vadd.f32 %v10392_v7, %v3746_v42  ;;  %v10407_v7 = vld [vmem:[%s12900_s7 + $0x80] sm:$0xff] }
0x17ff   : > { %11558 = vmatprep.subr.mxu0 %v10407_v7 }
0x1800   : > { %v13152_v61 = vadd.f32 %v3747_v14, %v12955_v4  ;;  %v3764_v44 = vsel %vm1008_vm0, %v13149_v57, 0.0  ;;  %11559 = vmatpush3.msra.mxu0 %v10407_v7  ;;  %v10445_v7 = vld [vmem:[%s12656_s5 + $0x40] sm:$0xff] }
0x1801   : > { %3765 = vadd.xlane.f32.xlu1 %v3764_v44 }
0x1802   : > { %v3761_v47 = vsel %vm1008_vm0, %v13152_v61, 0.0 }
0x1803   : > { %3762 = vadd.xlane.f32.xlu0 %v3761_v47 }
0x188a   : > { %v3766_v51 = vpop.xlane.xlu1 %3765 }
0x188b   : > { %v3768_v53 = vmul.f32 0.03125, %v3766_v51 }
0x188c   : > { %v3763_v55 = vpop.xlane.xlu0 %3762 }
0x188d   : > { %v3767_v2 = vmul.f32 0.03125, %v3763_v55  ;;  %v13159_v56 = vsub.f32 %v13149_v57, %v3768_v53  ;;  %v10424_v53 = vld [vmem:[%s12948_s14 + $0x1] ss:$0 sm:$0xff] }
0x188f   : > { %v13162_v4 = vsub.f32 %v13152_v61, %v3767_v2  ;;  %v3772_v60 = vmul.f32 %v13159_v56, %v13159_v56 }
0x1891   : > { %v3771_v58 = vmul.f32 %v13162_v4, %v13162_v4  ;;  %v3776_v0 = vsel %vm1008_vm0, %v3772_v60, 0.0 }
0x1893   : > { %v3773_v15 = vsel %vm1008_vm0, %v3771_v58, 0.0 }
0x1894   : > { %3774 = vadd.xlane.f32.xlu0 %v3773_v15 }
0x1898   : > { %3777 = vadd.xlane.f32.xlu0 %v3776_v0 }
0x191d   : > { %v3775_v6 = vpop.xlane.xlu0 %3774 }
0x191e   : > { %v3779_v33 = vmul.f32 0.03125, %v3775_v6 }
0x1920   : > { %v3781_v34 = vadd.f32 1e-05, %v3779_v33 }
0x1921   : > { %v3778_v35 = vpop.xlane.xlu0 %3777 }
0x1922   : > { %12244 = vrsqrt.f32 %v3781_v34  ;;  %v3780_v45 = vmul.f32 0.03125, %v3778_v35 }
0x1924   : > { %v3782_v48 = vadd.f32 1e-05, %v3780_v45 }
0x1926   : > { %12246 = vrsqrt.f32 %v3782_v48 }
0x192f   : > { %v12245_v50 = vpop.eup %12244 }
0x1930   : > { %v3785_v37 = vmul.f32 %v12245_v50, %v13162_v4 }
0x1932   : > { %v3793_v59 = vmul.f32 %v10397_v36, %v3785_v37 }
0x1933   : > { %v12247_v38 = vpop.eup %12246 }
0x1934   : > { %v3786_v1 = vmul.f32 %v12247_v38, %v13159_v56  ;;  %v3801_v28 = vadd.f32 %v10398_v62, %v3793_v59  ;;  %v12414_v59 = vld [vmem:[%s12619_s28 + $0x2] ss:$0 sm:$0xff] }
0x1936   : > { %v3794_v3 = vmul.f32 %v10397_v36, %v3786_v1  ;;  %11525 = vmatprep.mubr.msk.f32.mxu1 %vm1008_vm0, %v3801_v28  ;;  %v12413_v36 = vld [vmem:[%s12613_s23 + $0x2] ss:$0 sm:$0xff]  ;;  %v10439_v28 = vld [vmem:[%s12602_s0 + $0x50] sm:$0xff] }
0x1938   : > { %v3802_v39 = vadd.f32 %v10398_v62, %v3794_v3  ;;  %v10438_v3 = vld [vmem:[%s12602_s0 + $0x48] sm:$0xff] }
0x193a   : > { %11526 = vmatmul.mubr.msk.f32.vlgmr.msra.gmra.mxu1 %vm1008_vm0, %v3802_v39  ;;  %v10437_v39 = vld [vmem:[%s12602_s0 + $0x40] sm:$0xff] }
0x193b   : > { %11564 = vmatpush3.msra.mxu1 %v10432_v12 }
0x193c   : > { %11565 = vmatprep.subr.mxu1 %v10431_v13 }
0x193d   : > { %11566 = vmatpush3.msra.mxu1 %v10431_v13 }
0x193e   : > { %11567 = vmatprep.subr.mxu1 %v10430_v21 }
0x193f   : > { %11568 = vmatpush3.msra.mxu1 %v10430_v21 }
0x1940   : > { %11569 = vmatprep.subr.mxu1 %v10429_v22 }
0x1941   : > { %11570 = vmatpush3.msra.mxu1 %v10429_v22 }
0x1942   : > { %11574 = vmatprep.subr.mxu1 %v10440_v23 }
0x19fa   : > { %v11527_v20 = vpop.f32.mrf.mxu1 }
0x19fb   : > { %v3894_v42 = vadd.f32 %v11527_v20, %v10404_v8  ;;  %v10434_v20 = vld [vmem:[%s12681_s26 + $0x2] ss:$0 sm:$0xff] }
0x19fc   : > { %v3888_v14 = vpop.f32.mrf.mxu1 }
0x19fd   : > { %v3889_v44 = vadd.f32 %v10404_v8, %v3888_v14  ;;  %v3898_v51 = vmax.f32 %v3894_v42, 0.0 }
0x19ff   : > { %v3897_v47 = vmax.f32 %v3889_v44, 0.0 }
0x1a01   : > { %11560 = vmatprep.mubr.f32.mxu0 %v3897_v47  ;;  %v10442_v47 = vld [vmem:[%s12688_s30 + $0x2] ss:$0 sm:$0xff] }
0x1a02   : > { %11561 = vmatmul.mubr.f32.vlgmr.msra.gmra.mxu0 %v3898_v51 }
0x1ac2   : > { %v11562_v55 = vpop.f32.mrf.mxu0 }
0x1ac3   : > { %v3996_v2 = vadd.f32 %v11562_v55, %v10424_v53 }
0x1ac4   : > { %v3990_v56 = vpop.f32.mrf.mxu0 }
0x1ac5   : > { %v13199_v4 = vadd.f32 %v3996_v2, %v13149_v57  ;;  %v3991_v58 = vadd.f32 %v10424_v53, %v3990_v56  ;;  %v10450_v2 = vld [vmem:[%s12709_s27 + $0x2] ss:$0 sm:$0xff] }
0x1ac7   : > { %v13202_v15 = vadd.f32 %v3991_v58, %v13152_v61  ;;  %v4008_v60 = vsel %vm1008_vm0, %v13199_v4, 0.0 }
0x1ac8   : > { %4009 = vadd.xlane.f32.xlu1 %v4008_v60 }
0x1ac9   : > { %v4005_v0 = vsel %vm1008_vm0, %v13202_v15, 0.0 }
0x1aca   : > { %4006 = vadd.xlane.f32.xlu0 %v4005_v0 }
0x1b51   : > { %v4010_v63 = vpop.xlane.xlu1 %4009 }
0x1b52   : > { %v4012_v5 = vmul.f32 0.03125, %v4010_v63 }
0x1b53   : > { %v4007_v54 = vpop.xlane.xlu0 %4006 }
0x1b54   : > { %v4014_v57 = vsub.f32 %v13199_v4, %v4012_v5  ;;  %v4011_v10 = vmul.f32 0.03125, %v4007_v54 }
0x1b56   : > { %v4013_v61 = vsub.f32 %v13202_v15, %v4011_v10  ;;  %v4016_v46 = vmul.f32 %v4014_v57, %v4014_v57 }
0x1b58   : > { %v4020_v9 = vsel %vm1008_vm0, %v4016_v46, 0.0  ;;  %v4015_v49 = vmul.f32 %v4013_v61, %v4013_v61 }
0x1b59   : > { %4021 = vadd.xlane.f32.xlu1 %v4020_v9 }
0x1b5a   : > { %v4017_v11 = vsel %vm1008_vm0, %v4015_v49, 0.0 }
0x1b5b   : > { %4018 = vadd.xlane.f32.xlu0 %v4017_v11 }
0x1be2   : > { %v4022_v24 = vpop.xlane.xlu1 %4021 }
0x1be3   : > { %v4024_v25 = vmul.f32 0.03125, %v4022_v24 }
0x1be4   : > { %v4019_v27 = vpop.xlane.xlu0 %4018 }
0x1be5   : > { %v4026_v6 = vadd.f32 1e-05, %v4024_v25  ;;  %v4023_v33 = vmul.f32 0.03125, %v4019_v27 }
0x1be7   : > { %12248 = vrsqrt.f32 %v4026_v6  ;;  %v4025_v34 = vadd.f32 1e-05, %v4023_v33 }
0x1be9   : > { %12250 = vrsqrt.f32 %v4025_v34 }
0x1bf4   : > { %v12249_v35 = vpop.eup %12248 }
0x1bf5   : > { %v4030_v45 = vmul.f32 %v12249_v35, %v4014_v57 }
0x1bf6   : > { %v12251_v48 = vpop.eup %12250 }
0x1bf7   : > { %v4029_v50 = vmul.f32 %v12251_v48, %v4013_v61  ;;  %v4038_v37 = vmul.f32 %v12413_v36, %v4030_v45 }
0x1bf9   : > { %v4037_v62 = vmul.f32 %v12413_v36, %v4029_v50  ;;  %v4046_v38 = vadd.f32 %v12414_v59, %v4038_v37 }
0x1bfb   : > { %v4045_v1 = vadd.f32 %v12414_v59, %v4037_v62 }
0x1bfd   : > { %11571 = vmatprep.mubr.msk.f32.mxu1 %vm1008_vm0, %v4045_v1 }
0x1bfe   : > { %11572 = vmatmul.mubr.msk.f32.vlgmr.msra.gmra.mxu1 %vm1008_vm0, %v4046_v38 }
0x1bff   : > { %11575 = vmatpush3.msra.mxu1 %v10440_v23  ;;  %11582 = vmatprep.mubr.msk.f32.mxu1 %vm1008_vm0, %v12641_v16 }
0x1c00   : > { %11576 = vmatprep.subr.mxu1 %v10439_v28 }
0x1c01   : > { %11577 = vmatpush3.msra.mxu1 %v10439_v28 }
0x1c02   : > { %11578 = vmatprep.subr.mxu1 %v10438_v3 }
0x1c03   : > { %11579 = vmatpush3.msra.mxu1 %v10438_v3 }
0x1c04   : > { %11580 = vmatprep.subr.mxu1 %v10437_v39 }
0x1c05   : > { %11581 = vmatpush3.msra.mxu1 %v10437_v39 }
0x1c06   : > { %11583 = vmatmul.mubr.msk.f32.vlgmr.msra.gmra.mxu1 %vm1008_vm0, %v12662_v29  ;;  %11585 = vmatprep.subr.mxu1 %v10448_v40 }
0x1c07   : > { %11586 = vmatpush3.msra.mxu1 %v10448_v40  ;;  %11593 = vmatprep.mubr.msk.f32.mxu1 %vm1008_vm0, %v12641_v16 }
0x1c08   : > { %11587 = vmatprep.subr.mxu1 %v10447_v41 }
0x1c09   : > { %11588 = vmatpush3.msra.mxu1 %v10447_v41 }
0x1c0a   : > { %11589 = vmatprep.subr.mxu1 %v10446_v43 }
0x1c0b   : > { %11590 = vmatpush3.msra.mxu1 %v10446_v43 }
0x1c0c   : > { %11591 = vmatprep.subr.mxu1 %v10445_v7 }
0x1c0d   : > { %11592 = vmatpush3.msra.mxu1 %v10445_v7 }
0x1c0e   : > { %11594 = vmatmul.mubr.msk.f32.vlgmr.msra.gmra.mxu1 %vm1008_vm0, %v12662_v29 }
0x1cbe   : > { %v11573_v8 = vpop.f32.mrf.mxu1 }
0x1cbf   : > { %v4142_v55 = vadd.f32 %v11573_v8, %v10434_v20 }
0x1cc0   : > { %v4136_v42 = vpop.f32.mrf.mxu1 }
0x1cc1   : > { %v4137_v14 = vadd.f32 %v10434_v20, %v4136_v42  ;;  %v13259_v56 = vmul.f32 0.35355338, %v4142_v55 }
0x1cc3   : > { %v13237_v44 = vmul.f32 0.35355338, %v4137_v14 }
0x1cc5   : > { %4519 = vrot.lane.b32.xlu1 %v13237_v44, %s14249_s6  ;;  %11600 = vmatprep.mubr.msk.f32.mxu1 %vm1354_vm1, %v13237_v44 }
0x1cc6   : > { %v11584_v16 = vpop.f32.mrf.mxu1 }
0x1cc7   : > { %v13244_v51 = vadd.f32 %v11584_v16, %v10442_v47 }
0x1cc8   : > { %v4232_v53 = vpop.f32.mrf.mxu1 }
0x1cc9   : > { %v13246_v29 = vadd.f32 %v10442_v47, %v4232_v53  ;;  %4525 = vrot.lane.b32.xlu0 %v13244_v51, %s14249_s6  ;;  %11596 = vmatprep.subr.msk.mxu1 %vm1354_vm1, %v13244_v51 }
0x1cca   : > { %11597 = vmatpush3.xpose.msk.msra.mxu1 %vm1354_vm1, %v13244_v51 }
0x1ccb   : > { %11598 = vmatprep.subr.msk.mxu1 %vm1354_vm1, %v13246_v29  ;;  %4523 = vrot.lane.b32.xlu1 %v13246_v29, %s14249_s6 }
0x1cce   : > { %v11595_v58 = vpop.f32.mrf.mxu1  ;;  %11599 = vmatpush3.xpose.msk.msra.mxu1 %vm1354_vm1, %v13246_v29 }
0x1ccf   : > { %v13263_v60 = vadd.f32 %v11595_v58, %v10450_v2  ;;  %4521 = vrot.lane.b32.xlu1 %v13259_v56, %s14249_s6 }
0x1cd0   : > { %v4320_v0 = vpop.f32.mrf.mxu1 }
0x1cd1   : > { %v13267_v63 = vadd.f32 %v10450_v2, %v4320_v0  ;;  %11601 = vmatmul.mubr.msk.f32.vlgmr.msra.gmra.mxu1 %vm1354_vm1, %v13259_v56  ;;  %11603 = vmatprep.subr.mxu0 %v13263_v60 }
0x1cd2   : > { %11604 = vmatpush3.msra.mxu0 %v13263_v60 }
0x1cd3   : > { %11605 = vmatprep.subr.mxu0 %v13267_v63 }
0x1cd4   : > { %11606 = vmatpush3.msra.mxu0 %v13267_v63 }
0x1d37   : > { %v4520_v5 = vpop.permute.xlu1 %4519 }
0x1d38   : > { %11614 = vmatprep.mubr.msk.f32.mxu1 %vm1354_vm1, %v4520_v5 }
0x1d3b   : > { %v4526_v54 = vpop.permute.xlu0 %4525 }
0x1d3c   : > { %11610 = vmatprep.subr.msk.mxu1 %vm1354_vm1, %v4526_v54 }
0x1d3d   : > { %v4524_v57 = vpop.permute.xlu1 %4523  ;;  %11611 = vmatpush3.xpose.msk.msra.mxu1 %vm1354_vm1, %v4526_v54 }
0x1d3e   : > { %11612 = vmatprep.subr.msk.mxu1 %vm1354_vm1, %v4524_v57 }
0x1d41   : > { %11613 = vmatpush3.xpose.msk.msra.mxu1 %vm1354_vm1, %v4524_v57  ;;  %v4522_v10 = vpop.permute.xlu1 %4521 }
0x1d44   : > { %11615 = vmatmul.mubr.msk.f32.vlgmr.msra.gmra.mxu1 %vm1354_vm1, %v4522_v10 }
0x1d91   : > { %v11602_v61 = vpop.f32.mrf.mxu1 }
0x1d92   : > { %v4413_v46 = vadd.f32 %v13080_v52, %v11602_v61 }
0x1d93   : > { %v4407_v9 = vpop.f32.mrf.mxu1 }
0x1d94   : > { %v4408_v49 = vadd.f32 %v13086_v26, %v4407_v9  ;;  %v4419_v11 = vsel %vm1442_vm2, %v4413_v46, -inf }
0x1d95   : > { %4420 = vmax.xlane.f32.xlu1 %v4419_v11 }
0x1d96   : > { %v4416_v12 = vsel %vm1442_vm2, %v4408_v49, -inf }
0x1d97   : > { %4417 = vmax.xlane.f32.xlu0 %v4416_v12 }
0x1e04   : > { %v11616_v13 = vpop.f32.mrf.mxu1 }
0x1e05   : > { %v4607_v23 = vadd.f32 %v13080_v52, %v11616_v13 }
0x1e06   : > { %v4601_v21 = vpop.f32.mrf.mxu1 }
0x1e07   : > { %v4602_v22 = vadd.f32 %v13086_v26, %v4601_v21  ;;  %v4613_v25 = vsel %vm1442_vm2, %v4607_v23, -inf }
0x1e09   : > { %v4610_v24 = vsel %vm1442_vm2, %v4602_v22, -inf }
0x1e0a   : > { %4611 = vmax.xlane.f32.xlu0 %v4610_v24 }
0x1e0e   : > { %4614 = vmax.xlane.f32.xlu0 %v4613_v25 }
0x1e1e   : > { %v4421_v27 = vpop.xlane.xlu1 %4420 }
0x1e1f   : > { %v4423_v6 = vsub.f32 %v4413_v46, %v4421_v27 }
0x1e20   : > { %v4418_v33 = vpop.xlane.xlu0 %4417 }
0x1e21   : > { %v4426_v34 = vmul.f32 1.442695, %v4423_v6  ;;  %v4422_v35 = vsub.f32 %v4408_v49, %v4418_v33 }
0x1e23   : > { %12252 = vpow2.f32 %v4426_v34  ;;  %v4424_v45 = vmul.f32 1.442695, %v4422_v35 }
0x1e25   : > { %12254 = vpow2.f32 %v4424_v45 }
0x1e30   : > { %v12253_v48 = vpop.eup %12252 }
0x1e31   : > { %v4431_v50 = vsel %vm1442_vm2, %v12253_v48, 0.0 }
0x1e32   : > { %v12255_v36 = vpop.eup %12254  ;;  %4432 = vadd.xlane.f32.xlu1 %v4431_v50 }
0x1e33   : > { %v4428_v37 = vsel %vm1442_vm2, %v12255_v36, 0.0 }
0x1e34   : > { %4429 = vadd.xlane.f32.xlu0 %v4428_v37 }
0x1e93   : > { %v4612_v62 = vpop.xlane.xlu0 %4611 }
0x1e94   : > { %v4616_v59 = vsub.f32 %v4602_v22, %v4612_v62 }
0x1e96   : > { %v4618_v38 = vmul.f32 1.442695, %v4616_v59 }
0x1e97   : > { %v4615_v1 = vpop.xlane.xlu0 %4614 }
0x1e98   : > { %12256 = vpow2.f32 %v4618_v38  ;;  %v4617_v28 = vsub.f32 %v4607_v23, %v4615_v1 }
0x1e9a   : > { %v4620_v3 = vmul.f32 1.442695, %v4617_v28 }
0x1e9c   : > { %12258 = vpow2.f32 %v4620_v3 }
0x1ea5   : > { %v12257_v39 = vpop.eup %12256 }
0x1ea6   : > { %v4622_v40 = vsel %vm1442_vm2, %v12257_v39, 0.0 }
0x1ea7   : > { %4623 = vadd.xlane.f32.xlu0 %v4622_v40 }
0x1ea9   : > { %v12259_v41 = vpop.eup %12258 }
0x1eaa   : > { %v4625_v43 = vsel %vm1442_vm2, %v12259_v41, 0.0 }
0x1eab   : > { %4626 = vadd.xlane.f32.xlu1 %v4625_v43 }
0x1ebb   : > { %v4433_v7 = vpop.xlane.xlu1 %4432 }
0x1ebc   : > { %4634 = vrot.lane.b32.xlu1 %v13267_v63, %s14249_s6  ;;  %12260 = vrcp.f32 %v4433_v7 }
0x1ebd   : > { %4636 = vrot.lane.b32.xlu0 %v13263_v60, %s14249_s6  ;;  %v4430_v8 = vpop.xlane.xlu0 %4429 }
0x1ebe   : > { %12262 = vrcp.f32 %v4430_v8 }
0x1ec0   : > { %4727 = vrot.lane.b32.xlu1 %v13244_v51, %s14258_s13 }
0x1ec1   : > { %4721 = vrot.lane.b32.xlu0 %v13237_v44, %s14258_s13 }
0x1ec4   : > { %4725 = vrot.lane.b32.xlu1 %v13246_v29, %s14258_s13 }
0x1ec8   : > { %4723 = vrot.lane.b32.xlu1 %v13259_v56, %s14258_s13 }
0x1ec9   : > { %v12261_v20 = vpop.eup %12260 }
0x1eca   : > { %v4437_v47 = vmul.f32 %v12261_v20, %v12253_v48 }
0x1ecb   : > { %v12263_v42 = vpop.eup %12262 }
0x1ecc   : > { %v4436_v14 = vmul.f32 %v12263_v42, %v12255_v36 }
0x1ece   : > { %11607 = vmatprep.mubr.msk.f32.mxu0 %vm1442_vm2, %v4436_v14 }
0x1ecf   : > { %11608 = vmatmul.mubr.msk.f32.vlgmr.msra.gmra.mxu0 %vm1442_vm2, %v4437_v47 }
0x1f30   : > { %v4624_v16 = vpop.xlane.xlu0 %4623 }
0x1f31   : > { %12264 = vrcp.f32 %v4624_v16 }
0x1f34   : > { %v4627_v53 = vpop.xlane.xlu1 %4626  ;;  %v4637_v55 = vpop.permute.xlu0 %4636 }
0x1f35   : > { %12266 = vrcp.f32 %v4627_v53  ;;  %11617 = vmatprep.subr.mxu0 %v4637_v55 }
0x1f36   : > { %11618 = vmatpush3.msra.mxu0 %v4637_v55 }
0x1f38   : > { %v4635_v2 = vpop.permute.xlu1 %4634  ;;  %v4722_v10 = vpop.permute.xlu0 %4721 }
0x1f39   : > { %11619 = vmatprep.subr.mxu0 %v4635_v2 }
0x1f3a   : > { %11620 = vmatpush3.msra.mxu0 %v4635_v2 }
0x1f3c   : > { %v4728_v58 = vpop.permute.xlu1 %4727 }
0x1f3d   : > { %11624 = vmatprep.subr.msk.mxu0 %vm1354_vm1, %v4728_v58 }
0x1f3e   : > { %v12265_v0 = vpop.eup %12264 }
0x1f3f   : > { %v4630_v5 = vmul.f32 %v12265_v0, %v12257_v39 }
0x1f40   : > { %v4726_v61 = vpop.permute.xlu1 %4725 }
0x1f41   : > { %11621 = vmatprep.mubr.msk.f32.mxu0 %vm1442_vm2, %v4630_v5 }
0x1f42   : > { %v12267_v54 = vpop.eup %12266 }
0x1f43   : > { %v4631_v57 = vmul.f32 %v12267_v54, %v12259_v41 }
0x1f44   : > { %v4724_v46 = vpop.permute.xlu1 %4723 }
0x1f45   : > { %11622 = vmatmul.mubr.msk.f32.vlgmr.msra.gmra.mxu0 %vm1442_vm2, %v4631_v57 }
0x1f46   : > { %11625 = vmatpush3.xpose.msk.msra.mxu0 %vm1354_vm1, %v4728_v58  ;;  %11628 = vmatprep.mubr.msk.f32.mxu0 %vm1354_vm1, %v4722_v10 }
0x1f47   : > { %11626 = vmatprep.subr.msk.mxu0 %vm1354_vm1, %v4726_v61 }
0x1f4a   : > { %11627 = vmatpush3.xpose.msk.msra.mxu0 %vm1354_vm1, %v4726_v61 }
0x1f4d   : > { %11629 = vmatmul.mubr.msk.f32.vlgmr.msra.gmra.mxu0 %vm1354_vm1, %v4724_v46 }
0x1f8f   : > { %v13315_v9 = vpop.f32.mrf.mxu0 }
0x1f91   : > { %v13317_v49 = vpop.f32.mrf.mxu0 }
0x2005   : > { %v13319_v11 = vpop.f32.mrf.mxu0 }
0x2007   : > { %v13321_v12 = vpop.f32.mrf.mxu0 }
0x200d   : > { %v11630_v13 = vpop.f32.mrf.mxu0 }
0x200e   : > { %v4809_v21 = vadd.f32 %v13080_v52, %v11630_v13  ;;  %v10480_v13 = vld [vmem:[%s12840_s29 + $0x58] sm:$0xff] }
0x200f   : > { %v4803_v22 = vpop.f32.mrf.mxu0 }
0x2010   : > { %v4804_v23 = vadd.f32 %v13086_v26, %v4803_v22  ;;  %v4815_v24 = vsel %vm1442_vm2, %v4809_v21, -inf  ;;  %v10478_v22 = vld [vmem:[%s12840_s29 + $0x48] sm:$0xff] }
0x2011   : > { %4816 = vmax.xlane.f32.xlu1 %v4815_v24 }
0x2012   : > { %v4812_v25 = vsel %vm1442_vm2, %v4804_v23, -inf }
0x2013   : > { %4813 = vmax.xlane.f32.xlu0 %v4812_v25 }
0x2022   : > { %4834 = vrot.lane.b32.xlu1 %v13267_v63, %s14258_s13 }
0x2026   : > { %4927 = vrot.lane.b32.xlu1 %v13244_v51, %s14259_s4 }
0x202a   : > { %4925 = vrot.lane.b32.xlu1 %v13246_v29, %s14259_s4 }
0x202e   : > { %4923 = vrot.lane.b32.xlu1 %v13259_v56, %s14259_s4 }
0x209a   : > { %v4817_v27 = vpop.xlane.xlu1 %4816 }
0x209b   : > { %v4819_v6 = vsub.f32 %v4809_v21, %v4817_v27  ;;  %v10479_v21 = vld [vmem:[%s12840_s29 + $0x50] sm:$0xff] }
0x209c   : > { %v4814_v33 = vpop.xlane.xlu0 %4813 }
0x209d   : > { %v4822_v34 = vmul.f32 1.442695, %v4819_v6  ;;  %v4818_v35 = vsub.f32 %v4804_v23, %v4814_v33  ;;  %v10477_v23 = vld [vmem:[%s12840_s29 + $0x40] sm:$0xff] }
0x209e   : > { %v4835_v37 = vpop.permute.xlu1 %4834 }
0x209f   : > { %12268 = vpow2.f32 %v4822_v34  ;;  %v4820_v45 = vmul.f32 1.442695, %v4818_v35 }
0x20a1   : > { %12270 = vpow2.f32 %v4820_v45 }
0x20a2   : > { %v4928_v59 = vpop.permute.xlu1 %4927 }
0x20a6   : > { %v4926_v39 = vpop.permute.xlu1 %4925 }
0x20aa   : > { %v4924_v40 = vpop.permute.xlu1 %4923 }
0x20ac   : > { %v12269_v48 = vpop.eup %12268 }
0x20ad   : > { %v4827_v50 = vsel %vm1442_vm2, %v12269_v48, 0.0 }
0x20ae   : > { %v12271_v36 = vpop.eup %12270  ;;  %4828 = vadd.xlane.f32.xlu0 %v4827_v50 }
0x20af   : > { %v4824_v51 = vsel %vm1442_vm2, %v12271_v36, 0.0 }
0x20b2   : > { %4825 = vadd.xlane.f32.xlu0 %v4824_v51 }
0x20c8   : > { %4836 = vrot.lane.b32.xlu0 %v13263_v60, %s14258_s13 }
0x20cc   : > { %4921 = vrot.lane.b32.xlu0 %v13237_v44, %s14259_s4 }
0x2137   : > { %v4829_v29 = vpop.xlane.xlu0 %4828 }
0x2138   : > { %12272 = vrcp.f32 %v4829_v29 }
0x213b   : > { %v4826_v56 = vpop.xlane.xlu0 %4825 }
0x213c   : > { %12274 = vrcp.f32 %v4826_v56 }
0x213f   : > { %v4837_v62 = vpop.permute.xlu0 %4836 }
0x2140   : > { %11631 = vmatprep.subr.mxu1 %v4837_v62 }
0x2141   : > { %11632 = vmatpush3.msra.mxu1 %v4837_v62 }
0x2142   : > { %11633 = vmatprep.subr.mxu1 %v4835_v37 }
0x2143   : > { %11634 = vmatpush3.msra.mxu1 %v4835_v37  ;;  %v4922_v44 = vpop.permute.xlu0 %4921  ;;  %v10482_v37 = vld [vmem:[%s12862_s8 + $0x2] ss:$0 sm:$0xff] }
0x2144   : > { %11638 = vmatprep.subr.msk.mxu1 %vm1354_vm1, %v4928_v59 }
0x2145   : > { %v12273_v38 = vpop.eup %12272 }
0x2146   : > { %v4833_v3 = vmul.f32 %v12273_v38, %v12269_v48 }
0x2149   : > { %v12275_v1 = vpop.eup %12274 }
0x214a   : > { %v4832_v28 = vmul.f32 %v12275_v1, %v12271_v36 }
0x214c   : > { %11635 = vmatprep.mubr.msk.f32.mxu1 %vm1442_vm2, %v4832_v28 }
0x214d   : > { %11636 = vmatmul.mubr.msk.f32.vlgmr.msra.gmra.mxu1 %vm1442_vm2, %v4833_v3 }
0x214e   : > { %11639 = vmatpush3.xpose.msk.msra.mxu1 %vm1354_vm1, %v4928_v59  ;;  %11642 = vmatprep.mubr.msk.f32.mxu1 %vm1354_vm1, %v4922_v44 }
0x214f   : > { %11640 = vmatprep.subr.msk.mxu1 %vm1354_vm1, %v4926_v39 }
0x2152   : > { %11641 = vmatpush3.xpose.msk.msra.mxu1 %vm1354_vm1, %v4926_v39 }
0x2155   : > { %11643 = vmatmul.mubr.msk.f32.vlgmr.msra.gmra.mxu1 %vm1354_vm1, %v4924_v40 }
0x220d   : > { %v11637_v41 = vpop.f32.mrf.mxu1 }
0x220f   : > { %v4912_v43 = vpop.f32.mrf.mxu1 }
0x2215   : > { %v11644_v7 = vpop.f32.mrf.mxu1 }
0x2216   : > { %v5009_v8 = vadd.f32 %v13080_v52, %v11644_v7 }
0x2217   : > { %v5003_v20 = vpop.f32.mrf.mxu1 }
0x2218   : > { %v5004_v42 = vadd.f32 %v13086_v26, %v5003_v20  ;;  %v5015_v14 = vsel %vm1442_vm2, %v5009_v8, -inf }
0x2219   : > { %5016 = vmax.xlane.f32.xlu1 %v5015_v14  ;;  %v10491_v14 = vld [vmem:[%s12891_s9 + $0x50] sm:$0xff] }
0x221a   : > { %v5012_v47 = vsel %vm1442_vm2, %v5004_v42, -inf }
0x221b   : > { %5013 = vmax.xlane.f32.xlu0 %v5012_v47  ;;  %v10490_v47 = vld [vmem:[%s12891_s9 + $0x48] sm:$0xff] }
0x222a   : > { %5034 = vrot.lane.b32.xlu1 %v13267_v63, %s14259_s4 }
0x222e   : > { %5123 = vrot.lane.b32.xlu1 %v13321_v12, %s14260_s10 }
0x2232   : > { %5125 = vrot.lane.b32.xlu1 %v13319_v11, %s14260_s10 }
0x2236   : > { %5133 = vrot.lane.b32.xlu1 %v11637_v41, %s14261_s11 }
0x22a2   : > { %v5017_v52 = vpop.xlane.xlu1 %5016 }
0x22a3   : > { %v5019_v16 = vsub.f32 %v5009_v8, %v5017_v52  ;;  %v10489_v52 = vld [vmem:[%s12891_s9 + $0x40] sm:$0xff] }
0x22a4   : > { %v5014_v26 = vpop.xlane.xlu0 %5013 }
0x22a5   : > { %v5022_v53 = vmul.f32 1.442695, %v5019_v16  ;;  %v5018_v55 = vsub.f32 %v5004_v42, %v5014_v26  ;;  %v10492_v42 = vld [vmem:[%s12891_s9 + $0x58] sm:$0xff]  ;;  %v10511_v26 = vld [vmem:[%s12900_s7 + $0x170] sm:$0xff] }
0x22a6   : > { %v5035_v61 = vpop.permute.xlu1 %5034  ;;  %11663 = vmatprep.subr.mxu1 %v10492_v42  ;;  %v10512_v16 = vld [vmem:[%s12900_s7 + $0x178] sm:$0xff] }
0x22a7   : > { %12276 = vpow2.f32 %v5022_v53  ;;  %v5020_v2 = vmul.f32 1.442695, %v5018_v55  ;;  %11664 = vmatpush3.msra.mxu1 %v10492_v42  ;;  %v10510_v53 = vld [vmem:[%s12900_s7 + $0x168] sm:$0xff]  ;;  %v10509_v55 = vld [vmem:[%s12900_s7 + $0x160] sm:$0xff] }
0x22a8   : > { %11665 = vmatprep.subr.mxu1 %v10491_v14 }
0x22a9   : > { %12278 = vpow2.f32 %v5020_v2  ;;  %11666 = vmatpush3.msra.mxu1 %v10491_v14  ;;  %v10508_v2 = vld [vmem:[%s12900_s7 + $0x158] sm:$0xff] }
0x22aa   : > { %v5124_v27 = vpop.permute.xlu1 %5123  ;;  %11667 = vmatprep.subr.mxu1 %v10490_v47 }
0x22ab   : > { %v5145_v35 = vsel %vm1354_vm1, %v13317_v49, %v5124_v27  ;;  %11668 = vmatpush3.msra.mxu1 %v10490_v47 }
0x22ac   : > { %11669 = vmatprep.subr.mxu1 %v10489_v52 }
0x22ad   : > { %11670 = vmatpush3.msra.mxu1 %v10489_v52 }
0x22ae   : > { %v5126_v6 = vpop.permute.xlu1 %5125 }
0x22af   : > { %v5146_v48 = vsel %vm1354_vm1, %v13315_v9, %v5126_v6 }
0x22b2   : > { %v5134_v33 = vpop.permute.xlu1 %5133 }
0x22b3   : > { %v5148_v51 = vsel %vm1442_vm2, %v5146_v48, %v5134_v33  ;;  %v10499_v48 = vld [vmem:[%s12900_s7 + $0x110] sm:$0xff] }
0x22b4   : > { %v12277_v58 = vpop.eup %12276 }
0x22b5   : > { %v5027_v0 = vsel %vm1442_vm2, %v12277_v58, 0.0 }
0x22b6   : > { %v12279_v63 = vpop.eup %12278  ;;  %5028 = vadd.xlane.f32.xlu0 %v5027_v0  ;;  %v10506_v0 = vld [vmem:[%s12900_s7 + $0x148] sm:$0xff] }
0x22b7   : > { %v5024_v5 = vsel %vm1442_vm2, %v12279_v63, 0.0 }
0x22ba   : > { %5025 = vadd.xlane.f32.xlu0 %v5024_v5  ;;  %v10504_v5 = vld [vmem:[%s12900_s7 + $0x138] sm:$0xff] }
0x22d0   : > { %5036 = vrot.lane.b32.xlu0 %v13263_v60, %s14259_s4 }
0x22d4   : > { %5131 = vrot.lane.b32.xlu0 %v4912_v43, %s14261_s11 }
0x233f   : > { %v5029_v54 = vpop.xlane.xlu0 %5028 }
0x2340   : > { %12280 = vrcp.f32 %v5029_v54  ;;  %v10503_v54 = vld [vmem:[%s12900_s7 + $0x130] sm:$0xff] }
0x2343   : > { %v5026_v57 = vpop.xlane.xlu0 %5025 }
0x2344   : > { %12282 = vrcp.f32 %v5026_v57  ;;  %v10502_v57 = vld [vmem:[%s12900_s7 + $0x128] sm:$0xff] }
0x2347   : > { %v5037_v10 = vpop.permute.xlu0 %5036 }
0x2348   : > { %11645 = vmatprep.subr.mxu0 %v5037_v10 }
0x2349   : > { %11646 = vmatpush3.msra.mxu0 %v5037_v10  ;;  %v10501_v10 = vld [vmem:[%s12900_s7 + $0x120] sm:$0xff] }
0x234a   : > { %11647 = vmatprep.subr.mxu0 %v5035_v61 }
0x234b   : > { %11648 = vmatpush3.msra.mxu0 %v5035_v61  ;;  %v5132_v34 = vpop.permute.xlu0 %5131 }
0x234c   : > { %11652 = vmatprep.subr.mxu0 %v10480_v13  ;;  %v5147_v50 = vsel %vm1442_vm2, %v5145_v35, %v5132_v34 }
0x234d   : > { %v12281_v46 = vpop.eup %12280 }
0x234e   : > { %v5033_v60 = vmul.f32 %v12281_v46, %v12277_v58  ;;  %v10507_v58 = vld [vmem:[%s12900_s7 + $0x150] sm:$0xff] }
0x2351   : > { %v12283_v11 = vpop.eup %12282 }
0x2352   : > { %v5032_v12 = vmul.f32 %v12283_v11, %v12279_v63  ;;  %v10505_v63 = vld [vmem:[%s12900_s7 + $0x140] sm:$0xff] }
0x2354   : > { %11649 = vmatprep.mubr.msk.f32.mxu0 %vm1442_vm2, %v5032_v12 }
0x2355   : > { %11650 = vmatmul.mubr.msk.f32.vlgmr.msra.gmra.mxu0 %vm1442_vm2, %v5033_v60 }
0x2356   : > { %11653 = vmatpush3.msra.mxu0 %v10480_v13 }
0x2357   : > { %11654 = vmatprep.subr.mxu0 %v10479_v21 }
0x2358   : > { %11655 = vmatpush3.msra.mxu0 %v10479_v21 }
0x2359   : > { %11656 = vmatprep.subr.mxu0 %v10478_v22 }
0x235a   : > { %11657 = vmatpush3.msra.mxu0 %v10478_v22  ;;  %v10487_v22 = vld [vmem:[%s12919_s12 + $0x2] ss:$0 sm:$0xff] }
0x235b   : > { %11658 = vmatprep.subr.mxu0 %v10477_v23 }
0x235c   : > { %11659 = vmatpush3.msra.mxu0 %v10477_v23 }
0x235d   : > { %11674 = vmatprep.subr.mxu0 %v10512_v16 }
0x2415   : > { %v11651_v24 = vpop.f32.mrf.mxu0 }
0x2416   : > { %5141 = vrot.lane.b32.xlu1 %v11651_v24, %s14262_s22  ;;  %v10488_v24 = vld [vmem:[%s12925_s15 + $0x2] ss:$0 sm:$0xff] }
0x2417   : > { %v5112_v25 = vpop.f32.mrf.mxu0 }
0x2418   : > { %5139 = vrot.lane.b32.xlu0 %v5112_v25, %s14262_s22 }
0x2488   : > { %v5142_v45 = vpop.permute.xlu1 %5141 }
0x2489   : > { %v5150_v56 = vsel %vm2176_vm3, %v5148_v51, %v5142_v45  ;;  %v10500_v45 = vld [vmem:[%s12900_s7 + $0x118] sm:$0xff]  ;;  %v10494_v51 = vld [vmem:[%s12941_s1 + $0x2] ss:$0 sm:$0xff] }
0x248a   : > { %v5140_v36 = vpop.permute.xlu0 %5139 }
0x248b   : > { %v5149_v29 = vsel %vm2176_vm3, %v5147_v50, %v5140_v36  ;;  %v10498_v50 = vld [vmem:[%s12900_s7 + $0x108] sm:$0xff]  ;;  %v10497_v36 = vld [vmem:[%s12900_s7 + $0x100] sm:$0xff] }
0x248c   : > { %11660 = vmatprep.mubr.msk.f32.mxu0 %vm1008_vm0, %v5149_v29 }
0x248d   : > { %11661 = vmatmul.mubr.msk.f32.vlgmr.msra.gmra.mxu0 %vm1008_vm0, %v5150_v56 }
0x248e   : > { %11675 = vmatpush3.msra.mxu0 %v10512_v16  ;;  %v10522_v16 = vld [vmem:[%s12593_s3 + $0x78] sm:$0xff] }
0x248f   : > { %11676 = vmatprep.subr.mxu0 %v10511_v26  ;;  %11709 = vmatprep.subr.mxu1 %v10522_v16 }
0x2490   : > { %11677 = vmatpush3.msra.mxu0 %v10511_v26  ;;  %v10521_v26 = vld [vmem:[%s12593_s3 + $0x70] sm:$0xff] }
0x2491   : > { %11678 = vmatprep.subr.mxu0 %v10510_v53 }
0x2492   : > { %11679 = vmatpush3.msra.mxu0 %v10510_v53  ;;  %v10520_v53 = vld [vmem:[%s12593_s3 + $0x68] sm:$0xff] }
0x2493   : > { %11680 = vmatprep.subr.mxu0 %v10509_v55 }
0x2494   : > { %11681 = vmatpush3.msra.mxu0 %v10509_v55  ;;  %v10519_v55 = vld [vmem:[%s12593_s3 + $0x60] sm:$0xff] }
0x2495   : > { %11682 = vmatprep.subr.mxu0 %v10508_v2 }
0x2496   : > { %11683 = vmatpush3.msra.mxu0 %v10508_v2  ;;  %v10530_v2 = vld [vmem:[%s12602_s0 + $0x78] sm:$0xff] }
0x2497   : > { %11684 = vmatprep.subr.mxu0 %v10507_v58 }
0x2498   : > { %11685 = vmatpush3.msra.mxu0 %v10507_v58 }
0x2499   : > { %11686 = vmatprep.subr.mxu0 %v10506_v0 }
0x249a   : > { %11687 = vmatpush3.msra.mxu0 %v10506_v0 }
0x249b   : > { %11688 = vmatprep.subr.mxu0 %v10505_v63 }
0x249c   : > { %11689 = vmatpush3.msra.mxu0 %v10505_v63 }
0x249d   : > { %11690 = vmatprep.subr.mxu0 %v10504_v5 }
0x249e   : > { %11691 = vmatpush3.msra.mxu0 %v10504_v5 }
0x249f   : > { %11692 = vmatprep.subr.mxu0 %v10503_v54 }
0x24a0   : > { %11693 = vmatpush3.msra.mxu0 %v10503_v54 }
0x24a1   : > { %11694 = vmatprep.subr.mxu0 %v10502_v57 }
0x24a2   : > { %11695 = vmatpush3.msra.mxu0 %v10502_v57 }
0x24a3   : > { %11696 = vmatprep.subr.mxu0 %v10501_v10 }
0x24a4   : > { %11697 = vmatpush3.msra.mxu0 %v10501_v10 }
0x24a5   : > { %11698 = vmatprep.subr.mxu0 %v10500_v45 }
0x24a6   : > { %11699 = vmatpush3.msra.mxu0 %v10500_v45 }
0x24a7   : > { %11700 = vmatprep.subr.mxu0 %v10499_v48 }
0x24a8   : > { %11701 = vmatpush3.msra.mxu0 %v10499_v48  ;;  %v10524_v48 = vld [vmem:[%s12681_s26 + $0x3] ss:$0 sm:$0xff] }
0x24a9   : > { %11702 = vmatprep.subr.mxu0 %v10498_v50 }
0x24aa   : > { %11703 = vmatpush3.msra.mxu0 %v10498_v50 }
0x24ab   : > { %11704 = vmatprep.subr.mxu0 %v10497_v36 }
0x24ac   : > { %11705 = vmatpush3.msra.mxu0 %v10497_v36 }
0x254d   : > { %v11662_v62 = vpop.f32.mrf.mxu0 }
0x254e   : > { %v5242_v49 = vadd.f32 %v11662_v62, %v10482_v37 }
0x254f   : > { %v5236_v59 = vpop.f32.mrf.mxu0 }
0x2550   : > { %v13385_v38 = vadd.f32 %v5242_v49, %v13199_v4  ;;  %v5237_v9 = vadd.f32 %v10482_v37, %v5236_v59 }
0x2552   : > { %v13388_v1 = vadd.f32 %v5237_v9, %v13202_v15  ;;  %v5254_v28 = vsel %vm1008_vm0, %v13385_v38, 0.0  ;;  %v10514_v9 = vld [vmem:[%s12948_s14 + $0x2] ss:$0 sm:$0xff] }
0x2553   : > { %5255 = vadd.xlane.f32.xlu1 %v5254_v28 }
0x2554   : > { %v5251_v3 = vsel %vm1008_vm0, %v13388_v1, 0.0 }
0x2555   : > { %5252 = vadd.xlane.f32.xlu0 %v5251_v3 }
0x25dc   : > { %v5256_v44 = vpop.xlane.xlu1 %5255 }
0x25dd   : > { %v5258_v39 = vmul.f32 0.03125, %v5256_v44 }
0x25de   : > { %v5253_v40 = vpop.xlane.xlu0 %5252 }
0x25df   : > { %v5257_v4 = vmul.f32 0.03125, %v5253_v40  ;;  %v13395_v41 = vsub.f32 %v13385_v38, %v5258_v39 }
0x25e1   : > { %v13398_v15 = vsub.f32 %v13388_v1, %v5257_v4  ;;  %v5262_v8 = vmul.f32 %v13395_v41, %v13395_v41 }
0x25e3   : > { %v5261_v43 = vmul.f32 %v13398_v15, %v13398_v15  ;;  %v5266_v20 = vsel %vm1008_vm0, %v5262_v8, 0.0 }
0x25e5   : > { %v5263_v7 = vsel %vm1008_vm0, %v5261_v43, 0.0 }
0x25e6   : > { %5264 = vadd.xlane.f32.xlu0 %v5263_v7 }
0x25ea   : > { %5267 = vadd.xlane.f32.xlu0 %v5266_v20 }
0x266f   : > { %v5265_v61 = vpop.xlane.xlu0 %5264 }
0x2670   : > { %v5269_v46 = vmul.f32 0.03125, %v5265_v61 }
0x2672   : > { %v5271_v11 = vadd.f32 1e-05, %v5269_v46 }
0x2673   : > { %v5268_v12 = vpop.xlane.xlu0 %5267 }
0x2674   : > { %12284 = vrsqrt.f32 %v5271_v11  ;;  %v5270_v60 = vmul.f32 0.03125, %v5268_v12  ;;  %v12415_v12 = vld [vmem:[%s12613_s23 + $0x3] ss:$0 sm:$0xff] }
0x2676   : > { %v5272_v13 = vadd.f32 1e-05, %v5270_v60 }
0x2678   : > { %12286 = vrsqrt.f32 %v5272_v13 }
0x2681   : > { %v12285_v21 = vpop.eup %12284 }
0x2682   : > { %v5275_v23 = vmul.f32 %v12285_v21, %v13398_v15  ;;  %v12416_v21 = vld [vmem:[%s12619_s28 + $0x3] ss:$0 sm:$0xff] }
0x2684   : > { %v5283_v25 = vmul.f32 %v10487_v22, %v5275_v23 }
0x2685   : > { %v12287_v27 = vpop.eup %12286 }
0x2686   : > { %v5276_v6 = vmul.f32 %v12287_v27, %v13395_v41  ;;  %v5291_v33 = vadd.f32 %v10488_v24, %v5283_v25  ;;  %v10528_v25 = vld [vmem:[%s12602_s0 + $0x68] sm:$0xff]  ;;  %v10527_v27 = vld [vmem:[%s12602_s0 + $0x60] sm:$0xff] }
0x2688   : > { %v5284_v34 = vmul.f32 %v10487_v22, %v5276_v6  ;;  %11671 = vmatprep.mubr.msk.f32.mxu1 %vm1008_vm0, %v5291_v33  ;;  %v10538_v6 = vld [vmem:[%s12656_s5 + $0x78] sm:$0xff]  ;;  %v10537_v33 = vld [vmem:[%s12656_s5 + $0x70] sm:$0xff] }
0x268a   : > { %v5292_v35 = vadd.f32 %v10488_v24, %v5284_v34  ;;  %v10529_v24 = vld [vmem:[%s12602_s0 + $0x70] sm:$0xff]  ;;  %v10536_v34 = vld [vmem:[%s12656_s5 + $0x68] sm:$0xff] }
0x268c   : > { %11672 = vmatmul.mubr.msk.f32.vlgmr.msra.gmra.mxu1 %vm1008_vm0, %v5292_v35  ;;  %v10535_v35 = vld [vmem:[%s12656_s5 + $0x60] sm:$0xff] }
0x268d   : > { %11710 = vmatpush3.msra.mxu1 %v10522_v16 }
0x268e   : > { %11711 = vmatprep.subr.mxu1 %v10521_v26 }
0x268f   : > { %11712 = vmatpush3.msra.mxu1 %v10521_v26 }
0x2690   : > { %11713 = vmatprep.subr.mxu1 %v10520_v53 }
0x2691   : > { %11714 = vmatpush3.msra.mxu1 %v10520_v53 }
0x2692   : > { %11715 = vmatprep.subr.mxu1 %v10519_v55 }
0x2693   : > { %11716 = vmatpush3.msra.mxu1 %v10519_v55 }
0x2694   : > { %11720 = vmatprep.subr.mxu1 %v10530_v2 }
0x274c   : > { %v11673_v29 = vpop.f32.mrf.mxu1 }
0x274d   : > { %v5384_v56 = vadd.f32 %v11673_v29, %v10494_v51  ;;  %v10532_v29 = vld [vmem:[%s12688_s30 + $0x3] ss:$0 sm:$0xff] }
0x274e   : > { %v5378_v37 = vpop.f32.mrf.mxu1 }
0x274f   : > { %v5379_v62 = vadd.f32 %v10494_v51, %v5378_v37  ;;  %v5388_v59 = vmax.f32 %v5384_v56, 0.0 }
0x2751   : > { %v5387_v49 = vmax.f32 %v5379_v62, 0.0 }
0x2753   : > { %11706 = vmatprep.mubr.f32.mxu0 %v5387_v49  ;;  %v10540_v49 = vld [vmem:[%s12709_s27 + $0x3] ss:$0 sm:$0xff] }
0x2754   : > { %11707 = vmatmul.mubr.f32.vlgmr.msra.gmra.mxu0 %v5388_v59 }
0x2814   : > { %v11708_v28 = vpop.f32.mrf.mxu0 }
0x2815   : > { %v5486_v3 = vadd.f32 %v11708_v28, %v10514_v9 }
0x2816   : > { %v5480_v44 = vpop.f32.mrf.mxu0 }
0x2817   : > { %v13435_v39 = vadd.f32 %v5486_v3, %v13385_v38  ;;  %v5481_v40 = vadd.f32 %v10514_v9, %v5480_v44 }
0x2819   : > { %v13438_v4 = vadd.f32 %v5481_v40, %v13388_v1  ;;  %v5498_v41 = vsel %vm1008_vm0, %v13435_v39, 0.0 }
0x281a   : > { %5499 = vadd.xlane.f32.xlu1 %v5498_v41 }
0x281b   : > { %v5495_v15 = vsel %vm1008_vm0, %v13438_v4, 0.0 }
0x281c   : > { %5496 = vadd.xlane.f32.xlu0 %v5495_v15 }
0x28a3   : > { %v5500_v43 = vpop.xlane.xlu1 %5499 }
0x28a4   : > { %v5502_v7 = vmul.f32 0.03125, %v5500_v43 }
0x28a5   : > { %v5497_v8 = vpop.xlane.xlu0 %5496 }
0x28a6   : > { %v5504_v38 = vsub.f32 %v13435_v39, %v5502_v7  ;;  %v5501_v20 = vmul.f32 0.03125, %v5497_v8  ;;  %v13520_v8 = vld [vmem:[%s14248_s24 + $0x8] sm:$0xff] }
0x28a8   : > { %v5503_v1 = vsub.f32 %v13438_v4, %v5501_v20  ;;  %v5506_v42 = vmul.f32 %v5504_v38, %v5504_v38 }
0x28aa   : > { %v5510_v14 = vsel %vm1008_vm0, %v5506_v42, 0.0  ;;  %v5505_v47 = vmul.f32 %v5503_v1, %v5503_v1 }
0x28ab   : > { %5511 = vadd.xlane.f32.xlu1 %v5510_v14 }
0x28ac   : > { %v5507_v52 = vsel %vm1008_vm0, %v5505_v47, 0.0 }
0x28ad   : > { %5508 = vadd.xlane.f32.xlu0 %v5507_v52 }
0x2934   : > { %v5512_v58 = vpop.xlane.xlu1 %5511 }
0x2935   : > { %v5514_v0 = vmul.f32 0.03125, %v5512_v58 }
0x2936   : > { %v5509_v63 = vpop.xlane.xlu0 %5508 }
0x2937   : > { %v5516_v5 = vadd.f32 1e-05, %v5514_v0  ;;  %v5513_v54 = vmul.f32 0.03125, %v5509_v63 }
0x2939   : > { %12288 = vrsqrt.f32 %v5516_v5  ;;  %v5515_v57 = vadd.f32 1e-05, %v5513_v54 }
0x293b   : > { %12290 = vrsqrt.f32 %v5515_v57 }
0x2946   : > { %v12289_v10 = vpop.eup %12288 }
0x2947   : > { %v5520_v61 = vmul.f32 %v12289_v10, %v5504_v38 }
0x2948   : > { %v12291_v46 = vpop.eup %12290 }
0x2949   : > { %v5519_v11 = vmul.f32 %v12291_v46, %v5503_v1  ;;  %v5528_v60 = vmul.f32 %v12415_v12, %v5520_v61  ;;  %v13526_v1 = vld [vmem:[%s14248_s24] sm:$0xff] }
0x294b   : > { %v5527_v13 = vmul.f32 %v12415_v12, %v5519_v11  ;;  %v5536_v22 = vadd.f32 %v12416_v21, %v5528_v60 }
0x294d   : > { %v5535_v23 = vadd.f32 %v12416_v21, %v5527_v13 }
0x294f   : > { %11717 = vmatprep.mubr.msk.f32.mxu1 %vm1008_vm0, %v5535_v23 }
0x2950   : > { %11718 = vmatmul.mubr.msk.f32.vlgmr.msra.gmra.mxu1 %vm1008_vm0, %v5536_v22 }
0x2951   : > { %11721 = vmatpush3.msra.mxu1 %v10530_v2  ;;  %11728 = vmatprep.mubr.msk.f32.mxu1 %vm1008_vm0, %v12644_v17 }
0x2952   : > { %11722 = vmatprep.subr.mxu1 %v10529_v24 }
0x2953   : > { %11723 = vmatpush3.msra.mxu1 %v10529_v24 }
0x2954   : > { %11724 = vmatprep.subr.mxu1 %v10528_v25 }
0x2955   : > { %11725 = vmatpush3.msra.mxu1 %v10528_v25 }
0x2956   : > { %11726 = vmatprep.subr.mxu1 %v10527_v27 }
0x2957   : > { %11727 = vmatpush3.msra.mxu1 %v10527_v27 }
0x2958   : > { %11729 = vmatmul.mubr.msk.f32.vlgmr.msra.gmra.mxu1 %vm1008_vm0, %v12664_v30  ;;  %11731 = vmatprep.subr.mxu1 %v10538_v6 }
0x2959   : > { %11732 = vmatpush3.msra.mxu1 %v10538_v6  ;;  %11739 = vmatprep.mubr.msk.f32.mxu1 %vm1008_vm0, %v12644_v17 }
0x295a   : > { %11733 = vmatprep.subr.mxu1 %v10537_v33 }
0x295b   : > { %11734 = vmatpush3.msra.mxu1 %v10537_v33 }
0x295c   : > { %11735 = vmatprep.subr.mxu1 %v10536_v34 }
0x295d   : > { %11736 = vmatpush3.msra.mxu1 %v10536_v34 }
0x295e   : > { %11737 = vmatprep.subr.mxu1 %v10535_v35 }
0x295f   : > { %11738 = vmatpush3.msra.mxu1 %v10535_v35 }
0x2960   : > { %11740 = vmatmul.mubr.msk.f32.vlgmr.msra.gmra.mxu1 %vm1008_vm0, %v12664_v30 }
0x2a10   : > { %v11719_v45 = vpop.f32.mrf.mxu1 }
0x2a11   : > { %v5632_v62 = vadd.f32 %v11719_v45, %v10524_v48 }
0x2a12   : > { %v5626_v50 = vpop.f32.mrf.mxu1 }
0x2a13   : > { %v5627_v36 = vadd.f32 %v10524_v48, %v5626_v50  ;;  %v13495_v59 = vmul.f32 0.35355338, %v5632_v62 }
0x2a15   : > { %v13473_v51 = vmul.f32 0.35355338, %v5627_v36 }
0x2a17   : > { %6009 = vrot.lane.b32.xlu1 %v13473_v51, %s14249_s6  ;;  %11746 = vmatprep.mubr.msk.f32.mxu1 %vm1354_vm1, %v13473_v51 }
0x2a18   : > { %v11730_v17 = vpop.f32.mrf.mxu1 }
0x2a19   : > { %v13480_v56 = vadd.f32 %v11730_v17, %v10532_v29 }
0x2a1a   : > { %v5722_v37 = vpop.f32.mrf.mxu1 }
0x2a1b   : > { %v13482_v30 = vadd.f32 %v10532_v29, %v5722_v37  ;;  %6015 = vrot.lane.b32.xlu0 %v13480_v56, %s14249_s6  ;;  %11742 = vmatprep.subr.msk.mxu1 %vm1354_vm1, %v13480_v56 }
0x2a1c   : > { %11743 = vmatpush3.xpose.msk.msra.mxu1 %vm1354_vm1, %v13480_v56 }
0x2a1d   : > { %11744 = vmatprep.subr.msk.mxu1 %vm1354_vm1, %v13482_v30  ;;  %6013 = vrot.lane.b32.xlu1 %v13482_v30, %s14249_s6 }
0x2a20   : > { %v11741_v9 = vpop.f32.mrf.mxu1  ;;  %11745 = vmatpush3.xpose.msk.msra.mxu1 %vm1354_vm1, %v13482_v30 }
0x2a21   : > { %v13499_v28 = vadd.f32 %v11741_v9, %v10540_v49  ;;  %6011 = vrot.lane.b32.xlu1 %v13495_v59, %s14249_s6 }
0x2a22   : > { %v5810_v3 = vpop.f32.mrf.mxu1 }
0x2a23   : > { %v13503_v44 = vadd.f32 %v10540_v49, %v5810_v3  ;;  %11747 = vmatmul.mubr.msk.f32.vlgmr.msra.gmra.mxu1 %vm1354_vm1, %v13495_v59  ;;  %11749 = vmatprep.subr.mxu0 %v13499_v28 }
0x2a24   : > { %11750 = vmatpush3.msra.mxu0 %v13499_v28 }
0x2a25   : > { %11751 = vmatprep.subr.mxu0 %v13503_v44 }
0x2a26   : > { %11752 = vmatpush3.msra.mxu0 %v13503_v44 }
0x2a89   : > { %v6010_v40 = vpop.permute.xlu1 %6009 }
0x2a8a   : > { %11760 = vmatprep.mubr.msk.f32.mxu1 %vm1354_vm1, %v6010_v40 }
0x2a8d   : > { %v6016_v41 = vpop.permute.xlu0 %6015 }
0x2a8e   : > { %11756 = vmatprep.subr.msk.mxu1 %vm1354_vm1, %v6016_v41 }
0x2a8f   : > { %v6014_v15 = vpop.permute.xlu1 %6013  ;;  %11757 = vmatpush3.xpose.msk.msra.mxu1 %vm1354_vm1, %v6016_v41 }
0x2a90   : > { %11758 = vmatprep.subr.msk.mxu1 %vm1354_vm1, %v6014_v15 }
0x2a93   : > { %11759 = vmatpush3.xpose.msk.msra.mxu1 %vm1354_vm1, %v6014_v15  ;;  %v6012_v43 = vpop.permute.xlu1 %6011 }
0x2a96   : > { %11761 = vmatmul.mubr.msk.f32.vlgmr.msra.gmra.mxu1 %vm1354_vm1, %v6012_v43 }
0x2ae3   : > { %v11748_v7 = vpop.f32.mrf.mxu1 }
0x2ae4   : > { %v5903_v38 = vadd.f32 %v13520_v8, %v11748_v7 }
0x2ae5   : > { %v5897_v20 = vpop.f32.mrf.mxu1 }
0x2ae6   : > { %v5898_v42 = vadd.f32 %v13526_v1, %v5897_v20  ;;  %v5909_v14 = vsel %vm1442_vm2, %v5903_v38, -inf }
0x2ae7   : > { %5910 = vmax.xlane.f32.xlu1 %v5909_v14 }
0x2ae8   : > { %v5906_v47 = vsel %vm1442_vm2, %v5898_v42, -inf }
0x2ae9   : > { %5907 = vmax.xlane.f32.xlu0 %v5906_v47 }
0x2b56   : > { %v11762_v52 = vpop.f32.mrf.mxu1 }
0x2b57   : > { %v6097_v53 = vadd.f32 %v13520_v8, %v11762_v52 }
0x2b58   : > { %v6091_v16 = vpop.f32.mrf.mxu1 }
0x2b59   : > { %v6092_v26 = vadd.f32 %v13526_v1, %v6091_v16  ;;  %v6103_v2 = vsel %vm1442_vm2, %v6097_v53, -inf }
0x2b5b   : > { %v6100_v55 = vsel %vm1442_vm2, %v6092_v26, -inf }
0x2b5c   : > { %6101 = vmax.xlane.f32.xlu0 %v6100_v55 }
0x2b60   : > { %6104 = vmax.xlane.f32.xlu0 %v6103_v2 }
0x2b70   : > { %v5911_v58 = vpop.xlane.xlu1 %5910 }
0x2b71   : > { %v5913_v0 = vsub.f32 %v5903_v38, %v5911_v58 }
0x2b72   : > { %v5908_v63 = vpop.xlane.xlu0 %5907 }
0x2b73   : > { %v5916_v5 = vmul.f32 1.442695, %v5913_v0  ;;  %v5912_v54 = vsub.f32 %v5898_v42, %v5908_v63 }
0x2b75   : > { %12292 = vpow2.f32 %v5916_v5  ;;  %v5914_v57 = vmul.f32 1.442695, %v5912_v54 }
0x2b77   : > { %12294 = vpow2.f32 %v5914_v57 }
0x2b82   : > { %v12293_v10 = vpop.eup %12292 }
0x2b83   : > { %v5921_v61 = vsel %vm1442_vm2, %v12293_v10, 0.0 }
0x2b84   : > { %v12295_v46 = vpop.eup %12294  ;;  %5922 = vadd.xlane.f32.xlu1 %v5921_v61 }
0x2b85   : > { %v5918_v11 = vsel %vm1442_vm2, %v12295_v46, 0.0 }
0x2b86   : > { %5919 = vadd.xlane.f32.xlu0 %v5918_v11 }
0x2be5   : > { %v6102_v12 = vpop.xlane.xlu0 %6101 }
0x2be6   : > { %v6106_v60 = vsub.f32 %v6092_v26, %v6102_v12 }
0x2be8   : > { %v6108_v13 = vmul.f32 1.442695, %v6106_v60 }
0x2be9   : > { %v6105_v21 = vpop.xlane.xlu0 %6104 }
0x2bea   : > { %12296 = vpow2.f32 %v6108_v13  ;;  %v6107_v22 = vsub.f32 %v6097_v53, %v6105_v21 }
0x2bec   : > { %v6110_v23 = vmul.f32 1.442695, %v6107_v22 }
0x2bee   : > { %12298 = vpow2.f32 %v6110_v23 }
0x2bf7   : > { %v12297_v24 = vpop.eup %12296 }
0x2bf8   : > { %v6112_v25 = vsel %vm1442_vm2, %v12297_v24, 0.0 }
0x2bf9   : > { %6113 = vadd.xlane.f32.xlu0 %v6112_v25 }
0x2bfb   : > { %v12299_v27 = vpop.eup %12298 }
0x2bfc   : > { %v6115_v6 = vsel %vm1442_vm2, %v12299_v27, 0.0 }
0x2bfd   : > { %6116 = vadd.xlane.f32.xlu1 %v6115_v6 }
0x2c0d   : > { %v5923_v33 = vpop.xlane.xlu1 %5922 }
0x2c0e   : > { %6124 = vrot.lane.b32.xlu1 %v13503_v44, %s14249_s6  ;;  %12300 = vrcp.f32 %v5923_v33 }
0x2c0f   : > { %6126 = vrot.lane.b32.xlu0 %v13499_v28, %s14249_s6  ;;  %v5920_v34 = vpop.xlane.xlu0 %5919 }
0x2c10   : > { %12302 = vrcp.f32 %v5920_v34 }
0x2c12   : > { %6217 = vrot.lane.b32.xlu1 %v13480_v56, %s14258_s13 }
0x2c13   : > { %6211 = vrot.lane.b32.xlu0 %v13473_v51, %s14258_s13 }
0x2c16   : > { %6215 = vrot.lane.b32.xlu1 %v13482_v30, %s14258_s13 }
0x2c1a   : > { %6213 = vrot.lane.b32.xlu1 %v13495_v59, %s14258_s13 }
0x2c1b   : > { %v12301_v35 = vpop.eup %12300 }
0x2c1c   : > { %v5927_v50 = vmul.f32 %v12301_v35, %v12293_v10 }
0x2c1d   : > { %v12303_v45 = vpop.eup %12302 }
0x2c1e   : > { %v5926_v48 = vmul.f32 %v12303_v45, %v12295_v46 }
0x2c20   : > { %11753 = vmatprep.mubr.msk.f32.mxu0 %vm1442_vm2, %v5926_v48 }
0x2c21   : > { %11754 = vmatmul.mubr.msk.f32.vlgmr.msra.gmra.mxu0 %vm1442_vm2, %v5927_v50 }
0x2c82   : > { %v6114_v36 = vpop.xlane.xlu0 %6113 }
0x2c83   : > { %12304 = vrcp.f32 %v6114_v36 }
0x2c86   : > { %v6117_v29 = vpop.xlane.xlu1 %6116  ;;  %v6127_v17 = vpop.permute.xlu0 %6126 }
0x2c87   : > { %12306 = vrcp.f32 %v6117_v29  ;;  %11763 = vmatprep.subr.mxu0 %v6127_v17 }
0x2c88   : > { %11764 = vmatpush3.msra.mxu0 %v6127_v17 }
0x2c8a   : > { %v6125_v37 = vpop.permute.xlu1 %6124  ;;  %v6212_v41 = vpop.permute.xlu0 %6211 }
0x2c8b   : > { %11765 = vmatprep.subr.mxu0 %v6125_v37 }
0x2c8c   : > { %11766 = vmatpush3.msra.mxu0 %v6125_v37 }
0x2c8e   : > { %v6218_v62 = vpop.permute.xlu1 %6217 }
0x2c8f   : > { %11770 = vmatprep.subr.msk.mxu0 %vm1354_vm1, %v6218_v62 }
0x2c90   : > { %v12305_v49 = vpop.eup %12304 }
0x2c91   : > { %v6120_v9 = vmul.f32 %v12305_v49, %v12297_v24 }
0x2c92   : > { %v6216_v15 = vpop.permute.xlu1 %6215 }
0x2c93   : > { %11767 = vmatprep.mubr.msk.f32.mxu0 %vm1442_vm2, %v6120_v9 }
0x2c94   : > { %v12307_v3 = vpop.eup %12306 }
0x2c95   : > { %v6121_v40 = vmul.f32 %v12307_v3, %v12299_v27 }
0x2c96   : > { %v6214_v43 = vpop.permute.xlu1 %6213 }
0x2c97   : > { %11768 = vmatmul.mubr.msk.f32.vlgmr.msra.gmra.mxu0 %vm1442_vm2, %v6121_v40 }
0x2c98   : > { %11771 = vmatpush3.xpose.msk.msra.mxu0 %vm1354_vm1, %v6218_v62  ;;  %11774 = vmatprep.mubr.msk.f32.mxu0 %vm1354_vm1, %v6212_v41 }
0x2c99   : > { %11772 = vmatprep.subr.msk.mxu0 %vm1354_vm1, %v6216_v15 }
0x2c9c   : > { %11773 = vmatpush3.xpose.msk.msra.mxu0 %vm1354_vm1, %v6216_v15 }
0x2c9f   : > { %11775 = vmatmul.mubr.msk.f32.vlgmr.msra.gmra.mxu0 %vm1354_vm1, %v6214_v43 }
0x2ce1   : > { %v13561_v7 = vpop.f32.mrf.mxu0 }
0x2ce3   : > { %v13563_v38 = vpop.f32.mrf.mxu0 }
0x2d57   : > { %v13565_v20 = vpop.f32.mrf.mxu0 }
0x2d59   : > { %v13567_v42 = vpop.f32.mrf.mxu0 }
0x2d5f   : > { %v11776_v14 = vpop.f32.mrf.mxu0 }
0x2d60   : > { %v6299_v47 = vadd.f32 %v13520_v8, %v11776_v14  ;;  %v10570_v14 = vld [vmem:[%s12840_s29 + $0x78] sm:$0xff] }
0x2d61   : > { %v6293_v52 = vpop.f32.mrf.mxu0 }
0x2d62   : > { %v6294_v16 = vadd.f32 %v13526_v1, %v6293_v52  ;;  %v6305_v26 = vsel %vm1442_vm2, %v6299_v47, -inf  ;;  %v10568_v52 = vld [vmem:[%s12840_s29 + $0x68] sm:$0xff] }
0x2d63   : > { %6306 = vmax.xlane.f32.xlu1 %v6305_v26 }
0x2d64   : > { %v6302_v53 = vsel %vm1442_vm2, %v6294_v16, -inf }
0x2d65   : > { %6303 = vmax.xlane.f32.xlu0 %v6302_v53 }
0x2d74   : > { %6324 = vrot.lane.b32.xlu1 %v13503_v44, %s14258_s13 }
0x2d78   : > { %6417 = vrot.lane.b32.xlu1 %v13480_v56, %s14259_s4 }
0x2d7c   : > { %6415 = vrot.lane.b32.xlu1 %v13482_v30, %s14259_s4 }
0x2d80   : > { %6413 = vrot.lane.b32.xlu1 %v13495_v59, %s14259_s4 }
0x2dec   : > { %v6307_v55 = vpop.xlane.xlu1 %6306 }
0x2ded   : > { %v6309_v2 = vsub.f32 %v6299_v47, %v6307_v55  ;;  %v10569_v47 = vld [vmem:[%s12840_s29 + $0x70] sm:$0xff] }
0x2dee   : > { %v6304_v58 = vpop.xlane.xlu0 %6303 }
0x2def   : > { %v6312_v0 = vmul.f32 1.442695, %v6309_v2  ;;  %v6308_v63 = vsub.f32 %v6294_v16, %v6304_v58  ;;  %v10567_v16 = vld [vmem:[%s12840_s29 + $0x60] sm:$0xff] }
0x2df0   : > { %v6325_v61 = vpop.permute.xlu1 %6324 }
0x2df1   : > { %12308 = vpow2.f32 %v6312_v0  ;;  %v6310_v5 = vmul.f32 1.442695, %v6308_v63 }
0x2df3   : > { %12310 = vpow2.f32 %v6310_v5 }
0x2df4   : > { %v6418_v11 = vpop.permute.xlu1 %6417 }
0x2df8   : > { %v6416_v22 = vpop.permute.xlu1 %6415 }
0x2dfc   : > { %v6414_v23 = vpop.permute.xlu1 %6413 }
0x2dfe   : > { %v12309_v54 = vpop.eup %12308 }
0x2dff   : > { %v6317_v57 = vsel %vm1442_vm2, %v12309_v54, 0.0 }
0x2e00   : > { %v12311_v10 = vpop.eup %12310  ;;  %6318 = vadd.xlane.f32.xlu0 %v6317_v57 }
0x2e01   : > { %v6314_v56 = vsel %vm1442_vm2, %v12311_v10, 0.0 }
0x2e04   : > { %6315 = vadd.xlane.f32.xlu0 %v6314_v56 }
0x2e1a   : > { %6326 = vrot.lane.b32.xlu0 %v13499_v28, %s14258_s13 }
0x2e1e   : > { %6411 = vrot.lane.b32.xlu0 %v13473_v51, %s14259_s4 }
0x2e89   : > { %v6319_v30 = vpop.xlane.xlu0 %6318 }
0x2e8a   : > { %12312 = vrcp.f32 %v6319_v30 }
0x2e8d   : > { %v6316_v59 = vpop.xlane.xlu0 %6315 }
0x2e8e   : > { %12314 = vrcp.f32 %v6316_v59 }
0x2e91   : > { %v6327_v46 = vpop.permute.xlu0 %6326 }
0x2e92   : > { %11777 = vmatprep.subr.mxu1 %v6327_v46 }
0x2e93   : > { %11778 = vmatpush3.msra.mxu1 %v6327_v46 }
0x2e94   : > { %11779 = vmatprep.subr.mxu1 %v6325_v61 }
0x2e95   : > { %11780 = vmatpush3.msra.mxu1 %v6325_v61  ;;  %v6412_v51 = vpop.permute.xlu0 %6411  ;;  %v10572_v61 = vld [vmem:[%s12862_s8 + $0x3] ss:$0 sm:$0xff] }
0x2e96   : > { %11784 = vmatprep.subr.msk.mxu1 %vm1354_vm1, %v6418_v11 }
0x2e97   : > { %v12313_v12 = vpop.eup %12312 }
0x2e98   : > { %v6323_v21 = vmul.f32 %v12313_v12, %v12309_v54 }
0x2e9b   : > { %v12315_v60 = vpop.eup %12314 }
0x2e9c   : > { %v6322_v13 = vmul.f32 %v12315_v60, %v12311_v10 }
0x2e9e   : > { %11781 = vmatprep.mubr.msk.f32.mxu1 %vm1442_vm2, %v6322_v13 }
0x2e9f   : > { %11782 = vmatmul.mubr.msk.f32.vlgmr.msra.gmra.mxu1 %vm1442_vm2, %v6323_v21 }
0x2ea0   : > { %11785 = vmatpush3.xpose.msk.msra.mxu1 %vm1354_vm1, %v6418_v11  ;;  %11788 = vmatprep.mubr.msk.f32.mxu1 %vm1354_vm1, %v6412_v51 }
0x2ea1   : > { %11786 = vmatprep.subr.msk.mxu1 %vm1354_vm1, %v6416_v22 }
0x2ea4   : > { %11787 = vmatpush3.xpose.msk.msra.mxu1 %vm1354_vm1, %v6416_v22 }
0x2ea7   : > { %11789 = vmatmul.mubr.msk.f32.vlgmr.msra.gmra.mxu1 %vm1354_vm1, %v6414_v23 }
0x2f5f   : > { %v11783_v24 = vpop.f32.mrf.mxu1 }
0x2f61   : > { %v6402_v25 = vpop.f32.mrf.mxu1 }
0x2f67   : > { %v11790_v27 = vpop.f32.mrf.mxu1 }
0x2f68   : > { %v6499_v6 = vadd.f32 %v13520_v8, %v11790_v27 }
0x2f69   : > { %v6493_v33 = vpop.f32.mrf.mxu1 }
0x2f6a   : > { %v6494_v34 = vadd.f32 %v13526_v1, %v6493_v33  ;;  %v6505_v35 = vsel %vm1442_vm2, %v6499_v6, -inf }
0x2f6b   : > { %6506 = vmax.xlane.f32.xlu1 %v6505_v35  ;;  %v10581_v35 = vld [vmem:[%s12891_s9 + $0x70] sm:$0xff] }
0x2f6c   : > { %v6502_v45 = vsel %vm1442_vm2, %v6494_v34, -inf }
0x2f6d   : > { %6503 = vmax.xlane.f32.xlu0 %v6502_v45  ;;  %v10580_v45 = vld [vmem:[%s12891_s9 + $0x68] sm:$0xff] }
0x2f7c   : > { %6524 = vrot.lane.b32.xlu1 %v13503_v44, %s14259_s4 }
0x2f80   : > { %6613 = vrot.lane.b32.xlu1 %v13567_v42, %s14260_s10 }
0x2f84   : > { %6615 = vrot.lane.b32.xlu1 %v13565_v20, %s14260_s10 }
0x2f88   : > { %6623 = vrot.lane.b32.xlu1 %v11783_v24, %s14261_s11 }
0x2ff4   : > { %v6507_v48 = vpop.xlane.xlu1 %6506 }
0x2ff5   : > { %v6509_v50 = vsub.f32 %v6499_v6, %v6507_v48  ;;  %v10579_v48 = vld [vmem:[%s12891_s9 + $0x60] sm:$0xff] }
0x2ff6   : > { %v6504_v36 = vpop.xlane.xlu0 %6503 }
0x2ff7   : > { %v6512_v29 = vmul.f32 1.442695, %v6509_v50  ;;  %v6508_v17 = vsub.f32 %v6494_v34, %v6504_v36  ;;  %v10582_v34 = vld [vmem:[%s12891_s9 + $0x78] sm:$0xff]  ;;  %v10601_v36 = vld [vmem:[%s12900_s7 + $0x1f0] sm:$0xff] }
0x2ff8   : > { %v6525_v15 = vpop.permute.xlu1 %6524  ;;  %11809 = vmatprep.subr.mxu1 %v10582_v34  ;;  %v10602_v50 = vld [vmem:[%s12900_s7 + $0x1f8] sm:$0xff] }
0x2ff9   : > { %12316 = vpow2.f32 %v6512_v29  ;;  %v6510_v37 = vmul.f32 1.442695, %v6508_v17  ;;  %11810 = vmatpush3.msra.mxu1 %v10582_v34  ;;  %v10600_v29 = vld [vmem:[%s12900_s7 + $0x1e8] sm:$0xff]  ;;  %v10599_v17 = vld [vmem:[%s12900_s7 + $0x1e0] sm:$0xff] }
0x2ffa   : > { %11811 = vmatprep.subr.mxu1 %v10581_v35 }
0x2ffb   : > { %12318 = vpow2.f32 %v6510_v37  ;;  %11812 = vmatpush3.msra.mxu1 %v10581_v35  ;;  %v10598_v37 = vld [vmem:[%s12900_s7 + $0x1d8] sm:$0xff] }
0x2ffc   : > { %v6614_v55 = vpop.permute.xlu1 %6613  ;;  %11813 = vmatprep.subr.mxu1 %v10580_v45 }
0x2ffd   : > { %v6635_v63 = vsel %vm1354_vm1, %v13563_v38, %v6614_v55  ;;  %11814 = vmatpush3.msra.mxu1 %v10580_v45 }
0x2ffe   : > { %11815 = vmatprep.subr.mxu1 %v10579_v48 }
0x2fff   : > { %11816 = vmatpush3.msra.mxu1 %v10579_v48 }
0x3000   : > { %v6616_v2 = vpop.permute.xlu1 %6615 }
0x3001   : > { %v6636_v54 = vsel %vm1354_vm1, %v13561_v7, %v6616_v2 }
0x3004   : > { %v6624_v58 = vpop.permute.xlu1 %6623 }
0x3005   : > { %v6638_v56 = vsel %vm1442_vm2, %v6636_v54, %v6624_v58  ;;  %v10589_v54 = vld [vmem:[%s12900_s7 + $0x190] sm:$0xff] }
0x3006   : > { %v12317_v62 = vpop.eup %12316 }
0x3007   : > { %v6517_v49 = vsel %vm1442_vm2, %v12317_v62, 0.0 }
0x3008   : > { %v12319_v44 = vpop.eup %12318  ;;  %6518 = vadd.xlane.f32.xlu0 %v6517_v49  ;;  %v10596_v49 = vld [vmem:[%s12900_s7 + $0x1c8] sm:$0xff] }
0x3009   : > { %v6514_v9 = vsel %vm1442_vm2, %v12319_v44, 0.0 }
0x300c   : > { %6515 = vadd.xlane.f32.xlu0 %v6514_v9  ;;  %v10594_v9 = vld [vmem:[%s12900_s7 + $0x1b8] sm:$0xff] }
0x3022   : > { %6526 = vrot.lane.b32.xlu0 %v13499_v28, %s14259_s4 }
0x3026   : > { %6621 = vrot.lane.b32.xlu0 %v6402_v25, %s14261_s11 }
0x3091   : > { %v6519_v3 = vpop.xlane.xlu0 %6518 }
0x3092   : > { %12320 = vrcp.f32 %v6519_v3  ;;  %v10593_v3 = vld [vmem:[%s12900_s7 + $0x1b0] sm:$0xff] }
0x3095   : > { %v6516_v40 = vpop.xlane.xlu0 %6515 }
0x3096   : > { %12322 = vrcp.f32 %v6516_v40  ;;  %v10592_v40 = vld [vmem:[%s12900_s7 + $0x1a8] sm:$0xff] }
0x3099   : > { %v6527_v41 = vpop.permute.xlu0 %6526 }
0x309a   : > { %11791 = vmatprep.subr.mxu0 %v6527_v41 }
0x309b   : > { %11792 = vmatpush3.msra.mxu0 %v6527_v41  ;;  %v10591_v41 = vld [vmem:[%s12900_s7 + $0x1a0] sm:$0xff] }
0x309c   : > { %11793 = vmatprep.subr.mxu0 %v6525_v15 }
0x309d   : > { %11794 = vmatpush3.msra.mxu0 %v6525_v15  ;;  %v6622_v0 = vpop.permute.xlu0 %6621 }
0x309e   : > { %11798 = vmatprep.subr.mxu0 %v10570_v14  ;;  %v6637_v57 = vsel %vm1442_vm2, %v6635_v63, %v6622_v0 }
0x309f   : > { %v12321_v43 = vpop.eup %12320 }
0x30a0   : > { %v6523_v28 = vmul.f32 %v12321_v43, %v12317_v62  ;;  %v10597_v62 = vld [vmem:[%s12900_s7 + $0x1d0] sm:$0xff] }
0x30a3   : > { %v12323_v20 = vpop.eup %12322 }
0x30a4   : > { %v6522_v42 = vmul.f32 %v12323_v20, %v12319_v44  ;;  %v10595_v44 = vld [vmem:[%s12900_s7 + $0x1c0] sm:$0xff] }
0x30a6   : > { %11795 = vmatprep.mubr.msk.f32.mxu0 %vm1442_vm2, %v6522_v42 }
0x30a7   : > { %11796 = vmatmul.mubr.msk.f32.vlgmr.msra.gmra.mxu0 %vm1442_vm2, %v6523_v28 }
0x30a8   : > { %11799 = vmatpush3.msra.mxu0 %v10570_v14 }
0x30a9   : > { %11800 = vmatprep.subr.mxu0 %v10569_v47 }
0x30aa   : > { %11801 = vmatpush3.msra.mxu0 %v10569_v47 }
0x30ab   : > { %11802 = vmatprep.subr.mxu0 %v10568_v52 }
0x30ac   : > { %11803 = vmatpush3.msra.mxu0 %v10568_v52  ;;  %v10577_v52 = vld [vmem:[%s12919_s12 + $0x3] ss:$0 sm:$0xff] }
0x30ad   : > { %11804 = vmatprep.subr.mxu0 %v10567_v16 }
0x30ae   : > { %11805 = vmatpush3.msra.mxu0 %v10567_v16 }
0x30af   : > { %11820 = vmatprep.subr.mxu0 %v10602_v50 }
0x3167   : > { %v11797_v26 = vpop.f32.mrf.mxu0 }
0x3168   : > { %6631 = vrot.lane.b32.xlu1 %v11797_v26, %s14262_s22  ;;  %v10578_v26 = vld [vmem:[%s12925_s15 + $0x3] ss:$0 sm:$0xff] }
0x3169   : > { %v6602_v53 = vpop.f32.mrf.mxu0 }
0x316a   : > { %6629 = vrot.lane.b32.xlu0 %v6602_v53, %s14262_s22 }
0x31da   : > { %v6632_v5 = vpop.permute.xlu1 %6631 }
0x31db   : > { %v6640_v59 = vsel %vm2176_vm3, %v6638_v56, %v6632_v5  ;;  %v10590_v5 = vld [vmem:[%s12900_s7 + $0x198] sm:$0xff]  ;;  %v10584_v56 = vld [vmem:[%s12941_s1 + $0x3] ss:$0 sm:$0xff] }
0x31dc   : > { %v6630_v10 = vpop.permute.xlu0 %6629 }
0x31dd   : > { %v6639_v30 = vsel %vm2176_vm3, %v6637_v57, %v6630_v10  ;;  %v10588_v57 = vld [vmem:[%s12900_s7 + $0x188] sm:$0xff]  ;;  %v10587_v10 = vld [vmem:[%s12900_s7 + $0x180] sm:$0xff] }
0x31de   : > { %11806 = vmatprep.mubr.msk.f32.mxu0 %vm1008_vm0, %v6639_v30 }
0x31df   : > { %11807 = vmatmul.mubr.msk.f32.vlgmr.msra.gmra.mxu0 %vm1008_vm0, %v6640_v59 }
0x31e0   : > { %11821 = vmatpush3.msra.mxu0 %v10602_v50  ;;  %v10612_v50 = vld [vmem:[%s12593_s3 + $0x98] sm:$0xff] }
0x31e1   : > { %11822 = vmatprep.subr.mxu0 %v10601_v36  ;;  %11855 = vmatprep.subr.mxu1 %v10612_v50 }
0x31e2   : > { %11823 = vmatpush3.msra.mxu0 %v10601_v36  ;;  %v10611_v36 = vld [vmem:[%s12593_s3 + $0x90] sm:$0xff] }
0x31e3   : > { %11824 = vmatprep.subr.mxu0 %v10600_v29 }
0x31e4   : > { %11825 = vmatpush3.msra.mxu0 %v10600_v29  ;;  %v10610_v29 = vld [vmem:[%s12593_s3 + $0x88] sm:$0xff] }
0x31e5   : > { %11826 = vmatprep.subr.mxu0 %v10599_v17 }
0x31e6   : > { %11827 = vmatpush3.msra.mxu0 %v10599_v17  ;;  %v10609_v17 = vld [vmem:[%s12593_s3 + $0x80] sm:$0xff] }
0x31e7   : > { %11828 = vmatprep.subr.mxu0 %v10598_v37 }
0x31e8   : > { %11829 = vmatpush3.msra.mxu0 %v10598_v37  ;;  %v10620_v37 = vld [vmem:[%s12602_s0 + $0x98] sm:$0xff] }
0x31e9   : > { %11830 = vmatprep.subr.mxu0 %v10597_v62 }
0x31ea   : > { %11831 = vmatpush3.msra.mxu0 %v10597_v62 }
0x31eb   : > { %11832 = vmatprep.subr.mxu0 %v10596_v49 }
0x31ec   : > { %11833 = vmatpush3.msra.mxu0 %v10596_v49 }
0x31ed   : > { %11834 = vmatprep.subr.mxu0 %v10595_v44 }
0x31ee   : > { %11835 = vmatpush3.msra.mxu0 %v10595_v44 }
0x31ef   : > { %11836 = vmatprep.subr.mxu0 %v10594_v9 }
0x31f0   : > { %11837 = vmatpush3.msra.mxu0 %v10594_v9 }
0x31f1   : > { %11838 = vmatprep.subr.mxu0 %v10593_v3 }
0x31f2   : > { %11839 = vmatpush3.msra.mxu0 %v10593_v3 }
0x31f3   : > { %11840 = vmatprep.subr.mxu0 %v10592_v40 }
0x31f4   : > { %11841 = vmatpush3.msra.mxu0 %v10592_v40 }
0x31f5   : > { %11842 = vmatprep.subr.mxu0 %v10591_v41 }
0x31f6   : > { %11843 = vmatpush3.msra.mxu0 %v10591_v41 }
0x31f7   : > { %11844 = vmatprep.subr.mxu0 %v10590_v5 }
0x31f8   : > { %11845 = vmatpush3.msra.mxu0 %v10590_v5 }
0x31f9   : > { %11846 = vmatprep.subr.mxu0 %v10589_v54 }
0x31fa   : > { %11847 = vmatpush3.msra.mxu0 %v10589_v54  ;;  %v10614_v54 = vld [vmem:[%s12681_s26 + $0x4] ss:$0 sm:$0xff] }
0x31fb   : > { %11848 = vmatprep.subr.mxu0 %v10588_v57 }
0x31fc   : > { %11849 = vmatpush3.msra.mxu0 %v10588_v57 }
0x31fd   : > { %11850 = vmatprep.subr.mxu0 %v10587_v10 }
0x31fe   : > { %11851 = vmatpush3.msra.mxu0 %v10587_v10 }
0x329f   : > { %v11808_v46 = vpop.f32.mrf.mxu0 }
0x32a0   : > { %v6732_v38 = vadd.f32 %v11808_v46, %v10572_v61 }
0x32a1   : > { %v6726_v11 = vpop.f32.mrf.mxu0 }
0x32a2   : > { %v13631_v12 = vadd.f32 %v6732_v38, %v13435_v39  ;;  %v6727_v7 = vadd.f32 %v10572_v61, %v6726_v11 }
0x32a4   : > { %v13634_v60 = vadd.f32 %v6727_v7, %v13438_v4  ;;  %v6744_v13 = vsel %vm1008_vm0, %v13631_v12, 0.0  ;;  %v10604_v7 = vld [vmem:[%s12948_s14 + $0x3] ss:$0 sm:$0xff] }
0x32a5   : > { %6745 = vadd.xlane.f32.xlu1 %v6744_v13 }
0x32a6   : > { %v6741_v21 = vsel %vm1008_vm0, %v13634_v60, 0.0 }
0x32a7   : > { %6742 = vadd.xlane.f32.xlu0 %v6741_v21 }
0x332e   : > { %v6746_v51 = vpop.xlane.xlu1 %6745 }
0x332f   : > { %v6748_v22 = vmul.f32 0.03125, %v6746_v51 }
0x3330   : > { %v6743_v23 = vpop.xlane.xlu0 %6742 }
0x3331   : > { %v6747_v39 = vmul.f32 0.03125, %v6743_v23  ;;  %v13641_v24 = vsub.f32 %v13631_v12, %v6748_v22 }
0x3333   : > { %v13644_v4 = vsub.f32 %v13634_v60, %v6747_v39  ;;  %v6752_v6 = vmul.f32 %v13641_v24, %v13641_v24 }
0x3335   : > { %v6751_v25 = vmul.f32 %v13644_v4, %v13644_v4  ;;  %v6756_v33 = vsel %vm1008_vm0, %v6752_v6, 0.0 }
0x3337   : > { %v6753_v27 = vsel %vm1008_vm0, %v6751_v25, 0.0 }
0x3338   : > { %6754 = vadd.xlane.f32.xlu0 %v6753_v27 }
0x333c   : > { %6757 = vadd.xlane.f32.xlu0 %v6756_v33 }
0x33c1   : > { %v6755_v15 = vpop.xlane.xlu0 %6754 }
0x33c2   : > { %v6759_v43 = vmul.f32 0.03125, %v6755_v15 }
0x33c4   : > { %v6761_v20 = vadd.f32 1e-05, %v6759_v43 }
0x33c5   : > { %v6758_v42 = vpop.xlane.xlu0 %6757 }
0x33c6   : > { %12324 = vrsqrt.f32 %v6761_v20  ;;  %v6760_v28 = vmul.f32 0.03125, %v6758_v42  ;;  %v12419_v42 = vld [vmem:[%s12613_s23 + $0x4] ss:$0 sm:$0xff] }
0x33c8   : > { %v6762_v14 = vadd.f32 1e-05, %v6760_v28 }
0x33ca   : > { %12326 = vrsqrt.f32 %v6762_v14 }
0x33d3   : > { %v12325_v47 = vpop.eup %12324 }
0x33d4   : > { %v6765_v16 = vmul.f32 %v12325_v47, %v13644_v4  ;;  %v12420_v47 = vld [vmem:[%s12619_s28 + $0x4] ss:$0 sm:$0xff] }
0x33d6   : > { %v6773_v53 = vmul.f32 %v10577_v52, %v6765_v16 }
0x33d7   : > { %v12327_v55 = vpop.eup %12326 }
0x33d8   : > { %v6766_v2 = vmul.f32 %v12327_v55, %v13641_v24  ;;  %v6781_v58 = vadd.f32 %v10578_v26, %v6773_v53  ;;  %v10618_v53 = vld [vmem:[%s12602_s0 + $0x88] sm:$0xff]  ;;  %v10617_v55 = vld [vmem:[%s12602_s0 + $0x80] sm:$0xff] }
0x33da   : > { %v6774_v0 = vmul.f32 %v10577_v52, %v6766_v2  ;;  %11817 = vmatprep.mubr.msk.f32.mxu1 %vm1008_vm0, %v6781_v58  ;;  %v10628_v2 = vld [vmem:[%s12656_s5 + $0x98] sm:$0xff]  ;;  %v10627_v58 = vld [vmem:[%s12656_s5 + $0x90] sm:$0xff] }
0x33dc   : > { %v6782_v63 = vadd.f32 %v10578_v26, %v6774_v0  ;;  %v10619_v26 = vld [vmem:[%s12602_s0 + $0x90] sm:$0xff]  ;;  %v10626_v0 = vld [vmem:[%s12656_s5 + $0x88] sm:$0xff] }
0x33de   : > { %11818 = vmatmul.mubr.msk.f32.vlgmr.msra.gmra.mxu1 %vm1008_vm0, %v6782_v63  ;;  %v10625_v63 = vld [vmem:[%s12656_s5 + $0x80] sm:$0xff] }
0x33df   : > { %11856 = vmatpush3.msra.mxu1 %v10612_v50 }
0x33e0   : > { %11857 = vmatprep.subr.mxu1 %v10611_v36 }
0x33e1   : > { %11858 = vmatpush3.msra.mxu1 %v10611_v36 }
0x33e2   : > { %11859 = vmatprep.subr.mxu1 %v10610_v29 }
0x33e3   : > { %11860 = vmatpush3.msra.mxu1 %v10610_v29 }
0x33e4   : > { %11861 = vmatprep.subr.mxu1 %v10609_v17 }
0x33e5   : > { %11862 = vmatpush3.msra.mxu1 %v10609_v17 }
0x33e6   : > { %11866 = vmatprep.subr.mxu1 %v10620_v37 }
0x349e   : > { %v11819_v30 = vpop.f32.mrf.mxu1 }
0x349f   : > { %v6874_v59 = vadd.f32 %v11819_v30, %v10584_v56  ;;  %v10622_v30 = vld [vmem:[%s12688_s30 + $0x4] ss:$0 sm:$0xff] }
0x34a0   : > { %v6868_v61 = vpop.f32.mrf.mxu1 }
0x34a1   : > { %v6869_v46 = vadd.f32 %v10584_v56, %v6868_v61  ;;  %v6878_v11 = vmax.f32 %v6874_v59, 0.0 }
0x34a3   : > { %v6877_v38 = vmax.f32 %v6869_v46, 0.0 }
0x34a5   : > { %11852 = vmatprep.mubr.f32.mxu0 %v6877_v38  ;;  %v10630_v38 = vld [vmem:[%s12709_s27 + $0x4] ss:$0 sm:$0xff] }
0x34a6   : > { %11853 = vmatmul.mubr.f32.vlgmr.msra.gmra.mxu0 %v6878_v11 }
0x3566   : > { %v11854_v13 = vpop.f32.mrf.mxu0 }
0x3567   : > { %v6976_v21 = vadd.f32 %v11854_v13, %v10604_v7 }
0x3568   : > { %v6970_v51 = vpop.f32.mrf.mxu0 }
0x3569   : > { %v13681_v22 = vadd.f32 %v6976_v21, %v13631_v12  ;;  %v6971_v23 = vadd.f32 %v10604_v7, %v6970_v51 }
0x356b   : > { %v13684_v39 = vadd.f32 %v6971_v23, %v13634_v60  ;;  %v6988_v24 = vsel %vm1008_vm0, %v13681_v22, 0.0 }
0x356c   : > { %6989 = vadd.xlane.f32.xlu1 %v6988_v24 }
0x356d   : > { %v6985_v4 = vsel %vm1008_vm0, %v13684_v39, 0.0 }
0x356e   : > { %6986 = vadd.xlane.f32.xlu0 %v6985_v4 }
0x35f5   : > { %v6990_v25 = vpop.xlane.xlu1 %6989 }
0x35f6   : > { %v6992_v27 = vmul.f32 0.03125, %v6990_v25 }
0x35f7   : > { %v6987_v6 = vpop.xlane.xlu0 %6986 }
0x35f8   : > { %v6994_v12 = vsub.f32 %v13681_v22, %v6992_v27  ;;  %v6991_v33 = vmul.f32 0.03125, %v6987_v6 }
0x35fa   : > { %v6993_v60 = vsub.f32 %v13684_v39, %v6991_v33  ;;  %v6996_v34 = vmul.f32 %v6994_v12, %v6994_v12 }
0x35fc   : > { %v7000_v35 = vsel %vm1008_vm0, %v6996_v34, 0.0  ;;  %v6995_v45 = vmul.f32 %v6993_v60, %v6993_v60 }
0x35fd   : > { %7001 = vadd.xlane.f32.xlu1 %v7000_v35 }
0x35fe   : > { %v6997_v48 = vsel %vm1008_vm0, %v6995_v45, 0.0 }
0x35ff   : > { %6998 = vadd.xlane.f32.xlu0 %v6997_v48 }
0x3686   : > { %v7002_v62 = vpop.xlane.xlu1 %7001 }
0x3687   : > { %v7004_v49 = vmul.f32 0.03125, %v7002_v62 }
0x3688   : > { %v6999_v44 = vpop.xlane.xlu0 %6998 }
0x3689   : > { %v7006_v9 = vadd.f32 1e-05, %v7004_v49  ;;  %v7003_v3 = vmul.f32 0.03125, %v6999_v44 }
0x368b   : > { %12328 = vrsqrt.f32 %v7006_v9  ;;  %v7005_v40 = vadd.f32 1e-05, %v7003_v3 }
0x368d   : > { %12330 = vrsqrt.f32 %v7005_v40 }
0x3698   : > { %v12329_v41 = vpop.eup %12328 }
0x3699   : > { %v7010_v15 = vmul.f32 %v12329_v41, %v6994_v12 }
0x369a   : > { %v12331_v43 = vpop.eup %12330 }
0x369b   : > { %v7009_v20 = vmul.f32 %v12331_v43, %v6993_v60  ;;  %v7018_v28 = vmul.f32 %v12419_v42, %v7010_v15 }
0x369d   : > { %v7017_v14 = vmul.f32 %v12419_v42, %v7009_v20  ;;  %v7026_v52 = vadd.f32 %v12420_v47, %v7018_v28 }
0x369f   : > { %v7025_v16 = vadd.f32 %v12420_v47, %v7017_v14 }
0x36a1   : > { %11863 = vmatprep.mubr.msk.f32.mxu1 %vm1008_vm0, %v7025_v16 }
0x36a2   : > { %11864 = vmatmul.mubr.msk.f32.vlgmr.msra.gmra.mxu1 %vm1008_vm0, %v7026_v52 }
0x36a3   : > { %11867 = vmatpush3.msra.mxu1 %v10620_v37  ;;  %11874 = vmatprep.mubr.msk.f32.mxu1 %vm1008_vm0, %v12646_v18 }
0x36a4   : > { %11868 = vmatprep.subr.mxu1 %v10619_v26 }
0x36a5   : > { %11869 = vmatpush3.msra.mxu1 %v10619_v26 }
0x36a6   : > { %11870 = vmatprep.subr.mxu1 %v10618_v53 }
0x36a7   : > { %11871 = vmatpush3.msra.mxu1 %v10618_v53 }
0x36a8   : > { %11872 = vmatprep.subr.mxu1 %v10617_v55 }
0x36a9   : > { %11873 = vmatpush3.msra.mxu1 %v10617_v55 }
0x36aa   : > { %11875 = vmatmul.mubr.msk.f32.vlgmr.msra.gmra.mxu1 %vm1008_vm0, %v12666_v31  ;;  %11877 = vmatprep.subr.mxu1 %v10628_v2 }
0x36ab   : > { %11878 = vmatpush3.msra.mxu1 %v10628_v2  ;;  %11885 = vmatprep.mubr.msk.f32.mxu1 %vm1008_vm0, %v12646_v18 }
0x36ac   : > { %11879 = vmatprep.subr.mxu1 %v10627_v58 }
0x36ad   : > { %11880 = vmatpush3.msra.mxu1 %v10627_v58 }
0x36ae   : > { %11881 = vmatprep.subr.mxu1 %v10626_v0 }
0x36af   : > { %11882 = vmatpush3.msra.mxu1 %v10626_v0 }
0x36b0   : > { %11883 = vmatprep.subr.mxu1 %v10625_v63 }
0x36b1   : > { %11884 = vmatpush3.msra.mxu1 %v10625_v63 }
0x36b2   : > { %11886 = vmatmul.mubr.msk.f32.vlgmr.msra.gmra.mxu1 %vm1008_vm0, %v12666_v31 }
0x3762   : > { %v11865_v5 = vpop.f32.mrf.mxu1 }
0x3763   : > { %v7122_v46 = vadd.f32 %v11865_v5, %v10614_v54 }
0x3764   : > { %v7116_v57 = vpop.f32.mrf.mxu1 }
0x3765   : > { %v7117_v10 = vadd.f32 %v10614_v54, %v7116_v57  ;;  %v13741_v11 = vmul.f32 0.35355338, %v7122_v46 }
0x3767   : > { %v13719_v56 = vmul.f32 0.35355338, %v7117_v10 }
0x3769   : > { %7499 = vrot.lane.b32.xlu1 %v13719_v56, %s14249_s6  ;;  %11892 = vmatprep.mubr.msk.f32.mxu1 %vm1354_vm1, %v13719_v56 }
0x376a   : > { %v11876_v18 = vpop.f32.mrf.mxu1 }
0x376b   : > { %v13726_v59 = vadd.f32 %v11876_v18, %v10622_v30 }
0x376c   : > { %v7212_v61 = vpop.f32.mrf.mxu1 }
0x376d   : > { %v13728_v31 = vadd.f32 %v10622_v30, %v7212_v61  ;;  %7505 = vrot.lane.b32.xlu0 %v13726_v59, %s14249_s6  ;;  %11888 = vmatprep.subr.msk.mxu1 %vm1354_vm1, %v13726_v59 }
0x376e   : > { %11889 = vmatpush3.xpose.msk.msra.mxu1 %vm1354_vm1, %v13726_v59 }
0x376f   : > { %11890 = vmatprep.subr.msk.mxu1 %vm1354_vm1, %v13728_v31  ;;  %7503 = vrot.lane.b32.xlu1 %v13728_v31, %s14249_s6 }
0x3772   : > { %v11887_v7 = vpop.f32.mrf.mxu1  ;;  %11891 = vmatpush3.xpose.msk.msra.mxu1 %vm1354_vm1, %v13728_v31 }
0x3773   : > { %v13745_v13 = vadd.f32 %v11887_v7, %v10630_v38  ;;  %7501 = vrot.lane.b32.xlu1 %v13741_v11, %s14249_s6 }
0x3774   : > { %v7300_v21 = vpop.f32.mrf.mxu1 }
0x3775   : > { %v13749_v51 = vadd.f32 %v10630_v38, %v7300_v21  ;;  %11893 = vmatmul.mubr.msk.f32.vlgmr.msra.gmra.mxu1 %vm1354_vm1, %v13741_v11  ;;  %11895 = vmatprep.subr.mxu0 %v13745_v13 }
0x3776   : > { %11896 = vmatpush3.msra.mxu0 %v13745_v13 }
0x3777   : > { %11897 = vmatprep.subr.mxu0 %v13749_v51 }
0x3778   : > { %11898 = vmatpush3.msra.mxu0 %v13749_v51 }
0x37db   : > { %v7500_v23 = vpop.permute.xlu1 %7499 }
0x37dc   : > { %11906 = vmatprep.mubr.msk.f32.mxu1 %vm1354_vm1, %v7500_v23 }
0x37df   : > { %v7506_v24 = vpop.permute.xlu0 %7505 }
0x37e0   : > { %11902 = vmatprep.subr.msk.mxu1 %vm1354_vm1, %v7506_v24 }
0x37e1   : > { %v7504_v4 = vpop.permute.xlu1 %7503  ;;  %11903 = vmatpush3.xpose.msk.msra.mxu1 %vm1354_vm1, %v7506_v24 }
0x37e2   : > { %11904 = vmatprep.subr.msk.mxu1 %vm1354_vm1, %v7504_v4 }
0x37e5   : > { %11905 = vmatpush3.xpose.msk.msra.mxu1 %vm1354_vm1, %v7504_v4  ;;  %v7502_v25 = vpop.permute.xlu1 %7501 }
0x37e8   : > { %11907 = vmatmul.mubr.msk.f32.vlgmr.msra.gmra.mxu1 %vm1354_vm1, %v7502_v25 }
0x3835   : > { %v11894_v27 = vpop.f32.mrf.mxu1 }
0x3836   : > { %v7393_v6 = vadd.f32 %v13520_v8, %v11894_v27 }
0x3837   : > { %v7387_v12 = vpop.f32.mrf.mxu1 }
0x3838   : > { %v7388_v33 = vadd.f32 %v13526_v1, %v7387_v12  ;;  %v7399_v60 = vsel %vm1442_vm2, %v7393_v6, -inf }
0x3839   : > { %7400 = vmax.xlane.f32.xlu1 %v7399_v60  ;;  %v13814_v60 = vld [vmem:[%s14248_s24] sm:$0xff] }
0x383a   : > { %v7396_v34 = vsel %vm1442_vm2, %v7388_v33, -inf }
0x383b   : > { %7397 = vmax.xlane.f32.xlu0 %v7396_v34 }
0x38a8   : > { %v11908_v35 = vpop.f32.mrf.mxu1 }
0x38a9   : > { %v7587_v50 = vadd.f32 %v13520_v8, %v11908_v35 }
0x38aa   : > { %v7581_v45 = vpop.f32.mrf.mxu1 }
0x38ab   : > { %v7582_v48 = vadd.f32 %v13526_v1, %v7581_v45  ;;  %v7593_v29 = vsel %vm1442_vm2, %v7587_v50, -inf }
0x38ad   : > { %v7590_v36 = vsel %vm1442_vm2, %v7582_v48, -inf }
0x38ae   : > { %7591 = vmax.xlane.f32.xlu0 %v7590_v36 }
0x38b2   : > { %7594 = vmax.xlane.f32.xlu0 %v7593_v29 }
0x38c2   : > { %v7401_v17 = vpop.xlane.xlu1 %7400 }
0x38c3   : > { %v7403_v37 = vsub.f32 %v7393_v6, %v7401_v17  ;;  %v13808_v6 = vld [vmem:[%s14248_s24 + $0x8] sm:$0xff] }
0x38c4   : > { %v7398_v62 = vpop.xlane.xlu0 %7397 }
0x38c5   : > { %v7406_v49 = vmul.f32 1.442695, %v7403_v37  ;;  %v7402_v44 = vsub.f32 %v7388_v33, %v7398_v62 }
0x38c7   : > { %12332 = vpow2.f32 %v7406_v49  ;;  %v7404_v9 = vmul.f32 1.442695, %v7402_v44 }
0x38c9   : > { %12334 = vpow2.f32 %v7404_v9 }
0x38d4   : > { %v12333_v3 = vpop.eup %12332 }
0x38d5   : > { %v7411_v40 = vsel %vm1442_vm2, %v12333_v3, 0.0 }
0x38d6   : > { %v12335_v1 = vpop.eup %12334  ;;  %7412 = vadd.xlane.f32.xlu1 %v7411_v40 }
0x38d7   : > { %v7408_v8 = vsel %vm1442_vm2, %v12335_v1, 0.0 }
0x38d8   : > { %7409 = vadd.xlane.f32.xlu0 %v7408_v8 }
0x3937   : > { %v7592_v41 = vpop.xlane.xlu0 %7591 }
0x3938   : > { %v7596_v15 = vsub.f32 %v7582_v48, %v7592_v41 }
0x393a   : > { %v7598_v43 = vmul.f32 1.442695, %v7596_v15 }
0x393b   : > { %v7595_v20 = vpop.xlane.xlu0 %7594 }
0x393c   : > { %12336 = vpow2.f32 %v7598_v43  ;;  %v7597_v42 = vsub.f32 %v7587_v50, %v7595_v20 }
0x393e   : > { %v7600_v28 = vmul.f32 1.442695, %v7597_v42 }
0x3940   : > { %12338 = vpow2.f32 %v7600_v28 }
0x3949   : > { %v12337_v14 = vpop.eup %12336 }
0x394a   : > { %v7602_v47 = vsel %vm1442_vm2, %v12337_v14, 0.0 }
0x394b   : > { %7603 = vadd.xlane.f32.xlu0 %v7602_v47 }
0x394d   : > { %v12339_v52 = vpop.eup %12338 }
0x394e   : > { %v7605_v16 = vsel %vm1442_vm2, %v12339_v52, 0.0 }
0x394f   : > { %7606 = vadd.xlane.f32.xlu1 %v7605_v16 }
0x395f   : > { %v7413_v26 = vpop.xlane.xlu1 %7412 }
0x3960   : > { %7614 = vrot.lane.b32.xlu1 %v13749_v51, %s14249_s6  ;;  %12340 = vrcp.f32 %v7413_v26 }
0x3961   : > { %7616 = vrot.lane.b32.xlu0 %v13745_v13, %s14249_s6  ;;  %v7410_v53 = vpop.xlane.xlu0 %7409 }
0x3962   : > { %12342 = vrcp.f32 %v7410_v53 }
0x3964   : > { %7707 = vrot.lane.b32.xlu1 %v13726_v59, %s14258_s13 }
0x3965   : > { %7701 = vrot.lane.b32.xlu0 %v13719_v56, %s14258_s13 }
0x3968   : > { %7705 = vrot.lane.b32.xlu1 %v13728_v31, %s14258_s13 }
0x396c   : > { %7703 = vrot.lane.b32.xlu1 %v13741_v11, %s14258_s13 }
0x396d   : > { %v12341_v55 = vpop.eup %12340 }
0x396e   : > { %v7417_v0 = vmul.f32 %v12341_v55, %v12333_v3 }
0x396f   : > { %v12343_v2 = vpop.eup %12342 }
0x3970   : > { %v7416_v58 = vmul.f32 %v12343_v2, %v12335_v1 }
0x3972   : > { %11899 = vmatprep.mubr.msk.f32.mxu0 %vm1442_vm2, %v7416_v58 }
0x3973   : > { %11900 = vmatmul.mubr.msk.f32.vlgmr.msra.gmra.mxu0 %vm1442_vm2, %v7417_v0 }
0x39d4   : > { %v7604_v63 = vpop.xlane.xlu0 %7603 }
0x39d5   : > { %12344 = vrcp.f32 %v7604_v63 }
0x39d8   : > { %v7607_v5 = vpop.xlane.xlu1 %7606  ;;  %v7617_v54 = vpop.permute.xlu0 %7616 }
0x39d9   : > { %12346 = vrcp.f32 %v7607_v5  ;;  %11909 = vmatprep.subr.mxu0 %v7617_v54 }
0x39da   : > { %11910 = vmatpush3.msra.mxu0 %v7617_v54 }
0x39dc   : > { %v7615_v57 = vpop.permute.xlu1 %7614  ;;  %v7702_v38 = vpop.permute.xlu0 %7701 }
0x39dd   : > { %11911 = vmatprep.subr.mxu0 %v7615_v57 }
0x39de   : > { %11912 = vmatpush3.msra.mxu0 %v7615_v57 }
0x39e0   : > { %v7708_v10 = vpop.permute.xlu1 %7707 }
0x39e1   : > { %11916 = vmatprep.subr.msk.mxu0 %vm1354_vm1, %v7708_v10 }
0x39e2   : > { %v12345_v30 = vpop.eup %12344 }
0x39e3   : > { %v7610_v18 = vmul.f32 %v12345_v30, %v12337_v14 }
0x39e4   : > { %v7706_v7 = vpop.permute.xlu1 %7705 }
0x39e5   : > { %11913 = vmatprep.mubr.msk.f32.mxu0 %vm1442_vm2, %v7610_v18 }
0x39e6   : > { %v12347_v61 = vpop.eup %12346 }
0x39e7   : > { %v7611_v46 = vmul.f32 %v12347_v61, %v12339_v52 }
0x39e8   : > { %v7704_v21 = vpop.permute.xlu1 %7703 }
0x39e9   : > { %11914 = vmatmul.mubr.msk.f32.vlgmr.msra.gmra.mxu0 %vm1442_vm2, %v7611_v46 }
0x39ea   : > { %11917 = vmatpush3.xpose.msk.msra.mxu0 %vm1354_vm1, %v7708_v10  ;;  %11920 = vmatprep.mubr.msk.f32.mxu0 %vm1354_vm1, %v7702_v38 }
0x39eb   : > { %11918 = vmatprep.subr.msk.mxu0 %vm1354_vm1, %v7706_v7 }
0x39ee   : > { %11919 = vmatpush3.xpose.msk.msra.mxu0 %vm1354_vm1, %v7706_v7 }
0x39f1   : > { %11921 = vmatmul.mubr.msk.f32.vlgmr.msra.gmra.mxu0 %vm1354_vm1, %v7704_v21 }
0x3a33   : > { %v13797_v23 = vpop.f32.mrf.mxu0 }
0x3a35   : > { %v13799_v24 = vpop.f32.mrf.mxu0 }
0x3aa9   : > { %v13801_v4 = vpop.f32.mrf.mxu0 }
0x3aab   : > { %v13803_v25 = vpop.f32.mrf.mxu0 }
0x3ab1   : > { %v11922_v27 = vpop.f32.mrf.mxu0 }
0x3ab2   : > { %v7789_v12 = vadd.f32 %v13808_v6, %v11922_v27  ;;  %v10658_v27 = vld [vmem:[%s12840_s29 + $0x88] sm:$0xff] }
0x3ab3   : > { %v7783_v33 = vpop.f32.mrf.mxu0 }
0x3ab4   : > { %v7784_v34 = vadd.f32 %v13814_v60, %v7783_v33  ;;  %v7795_v35 = vsel %vm1442_vm2, %v7789_v12, -inf }
0x3ab5   : > { %7796 = vmax.xlane.f32.xlu1 %v7795_v35 }
0x3ab6   : > { %v7792_v45 = vsel %vm1442_vm2, %v7784_v34, -inf }
0x3ab7   : > { %7793 = vmax.xlane.f32.xlu0 %v7792_v45 }
0x3ac6   : > { %7814 = vrot.lane.b32.xlu1 %v13749_v51, %s14258_s13 }
0x3aca   : > { %7907 = vrot.lane.b32.xlu1 %v13726_v59, %s14259_s4 }
0x3ace   : > { %7905 = vrot.lane.b32.xlu1 %v13728_v31, %s14259_s4 }
0x3ad2   : > { %7903 = vrot.lane.b32.xlu1 %v13741_v11, %s14259_s4 }
0x3b3e   : > { %v7797_v48 = vpop.xlane.xlu1 %7796 }
0x3b3f   : > { %v7799_v50 = vsub.f32 %v7789_v12, %v7797_v48  ;;  %v10657_v12 = vld [vmem:[%s12840_s29 + $0x80] sm:$0xff] }
0x3b40   : > { %v7794_v36 = vpop.xlane.xlu0 %7793 }
0x3b41   : > { %v7802_v29 = vmul.f32 1.442695, %v7799_v50  ;;  %v7798_v17 = vsub.f32 %v7784_v34, %v7794_v36 }
0x3b42   : > { %v7815_v9 = vpop.permute.xlu1 %7814 }
0x3b43   : > { %12348 = vpow2.f32 %v7802_v29  ;;  %v7800_v37 = vmul.f32 1.442695, %v7798_v17 }
0x3b45   : > { %12350 = vpow2.f32 %v7800_v37 }
0x3b46   : > { %v7908_v40 = vpop.permute.xlu1 %7907 }
0x3b4a   : > { %v7906_v43 = vpop.permute.xlu1 %7905 }
0x3b4e   : > { %v7904_v20 = vpop.permute.xlu1 %7903 }
0x3b50   : > { %v12349_v62 = vpop.eup %12348 }
0x3b51   : > { %v7807_v49 = vsel %vm1442_vm2, %v12349_v62, 0.0 }
0x3b52   : > { %v12351_v44 = vpop.eup %12350  ;;  %7808 = vadd.xlane.f32.xlu0 %v7807_v49 }
0x3b53   : > { %v7804_v59 = vsel %vm1442_vm2, %v12351_v44, 0.0 }
0x3b56   : > { %7805 = vadd.xlane.f32.xlu0 %v7804_v59 }
0x3b6c   : > { %7816 = vrot.lane.b32.xlu0 %v13745_v13, %s14258_s13 }
0x3b70   : > { %7901 = vrot.lane.b32.xlu0 %v13719_v56, %s14259_s4 }
0x3bdb   : > { %v7809_v31 = vpop.xlane.xlu0 %7808 }
0x3bdc   : > { %12352 = vrcp.f32 %v7809_v31  ;;  %v10662_v31 = vld [vmem:[%s12862_s8 + $0x4] ss:$0 sm:$0xff] }
0x3bdf   : > { %v7806_v11 = vpop.xlane.xlu0 %7805 }
0x3be0   : > { %12354 = vrcp.f32 %v7806_v11 }
0x3be3   : > { %v7817_v3 = vpop.permute.xlu0 %7816 }
0x3be4   : > { %11923 = vmatprep.subr.mxu1 %v7817_v3 }
0x3be5   : > { %11924 = vmatpush3.msra.mxu1 %v7817_v3 }
0x3be6   : > { %11925 = vmatprep.subr.mxu1 %v7815_v9 }
0x3be7   : > { %11926 = vmatpush3.msra.mxu1 %v7815_v9  ;;  %v7902_v56 = vpop.permute.xlu0 %7901 }
0x3be8   : > { %11930 = vmatprep.subr.msk.mxu1 %vm1354_vm1, %v7908_v40 }
0x3be9   : > { %v12353_v1 = vpop.eup %12352 }
0x3bea   : > { %v7813_v15 = vmul.f32 %v12353_v1, %v12349_v62 }
0x3bed   : > { %v12355_v8 = vpop.eup %12354 }
0x3bee   : > { %v7812_v41 = vmul.f32 %v12355_v8, %v12351_v44 }
0x3bf0   : > { %11927 = vmatprep.mubr.msk.f32.mxu1 %vm1442_vm2, %v7812_v41 }
0x3bf1   : > { %11928 = vmatmul.mubr.msk.f32.vlgmr.msra.gmra.mxu1 %vm1442_vm2, %v7813_v15 }
0x3bf2   : > { %11931 = vmatpush3.xpose.msk.msra.mxu1 %vm1354_vm1, %v7908_v40  ;;  %11934 = vmatprep.mubr.msk.f32.mxu1 %vm1354_vm1, %v7902_v56 }
0x3bf3   : > { %11932 = vmatprep.subr.msk.mxu1 %vm1354_vm1, %v7906_v43 }
0x3bf6   : > { %11933 = vmatpush3.xpose.msk.msra.mxu1 %vm1354_vm1, %v7906_v43 }
0x3bf9   : > { %11935 = vmatmul.mubr.msk.f32.vlgmr.msra.gmra.mxu1 %vm1354_vm1, %v7904_v20 }
0x3cb1   : > { %v11929_v42 = vpop.f32.mrf.mxu1 }
0x3cb3   : > { %v7892_v28 = vpop.f32.mrf.mxu1 }
0x3cb9   : > { %v11936_v14 = vpop.f32.mrf.mxu1 }
0x3cba   : > { %v7989_v47 = vadd.f32 %v13808_v6, %v11936_v14 }
0x3cbb   : > { %v7983_v52 = vpop.f32.mrf.mxu1 }
0x3cbc   : > { %v7984_v16 = vadd.f32 %v13814_v60, %v7983_v52  ;;  %v7995_v26 = vsel %vm1442_vm2, %v7989_v47, -inf  ;;  %v10671_v52 = vld [vmem:[%s12891_s9 + $0x90] sm:$0xff] }
0x3cbd   : > { %7996 = vmax.xlane.f32.xlu1 %v7995_v26  ;;  %v10669_v26 = vld [vmem:[%s12891_s9 + $0x80] sm:$0xff] }
0x3cbe   : > { %v7992_v53 = vsel %vm1442_vm2, %v7984_v16, -inf }
0x3cbf   : > { %7993 = vmax.xlane.f32.xlu0 %v7992_v53  ;;  %v10692_v53 = vld [vmem:[%s12900_s7 + $0x278] sm:$0xff] }
0x3cce   : > { %8014 = vrot.lane.b32.xlu1 %v13749_v51, %s14259_s4 }
0x3cd2   : > { %8103 = vrot.lane.b32.xlu1 %v13803_v25, %s14260_s10  ;;  %v10659_v25 = vld [vmem:[%s12840_s29 + $0x90] sm:$0xff] }
0x3cd6   : > { %8105 = vrot.lane.b32.xlu1 %v13801_v4, %s14260_s10  ;;  %v10660_v4 = vld [vmem:[%s12840_s29 + $0x98] sm:$0xff] }
0x3cda   : > { %8113 = vrot.lane.b32.xlu1 %v11929_v42, %s14261_s11 }
0x3d46   : > { %v7997_v55 = vpop.xlane.xlu1 %7996 }
0x3d47   : > { %v7999_v2 = vsub.f32 %v7989_v47, %v7997_v55  ;;  %v10672_v47 = vld [vmem:[%s12891_s9 + $0x98] sm:$0xff]  ;;  %v10691_v55 = vld [vmem:[%s12900_s7 + $0x270] sm:$0xff] }
0x3d48   : > { %v7994_v58 = vpop.xlane.xlu0 %7993  ;;  %11955 = vmatprep.subr.mxu1 %v10672_v47 }
0x3d49   : > { %v8002_v0 = vmul.f32 1.442695, %v7999_v2  ;;  %v7998_v63 = vsub.f32 %v7984_v16, %v7994_v58  ;;  %11956 = vmatpush3.msra.mxu1 %v10672_v47  ;;  %v10670_v16 = vld [vmem:[%s12891_s9 + $0x88] sm:$0xff]  ;;  %v10689_v58 = vld [vmem:[%s12900_s7 + $0x260] sm:$0xff] }
0x3d4a   : > { %v8015_v46 = vpop.permute.xlu1 %8014  ;;  %11957 = vmatprep.subr.mxu1 %v10671_v52  ;;  %v10690_v2 = vld [vmem:[%s12900_s7 + $0x268] sm:$0xff] }
0x3d4b   : > { %12356 = vpow2.f32 %v8002_v0  ;;  %v8000_v5 = vmul.f32 1.442695, %v7998_v63  ;;  %11958 = vmatpush3.msra.mxu1 %v10671_v52  ;;  %v10688_v0 = vld [vmem:[%s12900_s7 + $0x258] sm:$0xff]  ;;  %v10687_v63 = vld [vmem:[%s12900_s7 + $0x250] sm:$0xff] }
0x3d4c   : > { %11959 = vmatprep.subr.mxu1 %v10670_v16 }
0x3d4d   : > { %12358 = vpow2.f32 %v8000_v5  ;;  %11960 = vmatpush3.msra.mxu1 %v10670_v16  ;;  %v10686_v5 = vld [vmem:[%s12900_s7 + $0x248] sm:$0xff]  ;;  %v10702_v16 = vld [vmem:[%s12593_s3 + $0xb8] sm:$0xff] }
0x3d4e   : > { %v8104_v35 = vpop.permute.xlu1 %8103  ;;  %11961 = vmatprep.subr.mxu1 %v10669_v26 }
0x3d4f   : > { %v8125_v36 = vsel %vm1354_vm1, %v13799_v24, %v8104_v35  ;;  %11962 = vmatpush3.msra.mxu1 %v10669_v26  ;;  %v10701_v26 = vld [vmem:[%s12593_s3 + $0xb0] sm:$0xff] }
0x3d50   : > { %12001 = vmatprep.subr.mxu1 %v10702_v16 }
0x3d52   : > { %v8106_v45 = vpop.permute.xlu1 %8105 }
0x3d53   : > { %v8126_v17 = vsel %vm1354_vm1, %v13797_v23, %v8106_v45 }
0x3d56   : > { %v8114_v48 = vpop.permute.xlu1 %8113 }
0x3d57   : > { %v8128_v49 = vsel %vm1442_vm2, %v8126_v17, %v8114_v48  ;;  %v10677_v17 = vld [vmem:[%s12900_s7 + $0x200] sm:$0xff] }
0x3d58   : > { %v12357_v54 = vpop.eup %12356 }
0x3d59   : > { %v8007_v57 = vsel %vm1442_vm2, %v12357_v54, 0.0 }
0x3d5a   : > { %v12359_v51 = vpop.eup %12358  ;;  %8008 = vadd.xlane.f32.xlu0 %v8007_v57  ;;  %v10684_v57 = vld [vmem:[%s12900_s7 + $0x238] sm:$0xff] }
0x3d5b   : > { %v8004_v10 = vsel %vm1442_vm2, %v12359_v51, 0.0 }
0x3d5e   : > { %8005 = vadd.xlane.f32.xlu0 %v8004_v10  ;;  %v10682_v10 = vld [vmem:[%s12900_s7 + $0x228] sm:$0xff] }
0x3d74   : > { %8016 = vrot.lane.b32.xlu0 %v13745_v13, %s14259_s4 }
0x3d78   : > { %8111 = vrot.lane.b32.xlu0 %v7892_v28, %s14261_s11 }
0x3de3   : > { %v8009_v30 = vpop.xlane.xlu0 %8008 }
0x3de4   : > { %12360 = vrcp.f32 %v8009_v30  ;;  %v10681_v30 = vld [vmem:[%s12900_s7 + $0x220] sm:$0xff] }
0x3de7   : > { %v8006_v18 = vpop.xlane.xlu0 %8005 }
0x3de8   : > { %12362 = vrcp.f32 %v8006_v18 }
0x3deb   : > { %v8017_v61 = vpop.permute.xlu0 %8016 }
0x3dec   : > { %11937 = vmatprep.subr.mxu0 %v8017_v61 }
0x3ded   : > { %11938 = vmatpush3.msra.mxu0 %v8017_v61 }
0x3dee   : > { %11939 = vmatprep.subr.mxu0 %v8015_v46 }
0x3def   : > { %11940 = vmatpush3.msra.mxu0 %v8015_v46  ;;  %v8112_v50 = vpop.permute.xlu0 %8111 }
0x3df0   : > { %11944 = vmatprep.subr.mxu0 %v10660_v4  ;;  %v8127_v37 = vsel %vm1442_vm2, %v8125_v36, %v8112_v50  ;;  %v10680_v50 = vld [vmem:[%s12900_s7 + $0x218] sm:$0xff]  ;;  %v10679_v36 = vld [vmem:[%s12900_s7 + $0x210] sm:$0xff] }
0x3df1   : > { %v12361_v38 = vpop.eup %12360 }
0x3df2   : > { %v8013_v13 = vmul.f32 %v12361_v38, %v12357_v54  ;;  %v10685_v54 = vld [vmem:[%s12900_s7 + $0x240] sm:$0xff] }
0x3df5   : > { %v12363_v7 = vpop.eup %12362 }
0x3df6   : > { %v8012_v21 = vmul.f32 %v12363_v7, %v12359_v51  ;;  %v10683_v51 = vld [vmem:[%s12900_s7 + $0x230] sm:$0xff] }
0x3df8   : > { %11941 = vmatprep.mubr.msk.f32.mxu0 %vm1442_vm2, %v8012_v21 }
0x3df9   : > { %11942 = vmatmul.mubr.msk.f32.vlgmr.msra.gmra.mxu0 %vm1442_vm2, %v8013_v13 }
0x3dfa   : > { %11945 = vmatpush3.msra.mxu0 %v10660_v4  ;;  %v10667_v4 = vld [vmem:[%s12919_s12 + $0x4] ss:$0 sm:$0xff] }
0x3dfb   : > { %11946 = vmatprep.subr.mxu0 %v10659_v25 }
0x3dfc   : > { %11947 = vmatpush3.msra.mxu0 %v10659_v25 }
0x3dfd   : > { %11948 = vmatprep.subr.mxu0 %v10658_v27 }
0x3dfe   : > { %11949 = vmatpush3.msra.mxu0 %v10658_v27  ;;  %v10668_v27 = vld [vmem:[%s12925_s15 + $0x4] ss:$0 sm:$0xff] }
0x3dff   : > { %11950 = vmatprep.subr.mxu0 %v10657_v12 }
0x3e00   : > { %11951 = vmatpush3.msra.mxu0 %v10657_v12 }
0x3e01   : > { %11966 = vmatprep.subr.mxu0 %v10692_v53 }
0x3eb9   : > { %v11943_v33 = vpop.f32.mrf.mxu0 }
0x3eba   : > { %8121 = vrot.lane.b32.xlu1 %v11943_v33, %s14262_s22 }
0x3ebb   : > { %v8092_v34 = vpop.f32.mrf.mxu0 }
0x3ebc   : > { %8119 = vrot.lane.b32.xlu0 %v8092_v34, %s14262_s22 }
0x3f2c   : > { %v8122_v29 = vpop.permute.xlu1 %8121 }
0x3f2d   : > { %v8130_v59 = vsel %vm2176_vm3, %v8128_v49, %v8122_v29  ;;  %v10678_v29 = vld [vmem:[%s12900_s7 + $0x208] sm:$0xff] }
0x3f2e   : > { %v8120_v62 = vpop.permute.xlu0 %8119 }
0x3f2f   : > { %v8129_v44 = vsel %vm2176_vm3, %v8127_v37, %v8120_v62  ;;  %v10674_v37 = vld [vmem:[%s12941_s1 + $0x4] ss:$0 sm:$0xff] }
0x3f30   : > { %11952 = vmatprep.mubr.msk.f32.mxu0 %vm1008_vm0, %v8129_v44 }
0x3f31   : > { %11953 = vmatmul.mubr.msk.f32.vlgmr.msra.gmra.mxu0 %vm1008_vm0, %v8130_v59 }
0x3f32   : > { %11967 = vmatpush3.msra.mxu0 %v10692_v53  ;;  %v10700_v53 = vld [vmem:[%s12593_s3 + $0xa8] sm:$0xff] }
0x3f33   : > { %11968 = vmatprep.subr.mxu0 %v10691_v55 }
0x3f34   : > { %11969 = vmatpush3.msra.mxu0 %v10691_v55  ;;  %v10699_v55 = vld [vmem:[%s12593_s3 + $0xa0] sm:$0xff] }
0x3f35   : > { %11970 = vmatprep.subr.mxu0 %v10690_v2 }
0x3f36   : > { %11971 = vmatpush3.msra.mxu0 %v10690_v2  ;;  %v10710_v2 = vld [vmem:[%s12602_s0 + $0xb8] sm:$0xff] }
0x3f37   : > { %11972 = vmatprep.subr.mxu0 %v10689_v58 }
0x3f38   : > { %11973 = vmatpush3.msra.mxu0 %v10689_v58 }
0x3f39   : > { %11974 = vmatprep.subr.mxu0 %v10688_v0 }
0x3f3a   : > { %11975 = vmatpush3.msra.mxu0 %v10688_v0 }
0x3f3b   : > { %11976 = vmatprep.subr.mxu0 %v10687_v63 }
0x3f3c   : > { %11977 = vmatpush3.msra.mxu0 %v10687_v63 }
0x3f3d   : > { %11978 = vmatprep.subr.mxu0 %v10686_v5 }
0x3f3e   : > { %11979 = vmatpush3.msra.mxu0 %v10686_v5 }
0x3f3f   : > { %11980 = vmatprep.subr.mxu0 %v10685_v54 }
0x3f40   : > { %11981 = vmatpush3.msra.mxu0 %v10685_v54 }
0x3f41   : > { %11982 = vmatprep.subr.mxu0 %v10684_v57 }
0x3f42   : > { %11983 = vmatpush3.msra.mxu0 %v10684_v57 }
0x3f43   : > { %11984 = vmatprep.subr.mxu0 %v10683_v51 }
0x3f44   : > { %11985 = vmatpush3.msra.mxu0 %v10683_v51 }
0x3f45   : > { %11986 = vmatprep.subr.mxu0 %v10682_v10 }
0x3f46   : > { %11987 = vmatpush3.msra.mxu0 %v10682_v10 }
0x3f47   : > { %11988 = vmatprep.subr.mxu0 %v10681_v30 }
0x3f48   : > { %11989 = vmatpush3.msra.mxu0 %v10681_v30 }
0x3f49   : > { %11990 = vmatprep.subr.mxu0 %v10680_v50 }
0x3f4a   : > { %11991 = vmatpush3.msra.mxu0 %v10680_v50 }
0x3f4b   : > { %11992 = vmatprep.subr.mxu0 %v10679_v36 }
0x3f4c   : > { %11993 = vmatpush3.msra.mxu0 %v10679_v36 }
0x3f4d   : > { %11994 = vmatprep.subr.mxu0 %v10678_v29 }
0x3f4e   : > { %11995 = vmatpush3.msra.mxu0 %v10678_v29 }
0x3f4f   : > { %11996 = vmatprep.subr.mxu0 %v10677_v17 }
0x3f50   : > { %11997 = vmatpush3.msra.mxu0 %v10677_v17  ;;  %v10712_v17 = vld [vmem:[%s12688_s30 + $0x5] ss:$0 sm:$0xff] }
0x3ff1   : > { %v11954_v11 = vpop.f32.mrf.mxu0 }
0x3ff2   : > { %v8222_v24 = vadd.f32 %v11954_v11, %v10662_v31 }
0x3ff3   : > { %v8216_v9 = vpop.f32.mrf.mxu0 }
0x3ff4   : > { %v13877_v3 = vadd.f32 %v8222_v24, %v13681_v22  ;;  %v8217_v23 = vadd.f32 %v10662_v31, %v8216_v9  ;;  %v10694_v24 = vld [vmem:[%s12948_s14 + $0x4] ss:$0 sm:$0xff] }
0x3ff6   : > { %v13880_v40 = vadd.f32 %v8217_v23, %v13684_v39  ;;  %v8234_v1 = vsel %vm1008_vm0, %v13877_v3, 0.0 }
0x3ff7   : > { %8235 = vadd.xlane.f32.xlu1 %v8234_v1 }
0x3ff8   : > { %v8231_v8 = vsel %vm1008_vm0, %v13880_v40, 0.0 }
0x3ff9   : > { %8232 = vadd.xlane.f32.xlu0 %v8231_v8 }
0x4080   : > { %v8236_v41 = vpop.xlane.xlu1 %8235 }
0x4081   : > { %v8238_v15 = vmul.f32 0.03125, %v8236_v41 }
0x4082   : > { %v8233_v56 = vpop.xlane.xlu0 %8232 }
0x4083   : > { %v8237_v22 = vmul.f32 0.03125, %v8233_v56  ;;  %v13887_v43 = vsub.f32 %v13877_v3, %v8238_v15 }
0x4085   : > { %v13890_v39 = vsub.f32 %v13880_v40, %v8237_v22  ;;  %v8242_v28 = vmul.f32 %v13887_v43, %v13887_v43 }
0x4087   : > { %v8241_v20 = vmul.f32 %v13890_v39, %v13890_v39  ;;  %v8246_v14 = vsel %vm1008_vm0, %v8242_v28, 0.0 }
0x4089   : > { %v8243_v42 = vsel %vm1008_vm0, %v8241_v20, 0.0 }
0x408a   : > { %8244 = vadd.xlane.f32.xlu0 %v8243_v42 }
0x408e   : > { %8247 = vadd.xlane.f32.xlu0 %v8246_v14 }
0x4113   : > { %v8245_v18 = vpop.xlane.xlu0 %8244 }
0x4114   : > { %v8249_v61 = vmul.f32 0.03125, %v8245_v18 }
0x4116   : > { %v8251_v46 = vadd.f32 1e-05, %v8249_v61  ;;  %v12423_v61 = vld [vmem:[%s12613_s23 + $0x5] ss:$0 sm:$0xff]  ;;  %s10290_s23 = sshll.u32 %s14265_s25, 1 }
0x4117   : > { %v8248_v38 = vpop.xlane.xlu0 %8247 }
0x4118   : > { %12364 = vrsqrt.f32 %v8251_v46  ;;  %v8250_v7 = vmul.f32 0.03125, %v8248_v38 }
0x411a   : > { %v8252_v21 = vadd.f32 1e-05, %v8250_v7  ;;  %v12424_v7 = vld [vmem:[%s12619_s28 + $0x5] ss:$0 sm:$0xff] }
0x411c   : > { %12366 = vrsqrt.f32 %v8252_v21 }
0x4125   : > { %v12365_v13 = vpop.eup %12364 }
0x4126   : > { %v8255_v25 = vmul.f32 %v12365_v13, %v13890_v39 }
0x4128   : > { %v8263_v12 = vmul.f32 %v10667_v4, %v8255_v25  ;;  %v10708_v25 = vld [vmem:[%s12602_s0 + $0xa8] sm:$0xff] }
0x4129   : > { %v12367_v33 = vpop.eup %12366 }
0x412a   : > { %v8256_v34 = vmul.f32 %v12367_v33, %v13887_v43  ;;  %v8271_v35 = vadd.f32 %v10668_v27, %v8263_v12  ;;  %v10718_v12 = vld [vmem:[%s12656_s5 + $0xb8] sm:$0xff]  ;;  %v10717_v33 = vld [vmem:[%s12656_s5 + $0xb0] sm:$0xff] }
0x412c   : > { %v8264_v45 = vmul.f32 %v10667_v4, %v8256_v34  ;;  %11963 = vmatprep.mubr.msk.f32.mxu1 %vm1008_vm0, %v8271_v35  ;;  %v10709_v4 = vld [vmem:[%s12602_s0 + $0xb0] sm:$0xff]  ;;  %v10716_v34 = vld [vmem:[%s12656_s5 + $0xa8] sm:$0xff]  ;;  %v10715_v35 = vld [vmem:[%s12656_s5 + $0xa0] sm:$0xff] }
0x412e   : > { %v8272_v48 = vadd.f32 %v10668_v27, %v8264_v45  ;;  %v10707_v27 = vld [vmem:[%s12602_s0 + $0xa0] sm:$0xff]  ;;  %s995_s0 = scalar_lea.vmem %s14202_s20, %s14265_s25 }
0x4130   : > { %11964 = vmatmul.mubr.msk.f32.vlgmr.msra.gmra.mxu1 %vm1008_vm0, %v8272_v48  ;;  %v10704_v48 = vld [vmem:[%s12681_s26 + $0x5] ss:$0 sm:$0xff]  ;;  %s999_s26 = scalar_lea.vmem %s14203_s21, %s10290_s23 }
0x4131   : > { %12002 = vmatpush3.msra.mxu1 %v10702_v16 }
0x4132   : > { %12003 = vmatprep.subr.mxu1 %v10701_v26 }
0x4133   : > { %12004 = vmatpush3.msra.mxu1 %v10701_v26 }
0x4134   : > { %12005 = vmatprep.subr.mxu1 %v10700_v53 }
0x4135   : > { %12006 = vmatpush3.msra.mxu1 %v10700_v53 }
0x4136   : > { %12007 = vmatprep.subr.mxu1 %v10699_v55 }
0x4137   : > { %12008 = vmatpush3.msra.mxu1 %v10699_v55 }
0x4138   : > { %12012 = vmatprep.subr.mxu1 %v10710_v2 }
0x41f0   : > { %v11965_v62 = vpop.f32.mrf.mxu1 }
0x41f1   : > { %v8364_v49 = vadd.f32 %v11965_v62, %v10674_v37 }
0x41f2   : > { %v8358_v44 = vpop.f32.mrf.mxu1 }
0x41f3   : > { %v8359_v59 = vadd.f32 %v10674_v37, %v8358_v44  ;;  %v8368_v11 = vmax.f32 %v8364_v49, 0.0  ;;  %v10720_v44 = vld [vmem:[%s12709_s27 + $0x5] ss:$0 sm:$0xff] }
0x41f5   : > { %v8367_v31 = vmax.f32 %v8359_v59, 0.0 }
0x41f7   : > { %11998 = vmatprep.mubr.f32.mxu0 %v8367_v31 }
0x41f8   : > { %11999 = vmatmul.mubr.f32.vlgmr.msra.gmra.mxu0 %v8368_v11 }
0x42b8   : > { %v12000_v9 = vpop.f32.mrf.mxu0 }
0x42b9   : > { %v8466_v23 = vadd.f32 %v12000_v9, %v10694_v24 }
0x42ba   : > { %v8460_v1 = vpop.f32.mrf.mxu0 }
0x42bb   : > { %v13927_v8 = vadd.f32 %v8466_v23, %v13877_v3  ;;  %v8461_v41 = vadd.f32 %v10694_v24, %v8460_v1 }
0x42bd   : > { %v13930_v15 = vadd.f32 %v8461_v41, %v13880_v40  ;;  %v8478_v56 = vsel %vm1008_vm0, %v13927_v8, 0.0 }
0x42be   : > { %8479 = vadd.xlane.f32.xlu1 %v8478_v56 }
0x42bf   : > { %v8475_v22 = vsel %vm1008_vm0, %v13930_v15, 0.0 }
0x42c0   : > { %8476 = vadd.xlane.f32.xlu0 %v8475_v22 }
0x4347   : > { %v8480_v43 = vpop.xlane.xlu1 %8479 }
0x4348   : > { %v8482_v39 = vmul.f32 0.03125, %v8480_v43 }
0x4349   : > { %v8477_v20 = vpop.xlane.xlu0 %8476 }
0x434a   : > { %v8484_v3 = vsub.f32 %v13927_v8, %v8482_v39  ;;  %v8481_v42 = vmul.f32 0.03125, %v8477_v20 }
0x434c   : > { %v8483_v40 = vsub.f32 %v13930_v15, %v8481_v42  ;;  %v8486_v28 = vmul.f32 %v8484_v3, %v8484_v3 }
0x434e   : > { %v8490_v14 = vsel %vm1008_vm0, %v8486_v28, 0.0  ;;  %v8485_v47 = vmul.f32 %v8483_v40, %v8483_v40 }
0x434f   : > { %8491 = vadd.xlane.f32.xlu1 %v8490_v14 }
0x4350   : > { %v8487_v52 = vsel %vm1008_vm0, %v8485_v47, 0.0 }
0x4351   : > { %8488 = vadd.xlane.f32.xlu0 %v8487_v52 }
0x43d8   : > { %v8492_v58 = vpop.xlane.xlu1 %8491 }
0x43d9   : > { %v8494_v0 = vmul.f32 0.03125, %v8492_v58 }
0x43da   : > { %v8489_v63 = vpop.xlane.xlu0 %8488 }
0x43db   : > { %v8496_v5 = vadd.f32 1e-05, %v8494_v0  ;;  %v8493_v54 = vmul.f32 0.03125, %v8489_v63 }
0x43dd   : > { %12368 = vrsqrt.f32 %v8496_v5  ;;  %v8495_v57 = vadd.f32 1e-05, %v8493_v54 }
0x43df   : > { %12370 = vrsqrt.f32 %v8495_v57 }
0x43ea   : > { %v12369_v51 = vpop.eup %12368 }
0x43eb   : > { %v8500_v10 = vmul.f32 %v12369_v51, %v8484_v3 }
0x43ec   : > { %v12371_v30 = vpop.eup %12370 }
0x43ed   : > { %v8499_v18 = vmul.f32 %v12371_v30, %v8483_v40  ;;  %v8508_v46 = vmul.f32 %v12423_v61, %v8500_v10 }
0x43ef   : > { %v8507_v38 = vmul.f32 %v12423_v61, %v8499_v18  ;;  %v8516_v21 = vadd.f32 %v12424_v7, %v8508_v46 }
0x43f1   : > { %v8515_v13 = vadd.f32 %v12424_v7, %v8507_v38 }
0x43f3   : > { %12009 = vmatprep.mubr.msk.f32.mxu1 %vm1008_vm0, %v8515_v13 }
0x43f4   : > { %12010 = vmatmul.mubr.msk.f32.vlgmr.msra.gmra.mxu1 %vm1008_vm0, %v8516_v21 }
0x43f5   : > { %12013 = vmatpush3.msra.mxu1 %v10710_v2  ;;  %12020 = vmatprep.mubr.msk.f32.mxu1 %vm1008_vm0, %v12648_v19 }
0x43f6   : > { %12014 = vmatprep.subr.mxu1 %v10709_v4 }
0x43f7   : > { %12015 = vmatpush3.msra.mxu1 %v10709_v4 }
0x43f8   : > { %12016 = vmatprep.subr.mxu1 %v10708_v25 }
0x43f9   : > { %12017 = vmatpush3.msra.mxu1 %v10708_v25 }
0x43fa   : > { %12018 = vmatprep.subr.mxu1 %v10707_v27 }
0x43fb   : > { %12019 = vmatpush3.msra.mxu1 %v10707_v27 }
0x43fc   : > { %12021 = vmatmul.mubr.msk.f32.vlgmr.msra.gmra.mxu1 %vm1008_vm0, %v12668_v32  ;;  %12023 = vmatprep.subr.mxu1 %v10718_v12 }
0x43fd   : > { %12024 = vmatpush3.msra.mxu1 %v10718_v12  ;;  %12031 = vmatprep.mubr.msk.f32.mxu1 %vm1008_vm0, %v12648_v19 }
0x43fe   : > { %12025 = vmatprep.subr.mxu1 %v10717_v33 }
0x43ff   : > { %12026 = vmatpush3.msra.mxu1 %v10717_v33 }
0x4400   : > { %12027 = vmatprep.subr.mxu1 %v10716_v34 }
0x4401   : > { %12028 = vmatpush3.msra.mxu1 %v10716_v34 }
0x4402   : > { %12029 = vmatprep.subr.mxu1 %v10715_v35 }
0x4403   : > { %12030 = vmatpush3.msra.mxu1 %v10715_v35 }
0x4404   : > { %12032 = vmatmul.mubr.msk.f32.vlgmr.msra.gmra.mxu1 %vm1008_vm0, %v12668_v32 }
0x44b4   : > { %v12011_v45 = vpop.f32.mrf.mxu1 }
0x44b5   : > { %v8612_v49 = vadd.f32 %v12011_v45, %v10704_v48 }
0x44b6   : > { %v8606_v50 = vpop.f32.mrf.mxu1 }
0x44b7   : > { %v8607_v36 = vadd.f32 %v10704_v48, %v8606_v50  ;;  %v13987_v59 = vmul.f32 0.35355338, %v8612_v49 }
0x44b9   : > { %v13965_v29 = vmul.f32 0.35355338, %v8607_v36 }
0x44bb   : > { %8989 = vrot.lane.b32.xlu1 %v13965_v29, %s14249_s6  ;;  %12038 = vmatprep.mubr.msk.f32.mxu1 %vm1354_vm1, %v13965_v29 }
0x44bc   : > { %v12022_v19 = vpop.f32.mrf.mxu1 }
0x44bd   : > { %v13972_v37 = vadd.f32 %v12022_v19, %v10712_v17 }
0x44be   : > { %v8702_v62 = vpop.f32.mrf.mxu1 }
0x44bf   : > { %v13974_v32 = vadd.f32 %v10712_v17, %v8702_v62  ;;  %8995 = vrot.lane.b32.xlu0 %v13972_v37, %s14249_s6  ;;  %12034 = vmatprep.subr.msk.mxu1 %vm1354_vm1, %v13972_v37 }
0x44c0   : > { %12035 = vmatpush3.xpose.msk.msra.mxu1 %vm1354_vm1, %v13972_v37 }
0x44c1   : > { %12036 = vmatprep.subr.msk.mxu1 %vm1354_vm1, %v13974_v32  ;;  %8993 = vrot.lane.b32.xlu1 %v13974_v32, %s14249_s6 }
0x44c4   : > { %v12033_v31 = vpop.f32.mrf.mxu1  ;;  %12037 = vmatpush3.xpose.msk.msra.mxu1 %vm1354_vm1, %v13974_v32 }
0x44c5   : > { %v13991_v11 = vadd.f32 %v12033_v31, %v10720_v44  ;;  %8991 = vrot.lane.b32.xlu1 %v13987_v59, %s14249_s6 }
0x44c6   : > { %v8790_v24 = vpop.f32.mrf.mxu1 }
0x44c7   : > { %v13995_v9 = vadd.f32 %v10720_v44, %v8790_v24  ;;  %12039 = vmatmul.mubr.msk.f32.vlgmr.msra.gmra.mxu1 %vm1354_vm1, %v13987_v59  ;;  %12041 = vmatprep.subr.mxu0 %v13991_v11 }
0x44c8   : > { %12042 = vmatpush3.msra.mxu0 %v13991_v11 }
0x44c9   : > { %12043 = vmatprep.subr.mxu0 %v13995_v9 }
0x44ca   : > { %12044 = vmatpush3.msra.mxu0 %v13995_v9 }
0x452d   : > { %v8990_v23 = vpop.permute.xlu1 %8989 }
0x452e   : > { %12052 = vmatprep.mubr.msk.f32.mxu1 %vm1354_vm1, %v8990_v23 }
0x4531   : > { %v8996_v1 = vpop.permute.xlu0 %8995 }
0x4532   : > { %12048 = vmatprep.subr.msk.mxu1 %vm1354_vm1, %v8996_v1 }
0x4533   : > { %v8994_v41 = vpop.permute.xlu1 %8993  ;;  %12049 = vmatpush3.xpose.msk.msra.mxu1 %vm1354_vm1, %v8996_v1 }
0x4534   : > { %12050 = vmatprep.subr.msk.mxu1 %vm1354_vm1, %v8994_v41 }
0x4537   : > { %12051 = vmatpush3.xpose.msk.msra.mxu1 %vm1354_vm1, %v8994_v41  ;;  %v8992_v56 = vpop.permute.xlu1 %8991 }
0x453a   : > { %12053 = vmatmul.mubr.msk.f32.vlgmr.msra.gmra.mxu1 %vm1354_vm1, %v8992_v56 }
0x4587   : > { %v12040_v22 = vpop.f32.mrf.mxu1 }
0x4588   : > { %v8883_v43 = vadd.f32 %v13808_v6, %v12040_v22 }
0x4589   : > { %v8877_v39 = vpop.f32.mrf.mxu1 }
0x458a   : > { %v8878_v20 = vadd.f32 %v13814_v60, %v8877_v39  ;;  %v8889_v3 = vsel %vm1442_vm2, %v8883_v43, -inf }
0x458b   : > { %8890 = vmax.xlane.f32.xlu1 %v8889_v3 }
0x458c   : > { %v8886_v42 = vsel %vm1442_vm2, %v8878_v20, -inf }
0x458d   : > { %8887 = vmax.xlane.f32.xlu0 %v8886_v42 }
0x45fa   : > { %v12054_v40 = vpop.f32.mrf.mxu1 }
0x45fb   : > { %v9077_v47 = vadd.f32 %v13808_v6, %v12054_v40 }
0x45fc   : > { %v9071_v28 = vpop.f32.mrf.mxu1 }
0x45fd   : > { %v9072_v14 = vadd.f32 %v13814_v60, %v9071_v28  ;;  %v9083_v16 = vsel %vm1442_vm2, %v9077_v47, -inf }
0x45ff   : > { %v9080_v52 = vsel %vm1442_vm2, %v9072_v14, -inf }
0x4600   : > { %9081 = vmax.xlane.f32.xlu0 %v9080_v52 }
0x4604   : > { %9084 = vmax.xlane.f32.xlu0 %v9083_v16 }
0x4614   : > { %v8891_v26 = vpop.xlane.xlu1 %8890 }
0x4615   : > { %v8893_v53 = vsub.f32 %v8883_v43, %v8891_v26 }
0x4616   : > { %v8888_v55 = vpop.xlane.xlu0 %8887 }
0x4617   : > { %v8896_v2 = vmul.f32 1.442695, %v8893_v53  ;;  %v8892_v58 = vsub.f32 %v8878_v20, %v8888_v55 }
0x4619   : > { %12372 = vpow2.f32 %v8896_v2  ;;  %v8894_v0 = vmul.f32 1.442695, %v8892_v58 }
0x461b   : > { %12374 = vpow2.f32 %v8894_v0 }
0x4626   : > { %v12373_v63 = vpop.eup %12372 }
0x4627   : > { %v8901_v5 = vsel %vm1442_vm2, %v12373_v63, 0.0 }
0x4628   : > { %v12375_v54 = vpop.eup %12374  ;;  %8902 = vadd.xlane.f32.xlu1 %v8901_v5 }
0x4629   : > { %v8898_v57 = vsel %vm1442_vm2, %v12375_v54, 0.0 }
0x462a   : > { %8899 = vadd.xlane.f32.xlu0 %v8898_v57 }
0x4689   : > { %v9082_v51 = vpop.xlane.xlu0 %9081 }
0x468a   : > { %v9086_v10 = vsub.f32 %v9072_v14, %v9082_v51 }
0x468c   : > { %v9088_v30 = vmul.f32 1.442695, %v9086_v10 }
0x468d   : > { %v9085_v18 = vpop.xlane.xlu0 %9084 }
0x468e   : > { %12376 = vpow2.f32 %v9088_v30  ;;  %v9087_v61 = vsub.f32 %v9077_v47, %v9085_v18 }
0x4690   : > { %v9090_v46 = vmul.f32 1.442695, %v9087_v61 }
0x4692   : > { %12378 = vpow2.f32 %v9090_v46 }
0x469b   : > { %v12377_v38 = vpop.eup %12376 }
0x469c   : > { %v9092_v7 = vsel %vm1442_vm2, %v12377_v38, 0.0 }
0x469d   : > { %9093 = vadd.xlane.f32.xlu0 %v9092_v7 }
0x469f   : > { %v12379_v21 = vpop.eup %12378 }
0x46a0   : > { %v9095_v13 = vsel %vm1442_vm2, %v12379_v21, 0.0 }
0x46a1   : > { %9096 = vadd.xlane.f32.xlu1 %v9095_v13 }
0x46b1   : > { %v8903_v4 = vpop.xlane.xlu1 %8902 }
0x46b2   : > { %9104 = vrot.lane.b32.xlu1 %v13995_v9, %s14249_s6  ;;  %12380 = vrcp.f32 %v8903_v4 }
0x46b3   : > { %9106 = vrot.lane.b32.xlu0 %v13991_v11, %s14249_s6  ;;  %v8900_v25 = vpop.xlane.xlu0 %8899 }
0x46b4   : > { %12382 = vrcp.f32 %v8900_v25 }
0x46b6   : > { %9197 = vrot.lane.b32.xlu1 %v13972_v37, %s14258_s13 }
0x46b7   : > { %9191 = vrot.lane.b32.xlu0 %v13965_v29, %s14258_s13 }
0x46ba   : > { %9195 = vrot.lane.b32.xlu1 %v13974_v32, %s14258_s13 }
0x46be   : > { %9193 = vrot.lane.b32.xlu1 %v13987_v59, %s14258_s13 }
0x46bf   : > { %v12381_v27 = vpop.eup %12380 }
0x46c0   : > { %v8907_v34 = vmul.f32 %v12381_v27, %v12373_v63 }
0x46c1   : > { %v12383_v12 = vpop.eup %12382 }
0x46c2   : > { %v8906_v33 = vmul.f32 %v12383_v12, %v12375_v54 }
0x46c4   : > { %12045 = vmatprep.mubr.msk.f32.mxu0 %vm1442_vm2, %v8906_v33 }
0x46c5   : > { %12046 = vmatmul.mubr.msk.f32.vlgmr.msra.gmra.mxu0 %vm1442_vm2, %v8907_v34 }
0x4726   : > { %v9094_v35 = vpop.xlane.xlu0 %9093 }
0x4727   : > { %12384 = vrcp.f32 %v9094_v35 }
0x472a   : > { %v9097_v45 = vpop.xlane.xlu1 %9096  ;;  %v9107_v48 = vpop.permute.xlu0 %9106 }
0x472b   : > { %12386 = vrcp.f32 %v9097_v45  ;;  %12055 = vmatprep.subr.mxu0 %v9107_v48 }
0x472c   : > { %12056 = vmatpush3.msra.mxu0 %v9107_v48 }
0x472e   : > { %v9105_v50 = vpop.permute.xlu1 %9104  ;;  %v9192_v44 = vpop.permute.xlu0 %9191 }
0x472f   : > { %12057 = vmatprep.subr.mxu0 %v9105_v50 }
0x4730   : > { %12058 = vmatpush3.msra.mxu0 %v9105_v50 }
0x4732   : > { %v9198_v36 = vpop.permute.xlu1 %9197 }
0x4733   : > { %12062 = vmatprep.subr.msk.mxu0 %vm1354_vm1, %v9198_v36 }
0x4734   : > { %v12385_v17 = vpop.eup %12384 }
0x4735   : > { %v9100_v19 = vmul.f32 %v12385_v17, %v12377_v38 }
0x4736   : > { %v9196_v31 = vpop.permute.xlu1 %9195 }
0x4737   : > { %12059 = vmatprep.mubr.msk.f32.mxu0 %vm1442_vm2, %v9100_v19 }
0x4738   : > { %v12387_v62 = vpop.eup %12386 }
0x4739   : > { %v9101_v49 = vmul.f32 %v12387_v62, %v12379_v21 }
0x473a   : > { %v9194_v24 = vpop.permute.xlu1 %9193 }
0x473b   : > { %12060 = vmatmul.mubr.msk.f32.vlgmr.msra.gmra.mxu0 %vm1442_vm2, %v9101_v49  ;;  %v10750_v49 = vld [vmem:[%s12840_s29 + $0xb8] sm:$0xff] }
0x473c   : > { %12063 = vmatpush3.xpose.msk.msra.mxu0 %vm1354_vm1, %v9198_v36  ;;  %12066 = vmatprep.mubr.msk.f32.mxu0 %vm1354_vm1, %v9192_v44  ;;  %v10749_v44 = vld [vmem:[%s12840_s29 + $0xb0] sm:$0xff] }
0x473d   : > { %12064 = vmatprep.subr.msk.mxu0 %vm1354_vm1, %v9196_v31 }
0x4740   : > { %12065 = vmatpush3.xpose.msk.msra.mxu0 %vm1354_vm1, %v9196_v31  ;;  %v10748_v31 = vld [vmem:[%s12840_s29 + $0xa8] sm:$0xff] }
0x4743   : > { %12067 = vmatmul.mubr.msk.f32.vlgmr.msra.gmra.mxu0 %vm1354_vm1, %v9194_v24  ;;  %v10747_v24 = vld [vmem:[%s12840_s29 + $0xa0] sm:$0xff] }
0x4785   : > { %v14043_v23 = vpop.f32.mrf.mxu0 }
0x4787   : > { %v14045_v1 = vpop.f32.mrf.mxu0 }
0x47fb   : > { %v14047_v41 = vpop.f32.mrf.mxu0 }
0x47fd   : > { %v14049_v56 = vpop.f32.mrf.mxu0 }
0x4803   : > { %v12068_v22 = vpop.f32.mrf.mxu0 }
0x4804   : > { %v9279_v43 = vadd.f32 %v13808_v6, %v12068_v22 }
0x4805   : > { %v9273_v39 = vpop.f32.mrf.mxu0 }
0x4806   : > { %v9274_v20 = vadd.f32 %v13814_v60, %v9273_v39  ;;  %v9285_v3 = vsel %vm1442_vm2, %v9279_v43, -inf }
0x4807   : > { %9286 = vmax.xlane.f32.xlu1 %v9285_v3 }
0x4808   : > { %v9282_v42 = vsel %vm1442_vm2, %v9274_v20, -inf }
0x4809   : > { %9283 = vmax.xlane.f32.xlu0 %v9282_v42 }
0x4818   : > { %9304 = vrot.lane.b32.xlu1 %v13995_v9, %s14258_s13 }
0x481c   : > { %9397 = vrot.lane.b32.xlu1 %v13972_v37, %s14259_s4 }
0x4820   : > { %9395 = vrot.lane.b32.xlu1 %v13974_v32, %s14259_s4 }
0x4824   : > { %9393 = vrot.lane.b32.xlu1 %v13987_v59, %s14259_s4 }
0x4890   : > { %v9287_v40 = vpop.xlane.xlu1 %9286 }
0x4891   : > { %v9289_v28 = vsub.f32 %v9279_v43, %v9287_v40 }
0x4892   : > { %v9284_v14 = vpop.xlane.xlu0 %9283 }
0x4893   : > { %v9292_v47 = vmul.f32 1.442695, %v9289_v28  ;;  %v9288_v52 = vsub.f32 %v9274_v20, %v9284_v14 }
0x4894   : > { %v9305_v2 = vpop.permute.xlu1 %9304 }
0x4895   : > { %12388 = vpow2.f32 %v9292_v47  ;;  %v9290_v16 = vmul.f32 1.442695, %v9288_v52 }
0x4897   : > { %12390 = vpow2.f32 %v9290_v16 }
0x4898   : > { %v9398_v0 = vpop.permute.xlu1 %9397 }
0x489c   : > { %v9396_v51 = vpop.permute.xlu1 %9395 }
0x48a0   : > { %v9394_v10 = vpop.permute.xlu1 %9393 }
0x48a2   : > { %v12389_v26 = vpop.eup %12388 }
0x48a3   : > { %v9297_v53 = vsel %vm1442_vm2, %v12389_v26, 0.0 }
0x48a4   : > { %v12391_v55 = vpop.eup %12390  ;;  %9298 = vadd.xlane.f32.xlu0 %v9297_v53 }
0x48a5   : > { %v9294_v37 = vsel %vm1442_vm2, %v12391_v55, 0.0 }
0x48a8   : > { %9295 = vadd.xlane.f32.xlu0 %v9294_v37 }
0x48be   : > { %9306 = vrot.lane.b32.xlu0 %v13991_v11, %s14258_s13 }
0x48c2   : > { %9391 = vrot.lane.b32.xlu0 %v13965_v29, %s14259_s4 }
0x492d   : > { %v9299_v32 = vpop.xlane.xlu0 %9298 }
0x492e   : > { %12392 = vrcp.f32 %v9299_v32 }
0x4931   : > { %v9296_v59 = vpop.xlane.xlu0 %9295 }
0x4932   : > { %12394 = vrcp.f32 %v9296_v59 }
0x4935   : > { %v9307_v58 = vpop.permute.xlu0 %9306 }
0x4936   : > { %12069 = vmatprep.subr.mxu1 %v9307_v58 }
0x4937   : > { %12070 = vmatpush3.msra.mxu1 %v9307_v58 }
0x4938   : > { %12071 = vmatprep.subr.mxu1 %v9305_v2 }
0x4939   : > { %12072 = vmatpush3.msra.mxu1 %v9305_v2  ;;  %v9392_v29 = vpop.permute.xlu0 %9391 }
0x493a   : > { %12076 = vmatprep.subr.msk.mxu1 %vm1354_vm1, %v9398_v0 }
0x493b   : > { %v12393_v63 = vpop.eup %12392 }
0x493c   : > { %v9303_v57 = vmul.f32 %v12393_v63, %v12389_v26  ;;  %v10752_v26 = vld [vmem:[%s12862_s8 + $0x5] ss:$0 sm:$0xff] }
0x493f   : > { %v12395_v5 = vpop.eup %12394 }
0x4940   : > { %v9302_v54 = vmul.f32 %v12395_v5, %v12391_v55 }
0x4942   : > { %12073 = vmatprep.mubr.msk.f32.mxu1 %vm1442_vm2, %v9302_v54 }
0x4943   : > { %12074 = vmatmul.mubr.msk.f32.vlgmr.msra.gmra.mxu1 %vm1442_vm2, %v9303_v57 }
0x4944   : > { %12077 = vmatpush3.xpose.msk.msra.mxu1 %vm1354_vm1, %v9398_v0  ;;  %12080 = vmatprep.mubr.msk.f32.mxu1 %vm1354_vm1, %v9392_v29 }
0x4945   : > { %12078 = vmatprep.subr.msk.mxu1 %vm1354_vm1, %v9396_v51 }
0x4948   : > { %12079 = vmatpush3.xpose.msk.msra.mxu1 %vm1354_vm1, %v9396_v51 }
0x494b   : > { %12081 = vmatmul.mubr.msk.f32.vlgmr.msra.gmra.mxu1 %vm1354_vm1, %v9394_v10  ;;  %v10762_v10 = vld [vmem:[%s12891_s9 + $0xb8] sm:$0xff] }
0x494c   : > { %12101 = vmatprep.subr.mxu1 %v10762_v10 }
0x494d   : > { %12102 = vmatpush3.msra.mxu1 %v10762_v10 }
0x4a03   : > { %v12075_v30 = vpop.f32.mrf.mxu1 }
0x4a05   : > { %v9382_v18 = vpop.f32.mrf.mxu1 }
0x4a0b   : > { %v12082_v61 = vpop.f32.mrf.mxu1 }
0x4a0c   : > { %v9479_v46 = vadd.f32 %v13808_v6, %v12082_v61  ;;  %v10759_v61 = vld [vmem:[%s12891_s9 + $0xa0] sm:$0xff] }
0x4a0d   : > { %v9473_v38 = vpop.f32.mrf.mxu1 }
0x4a0e   : > { %v9474_v7 = vadd.f32 %v13814_v60, %v9473_v38  ;;  %v9485_v21 = vsel %vm1442_vm2, %v9479_v46, -inf  ;;  %v10781_v38 = vld [vmem:[%s12900_s7 + $0x2f0] sm:$0xff] }
0x4a0f   : > { %9486 = vmax.xlane.f32.xlu1 %v9485_v21  ;;  %v10779_v21 = vld [vmem:[%s12900_s7 + $0x2e0] sm:$0xff] }
0x4a10   : > { %v9482_v13 = vsel %vm1442_vm2, %v9474_v7, -inf }
0x4a11   : > { %9483 = vmax.xlane.f32.xlu0 %v9482_v13  ;;  %v10778_v13 = vld [vmem:[%s12900_s7 + $0x2d8] sm:$0xff] }
0x4a20   : > { %9504 = vrot.lane.b32.xlu1 %v13995_v9, %s14259_s4 }
0x4a24   : > { %9593 = vrot.lane.b32.xlu1 %v14049_v56, %s14260_s10 }
0x4a28   : > { %9595 = vrot.lane.b32.xlu1 %v14047_v41, %s14260_s10 }
0x4a2c   : > { %9603 = vrot.lane.b32.xlu1 %v12075_v30, %s14261_s11  ;;  %v10761_v30 = vld [vmem:[%s12891_s9 + $0xb0] sm:$0xff] }
0x4a2d   : > { %12103 = vmatprep.subr.mxu1 %v10761_v30 }
0x4a2e   : > { %12104 = vmatpush3.msra.mxu1 %v10761_v30  ;;  %v10786_v30 = vld [vmem:[%s995_s0] ss:$0 sm:$0xff] }
0x4a98   : > { %v9487_v6 = vpop.xlane.xlu1 %9486 }
0x4a99   : > { %v9489_v4 = vsub.f32 %v9479_v46, %v9487_v6  ;;  %v10782_v46 = vld [vmem:[%s12900_s7 + $0x2f8] sm:$0xff]  ;;  %v10777_v6 = vld [vmem:[%s12900_s7 + $0x2d0] sm:$0xff] }
0x4a9a   : > { %v9484_v60 = vpop.xlane.xlu0 %9483 }
0x4a9b   : > { %v9492_v25 = vmul.f32 1.442695, %v9489_v4  ;;  %v9488_v27 = vsub.f32 %v9474_v7, %v9484_v60  ;;  %v10780_v7 = vld [vmem:[%s12900_s7 + $0x2e8] sm:$0xff]  ;;  %v10775_v60 = vld [vmem:[%s12900_s7 + $0x2c0] sm:$0xff] }
0x4a9c   : > { %v9505_v36 = vpop.permute.xlu1 %9504  ;;  %v10776_v4 = vld [vmem:[%s12900_s7 + $0x2c8] sm:$0xff] }
0x4a9d   : > { %12396 = vpow2.f32 %v9492_v25  ;;  %v9490_v12 = vmul.f32 1.442695, %v9488_v27  ;;  %v10774_v25 = vld [vmem:[%s12900_s7 + $0x2b8] sm:$0xff]  ;;  %v10773_v27 = vld [vmem:[%s12900_s7 + $0x2b0] sm:$0xff] }
0x4a9f   : > { %12398 = vpow2.f32 %v9490_v12  ;;  %v10772_v12 = vld [vmem:[%s12900_s7 + $0x2a8] sm:$0xff] }
0x4aa0   : > { %v9594_v22 = vpop.permute.xlu1 %9593 }
0x4aa1   : > { %v9615_v3 = vsel %vm1354_vm1, %v14045_v1, %v9594_v22  ;;  %v10769_v22 = vld [vmem:[%s12900_s7 + $0x290] sm:$0xff] }
0x4aa4   : > { %v9596_v43 = vpop.permute.xlu1 %9595 }
0x4aa5   : > { %v9616_v40 = vsel %vm1354_vm1, %v14043_v23, %v9596_v43  ;;  %v10768_v43 = vld [vmem:[%s12900_s7 + $0x288] sm:$0xff] }
0x4aa8   : > { %v9604_v39 = vpop.permute.xlu1 %9603 }
0x4aa9   : > { %v9618_v47 = vsel %vm1442_vm2, %v9616_v40, %v9604_v39  ;;  %v10767_v39 = vld [vmem:[%s12900_s7 + $0x280] sm:$0xff] }
0x4aaa   : > { %v12397_v33 = vpop.eup %12396 }
0x4aab   : > { %v9497_v34 = vsel %vm1442_vm2, %v12397_v33, 0.0 }
0x4aac   : > { %v12399_v9 = vpop.eup %12398  ;;  %9498 = vadd.xlane.f32.xlu0 %v9497_v34 }
0x4aad   : > { %v9494_v35 = vsel %vm1442_vm2, %v12399_v9, 0.0 }
0x4ab0   : > { %9495 = vadd.xlane.f32.xlu0 %v9494_v35 }
0x4ac6   : > { %9506 = vrot.lane.b32.xlu0 %v13991_v11, %s14259_s4 }
0x4aca   : > { %9601 = vrot.lane.b32.xlu0 %v9382_v18, %s14261_s11  ;;  %v10760_v18 = vld [vmem:[%s12891_s9 + $0xa8] sm:$0xff] }
0x4acb   : > { %12105 = vmatprep.subr.mxu1 %v10760_v18 }
0x4acc   : > { %12106 = vmatpush3.msra.mxu1 %v10760_v18 }
0x4acd   : > { %12107 = vmatprep.subr.mxu1 %v10759_v61 }
0x4ace   : > { %12108 = vmatpush3.msra.mxu1 %v10759_v61 }
0x4b35   : > { %v9499_v45 = vpop.xlane.xlu0 %9498 }
0x4b36   : > { %12400 = vrcp.f32 %v9499_v45 }
0x4b39   : > { %v9496_v48 = vpop.xlane.xlu0 %9495 }
0x4b3a   : > { %12402 = vrcp.f32 %v9496_v48 }
0x4b3d   : > { %v9507_v50 = vpop.permute.xlu0 %9506 }
0x4b3e   : > { %12083 = vmatprep.subr.mxu0 %v9507_v50 }
0x4b3f   : > { %12084 = vmatpush3.msra.mxu0 %v9507_v50 }
0x4b40   : > { %12085 = vmatprep.subr.mxu0 %v9505_v36 }
0x4b41   : > { %12086 = vmatpush3.msra.mxu0 %v9505_v36  ;;  %v9602_v20 = vpop.permute.xlu0 %9601 }
0x4b42   : > { %12090 = vmatprep.subr.mxu0 %v10750_v49  ;;  %v9617_v28 = vsel %vm1442_vm2, %v9615_v3, %v9602_v20  ;;  %v10764_v20 = vld [vmem:[%s12941_s1 + $0x5] ss:$0 sm:$0xff] }
0x4b43   : > { %v12401_v17 = vpop.eup %12400 }
0x4b44   : > { %v9503_v11 = vmul.f32 %v12401_v17, %v12397_v33  ;;  %v10771_v33 = vld [vmem:[%s12900_s7 + $0x2a0] sm:$0xff] }
0x4b45   : > { %v10757_v17 = vld [vmem:[%s12919_s12 + $0x5] ss:$0 sm:$0xff] }
0x4b47   : > { %v12403_v19 = vpop.eup %12402 }
0x4b48   : > { %v9502_v62 = vmul.f32 %v12403_v19, %v12399_v9 }
0x4b4a   : > { %12087 = vmatprep.mubr.msk.f32.mxu0 %vm1442_vm2, %v9502_v62  ;;  %v10758_v62 = vld [vmem:[%s12925_s15 + $0x5] ss:$0 sm:$0xff] }
0x4b4b   : > { %12088 = vmatmul.mubr.msk.f32.vlgmr.msra.gmra.mxu0 %vm1442_vm2, %v9503_v11 }
0x4b4c   : > { %12091 = vmatpush3.msra.mxu0 %v10750_v49 }
0x4b4d   : > { %12092 = vmatprep.subr.mxu0 %v10749_v44 }
0x4b4e   : > { %12093 = vmatpush3.msra.mxu0 %v10749_v44 }
0x4b4f   : > { %12094 = vmatprep.subr.mxu0 %v10748_v31 }
0x4b50   : > { %12095 = vmatpush3.msra.mxu0 %v10748_v31 }
0x4b51   : > { %12096 = vmatprep.subr.mxu0 %v10747_v24 }
0x4b52   : > { %12097 = vmatpush3.msra.mxu0 %v10747_v24 }
0x4b53   : > { %12112 = vmatprep.subr.mxu0 %v10782_v46 }
0x4c0b   : > { %v12089_v41 = vpop.f32.mrf.mxu0 }
0x4c0c   : > { %9611 = vrot.lane.b32.xlu1 %v12089_v41, %s14262_s22 }
0x4c0d   : > { %v9582_v56 = vpop.f32.mrf.mxu0 }
0x4c0e   : > { %9609 = vrot.lane.b32.xlu0 %v9582_v56, %s14262_s22  ;;  %v10770_v56 = vld [vmem:[%s12900_s7 + $0x298] sm:$0xff] }
0x4c7e   : > { %v9612_v42 = vpop.permute.xlu1 %9611 }
0x4c7f   : > { %v9620_v16 = vsel %vm2176_vm3, %v9618_v47, %v9612_v42 }
0x4c80   : > { %v9610_v14 = vpop.permute.xlu0 %9609 }
0x4c81   : > { %v9619_v52 = vsel %vm2176_vm3, %v9617_v28, %v9610_v14 }
0x4c82   : > { %12098 = vmatprep.mubr.msk.f32.mxu0 %vm1008_vm0, %v9619_v52  ;;  %v10784_v52 = vld [vmem:[%s12948_s14 + $0x5] ss:$0 sm:$0xff]  ;;  %s992_s14 = scalar_lea.vmem %s14201_s19, %s14265_s25 }
0x4c83   : > { %12099 = vmatmul.mubr.msk.f32.vlgmr.msra.gmra.mxu0 %vm1008_vm0, %v9620_v16 }
0x4c84   : > { %12113 = vmatpush3.msra.mxu0 %v10782_v46 }
0x4c85   : > { %12114 = vmatprep.subr.mxu0 %v10781_v38 }
0x4c86   : > { %12115 = vmatpush3.msra.mxu0 %v10781_v38 }
0x4c87   : > { %12116 = vmatprep.subr.mxu0 %v10780_v7 }
0x4c88   : > { %12117 = vmatpush3.msra.mxu0 %v10780_v7 }
0x4c89   : > { %12118 = vmatprep.subr.mxu0 %v10779_v21 }
0x4c8a   : > { %12119 = vmatpush3.msra.mxu0 %v10779_v21 }
0x4c8b   : > { %12120 = vmatprep.subr.mxu0 %v10778_v13 }
0x4c8c   : > { %12121 = vmatpush3.msra.mxu0 %v10778_v13 }
0x4c8d   : > { %12122 = vmatprep.subr.mxu0 %v10777_v6 }
0x4c8e   : > { %12123 = vmatpush3.msra.mxu0 %v10777_v6 }
0x4c8f   : > { %12124 = vmatprep.subr.mxu0 %v10776_v4 }
0x4c90   : > { %12125 = vmatpush3.msra.mxu0 %v10776_v4 }
0x4c91   : > { %12126 = vmatprep.subr.mxu0 %v10775_v60 }
0x4c92   : > { %12127 = vmatpush3.msra.mxu0 %v10775_v60 }
0x4c93   : > { %12128 = vmatprep.subr.mxu0 %v10774_v25 }
0x4c94   : > { %12129 = vmatpush3.msra.mxu0 %v10774_v25 }
0x4c95   : > { %12130 = vmatprep.subr.mxu0 %v10773_v27 }
0x4c96   : > { %12131 = vmatpush3.msra.mxu0 %v10773_v27 }
0x4c97   : > { %12132 = vmatprep.subr.mxu0 %v10772_v12 }
0x4c98   : > { %12133 = vmatpush3.msra.mxu0 %v10772_v12 }
0x4c99   : > { %12134 = vmatprep.subr.mxu0 %v10771_v33 }
0x4c9a   : > { %12135 = vmatpush3.msra.mxu0 %v10771_v33 }
0x4c9b   : > { %12136 = vmatprep.subr.mxu0 %v10770_v56 }
0x4c9c   : > { %12137 = vmatpush3.msra.mxu0 %v10770_v56 }
0x4c9d   : > { %12138 = vmatprep.subr.mxu0 %v10769_v22 }
0x4c9e   : > { %12139 = vmatpush3.msra.mxu0 %v10769_v22 }
0x4c9f   : > { %12140 = vmatprep.subr.mxu0 %v10768_v43 }
0x4ca0   : > { %12141 = vmatpush3.msra.mxu0 %v10768_v43 }
0x4ca1   : > { %12142 = vmatprep.subr.mxu0 %v10767_v39 }
0x4ca2   : > { %12143 = vmatpush3.msra.mxu0 %v10767_v39 }
0x4d43   : > { %v12100_v53 = vpop.f32.mrf.mxu0 }
0x4d44   : > { %v9712_v1 = vadd.f32 %v12100_v53, %v10752_v26 }
0x4d45   : > { %v9706_v55 = vpop.f32.mrf.mxu0 }
0x4d46   : > { %v14113_v37 = vadd.f32 %v9712_v1, %v13927_v8  ;;  %v9707_v23 = vadd.f32 %v10752_v26, %v9706_v55 }
0x4d48   : > { %v14116_v32 = vadd.f32 %v9707_v23, %v13930_v15  ;;  %v9724_v59 = vsel %vm1008_vm0, %v14113_v37, 0.0 }
0x4d49   : > { %9725 = vadd.xlane.f32.xlu1 %v9724_v59 }
0x4d4a   : > { %v9721_v2 = vsel %vm1008_vm0, %v14116_v32, 0.0 }
0x4d4b   : > { %9722 = vadd.xlane.f32.xlu0 %v9721_v2 }
0x4dd2   : > { %v9726_v58 = vpop.xlane.xlu1 %9725 }
0x4dd3   : > { %v9728_v0 = vmul.f32 0.03125, %v9726_v58 }
0x4dd4   : > { %v9723_v63 = vpop.xlane.xlu0 %9722 }
0x4dd5   : > { %v9727_v8 = vmul.f32 0.03125, %v9723_v63  ;;  %v14123_v5 = vsub.f32 %v14113_v37, %v9728_v0 }
0x4dd7   : > { %v14126_v15 = vsub.f32 %v14116_v32, %v9727_v8  ;;  %v9732_v29 = vmul.f32 %v14123_v5, %v14123_v5 }
0x4dd9   : > { %v9731_v54 = vmul.f32 %v14126_v15, %v14126_v15  ;;  %v9736_v51 = vsel %vm1008_vm0, %v9732_v29, 0.0 }
0x4ddb   : > { %v9733_v57 = vsel %vm1008_vm0, %v9731_v54, 0.0 }
0x4ddc   : > { %9734 = vadd.xlane.f32.xlu0 %v9733_v57 }
0x4de0   : > { %9737 = vadd.xlane.f32.xlu0 %v9736_v51  ;;  %v10785_v51 = vld [vmem:[%s992_s14] ss:$0 sm:$0xff] }
0x4e65   : > { %v9735_v34 = vpop.xlane.xlu0 %9734 }
0x4e66   : > { %v9739_v9 = vmul.f32 0.03125, %v9735_v34 }
0x4e68   : > { %v9741_v35 = vadd.f32 1e-05, %v9739_v9 }
0x4e69   : > { %v9738_v45 = vpop.xlane.xlu0 %9737 }
0x4e6a   : > { %12404 = vrsqrt.f32 %v9741_v35  ;;  %v9740_v48 = vmul.f32 0.03125, %v9738_v45 }
0x4e6c   : > { %v9742_v50 = vadd.f32 1e-05, %v9740_v48 }
0x4e6e   : > { %12406 = vrsqrt.f32 %v9742_v50 }
0x4e77   : > { %v12405_v36 = vpop.eup %12404 }
0x4e78   : > { %v9745_v19 = vmul.f32 %v12405_v36, %v14126_v15 }
0x4e7a   : > { %v9753_v11 = vmul.f32 %v10757_v17, %v9745_v19 }
0x4e7b   : > { %v12407_v49 = vpop.eup %12406 }
0x4e7c   : > { %v9746_v44 = vmul.f32 %v12407_v49, %v14123_v5  ;;  %v9761_v31 = vadd.f32 %v10758_v62, %v9753_v11 }
0x4e7e   : > { %v9754_v24 = vmul.f32 %v10757_v17, %v9746_v44  ;;  %12109 = vmatprep.mubr.msk.f32.mxu1 %vm1008_vm0, %v9761_v31 }
0x4e80   : > { %v9762_v41 = vadd.f32 %v10758_v62, %v9754_v24 }
0x4e82   : > { %12110 = vmatmul.mubr.msk.f32.vlgmr.msra.gmra.mxu1 %vm1008_vm0, %v9762_v41 }
0x4f42   : > { %v12111_v3 = vpop.f32.mrf.mxu1 }
0x4f43   : > { %v9854_v42 = vadd.f32 %v12111_v3, %v10764_v20 }
0x4f44   : > { %v9848_v40 = vpop.f32.mrf.mxu1 }
0x4f45   : > { %v9849_v28 = vadd.f32 %v10764_v20, %v9848_v40  ;;  %v9858_v47 = vmax.f32 %v9854_v42, 0.0 }
0x4f47   : > { %v9857_v14 = vmax.f32 %v9849_v28, 0.0 }
0x4f49   : > { %12144 = vmatprep.mubr.f32.mxu0 %v9857_v14 }
0x4f4a   : > { %12145 = vmatmul.mubr.f32.vlgmr.msra.gmra.mxu0 %v9858_v47 }
0x500a   : > { %v12146_v16 = vpop.f32.mrf.mxu0 }
0x500b   : > { %v9956_v26 = vadd.f32 %v12146_v16, %v10784_v52 }
0x500c   : > { %v9950_v53 = vpop.f32.mrf.mxu0 }
0x500d   : > { %v9960_v1 = vadd.f32 %v9956_v26, %v14113_v37  ;;  %v9951_v55 = vadd.f32 %v10784_v52, %v9950_v53 }
0x500f   : > { %v9959_v23 = vadd.f32 %v9951_v55, %v14116_v32  ;;  %v9965_v59 = vrot.slane %v9960_v1, 6 }
0x5011   : > { %v9962_v2 = vrot.slane %v9959_v23, 7 }
0x5013   : > { %v9968_v58 = vsel %vm9967_vm4, %v9962_v2, %v9965_v59 }
0x5014   : > { %v9972_v0 = vsel %vm9971_vm5, %v9968_v58, 0.0 }
0x5015   : > { %9973 = vadd.xlane.f32.xlu0 %v9972_v0 }
0x509e   : > { %v9974_v63 = vpop.xlane.xlu0 %9973 }
0x509f   : > { %v9975_v8 = vmul.f32 0.03125, %v9974_v63 }
0x50a1   : > { %v9976_v5 = vsub.f32 %v9968_v58, %v9975_v8 }
0x50a3   : > { %v9977_v15 = vmul.f32 %v9976_v5, %v9976_v5 }
0x50a5   : > { %v9978_v37 = vsel %vm9971_vm5, %v9977_v15, 0.0 }
0x50a6   : > { %9979 = vadd.xlane.f32.xlu1 %v9978_v37 }
0x512f   : > { %v9980_v54 = vpop.xlane.xlu1 %9979 }
0x5130   : > { %v9981_v32 = vmul.f32 0.03125, %v9980_v54 }
0x5132   : > { %v9982_v57 = vadd.f32 1e-05, %v9981_v32 }
0x5134   : > { %12408 = vrsqrt.f32 %v9982_v57 }
0x5141   : > { %v12409_v29 = vpop.eup %12408 }
0x5142   : > { %v9984_v10 = vmul.f32 %v12409_v29, %v9976_v5 }
0x5144   : > { %v9991_v18 = vmul.f32 %v10785_v51, %v9984_v10 }
0x5146   : > { %v9998_v61 = vadd.f32 %v10786_v30, %v9991_v18 }
0x5148   : > { %9999 = vst.msk [vmem:[%s999_s26] sm:$0x3] %vm9971_vm5, %v9998_v61 }
0x5149 PF: > { %s14263_s30 = sld [smem:[#allocation2_spill]] }
0x514f   : > { %s31_s2 = sadd.s32 1, %s14263_s30  }
0x5150   : > { %p28_p5 = scmp.ge.s32.totalorder %s31_s2, 4  }
0x5152   :  { %30 = sbr.rel (!%p28_p5) target bundleno = 20 (0x14), region = 271 }

</bundles_post_ra>
